<compile_context>
chip_gen: v7x
topology: tpu7x:2x2x1
jax: 0.10.0
libtpu: 0.0.40
codegen_flags: <defaults>
</compile_context>

<pallas_src>
import functools
import math

import jax
import jax.numpy as jnp
from jax.experimental import pallas as pl
from jax.experimental.pallas import tpu as pltpu

LN_EPS = 1e-12            # BERT LayerNorm eps
NEG_INF = -1000000000.0   # matches (1 - masks) * -1000000000.0 in the PyTorch module
VMEM_LIMIT = 48 * 1024 * 1024   # safe on v5e/v6e (128 MiB) and v7x (64 MiB)


def _pick_tile(dim, desired, align):
    """Largest tile <= desired that is align-aligned and exactly divides dim,
    or the full dim when dim <= desired / no aligned divisor exists."""
    if dim <= desired:
        return dim
    t = (desired // align) * align
    while t >= align:
        if dim % t == 0:
            return t
        t -= align
    return dim


def _pick_chunk(T, max_chunk=16):
    """Timestep chunk for the LSTM grid: full T when small, else a multiple-of-8
    divisor of T (keeps the (8,128) block constraint), else fall back to full T."""
    if T <= max_chunk:
        return T
    c = (max_chunk // 8) * 8
    while c >= 8:
        if T % c == 0:
            return c
        c -= 8
    return T


# ---------------------------------------------------------------------------
# Kernel 1: fused 2-layer LSTM + (Linear(128->D) folded into W_q) -> emits Q.
# Grid = (T/Tt,) ("arbitrary": sequential).  hidden stays (B, Sq, D); the time
# axis is streamed via the index_map, a chunk of Tt timesteps is unrolled per
# grid step, and the recurrent h/c state lives in VMEM scratch.  Each cell is
# one MXU matmul against the prepacked [Wih; Whh] weight; the layer-input and
# previous hidden state are assembled in a VMEM scratch row ([x_t | h_prev]).
# ---------------------------------------------------------------------------
def _lstm_q_kernel(x_ref, w0_ref, b0_ref, w1_ref, b1_ref, wdq_ref, bdq_ref,
                   q_ref, xh0, xh1, c0, c1, *, chunk, in_dim, hid):
    @pl.when(pl.program_id(0) == 0)
    def _():
        xh0[...] = jnp.zeros_like(xh0)   # [:, in_dim:] holds h0 state
        xh1[...] = jnp.zeros_like(xh1)   # [:, hid:]    holds h1 state
        c0[...] = jnp.zeros_like(c0)
        c1[...] = jnp.zeros_like(c1)

    w0 = w0_ref[...]
    b0 = b0_ref[...]
    w1 = w1_ref[...]
    b1 = b1_ref[...]
    wdq = wdq_ref[...]
    bdq = bdq_ref[...]

    def gates_to_hc(g, c_prev):
        # PyTorch gate order (i, f, g, o); bias already = b_ih + b_hh.
        i_g = jax.nn.sigmoid(g[:, 0 * hid:1 * hid])
        f_g = jax.nn.sigmoid(g[:, 1 * hid:2 * hid])
        g_g = jnp.tanh(g[:, 2 * hid:3 * hid])
        o_g = jax.nn.sigmoid(g[:, 3 * hid:4 * hid])
        c_new = f_g * c_prev + i_g * g_g
        h_new = o_g * jnp.tanh(c_new)
        return h_new, c_new

    c0v = c0[...]
    c1v = c1[...]
    for tt in range(chunk):                               # unrolled, static indices
        xh0[:, :in_dim] = x_ref[:, tt, :]                 # layer-0 input
        g0 = jnp.dot(xh0[...], w0, preferred_element_type=jnp.float32) + b0
        h0n, c0v = gates_to_hc(g0, c0v)
        xh0[:, in_dim:] = h0n                             # h0 state for next step
        xh1[:, :hid] = h0n                                # layer-1 input
        g1 = jnp.dot(xh1[...], w1, preferred_element_type=jnp.float32) + b1
        h1n, c1v = gates_to_hc(g1, c1v)
        xh1[:, hid:] = h1n                                # h1 state for next step
        # Fused Linear(128->D) + W_q epilogue: emit Q directly.
        q_ref[:, tt, :] = (jnp.dot(h1n, wdq, preferred_element_type=jnp.float32)
                           + bdq).astype(q_ref.dtype)
    c0[...] = c0v
    c1[...] = c1v


def pallas_lstm_q(hidden, p):
    B, T, D = hidden.shape
    hc = p["whh0"].shape[0]
    # Light contract asserts (weights are caller-prepacked: (in,out) layout,
    # gate order i/f/g/o, biases = b_ih + b_hh).
    assert p["wih0"].shape == (D, 4 * hc) and p["whh0"].shape == (hc, 4 * hc)
    assert p["wih1"].shape == (hc, 4 * hc) and p["whh1"].shape == (hc, 4 * hc)
    assert p["wd"].shape == (hc, D) and p["wq"].shape == (D, D)

    w0 = jnp.concatenate([p["wih0"], p["whh0"]], axis=0)        # (D+hc, 4hc)
    w1 = jnp.concatenate([p["wih1"], p["whh1"]], axis=0)        # (2hc,  4hc)
    wdq = p["wd"] @ p["wq"]                                     # (hc, D)  Linear∘W_q fold
    bdq = p["bd"] @ p["wq"] + p["bq"]                           # (D,)

    chunk = _pick_chunk(T)
    kern = functools.partial(_lstm_q_kernel, chunk=chunk, in_dim=D, hid=hc)
    return pl.pallas_call(
        kern,
        out_shape=jax.ShapeDtypeStruct((B, T, D), jnp.float32),
        grid=(T // chunk,),
        in_specs=[
            pl.BlockSpec((B, chunk, D), lambda t: (0, t, 0)),
            pl.BlockSpec((D + hc, 4 * hc), lambda t: (0, 0)),
            pl.BlockSpec((1, 4 * hc), lambda t: (0, 0)),
            pl.BlockSpec((2 * hc, 4 * hc), lambda t: (0, 0)),
            pl.BlockSpec((1, 4 * hc), lambda t: (0, 0)),
            pl.BlockSpec((hc, D), lambda t: (0, 0)),
            pl.BlockSpec((1, D), lambda t: (0, 0)),
        ],
        out_specs=pl.BlockSpec((B, chunk, D), lambda t: (0, t, 0)),
        scratch_shapes=[
            pltpu.VMEM((B, D + hc), jnp.float32),   # [x_t | h0]
            pltpu.VMEM((B, 2 * hc), jnp.float32),   # [h0  | h1]
            pltpu.VMEM((B, hc), jnp.float32),       # c0
            pltpu.VMEM((B, hc), jnp.float32),       # c1
        ],
        compiler_params=pltpu.CompilerParams(
            dimension_semantics=("arbitrary",), vmem_limit_bytes=VMEM_LIMIT),
    )(hidden, w0, p["b0"].reshape(1, 4 * hc), w1, p["b1"].reshape(1, 4 * hc),
      wdq, bdq.reshape(1, D))


# ---------------------------------------------------------------------------
# Kernel 2: tiled dense (+ optional GELU epilogue), bf16 MXU operands / f32 acc.
# ---------------------------------------------------------------------------
def _dense_kernel(x_ref, w_ref, b_ref, o_ref, acc_ref, *, activation, mxu_dtype):
    @pl.when(pl.program_id(2) == 0)
    def _():
        acc_ref[...] = jnp.zeros_like(acc_ref)

    acc_ref[...] += jnp.dot(x_ref[...].astype(mxu_dtype),
                            w_ref[...].astype(mxu_dtype),
                            preferred_element_type=jnp.float32)

    @pl.when(pl.program_id(2) == pl.num_programs(2) - 1)
    def _():
        y = acc_ref[...] + b_ref[...]
        if activation == "gelu":
            # exact (erf) GELU, matching torch.nn.functional.gelu default
            y = 0.5 * y * (1.0 + jax.lax.erf(y * (1.0 / math.sqrt(2.0))))
        o_ref[...] = y.astype(o_ref.dtype)


def pallas_dense(x, w, b, activation=None, mxu_dtype=jnp.bfloat16,
                 tm=256, tn=256, tk=512):
    M, K = x.shape
    _, N = w.shape
    tm = _pick_tile(M, tm, 8)
    tn = _pick_tile(N, tn, 128)
    tk = _pick_tile(K, tk, 128)
    kern = functools.partial(_dense_kernel, activation=activation, mxu_dtype=mxu_dtype)
    return pl.pallas_call(
        kern,
        out_shape=jax.ShapeDtypeStruct((M, N), jnp.float32),
        grid=(M // tm, N // tn, K // tk),
        in_specs=[
            pl.BlockSpec((tm, tk), lambda i, j, kk: (i, kk)),
            pl.BlockSpec((tk, tn), lambda i, j, kk: (kk, j)),
            pl.BlockSpec((1, tn), lambda i, j, kk: (0, j)),
        ],
        out_specs=pl.BlockSpec((tm, tn), lambda i, j, kk: (i, j)),
        scratch_shapes=[pltpu.VMEM((tm, tn), jnp.float32)],
        compiler_params=pltpu.CompilerParams(
            dimension_semantics=("parallel", "parallel", "arbitrary"),
            vmem_limit_bytes=VMEM_LIMIT),
    )(x, w, b.reshape(1, N))


# ---------------------------------------------------------------------------
# Kernel 3: fused dense + residual + LayerNorm (LN over the full feature dim,
# so only M and K are tiled; the (tm, N) accumulator carries across the K axis).
# ---------------------------------------------------------------------------
def _dense_res_ln_kernel(x_ref, w_ref, b_ref, r_ref, g_ref, be_ref, o_ref, acc_ref,
                         *, mxu_dtype):
    @pl.when(pl.program_id(1) == 0)
    def _():
        acc_ref[...] = jnp.zeros_like(acc_ref)

    acc_ref[...] += jnp.dot(x_ref[...].astype(mxu_dtype),
                            w_ref[...].astype(mxu_dtype),
                            preferred_element_type=jnp.float32)

    @pl.when(pl.program_id(1) == pl.num_programs(1) - 1)
    def _():
        h = acc_ref[...] + b_ref[...] + r_ref[...]
        mu = jnp.mean(h, axis=-1, keepdims=True)
        var = jnp.mean(jnp.square(h - mu), axis=-1, keepdims=True)
        o_ref[...] = ((h - mu) * jax.lax.rsqrt(var + LN_EPS) * g_ref[...]
                      + be_ref[...]).astype(o_ref.dtype)


def pallas_dense_residual_layernorm(x, w, b, residual, gamma, beta,
                                    mxu_dtype=jnp.bfloat16, tm=256, tk=512):
    M, K = x.shape
    _, N = w.shape
    tm = _pick_tile(M, tm, 8)
    tk = _pick_tile(K, tk, 128)
    kern = functools.partial(_dense_res_ln_kernel, mxu_dtype=mxu_dtype)
    return pl.pallas_call(
        kern,
        out_shape=jax.ShapeDtypeStruct((M, N), jnp.float32),
        grid=(M // tm, K // tk),
        in_specs=[
            pl.BlockSpec((tm, tk), lambda i, kk: (i, kk)),
            pl.BlockSpec((tk, N), lambda i, kk: (kk, 0)),
            pl.BlockSpec((1, N), lambda i, kk: (0, 0)),
            pl.BlockSpec((tm, N), lambda i, kk: (i, 0)),
            pl.BlockSpec((1, N), lambda i, kk: (0, 0)),
            pl.BlockSpec((1, N), lambda i, kk: (0, 0)),
        ],
        out_specs=pl.BlockSpec((tm, N), lambda i, kk: (i, 0)),
        scratch_shapes=[pltpu.VMEM((tm, N), jnp.float32)],
        compiler_params=pltpu.CompilerParams(
            dimension_semantics=("parallel", "arbitrary"),
            vmem_limit_bytes=VMEM_LIMIT),
    )(x, w, b.reshape(1, N), residual, gamma.reshape(1, N), beta.reshape(1, N))


# ---------------------------------------------------------------------------
# Kernel 4: cross attention, all heads per grid step (grid over batch only).
# Q is (B, Sq, D), K/V arrive packed as (B, Sk, 2D); head slicing happens
# in-kernel with static slices, each head's context slice is stored directly
# (no concatenate), and the returned probs use exact softmax division.
# ---------------------------------------------------------------------------
def _attn_kernel(q_ref, kv_ref, m_ref, ctx_ref, p_ref, *,
                 num_heads, scale, hidden, mxu_dtype):
    q = q_ref[0]                       # (Sq, D)
    kv = kv_ref[0]                     # (Sk, 2D)   [K | V]
    m = m_ref[0]                       # (1,  Sk)   additive mask

    dh = hidden // num_heads
    for h in range(num_heads):
        qh = q[:, h * dh:(h + 1) * dh].astype(mxu_dtype)
        kh = kv[:, h * dh:(h + 1) * dh].astype(mxu_dtype)
        vh = kv[:, hidden + h * dh: hidden + (h + 1) * dh].astype(mxu_dtype)
        # contract last axes directly (no k.T relayout)
        s = jax.lax.dot_general(qh, kh, (((1,), (1,)), ((), ())),
                                preferred_element_type=jnp.float32) * scale
        s = s + m
        s = s - jnp.max(s, axis=-1, keepdims=True)
        e = jnp.exp(s)
        # exact division: probs is a semantic output of the module (pointer dist).
        p = e / jnp.sum(e, axis=-1, keepdims=True)
        p_ref[0, h] = p.astype(p_ref.dtype)
        ctx_ref[0, :, h * dh:(h + 1) * dh] = jnp.dot(
            p.astype(mxu_dtype), vh,
            preferred_element_type=jnp.float32).astype(ctx_ref.dtype)


def pallas_attention(q, kv, add_mask, num_heads, mxu_dtype):
    B, Sq, D = q.shape
    Sk = kv.shape[1]
    scale = 1.0 / math.sqrt(D // num_heads)
    kern = functools.partial(_attn_kernel, num_heads=num_heads, scale=scale,
                             hidden=D, mxu_dtype=mxu_dtype)
    ctx, probs = pl.pallas_call(
        kern,
        out_shape=(jax.ShapeDtypeStruct((B, Sq, D), jnp.float32),
                   jax.ShapeDtypeStruct((B, num_heads, Sq, Sk), jnp.float32)),
        grid=(B,),
        in_specs=[
            pl.BlockSpec((1, Sq, D), lambda b: (b, 0, 0)),
            pl.BlockSpec((1, Sk, 2 * D), lambda b: (b, 0, 0)),
            pl.BlockSpec((1, 1, Sk), lambda b: (b, 0, 0)),
        ],
        out_specs=(
            pl.BlockSpec((1, Sq, D), lambda b: (b, 0, 0)),
            pl.BlockSpec((1, num_heads, Sq, Sk), lambda b: (b, 0, 0, 0)),
        ),
        compiler_params=pltpu.CompilerParams(
            dimension_semantics=("parallel",), vmem_limit_bytes=VMEM_LIMIT),
    )(q, kv, add_mask)
    return ctx, probs


# ---------------------------------------------------------------------------
# Pointer_Block forward (glue in plain JAX, hot path in Pallas; 6 pallas_calls).
# ---------------------------------------------------------------------------
def pointer_block_forward(hidden, masks, encoder, params, num_heads,
                          mxu_dtype=jnp.bfloat16):
    B, Sq, D = hidden.shape
    Sk = encoder.shape[1]

    # 1-2 + W_q: fused 2-layer LSTM, Linear(128->D) and query projection -> Q.
    q = pallas_lstm_q(hidden, params)                                  # (B, Sq, D)

    # 3. additive attention mask over encoder keys (un-replicated: (B, 1, Sk)).
    add_mask = ((1.0 - masks.astype(jnp.float32)) * NEG_INF).reshape(B, 1, Sk)

    # 4. K/V projections fused into one dense ([wk|wv] along N).
    wkv = jnp.concatenate([params["wk"], params["wv"]], axis=1)        # (D, 2D)
    bkv = jnp.concatenate([params["bk"], params["bv"]])                # (2D,)
    kv = pallas_dense(encoder.reshape(B * Sk, D), wkv, bkv,
                      mxu_dtype=mxu_dtype).reshape(B, Sk, 2 * D)

    ctx, probs = pallas_attention(q, kv, add_mask, num_heads, mxu_dtype)

    # attention output dense + residual(hidden) + LayerNorm, fused.
    attn_out = pallas_dense_residual_layernorm(
        ctx.reshape(B * Sq, D), params["w_ao"], params["b_ao"],
        hidden.reshape(B * Sq, D), params["ln1_g"], params["ln1_b"],
        mxu_dtype=mxu_dtype)

    # 5-6. intermediate GELU dense, then output dense + residual + LayerNorm, fused.
    inter = pallas_dense(attn_out, params["w_i"], params["b_i"],
                         activation="gelu", mxu_dtype=mxu_dtype)
    layer_out = pallas_dense_residual_layernorm(
        inter, params["w_o"], params["b_o"], attn_out,
        params["ln2_g"], params["ln2_b"], mxu_dtype=mxu_dtype)

    return layer_out.reshape(B, Sq, D), (probs,)


# ---------------------------------------------------------------------------
# Pure-JAX reference (for correctness check).
# ---------------------------------------------------------------------------
def _ln_ref(x, g, b):
    mu = jnp.mean(x, axis=-1, keepdims=True)
    var = jnp.mean(jnp.square(x - mu), axis=-1, keepdims=True)
    return (x - mu) * jax.lax.rsqrt(var + LN_EPS) * g + b


def reference_forward(hidden, masks, encoder, p, num_heads):
    B, Sq, D = hidden.shape
    Sk = encoder.shape[1]
    hc = p["whh0"].shape[0]
    dh = D // num_heads

    def cell(x_in, h, c, wih, whh, b):
        g = x_in @ wih + h @ whh + b
        i_g = jax.nn.sigmoid(g[:, :hc]); f_g = jax.nn.sigmoid(g[:, hc:2 * hc])
        g_g = jnp.tanh(g[:, 2 * hc:3 * hc]); o_g = jax.nn.sigmoid(g[:, 3 * hc:])
        c_new = f_g * c + i_g * g_g
        return o_g * jnp.tanh(c_new), c_new

    def lstm_step(carry, x_t):
        h0, c0, h1, c1 = carry
        h0, c0 = cell(x_t, h0, c0, p["wih0"], p["whh0"], p["b0"])
        h1, c1 = cell(h0, h1, c1, p["wih1"], p["whh1"], p["b1"])
        return (h0, c0, h1, c1), h1

    init = tuple(jnp.zeros((B, hc), jnp.float32) for _ in range(4))
    _, hs = jax.lax.scan(lstm_step, init, jnp.transpose(hidden, (1, 0, 2)))
    lstm_proj = jnp.transpose(hs, (1, 0, 2)) @ p["wd"] + p["bd"]       # (B, Sq, D)

    add_mask = (1.0 - masks.astype(jnp.float32)) * NEG_INF
    attn_mask = add_mask[:, None, None, :]

    def split(x, S):
        return x.reshape(B, S, num_heads, dh).transpose(0, 2, 1, 3)

    q = split(lstm_proj @ p["wq"] + p["bq"], Sq)
    k = split(encoder @ p["wk"] + p["bk"], Sk)
    v = split(encoder @ p["wv"] + p["bv"], Sk)
    scores = jnp.einsum("bhqd,bhkd->bhqk", q, k) / math.sqrt(dh) + attn_mask
    probs = jax.nn.softmax(scores, axis=-1)
    ctx = jnp.einsum("bhqk,bhkd->bhqd", probs, v).transpose(0, 2, 1, 3).reshape(B, Sq, D)
    attn_out = _ln_ref(ctx @ p["w_ao"] + p["b_ao"] + hidden, p["ln1_g"], p["ln1_b"])
    inter = jax.nn.gelu(attn_out @ p["w_i"] + p["b_i"], approximate=False)
    layer_out = _ln_ref(inter @ p["w_o"] + p["b_o"] + attn_out, p["ln2_g"], p["ln2_b"])
    return layer_out, probs


# ---------------------------------------------------------------------------
if __name__ == "__main__":
    B, Sq, Sk, D, NUM_HEADS, I, HC = 2, 8, 16, 32, 4, 64, 128

    key = jax.random.PRNGKey(0)
    ks = jax.random.split(key, 20)

    def w(k, shape, scale=0.02):
        return jax.random.normal(k, shape, jnp.float32) * scale

    params = {
        # LSTM weights stored (in, out) = PyTorch weight_ih/hh_l{k}.T, gate order
        # (i,f,g,o); b{0,1} correspond to b_ih + b_hh.
        "wih0": w(ks[0], (D, 4 * HC), 0.05), "whh0": w(ks[1], (HC, 4 * HC), 0.05),
        "b0": w(ks[2], (4 * HC,), 0.05),
        "wih1": w(ks[3], (HC, 4 * HC), 0.05), "whh1": w(ks[4], (HC, 4 * HC), 0.05),
        "b1": w(ks[5], (4 * HC,), 0.05),
        "wd": w(ks[6], (HC, D), 0.05), "bd": jnp.zeros((D,), jnp.float32),
        # BERT attention / intermediate / output
        "wq": w(ks[7], (D, D)), "bq": jnp.zeros((D,), jnp.float32),
        "wk": w(ks[8], (D, D)), "bk": jnp.zeros((D,), jnp.float32),
        "wv": w(ks[9], (D, D)), "bv": jnp.zeros((D,), jnp.float32),
        "w_ao": w(ks[10], (D, D)), "b_ao": jnp.zeros((D,), jnp.float32),
        "ln1_g": jnp.ones((D,), jnp.float32), "ln1_b": jnp.zeros((D,), jnp.float32),
        "w_i": w(ks[11], (D, I)), "b_i": jnp.zeros((I,), jnp.float32),
        "w_o": w(ks[12], (I, D)), "b_o": jnp.zeros((D,), jnp.float32),
        "ln2_g": jnp.ones((D,), jnp.float32), "ln2_b": jnp.zeros((D,), jnp.float32),
    }

    hidden = jax.random.normal(ks[13], (B, Sq, D), jnp.float32)
    encoder = jax.random.normal(ks[14], (B, Sk, D), jnp.float32)
    masks = jax.random.bernoulli(ks[15], 0.8, (B, Sk)).astype(jnp.float32)
    masks = masks.at[:, 0].set(1.0)   # ensure at least one valid key position per row

    ref_out, ref_probs = reference_forward(hidden, masks, encoder, params, NUM_HEADS)

    # f32 MXU path: tight correctness check.
    fwd32 = jax.jit(functools.partial(pointer_block_forward, num_heads=NUM_HEADS,
                                      mxu_dtype=jnp.float32))
    out32, res32 = fwd32(hidden, masks, encoder, params)
    out32 = jax.block_until_ready(out32)
    probs32 = jax.block_until_ready(res32[0])
    assert jnp.allclose(out32, ref_out, atol=2e-3, rtol=2e-3), "f32 layer output mismatch"
    assert jnp.allclose(probs32, ref_probs, atol=2e-3, rtol=2e-3), "f32 attn probs mismatch"

    # bf16 MXU path (recommended production setting): looser tolerance.
    fwd16 = jax.jit(functools.partial(pointer_block_forward, num_heads=NUM_HEADS,
                                      mxu_dtype=jnp.bfloat16))
    out16, res16 = fwd16(hidden, masks, encoder, params)
    out16 = jax.block_until_ready(out16)
    probs16 = jax.block_until_ready(res16[0])
    assert jnp.allclose(out16, ref_out, atol=5e-2, rtol=5e-2), "bf16 layer output mismatch"
    assert jnp.allclose(probs16, ref_probs, atol=5e-2, rtol=5e-2), "bf16 attn probs mismatch"

    print("KERNEL_OK")
</pallas_src>

<mosaic_0001>
module attributes {stable_mosaic.version = 11 : i64} {
  func.func @_dense_kernel(%arg0: i32, %arg1: i32, %arg2: i32, %arg3: memref<32x32xf32, #tpu.memory_space<vmem>>, %arg4: memref<32x64xf32, #tpu.memory_space<vmem>>, %arg5: memref<1x64xf32, #tpu.memory_space<vmem>>, %arg6: memref<32x64xf32, #tpu.memory_space<vmem>>, %arg7: memref<32x64xf32, #tpu.memory_space<vmem>>) attributes {dimension_semantics = [#tpu.dimension_semantics<parallel>, #tpu.dimension_semantics<parallel>, #tpu.dimension_semantics<arbitrary>], iteration_bounds = array<i64: 1, 1, 1>, scalar_prefetch = 0 : i64, scratch_operands = 1 : i64, tpu.core_type = #tpu.core_type<tc>, window_params = [{transform_indices = @transform_0, window_bounds = array<i64: 32, 32>}, {transform_indices = @transform_1, window_bounds = array<i64: 32, 64>}, {transform_indices = @transform_2, window_bounds = array<i64: 1, 64>}, {transform_indices = @transform_3, window_bounds = array<i64: 32, 64>}]} {
    %c0_i32 = arith.constant 0 : i32
    %0 = arith.cmpi eq, %arg2, %c0_i32 : i32
    %1 = arith.extui %0 : i1 to i32
    %c0_i32_0 = arith.constant 0 : i32
    %2 = arith.cmpi ne, %1, %c0_i32_0 : i32
    scf.if %2 {
      %cst_10 = arith.constant 0.000000e+00 : f32
      %12 = vector.broadcast %cst_10 : f32 to vector<32x64xf32>
      %c0_11 = arith.constant 0 : index
      %c0_12 = arith.constant 0 : index
      %13 = vector.load %arg7[%c0_11, %c0_12] : memref<32x64xf32, #tpu.memory_space<vmem>>, vector<32x64xf32>
      tpu.vector_store %arg7[%c0_11, %c0_12], %12 {strides = array<i32>} : memref<32x64xf32, #tpu.memory_space<vmem>>, vector<32x64xf32>,
    } else {
    }
    %c0 = arith.constant 0 : index
    %c0_1 = arith.constant 0 : index
    %3 = vector.load %arg7[%c0, %c0_1] : memref<32x64xf32, #tpu.memory_space<vmem>>, vector<32x64xf32>
    %c0_2 = arith.constant 0 : index
    %c0_3 = arith.constant 0 : index
    %4 = vector.load %arg3[%c0_2, %c0_3] : memref<32x32xf32, #tpu.memory_space<vmem>>, vector<32x32xf32>
    %c0_4 = arith.constant 0 : index
    %c0_5 = arith.constant 0 : index
    %5 = vector.load %arg4[%c0_4, %c0_5] : memref<32x64xf32, #tpu.memory_space<vmem>>, vector<32x64xf32>
    %cst = arith.constant dense<0.000000e+00> : vector<32x64xf32>
    %6 = tpu.matmul %4, %5, %cst {dimension_numbers = #tpu.dot_dimension_numbers<[1], [0], [0], [1], [0, 0, 1, 1], [], []>} : vector<32x32xf32>, vector<32x64xf32>, vector<32x64xf32> -> vector<32x64xf32>
    %7 = arith.addf %3, %6 : vector<32x64xf32>
    %c0_6 = arith.constant 0 : index
    %c0_7 = arith.constant 0 : index
    %8 = vector.load %arg7[%c0_6, %c0_7] : memref<32x64xf32, #tpu.memory_space<vmem>>, vector<32x64xf32>
    tpu.vector_store %arg7[%c0_6, %c0_7], %7 {strides = array<i32>} : memref<32x64xf32, #tpu.memory_space<vmem>>, vector<32x64xf32>,
    %c0_i32_8 = arith.constant 0 : i32
    %9 = arith.cmpi eq, %arg2, %c0_i32_8 : i32
    %10 = arith.extui %9 : i1 to i32
    %c0_i32_9 = arith.constant 0 : i32
    %11 = arith.cmpi ne, %10, %c0_i32_9 : i32
    scf.if %11 {
      %c0_10 = arith.constant 0 : index
      %c0_11 = arith.constant 0 : index
      %12 = vector.load %arg7[%c0_10, %c0_11] : memref<32x64xf32, #tpu.memory_space<vmem>>, vector<32x64xf32>
      %c0_12 = arith.constant 0 : index
      %c0_13 = arith.constant 0 : index
      %13 = vector.load %arg5[%c0_12, %c0_13] : memref<1x64xf32, #tpu.memory_space<vmem>>, vector<1x64xf32>
      %14 = vector.broadcast %13 : vector<1x64xf32> to vector<32x64xf32>
      %15 = arith.addf %12, %14 : vector<32x64xf32>
      %c0_14 = arith.constant 0 : index
      %c0_15 = arith.constant 0 : index
      %16 = vector.load %arg6[%c0_14, %c0_15] : memref<32x64xf32, #tpu.memory_space<vmem>>, vector<32x64xf32>
      tpu.vector_store %arg6[%c0_14, %c0_15], %15 {strides = array<i32>} : memref<32x64xf32, #tpu.memory_space<vmem>>, vector<32x64xf32>,
    } else {
    }
    return
  }
  func.func @transform_0(%arg0: i32, %arg1: i32, %arg2: i32) -> (i32, i32) {
    %c0_i32 = arith.constant 0 : i32
    return %arg0, %arg2 : i32, i32
  }
  func.func @transform_1(%arg0: i32, %arg1: i32, %arg2: i32) -> (i32, i32) {
    %c0_i32 = arith.constant 0 : i32
    return %arg2, %arg1 : i32, i32
  }
  func.func @transform_2(%arg0: i32, %arg1: i32, %arg2: i32) -> (i32, i32) {
    %c0_i32 = arith.constant 0 : i32
    %c0_i32_0 = arith.constant 0 : i32
    return %c0_i32, %arg1 : i32, i32
  }
  func.func @transform_3(%arg0: i32, %arg1: i32, %arg2: i32) -> (i32, i32) {
    %c0_i32 = arith.constant 0 : i32
    return %arg0, %arg1 : i32, i32
  }
}

module attributes {stable_mosaic.version = 11 : i64} {
  func.func @_attn_kernel(%arg0: i32, %arg1: memref<1x8x32xf32, #tpu.memory_space<vmem>>, %arg2: memref<1x16x64xf32, #tpu.memory_space<vmem>>, %arg3: memref<1x1x16xf32, #tpu.memory_space<vmem>>, %arg4: memref<1x8x32xf32, #tpu.memory_space<vmem>>, %arg5: memref<1x4x8x16xf32, #tpu.memory_space<vmem>>) attributes {dimension_semantics = [#tpu.dimension_semantics<parallel>], iteration_bounds = array<i64: 2>, scalar_prefetch = 0 : i64, scratch_operands = 0 : i64, tpu.core_type = #tpu.core_type<tc>, window_params = [{transform_indices = @transform_0, window_bounds = array<i64: 1, 8, 32>}, {transform_indices = @transform_1, window_bounds = array<i64: 1, 16, 64>}, {transform_indices = @transform_2, window_bounds = array<i64: 1, 1, 16>}, {transform_indices = @transform_3, window_bounds = array<i64: 1, 8, 32>}, {transform_indices = @transform_4, window_bounds = array<i64: 1, 4, 8, 16>}]} {
    %c0 = arith.constant 0 : index
    %c0_0 = arith.constant 0 : index
    %c0_1 = arith.constant 0 : index
    %0 = vector.load %arg1[%c0, %c0_0, %c0_1] : memref<1x8x32xf32, #tpu.memory_space<vmem>>, vector<1x8x32xf32>
    %1 = vector.shape_cast %0 : vector<1x8x32xf32> to vector<8x32xf32>
    %c0_2 = arith.constant 0 : index
    %c0_3 = arith.constant 0 : index
    %c0_4 = arith.constant 0 : index
    %2 = vector.load %arg2[%c0_2, %c0_3, %c0_4] : memref<1x16x64xf32, #tpu.memory_space<vmem>>, vector<1x16x64xf32>
    %3 = vector.shape_cast %2 : vector<1x16x64xf32> to vector<16x64xf32>
    %c0_5 = arith.constant 0 : index
    %c0_6 = arith.constant 0 : index
    %c0_7 = arith.constant 0 : index
    %4 = vector.load %arg3[%c0_5, %c0_6, %c0_7] : memref<1x1x16xf32, #tpu.memory_space<vmem>>, vector<1x1x16xf32>
    %5 = vector.shape_cast %4 : vector<1x1x16xf32> to vector<1x16xf32>
    %6 = vector.extract_strided_slice %1 {offsets = [0, 0], sizes = [8, 8], strides = [1, 1]} : vector<8x32xf32> to vector<8x8xf32>
    %7 = vector.extract_strided_slice %3 {offsets = [0, 0], sizes = [16, 8], strides = [1, 1]} : vector<16x64xf32> to vector<16x8xf32>
    %8 = vector.extract_strided_slice %3 {offsets = [0, 32], sizes = [16, 8], strides = [1, 1]} : vector<16x64xf32> to vector<16x8xf32>
    %cst = arith.constant dense<0.000000e+00> : vector<8x16xf32>
    %9 = tpu.matmul %6, %7, %cst {dimension_numbers = #tpu.dot_dimension_numbers<[1], [1], [0], [0], [0, 0, 1, 0], [], []>} : vector<8x8xf32>, vector<16x8xf32>, vector<8x16xf32> -> vector<8x16xf32>
    %cst_8 = arith.constant 0.353553385 : f32
    %10 = vector.broadcast %cst_8 : f32 to vector<8x16xf32>
    %11 = arith.mulf %9, %10 : vector<8x16xf32>
    %12 = vector.broadcast %5 : vector<1x16xf32> to vector<8x16xf32>
    %13 = arith.addf %11, %12 : vector<8x16xf32>
    %cst_9 = arith.constant dense<0xFF800000> : vector<8xf32>
    %14 = vector.multi_reduction <maximumf>, %13, %cst_9 [1] : vector<8x16xf32> to vector<8xf32>
    %15 = vector.shape_cast %14 : vector<8xf32> to vector<8x1xf32>
    %16 = vector.broadcast %15 : vector<8x1xf32> to vector<8x16xf32>
    %17 = arith.subf %13, %16 : vector<8x16xf32>
    %18 = math.exp %17 : vector<8x16xf32>
    %cst_10 = arith.constant dense<0.000000e+00> : vector<8xf32>
    %19 = vector.multi_reduction <add>, %18, %cst_10 [1] : vector<8x16xf32> to vector<8xf32>
    %20 = vector.shape_cast %19 : vector<8xf32> to vector<8x1xf32>
    %21 = vector.broadcast %20 : vector<8x1xf32> to vector<8x16xf32>
    %22 = arith.divf %18, %21 : vector<8x16xf32>
    %c0_11 = arith.constant 0 : index
    %c0_12 = arith.constant 0 : index
    %c0_13 = arith.constant 0 : index
    %c0_14 = arith.constant 0 : index
    %23 = vector.load %arg5[%c0_11, %c0_12, %c0_13, %c0_14] : memref<1x4x8x16xf32, #tpu.memory_space<vmem>>, vector<1x1x8x16xf32>
    %24 = vector.shape_cast %23 : vector<1x1x8x16xf32> to vector<8x16xf32>
    %25 = vector.shape_cast %22 : vector<8x16xf32> to vector<1x1x8x16xf32>
    tpu.vector_store %arg5[%c0_11, %c0_12, %c0_13, %c0_14], %25 {strides = array<i32>} : memref<1x4x8x16xf32, #tpu.memory_space<vmem>>, vector<1x1x8x16xf32>,
    %cst_15 = arith.constant dense<0.000000e+00> : vector<8x8xf32>
    %26 = tpu.matmul %22, %8, %cst_15 {dimension_numbers = #tpu.dot_dimension_numbers<[1], [0], [0], [1], [0, 0, 1, 1], [], []>} : vector<8x16xf32>, vector<16x8xf32>, vector<8x8xf32> -> vector<8x8xf32>
    %c0_16 = arith.constant 0 : index
    %c0_17 = arith.constant 0 : index
    %c0_18 = arith.constant 0 : index
    %27 = vector.load %arg4[%c0_16, %c0_17, %c0_18] : memref<1x8x32xf32, #tpu.memory_space<vmem>>, vector<1x8x8xf32>
    %28 = vector.shape_cast %27 : vector<1x8x8xf32> to vector<8x8xf32>
    %29 = vector.shape_cast %26 : vector<8x8xf32> to vector<1x8x8xf32>
    tpu.vector_store %arg4[%c0_16, %c0_17, %c0_18], %29 {strides = array<i32>} : memref<1x8x32xf32, #tpu.memory_space<vmem>>, vector<1x8x8xf32>,
    %30 = vector.extract_strided_slice %1 {offsets = [0, 8], sizes = [8, 8], strides = [1, 1]} : vector<8x32xf32> to vector<8x8xf32>
    %31 = vector.extract_strided_slice %3 {offsets = [0, 8], sizes = [16, 8], strides = [1, 1]} : vector<16x64xf32> to vector<16x8xf32>
    %32 = vector.extract_strided_slice %3 {offsets = [0, 40], sizes = [16, 8], strides = [1, 1]} : vector<16x64xf32> to vector<16x8xf32>
    %cst_19 = arith.constant dense<0.000000e+00> : vector<8x16xf32>
    %33 = tpu.matmul %30, %31, %cst_19 {dimension_numbers = #tpu.dot_dimension_numbers<[1], [1], [0], [0], [0, 0, 1, 0], [], []>} : vector<8x8xf32>, vector<16x8xf32>, vector<8x16xf32> -> vector<8x16xf32>
    %cst_20 = arith.constant 0.353553385 : f32
    %34 = vector.broadcast %cst_20 : f32 to vector<8x16xf32>
    %35 = arith.mulf %33, %34 : vector<8x16xf32>
    %36 = vector.broadcast %5 : vector<1x16xf32> to vector<8x16xf32>
    %37 = arith.addf %35, %36 : vector<8x16xf32>
    %cst_21 = arith.constant dense<0xFF800000> : vector<8xf32>
    %38 = vector.multi_reduction <maximumf>, %37, %cst_21 [1] : vector<8x16xf32> to vector<8xf32>
    %39 = vector.shape_cast %38 : vector<8xf32> to vector<8x1xf32>
    %40 = vector.broadcast %39 : vector<8x1xf32> to vector<8x16xf32>
    %41 = arith.subf %37, %40 : vector<8x16xf32>
    %42 = math.exp %41 : vector<8x16xf32>
    %cst_22 = arith.constant dense<0.000000e+00> : vector<8xf32>
    %43 = vector.multi_reduction <add>, %42, %cst_22 [1] : vector<8x16xf32> to vector<8xf32>
    %44 = vector.shape_cast %43 : vector<8xf32> to vector<8x1xf32>
    %45 = vector.broadcast %44 : vector<8x1xf32> to vector<8x16xf32>
    %46 = arith.divf %42, %45 : vector<8x16xf32>
    %c0_23 = arith.constant 0 : index
    %c1 = arith.constant 1 : index
    %c0_24 = arith.constant 0 : index
    %c0_25 = arith.constant 0 : index
    %47 = vector.load %arg5[%c0_23, %c1, %c0_24, %c0_25] : memref<1x4x8x16xf32, #tpu.memory_space<vmem>>, vector<1x1x8x16xf32>
    %48 = vector.shape_cast %47 : vector<1x1x8x16xf32> to vector<8x16xf32>
    %49 = vector.shape_cast %46 : vector<8x16xf32> to vector<1x1x8x16xf32>
    tpu.vector_store %arg5[%c0_23, %c1, %c0_24, %c0_25], %49 {strides = array<i32>} : memref<1x4x8x16xf32, #tpu.memory_space<vmem>>, vector<1x1x8x16xf32>,
    %cst_26 = arith.constant dense<0.000000e+00> : vector<8x8xf32>
    %50 = tpu.matmul %46, %32, %cst_26 {dimension_numbers = #tpu.dot_dimension_numbers<[1], [0], [0], [1], [0, 0, 1, 1], [], []>} : vector<8x16xf32>, vector<16x8xf32>, vector<8x8xf32> -> vector<8x8xf32>
    %c0_27 = arith.constant 0 : index
    %c0_28 = arith.constant 0 : index
    %c8 = arith.constant 8 : index
    %51 = vector.load %arg4[%c0_27, %c0_28, %c8] : memref<1x8x32xf32, #tpu.memory_space<vmem>>, vector<1x8x8xf32>
    %52 = vector.shape_cast %51 : vector<1x8x8xf32> to vector<8x8xf32>
    %53 = vector.shape_cast %50 : vector<8x8xf32> to vector<1x8x8xf32>
    tpu.vector_store %arg4[%c0_27, %c0_28, %c8], %53 {strides = array<i32>} : memref<1x8x32xf32, #tpu.memory_space<vmem>>, vector<1x8x8xf32>,
    %54 = vector.extract_strided_slice %1 {offsets = [0, 16], sizes = [8, 8], strides = [1, 1]} : vector<8x32xf32> to vector<8x8xf32>
    %55 = vector.extract_strided_slice %3 {offsets = [0, 16], sizes = [16, 8], strides = [1, 1]} : vector<16x64xf32> to vector<16x8xf32>
    %56 = vector.extract_strided_slice %3 {offsets = [0, 48], sizes = [16, 8], strides = [1, 1]} : vector<16x64xf32> to vector<16x8xf32>
    %cst_29 = arith.constant dense<0.000000e+00> : vector<8x16xf32>
    %57 = tpu.matmul %54, %55, %cst_29 {dimension_numbers = #tpu.dot_dimension_numbers<[1], [1], [0], [0], [0, 0, 1, 0], [], []>} : vector<8x8xf32>, vector<16x8xf32>, vector<8x16xf32> -> vector<8x16xf32>
    %cst_30 = arith.constant 0.353553385 : f32
    %58 = vector.broadcast %cst_30 : f32 to vector<8x16xf32>
    %59 = arith.mulf %57, %58 : vector<8x16xf32>
    %60 = vector.broadcast %5 : vector<1x16xf32> to vector<8x16xf32>
    %61 = arith.addf %59, %60 : vector<8x16xf32>
    %cst_31 = arith.constant dense<0xFF800000> : vector<8xf32>
    %62 = vector.multi_reduction <maximumf>, %61, %cst_31 [1] : vector<8x16xf32> to vector<8xf32>
    %63 = vector.shape_cast %62 : vector<8xf32> to vector<8x1xf32>
    %64 = vector.broadcast %63 : vector<8x1xf32> to vector<8x16xf32>
    %65 = arith.subf %61, %64 : vector<8x16xf32>
    %66 = math.exp %65 : vector<8x16xf32>
    %cst_32 = arith.constant dense<0.000000e+00> : vector<8xf32>
    %67 = vector.multi_reduction <add>, %66, %cst_32 [1] : vector<8x16xf32> to vector<8xf32>
    %68 = vector.shape_cast %67 : vector<8xf32> to vector<8x1xf32>
    %69 = vector.broadcast %68 : vector<8x1xf32> to vector<8x16xf32>
    %70 = arith.divf %66, %69 : vector<8x16xf32>
    %c0_33 = arith.constant 0 : index
    %c2 = arith.constant 2 : index
    %c0_34 = arith.constant 0 : index
    %c0_35 = arith.constant 0 : index
    %71 = vector.load %arg5[%c0_33, %c2, %c0_34, %c0_35] : memref<1x4x8x16xf32, #tpu.memory_space<vmem>>, vector<1x1x8x16xf32>
    %72 = vector.shape_cast %71 : vector<1x1x8x16xf32> to vector<8x16xf32>
    %73 = vector.shape_cast %70 : vector<8x16xf32> to vector<1x1x8x16xf32>
    tpu.vector_store %arg5[%c0_33, %c2, %c0_34, %c0_35], %73 {strides = array<i32>} : memref<1x4x8x16xf32, #tpu.memory_space<vmem>>, vector<1x1x8x16xf32>,
    %cst_36 = arith.constant dense<0.000000e+00> : vector<8x8xf32>
    %74 = tpu.matmul %70, %56, %cst_36 {dimension_numbers = #tpu.dot_dimension_numbers<[1], [0], [0], [1], [0, 0, 1, 1], [], []>} : vector<8x16xf32>, vector<16x8xf32>, vector<8x8xf32> -> vector<8x8xf32>
    %c0_37 = arith.constant 0 : index
    %c0_38 = arith.constant 0 : index
    %c16 = arith.constant 16 : index
    %75 = vector.load %arg4[%c0_37, %c0_38, %c16] : memref<1x8x32xf32, #tpu.memory_space<vmem>>, vector<1x8x8xf32>
    %76 = vector.shape_cast %75 : vector<1x8x8xf32> to vector<8x8xf32>
    %77 = vector.shape_cast %74 : vector<8x8xf32> to vector<1x8x8xf32>
    tpu.vector_store %arg4[%c0_37, %c0_38, %c16], %77 {strides = array<i32>} : memref<1x8x32xf32, #tpu.memory_space<vmem>>, vector<1x8x8xf32>,
    %78 = vector.extract_strided_slice %1 {offsets = [0, 24], sizes = [8, 8], strides = [1, 1]} : vector<8x32xf32> to vector<8x8xf32>
    %79 = vector.extract_strided_slice %3 {offsets = [0, 24], sizes = [16, 8], strides = [1, 1]} : vector<16x64xf32> to vector<16x8xf32>
    %80 = vector.extract_strided_slice %3 {offsets = [0, 56], sizes = [16, 8], strides = [1, 1]} : vector<16x64xf32> to vector<16x8xf32>
    %cst_39 = arith.constant dense<0.000000e+00> : vector<8x16xf32>
    %81 = tpu.matmul %78, %79, %cst_39 {dimension_numbers = #tpu.dot_dimension_numbers<[1], [1], [0], [0], [0, 0, 1, 0], [], []>} : vector<8x8xf32>, vector<16x8xf32>, vector<8x16xf32> -> vector<8x16xf32>
    %cst_40 = arith.constant 0.353553385 : f32
    %82 = vector.broadcast %cst_40 : f32 to vector<8x16xf32>
    %83 = arith.mulf %81, %82 : vector<8x16xf32>
    %84 = vector.broadcast %5 : vector<1x16xf32> to vector<8x16xf32>
    %85 = arith.addf %83, %84 : vector<8x16xf32>
    %cst_41 = arith.constant dense<0xFF800000> : vector<8xf32>
    %86 = vector.multi_reduction <maximumf>, %85, %cst_41 [1] : vector<8x16xf32> to vector<8xf32>
    %87 = vector.shape_cast %86 : vector<8xf32> to vector<8x1xf32>
    %88 = vector.broadcast %87 : vector<8x1xf32> to vector<8x16xf32>
    %89 = arith.subf %85, %88 : vector<8x16xf32>
    %90 = math.exp %89 : vector<8x16xf32>
    %cst_42 = arith.constant dense<0.000000e+00> : vector<8xf32>
    %91 = vector.multi_reduction <add>, %90, %cst_42 [1] : vector<8x16xf32> to vector<8xf32>
    %92 = vector.shape_cast %91 : vector<8xf32> to vector<8x1xf32>
    %93 = vector.broadcast %92 : vector<8x1xf32> to vector<8x16xf32>
    %94 = arith.divf %90, %93 : vector<8x16xf32>
    %c0_43 = arith.constant 0 : index
    %c3 = arith.constant 3 : index
    %c0_44 = arith.constant 0 : index
    %c0_45 = arith.constant 0 : index
    %95 = vector.load %arg5[%c0_43, %c3, %c0_44, %c0_45] : memref<1x4x8x16xf32, #tpu.memory_space<vmem>>, vector<1x1x8x16xf32>
    %96 = vector.shape_cast %95 : vector<1x1x8x16xf32> to vector<8x16xf32>
    %97 = vector.shape_cast %94 : vector<8x16xf32> to vector<1x1x8x16xf32>
    tpu.vector_store %arg5[%c0_43, %c3, %c0_44, %c0_45], %97 {strides = array<i32>} : memref<1x4x8x16xf32, #tpu.memory_space<vmem>>, vector<1x1x8x16xf32>,
    %cst_46 = arith.constant dense<0.000000e+00> : vector<8x8xf32>
    %98 = tpu.matmul %94, %80, %cst_46 {dimension_numbers = #tpu.dot_dimension_numbers<[1], [0], [0], [1], [0, 0, 1, 1], [], []>} : vector<8x16xf32>, vector<16x8xf32>, vector<8x8xf32> -> vector<8x8xf32>
    %c0_47 = arith.constant 0 : index
    %c0_48 = arith.constant 0 : index
    %c24 = arith.constant 24 : index
    %99 = vector.load %arg4[%c0_47, %c0_48, %c24] : memref<1x8x32xf32, #tpu.memory_space<vmem>>, vector<1x8x8xf32>
    %100 = vector.shape_cast %99 : vector<1x8x8xf32> to vector<8x8xf32>
    %101 = vector.shape_cast %98 : vector<8x8xf32> to vector<1x8x8xf32>
    tpu.vector_store %arg4[%c0_47, %c0_48, %c24], %101 {strides = array<i32>} : memref<1x8x32xf32, #tpu.memory_space<vmem>>, vector<1x8x8xf32>,
    return
  }
  func.func @transform_0(%arg0: i32) -> (i32, i32, i32) {
    %c0_i32 = arith.constant 0 : i32
    %c0_i32_0 = arith.constant 0 : i32
    %c0_i32_1 = arith.constant 0 : i32
    return %arg0, %c0_i32, %c0_i32_0 : i32, i32, i32
  }
  func.func @transform_1(%arg0: i32) -> (i32, i32, i32) {
    %c0_i32 = arith.constant 0 : i32
    %c0_i32_0 = arith.constant 0 : i32
    %c0_i32_1 = arith.constant 0 : i32
    return %arg0, %c0_i32, %c0_i32_0 : i32, i32, i32
  }
  func.func @transform_2(%arg0: i32) -> (i32, i32, i32) {
    %c0_i32 = arith.constant 0 : i32
    %c0_i32_0 = arith.constant 0 : i32
    %c0_i32_1 = arith.constant 0 : i32
    return %arg0, %c0_i32, %c0_i32_0 : i32, i32, i32
  }
  func.func @transform_3(%arg0: i32) -> (i32, i32, i32) {
    %c0_i32 = arith.constant 0 : i32
    %c0_i32_0 = arith.constant 0 : i32
    %c0_i32_1 = arith.constant 0 : i32
    return %arg0, %c0_i32, %c0_i32_0 : i32, i32, i32
  }
  func.func @transform_4(%arg0: i32) -> (i32, i32, i32, i32) {
    %c0_i32 = arith.constant 0 : i32
    %c0_i32_0 = arith.constant 0 : i32
    %c0_i32_1 = arith.constant 0 : i32
    %c0_i32_2 = arith.constant 0 : i32
    return %arg0, %c0_i32, %c0_i32_0, %c0_i32_1 : i32, i32, i32, i32
  }
}

module attributes {stable_mosaic.version = 11 : i64} {
  func.func @_lstm_q_kernel(%arg0: i32, %arg1: memref<2x8x32xf32, #tpu.memory_space<vmem>>, %arg2: memref<160x512xf32, #tpu.memory_space<vmem>>, %arg3: memref<1x512xf32, #tpu.memory_space<vmem>>, %arg4: memref<256x512xf32, #tpu.memory_space<vmem>>, %arg5: memref<1x512xf32, #tpu.memory_space<vmem>>, %arg6: memref<128x32xf32, #tpu.memory_space<vmem>>, %arg7: memref<1x32xf32, #tpu.memory_space<vmem>>, %arg8: memref<2x8x32xf32, #tpu.memory_space<vmem>>, %arg9: memref<2x160xf32, #tpu.memory_space<vmem>>, %arg10: memref<2x256xf32, #tpu.memory_space<vmem>>, %arg11: memref<2x128xf32, #tpu.memory_space<vmem>>, %arg12: memref<2x128xf32, #tpu.memory_space<vmem>>) attributes {dimension_semantics = [#tpu.dimension_semantics<arbitrary>], iteration_bounds = array<i64: 1>, scalar_prefetch = 0 : i64, scratch_operands = 4 : i64, tpu.core_type = #tpu.core_type<tc>, window_params = [{transform_indices = @transform_0, window_bounds = array<i64: 2, 8, 32>}, {pipeline_mode = #tpu.pipeline_mode<synchronous>, transform_indices = @transform_1, window_bounds = array<i64: 160, 512>}, {pipeline_mode = #tpu.pipeline_mode<synchronous>, transform_indices = @transform_2, window_bounds = array<i64: 1, 512>}, {pipeline_mode = #tpu.pipeline_mode<synchronous>, transform_indices = @transform_3, window_bounds = array<i64: 256, 512>}, {pipeline_mode = #tpu.pipeline_mode<synchronous>, transform_indices = @transform_4, window_bounds = array<i64: 1, 512>}, {pipeline_mode = #tpu.pipeline_mode<synchronous>, transform_indices = @transform_5, window_bounds = array<i64: 128, 32>}, {pipeline_mode = #tpu.pipeline_mode<synchronous>, transform_indices = @transform_6, window_bounds = array<i64: 1, 32>}, {transform_indices = @transform_7, window_bounds = array<i64: 2, 8, 32>}]} {
    %c0_i32 = arith.constant 0 : i32
    %0 = arith.cmpi eq, %arg0, %c0_i32 : i32
    %1 = arith.extui %0 : i1 to i32
    %c0_i32_0 = arith.constant 0 : i32
    %2 = arith.cmpi ne, %1, %c0_i32_0 : i32
    scf.if %2 {
      %cst_226 = arith.constant 0.000000e+00 : f32
      %573 = vector.broadcast %cst_226 : f32 to vector<2x160xf32>
      %c0_227 = arith.constant 0 : index
      %c0_228 = arith.constant 0 : index
      %574 = vector.load %arg9[%c0_227, %c0_228] : memref<2x160xf32, #tpu.memory_space<vmem>>, vector<2x160xf32>
      tpu.vector_store %arg9[%c0_227, %c0_228], %573 {strides = array<i32>} : memref<2x160xf32, #tpu.memory_space<vmem>>, vector<2x160xf32>,
      %cst_229 = arith.constant 0.000000e+00 : f32
      %575 = vector.broadcast %cst_229 : f32 to vector<2x256xf32>
      %c0_230 = arith.constant 0 : index
      %c0_231 = arith.constant 0 : index
      %576 = vector.load %arg10[%c0_230, %c0_231] : memref<2x256xf32, #tpu.memory_space<vmem>>, vector<2x256xf32>
      tpu.vector_store %arg10[%c0_230, %c0_231], %575 {strides = array<i32>} : memref<2x256xf32, #tpu.memory_space<vmem>>, vector<2x256xf32>,
      %cst_232 = arith.constant 0.000000e+00 : f32
      %577 = vector.broadcast %cst_232 : f32 to vector<2x128xf32>
      %c0_233 = arith.constant 0 : index
      %c0_234 = arith.constant 0 : index
      %578 = vector.load %arg11[%c0_233, %c0_234] : memref<2x128xf32, #tpu.memory_space<vmem>>, vector<2x128xf32>
      tpu.vector_store %arg11[%c0_233, %c0_234], %577 {strides = array<i32>} : memref<2x128xf32, #tpu.memory_space<vmem>>, vector<2x128xf32>,
      %cst_235 = arith.constant 0.000000e+00 : f32
      %579 = vector.broadcast %cst_235 : f32 to vector<2x128xf32>
      %c0_236 = arith.constant 0 : index
      %c0_237 = arith.constant 0 : index
      %580 = vector.load %arg12[%c0_236, %c0_237] : memref<2x128xf32, #tpu.memory_space<vmem>>, vector<2x128xf32>
      tpu.vector_store %arg12[%c0_236, %c0_237], %579 {strides = array<i32>} : memref<2x128xf32, #tpu.memory_space<vmem>>, vector<2x128xf32>,
    } else {
    }
    %c0 = arith.constant 0 : index
    %c0_1 = arith.constant 0 : index
    %3 = vector.load %arg2[%c0, %c0_1] : memref<160x512xf32, #tpu.memory_space<vmem>>, vector<160x512xf32>
    %c0_2 = arith.constant 0 : index
    %c0_3 = arith.constant 0 : index
    %4 = vector.load %arg3[%c0_2, %c0_3] : memref<1x512xf32, #tpu.memory_space<vmem>>, vector<1x512xf32>
    %c0_4 = arith.constant 0 : index
    %c0_5 = arith.constant 0 : index
    %5 = vector.load %arg4[%c0_4, %c0_5] : memref<256x512xf32, #tpu.memory_space<vmem>>, vector<256x512xf32>
    %c0_6 = arith.constant 0 : index
    %c0_7 = arith.constant 0 : index
    %6 = vector.load %arg5[%c0_6, %c0_7] : memref<1x512xf32, #tpu.memory_space<vmem>>, vector<1x512xf32>
    %c0_8 = arith.constant 0 : index
    %c0_9 = arith.constant 0 : index
    %7 = vector.load %arg6[%c0_8, %c0_9] : memref<128x32xf32, #tpu.memory_space<vmem>>, vector<128x32xf32>
    %c0_10 = arith.constant 0 : index
    %c0_11 = arith.constant 0 : index
    %8 = vector.load %arg7[%c0_10, %c0_11] : memref<1x32xf32, #tpu.memory_space<vmem>>, vector<1x32xf32>
    %c0_12 = arith.constant 0 : index
    %c0_13 = arith.constant 0 : index
    %9 = vector.load %arg11[%c0_12, %c0_13] : memref<2x128xf32, #tpu.memory_space<vmem>>, vector<2x128xf32>
    %c0_14 = arith.constant 0 : index
    %c0_15 = arith.constant 0 : index
    %10 = vector.load %arg12[%c0_14, %c0_15] : memref<2x128xf32, #tpu.memory_space<vmem>>, vector<2x128xf32>
    %c0_16 = arith.constant 0 : index
    %c0_17 = arith.constant 0 : index
    %c0_18 = arith.constant 0 : index
    %11 = vector.load %arg1[%c0_16, %c0_17, %c0_18] : memref<2x8x32xf32, #tpu.memory_space<vmem>>, vector<2x1x32xf32>
    %12 = vector.shape_cast %11 : vector<2x1x32xf32> to vector<2x32xf32>
    %c0_19 = arith.constant 0 : index
    %c0_20 = arith.constant 0 : index
    %13 = vector.load %arg9[%c0_19, %c0_20] : memref<2x160xf32, #tpu.memory_space<vmem>>, vector<2x32xf32>
    tpu.vector_store %arg9[%c0_19, %c0_20], %12 {strides = array<i32>} : memref<2x160xf32, #tpu.memory_space<vmem>>, vector<2x32xf32>,
    %c0_21 = arith.constant 0 : index
    %c0_22 = arith.constant 0 : index
    %14 = vector.load %arg9[%c0_21, %c0_22] : memref<2x160xf32, #tpu.memory_space<vmem>>, vector<2x160xf32>
    %cst = arith.constant dense<0.000000e+00> : vector<2x512xf32>
    %15 = tpu.matmul %14, %3, %cst {dimension_numbers = #tpu.dot_dimension_numbers<[1], [0], [0], [1], [0, 0, 1, 1], [], []>} : vector<2x160xf32>, vector<160x512xf32>, vector<2x512xf32> -> vector<2x512xf32>
    %16 = vector.broadcast %4 : vector<1x512xf32> to vector<2x512xf32>
    %17 = arith.addf %15, %16 : vector<2x512xf32>
    %18 = vector.extract_strided_slice %17 {offsets = [0, 0], sizes = [2, 128], strides = [1, 1]} : vector<2x512xf32> to vector<2x128xf32>
    %19 = arith.negf %18 : vector<2x128xf32>
    %20 = math.exp %19 : vector<2x128xf32>
    %cst_23 = arith.constant 1.000000e+00 : f32
    %21 = vector.broadcast %cst_23 : f32 to vector<2x128xf32>
    %22 = arith.addf %21, %20 : vector<2x128xf32>
    %23 = arith.divf %21, %22 : vector<2x128xf32>
    %24 = vector.extract_strided_slice %17 {offsets = [0, 128], sizes = [2, 128], strides = [1, 1]} : vector<2x512xf32> to vector<2x128xf32>
    %25 = arith.negf %24 : vector<2x128xf32>
    %26 = math.exp %25 : vector<2x128xf32>
    %cst_24 = arith.constant 1.000000e+00 : f32
    %27 = vector.broadcast %cst_24 : f32 to vector<2x128xf32>
    %28 = arith.addf %27, %26 : vector<2x128xf32>
    %29 = arith.divf %27, %28 : vector<2x128xf32>
    %30 = vector.extract_strided_slice %17 {offsets = [0, 256], sizes = [2, 128], strides = [1, 1]} : vector<2x512xf32> to vector<2x128xf32>
    %31 = math.tanh %30 : vector<2x128xf32>
    %32 = vector.extract_strided_slice %17 {offsets = [0, 384], sizes = [2, 128], strides = [1, 1]} : vector<2x512xf32> to vector<2x128xf32>
    %33 = arith.negf %32 : vector<2x128xf32>
    %34 = math.exp %33 : vector<2x128xf32>
    %cst_25 = arith.constant 1.000000e+00 : f32
    %35 = vector.broadcast %cst_25 : f32 to vector<2x128xf32>
    %36 = arith.addf %35, %34 : vector<2x128xf32>
    %37 = arith.divf %35, %36 : vector<2x128xf32>
    %38 = arith.mulf %29, %9 : vector<2x128xf32>
    %39 = arith.mulf %23, %31 : vector<2x128xf32>
    %40 = arith.addf %38, %39 : vector<2x128xf32>
    %41 = math.tanh %40 : vector<2x128xf32>
    %42 = arith.mulf %37, %41 : vector<2x128xf32>
    %c0_26 = arith.constant 0 : index
    %c32 = arith.constant 32 : index
    %43 = vector.load %arg9[%c0_26, %c32] : memref<2x160xf32, #tpu.memory_space<vmem>>, vector<2x128xf32>
    tpu.vector_store %arg9[%c0_26, %c32], %42 {strides = array<i32>} : memref<2x160xf32, #tpu.memory_space<vmem>>, vector<2x128xf32>,
    %c0_27 = arith.constant 0 : index
    %c0_28 = arith.constant 0 : index
    %44 = vector.load %arg10[%c0_27, %c0_28] : memref<2x256xf32, #tpu.memory_space<vmem>>, vector<2x128xf32>
    tpu.vector_store %arg10[%c0_27, %c0_28], %42 {strides = array<i32>} : memref<2x256xf32, #tpu.memory_space<vmem>>, vector<2x128xf32>,
    %c0_29 = arith.constant 0 : index
    %c0_30 = arith.constant 0 : index
    %45 = vector.load %arg10[%c0_29, %c0_30] : memref<2x256xf32, #tpu.memory_space<vmem>>, vector<2x256xf32>
    %cst_31 = arith.constant dense<0.000000e+00> : vector<2x512xf32>
    %46 = tpu.matmul %45, %5, %cst_31 {dimension_numbers = #tpu.dot_dimension_numbers<[1], [0], [0], [1], [0, 0, 1, 1], [], []>} : vector<2x256xf32>, vector<256x512xf32>, vector<2x512xf32> -> vector<2x512xf32>
    %47 = vector.broadcast %6 : vector<1x512xf32> to vector<2x512xf32>
    %48 = arith.addf %46, %47 : vector<2x512xf32>
    %49 = vector.extract_strided_slice %48 {offsets = [0, 0], sizes = [2, 128], strides = [1, 1]} : vector<2x512xf32> to vector<2x128xf32>
    %50 = arith.negf %49 : vector<2x128xf32>
    %51 = math.exp %50 : vector<2x128xf32>
    %cst_32 = arith.constant 1.000000e+00 : f32
    %52 = vector.broadcast %cst_32 : f32 to vector<2x128xf32>
    %53 = arith.addf %52, %51 : vector<2x128xf32>
    %54 = arith.divf %52, %53 : vector<2x128xf32>
    %55 = vector.extract_strided_slice %48 {offsets = [0, 128], sizes = [2, 128], strides = [1, 1]} : vector<2x512xf32> to vector<2x128xf32>
    %56 = arith.negf %55 : vector<2x128xf32>
    %57 = math.exp %56 : vector<2x128xf32>
    %cst_33 = arith.constant 1.000000e+00 : f32
    %58 = vector.broadcast %cst_33 : f32 to vector<2x128xf32>
    %59 = arith.addf %58, %57 : vector<2x128xf32>
    %60 = arith.divf %58, %59 : vector<2x128xf32>
    %61 = vector.extract_strided_slice %48 {offsets = [0, 256], sizes = [2, 128], strides = [1, 1]} : vector<2x512xf32> to vector<2x128xf32>
    %62 = math.tanh %61 : vector<2x128xf32>
    %63 = vector.extract_strided_slice %48 {offsets = [0, 384], sizes = [2, 128], strides = [1, 1]} : vector<2x512xf32> to vector<2x128xf32>
    %64 = arith.negf %63 : vector<2x128xf32>
    %65 = math.exp %64 : vector<2x128xf32>
    %cst_34 = arith.constant 1.000000e+00 : f32
    %66 = vector.broadcast %cst_34 : f32 to vector<2x128xf32>
    %67 = arith.addf %66, %65 : vector<2x128xf32>
    %68 = arith.divf %66, %67 : vector<2x128xf32>
    %69 = arith.mulf %60, %10 : vector<2x128xf32>
    %70 = arith.mulf %54, %62 : vector<2x128xf32>
    %71 = arith.addf %69, %70 : vector<2x128xf32>
    %72 = math.tanh %71 : vector<2x128xf32>
    %73 = arith.mulf %68, %72 : vector<2x128xf32>
    %c0_35 = arith.constant 0 : index
    %c128 = arith.constant 128 : index
    %74 = vector.load %arg10[%c0_35, %c128] : memref<2x256xf32, #tpu.memory_space<vmem>>, vector<2x128xf32>
    tpu.vector_store %arg10[%c0_35, %c128], %73 {strides = array<i32>} : memref<2x256xf32, #tpu.memory_space<vmem>>, vector<2x128xf32>,
    %cst_36 = arith.constant dense<0.000000e+00> : vector<2x32xf32>
    %75 = tpu.matmul %73, %7, %cst_36 {dimension_numbers = #tpu.dot_dimension_numbers<[1], [0], [0], [1], [0, 0, 1, 1], [], []>} : vector<2x128xf32>, vector<128x32xf32>, vector<2x32xf32> -> vector<2x32xf32>
    %76 = vector.broadcast %8 : vector<1x32xf32> to vector<2x32xf32>
    %77 = arith.addf %75, %76 : vector<2x32xf32>
    %c0_37 = arith.constant 0 : index
    %c0_38 = arith.constant 0 : index
    %c0_39 = arith.constant 0 : index
    %78 = vector.load %arg8[%c0_37, %c0_38, %c0_39] : memref<2x8x32xf32, #tpu.memory_space<vmem>>, vector<2x1x32xf32>
    %79 = vector.shape_cast %78 : vector<2x1x32xf32> to vector<2x32xf32>
    %80 = vector.shape_cast %77 : vector<2x32xf32> to vector<2x1x32xf32>
    tpu.vector_store %arg8[%c0_37, %c0_38, %c0_39], %80 {strides = array<i32>} : memref<2x8x32xf32, #tpu.memory_space<vmem>>, vector<2x1x32xf32>,
    %c0_40 = arith.constant 0 : index
    %c1 = arith.constant 1 : index
    %c0_41 = arith.constant 0 : index
    %81 = vector.load %arg1[%c0_40, %c1, %c0_41] : memref<2x8x32xf32, #tpu.memory_space<vmem>>, vector<2x1x32xf32>
    %82 = vector.shape_cast %81 : vector<2x1x32xf32> to vector<2x32xf32>
    %c0_42 = arith.constant 0 : index
    %c0_43 = arith.constant 0 : index
    %83 = vector.load %arg9[%c0_42, %c0_43] : memref<2x160xf32, #tpu.memory_space<vmem>>, vector<2x32xf32>
    tpu.vector_store %arg9[%c0_42, %c0_43], %82 {strides = array<i32>} : memref<2x160xf32, #tpu.memory_space<vmem>>, vector<2x32xf32>,
    %c0_44 = arith.constant 0 : index
    %c0_45 = arith.constant 0 : index
    %84 = vector.load %arg9[%c0_44, %c0_45] : memref<2x160xf32, #tpu.memory_space<vmem>>, vector<2x160xf32>
    %cst_46 = arith.constant dense<0.000000e+00> : vector<2x512xf32>
    %85 = tpu.matmul %84, %3, %cst_46 {dimension_numbers = #tpu.dot_dimension_numbers<[1], [0], [0], [1], [0, 0, 1, 1], [], []>} : vector<2x160xf32>, vector<160x512xf32>, vector<2x512xf32> -> vector<2x512xf32>
    %86 = vector.broadcast %4 : vector<1x512xf32> to vector<2x512xf32>
    %87 = arith.addf %85, %86 : vector<2x512xf32>
    %88 = vector.extract_strided_slice %87 {offsets = [0, 0], sizes = [2, 128], strides = [1, 1]} : vector<2x512xf32> to vector<2x128xf32>
    %89 = arith.negf %88 : vector<2x128xf32>
    %90 = math.exp %89 : vector<2x128xf32>
    %cst_47 = arith.constant 1.000000e+00 : f32
    %91 = vector.broadcast %cst_47 : f32 to vector<2x128xf32>
    %92 = arith.addf %91, %90 : vector<2x128xf32>
    %93 = arith.divf %91, %92 : vector<2x128xf32>
    %94 = vector.extract_strided_slice %87 {offsets = [0, 128], sizes = [2, 128], strides = [1, 1]} : vector<2x512xf32> to vector<2x128xf32>
    %95 = arith.negf %94 : vector<2x128xf32>
    %96 = math.exp %95 : vector<2x128xf32>
    %cst_48 = arith.constant 1.000000e+00 : f32
    %97 = vector.broadcast %cst_48 : f32 to vector<2x128xf32>
    %98 = arith.addf %97, %96 : vector<2x128xf32>
    %99 = arith.divf %97, %98 : vector<2x128xf32>
    %100 = vector.extract_strided_slice %87 {offsets = [0, 256], sizes = [2, 128], strides = [1, 1]} : vector<2x512xf32> to vector<2x128xf32>
    %101 = math.tanh %100 : vector<2x128xf32>
    %102 = vector.extract_strided_slice %87 {offsets = [0, 384], sizes = [2, 128], strides = [1, 1]} : vector<2x512xf32> to vector<2x128xf32>
    %103 = arith.negf %102 : vector<2x128xf32>
    %104 = math.exp %103 : vector<2x128xf32>
    %cst_49 = arith.constant 1.000000e+00 : f32
    %105 = vector.broadcast %cst_49 : f32 to vector<2x128xf32>
    %106 = arith.addf %105, %104 : vector<2x128xf32>
    %107 = arith.divf %105, %106 : vector<2x128xf32>
    %108 = arith.mulf %99, %40 : vector<2x128xf32>
    %109 = arith.mulf %93, %101 : vector<2x128xf32>
    %110 = arith.addf %108, %109 : vector<2x128xf32>
    %111 = math.tanh %110 : vector<2x128xf32>
    %112 = arith.mulf %107, %111 : vector<2x128xf32>
    %c0_50 = arith.constant 0 : index
    %c32_51 = arith.constant 32 : index
    %113 = vector.load %arg9[%c0_50, %c32_51] : memref<2x160xf32, #tpu.memory_space<vmem>>, vector<2x128xf32>
    tpu.vector_store %arg9[%c0_50, %c32_51], %112 {strides = array<i32>} : memref<2x160xf32, #tpu.memory_space<vmem>>, vector<2x128xf32>,
    %c0_52 = arith.constant 0 : index
    %c0_53 = arith.constant 0 : index
    %114 = vector.load %arg10[%c0_52, %c0_53] : memref<2x256xf32, #tpu.memory_space<vmem>>, vector<2x128xf32>
    tpu.vector_store %arg10[%c0_52, %c0_53], %112 {strides = array<i32>} : memref<2x256xf32, #tpu.memory_space<vmem>>, vector<2x128xf32>,
    %c0_54 = arith.constant 0 : index
    %c0_55 = arith.constant 0 : index
    %115 = vector.load %arg10[%c0_54, %c0_55] : memref<2x256xf32, #tpu.memory_space<vmem>>, vector<2x256xf32>
    %cst_56 = arith.constant dense<0.000000e+00> : vector<2x512xf32>
    %116 = tpu.matmul %115, %5, %cst_56 {dimension_numbers = #tpu.dot_dimension_numbers<[1], [0], [0], [1], [0, 0, 1, 1], [], []>} : vector<2x256xf32>, vector<256x512xf32>, vector<2x512xf32> -> vector<2x512xf32>
    %117 = vector.broadcast %6 : vector<1x512xf32> to vector<2x512xf32>
    %118 = arith.addf %116, %117 : vector<2x512xf32>
    %119 = vector.extract_strided_slice %118 {offsets = [0, 0], sizes = [2, 128], strides = [1, 1]} : vector<2x512xf32> to vector<2x128xf32>
    %120 = arith.negf %119 : vector<2x128xf32>
    %121 = math.exp %120 : vector<2x128xf32>
    %cst_57 = arith.constant 1.000000e+00 : f32
    %122 = vector.broadcast %cst_57 : f32 to vector<2x128xf32>
    %123 = arith.addf %122, %121 : vector<2x128xf32>
    %124 = arith.divf %122, %123 : vector<2x128xf32>
    %125 = vector.extract_strided_slice %118 {offsets = [0, 128], sizes = [2, 128], strides = [1, 1]} : vector<2x512xf32> to vector<2x128xf32>
    %126 = arith.negf %125 : vector<2x128xf32>
    %127 = math.exp %126 : vector<2x128xf32>
    %cst_58 = arith.constant 1.000000e+00 : f32
    %128 = vector.broadcast %cst_58 : f32 to vector<2x128xf32>
    %129 = arith.addf %128, %127 : vector<2x128xf32>
    %130 = arith.divf %128, %129 : vector<2x128xf32>
    %131 = vector.extract_strided_slice %118 {offsets = [0, 256], sizes = [2, 128], strides = [1, 1]} : vector<2x512xf32> to vector<2x128xf32>
    %132 = math.tanh %131 : vector<2x128xf32>
    %133 = vector.extract_strided_slice %118 {offsets = [0, 384], sizes = [2, 128], strides = [1, 1]} : vector<2x512xf32> to vector<2x128xf32>
    %134 = arith.negf %133 : vector<2x128xf32>
    %135 = math.exp %134 : vector<2x128xf32>
    %cst_59 = arith.constant 1.000000e+00 : f32
    %136 = vector.broadcast %cst_59 : f32 to vector<2x128xf32>
    %137 = arith.addf %136, %135 : vector<2x128xf32>
    %138 = arith.divf %136, %137 : vector<2x128xf32>
    %139 = arith.mulf %130, %71 : vector<2x128xf32>
    %140 = arith.mulf %124, %132 : vector<2x128xf32>
    %141 = arith.addf %139, %140 : vector<2x128xf32>
    %142 = math.tanh %141 : vector<2x128xf32>
    %143 = arith.mulf %138, %142 : vector<2x128xf32>
    %c0_60 = arith.constant 0 : index
    %c128_61 = arith.constant 128 : index
    %144 = vector.load %arg10[%c0_60, %c128_61] : memref<2x256xf32, #tpu.memory_space<vmem>>, vector<2x128xf32>
    tpu.vector_store %arg10[%c0_60, %c128_61], %143 {strides = array<i32>} : memref<2x256xf32, #tpu.memory_space<vmem>>, vector<2x128xf32>,
    %cst_62 = arith.constant dense<0.000000e+00> : vector<2x32xf32>
    %145 = tpu.matmul %143, %7, %cst_62 {dimension_numbers = #tpu.dot_dimension_numbers<[1], [0], [0], [1], [0, 0, 1, 1], [], []>} : vector<2x128xf32>, vector<128x32xf32>, vector<2x32xf32> -> vector<2x32xf32>
    %146 = vector.broadcast %8 : vector<1x32xf32> to vector<2x32xf32>
    %147 = arith.addf %145, %146 : vector<2x32xf32>
    %c0_63 = arith.constant 0 : index
    %c1_64 = arith.constant 1 : index
    %c0_65 = arith.constant 0 : index
    %148 = vector.load %arg8[%c0_63, %c1_64, %c0_65] : memref<2x8x32xf32, #tpu.memory_space<vmem>>, vector<2x1x32xf32>
    %149 = vector.shape_cast %148 : vector<2x1x32xf32> to vector<2x32xf32>
    %150 = vector.shape_cast %147 : vector<2x32xf32> to vector<2x1x32xf32>
    tpu.vector_store %arg8[%c0_63, %c1_64, %c0_65], %150 {strides = array<i32>} : memref<2x8x32xf32, #tpu.memory_space<vmem>>, vector<2x1x32xf32>,
    %c0_66 = arith.constant 0 : index
    %c2 = arith.constant 2 : index
    %c0_67 = arith.constant 0 : index
    %151 = vector.load %arg1[%c0_66, %c2, %c0_67] : memref<2x8x32xf32, #tpu.memory_space<vmem>>, vector<2x1x32xf32>
    %152 = vector.shape_cast %151 : vector<2x1x32xf32> to vector<2x32xf32>
    %c0_68 = arith.constant 0 : index
    %c0_69 = arith.constant 0 : index
    %153 = vector.load %arg9[%c0_68, %c0_69] : memref<2x160xf32, #tpu.memory_space<vmem>>, vector<2x32xf32>
    tpu.vector_store %arg9[%c0_68, %c0_69], %152 {strides = array<i32>} : memref<2x160xf32, #tpu.memory_space<vmem>>, vector<2x32xf32>,
    %c0_70 = arith.constant 0 : index
    %c0_71 = arith.constant 0 : index
    %154 = vector.load %arg9[%c0_70, %c0_71] : memref<2x160xf32, #tpu.memory_space<vmem>>, vector<2x160xf32>
    %cst_72 = arith.constant dense<0.000000e+00> : vector<2x512xf32>
    %155 = tpu.matmul %154, %3, %cst_72 {dimension_numbers = #tpu.dot_dimension_numbers<[1], [0], [0], [1], [0, 0, 1, 1], [], []>} : vector<2x160xf32>, vector<160x512xf32>, vector<2x512xf32> -> vector<2x512xf32>
    %156 = vector.broadcast %4 : vector<1x512xf32> to vector<2x512xf32>
    %157 = arith.addf %155, %156 : vector<2x512xf32>
    %158 = vector.extract_strided_slice %157 {offsets = [0, 0], sizes = [2, 128], strides = [1, 1]} : vector<2x512xf32> to vector<2x128xf32>
    %159 = arith.negf %158 : vector<2x128xf32>
    %160 = math.exp %159 : vector<2x128xf32>
    %cst_73 = arith.constant 1.000000e+00 : f32
    %161 = vector.broadcast %cst_73 : f32 to vector<2x128xf32>
    %162 = arith.addf %161, %160 : vector<2x128xf32>
    %163 = arith.divf %161, %162 : vector<2x128xf32>
    %164 = vector.extract_strided_slice %157 {offsets = [0, 128], sizes = [2, 128], strides = [1, 1]} : vector<2x512xf32> to vector<2x128xf32>
    %165 = arith.negf %164 : vector<2x128xf32>
    %166 = math.exp %165 : vector<2x128xf32>
    %cst_74 = arith.constant 1.000000e+00 : f32
    %167 = vector.broadcast %cst_74 : f32 to vector<2x128xf32>
    %168 = arith.addf %167, %166 : vector<2x128xf32>
    %169 = arith.divf %167, %168 : vector<2x128xf32>
    %170 = vector.extract_strided_slice %157 {offsets = [0, 256], sizes = [2, 128], strides = [1, 1]} : vector<2x512xf32> to vector<2x128xf32>
    %171 = math.tanh %170 : vector<2x128xf32>
    %172 = vector.extract_strided_slice %157 {offsets = [0, 384], sizes = [2, 128], strides = [1, 1]} : vector<2x512xf32> to vector<2x128xf32>
    %173 = arith.negf %172 : vector<2x128xf32>
    %174 = math.exp %173 : vector<2x128xf32>
    %cst_75 = arith.constant 1.000000e+00 : f32
    %175 = vector.broadcast %cst_75 : f32 to vector<2x128xf32>
    %176 = arith.addf %175, %174 : vector<2x128xf32>
    %177 = arith.divf %175, %176 : vector<2x128xf32>
    %178 = arith.mulf %169, %110 : vector<2x128xf32>
    %179 = arith.mulf %163, %171 : vector<2x128xf32>
    %180 = arith.addf %178, %179 : vector<2x128xf32>
    %181 = math.tanh %180 : vector<2x128xf32>
    %182 = arith.mulf %177, %181 : vector<2x128xf32>
    %c0_76 = arith.constant 0 : index
    %c32_77 = arith.constant 32 : index
    %183 = vector.load %arg9[%c0_76, %c32_77] : memref<2x160xf32, #tpu.memory_space<vmem>>, vector<2x128xf32>
    tpu.vector_store %arg9[%c0_76, %c32_77], %182 {strides = array<i32>} : memref<2x160xf32, #tpu.memory_space<vmem>>, vector<2x128xf32>,
    %c0_78 = arith.constant 0 : index
    %c0_79 = arith.constant 0 : index
    %184 = vector.load %arg10[%c0_78, %c0_79] : memref<2x256xf32, #tpu.memory_space<vmem>>, vector<2x128xf32>
    tpu.vector_store %arg10[%c0_78, %c0_79], %182 {strides = array<i32>} : memref<2x256xf32, #tpu.memory_space<vmem>>, vector<2x128xf32>,
    %c0_80 = arith.constant 0 : index
    %c0_81 = arith.constant 0 : index
    %185 = vector.load %arg10[%c0_80, %c0_81] : memref<2x256xf32, #tpu.memory_space<vmem>>, vector<2x256xf32>
    %cst_82 = arith.constant dense<0.000000e+00> : vector<2x512xf32>
    %186 = tpu.matmul %185, %5, %cst_82 {dimension_numbers = #tpu.dot_dimension_numbers<[1], [0], [0], [1], [0, 0, 1, 1], [], []>} : vector<2x256xf32>, vector<256x512xf32>, vector<2x512xf32> -> vector<2x512xf32>
    %187 = vector.broadcast %6 : vector<1x512xf32> to vector<2x512xf32>
    %188 = arith.addf %186, %187 : vector<2x512xf32>
    %189 = vector.extract_strided_slice %188 {offsets = [0, 0], sizes = [2, 128], strides = [1, 1]} : vector<2x512xf32> to vector<2x128xf32>
    %190 = arith.negf %189 : vector<2x128xf32>
    %191 = math.exp %190 : vector<2x128xf32>
    %cst_83 = arith.constant 1.000000e+00 : f32
    %192 = vector.broadcast %cst_83 : f32 to vector<2x128xf32>
    %193 = arith.addf %192, %191 : vector<2x128xf32>
    %194 = arith.divf %192, %193 : vector<2x128xf32>
    %195 = vector.extract_strided_slice %188 {offsets = [0, 128], sizes = [2, 128], strides = [1, 1]} : vector<2x512xf32> to vector<2x128xf32>
    %196 = arith.negf %195 : vector<2x128xf32>
    %197 = math.exp %196 : vector<2x128xf32>
    %cst_84 = arith.constant 1.000000e+00 : f32
    %198 = vector.broadcast %cst_84 : f32 to vector<2x128xf32>
    %199 = arith.addf %198, %197 : vector<2x128xf32>
    %200 = arith.divf %198, %199 : vector<2x128xf32>
    %201 = vector.extract_strided_slice %188 {offsets = [0, 256], sizes = [2, 128], strides = [1, 1]} : vector<2x512xf32> to vector<2x128xf32>
    %202 = math.tanh %201 : vector<2x128xf32>
    %203 = vector.extract_strided_slice %188 {offsets = [0, 384], sizes = [2, 128], strides = [1, 1]} : vector<2x512xf32> to vector<2x128xf32>
    %204 = arith.negf %203 : vector<2x128xf32>
    %205 = math.exp %204 : vector<2x128xf32>
    %cst_85 = arith.constant 1.000000e+00 : f32
    %206 = vector.broadcast %cst_85 : f32 to vector<2x128xf32>
    %207 = arith.addf %206, %205 : vector<2x128xf32>
    %208 = arith.divf %206, %207 : vector<2x128xf32>
    %209 = arith.mulf %200, %141 : vector<2x128xf32>
    %210 = arith.mulf %194, %202 : vector<2x128xf32>
    %211 = arith.addf %209, %210 : vector<2x128xf32>
    %212 = math.tanh %211 : vector<2x128xf32>
    %213 = arith.mulf %208, %212 : vector<2x128xf32>
    %c0_86 = arith.constant 0 : index
    %c128_87 = arith.constant 128 : index
    %214 = vector.load %arg10[%c0_86, %c128_87] : memref<2x256xf32, #tpu.memory_space<vmem>>, vector<2x128xf32>
    tpu.vector_store %arg10[%c0_86, %c128_87], %213 {strides = array<i32>} : memref<2x256xf32, #tpu.memory_space<vmem>>, vector<2x128xf32>,
    %cst_88 = arith.constant dense<0.000000e+00> : vector<2x32xf32>
    %215 = tpu.matmul %213, %7, %cst_88 {dimension_numbers = #tpu.dot_dimension_numbers<[1], [0], [0], [1], [0, 0, 1, 1], [], []>} : vector<2x128xf32>, vector<128x32xf32>, vector<2x32xf32> -> vector<2x32xf32>
    %216 = vector.broadcast %8 : vector<1x32xf32> to vector<2x32xf32>
    %217 = arith.addf %215, %216 : vector<2x32xf32>
    %c0_89 = arith.constant 0 : index
    %c2_90 = arith.constant 2 : index
    %c0_91 = arith.constant 0 : index
    %218 = vector.load %arg8[%c0_89, %c2_90, %c0_91] : memref<2x8x32xf32, #tpu.memory_space<vmem>>, vector<2x1x32xf32>
    %219 = vector.shape_cast %218 : vector<2x1x32xf32> to vector<2x32xf32>
    %220 = vector.shape_cast %217 : vector<2x32xf32> to vector<2x1x32xf32>
    tpu.vector_store %arg8[%c0_89, %c2_90, %c0_91], %220 {strides = array<i32>} : memref<2x8x32xf32, #tpu.memory_space<vmem>>, vector<2x1x32xf32>,
    %c0_92 = arith.constant 0 : index
    %c3 = arith.constant 3 : index
    %c0_93 = arith.constant 0 : index
    %221 = vector.load %arg1[%c0_92, %c3, %c0_93] : memref<2x8x32xf32, #tpu.memory_space<vmem>>, vector<2x1x32xf32>
    %222 = vector.shape_cast %221 : vector<2x1x32xf32> to vector<2x32xf32>
    %c0_94 = arith.constant 0 : index
    %c0_95 = arith.constant 0 : index
    %223 = vector.load %arg9[%c0_94, %c0_95] : memref<2x160xf32, #tpu.memory_space<vmem>>, vector<2x32xf32>
    tpu.vector_store %arg9[%c0_94, %c0_95], %222 {strides = array<i32>} : memref<2x160xf32, #tpu.memory_space<vmem>>, vector<2x32xf32>,
    %c0_96 = arith.constant 0 : index
    %c0_97 = arith.constant 0 : index
    %224 = vector.load %arg9[%c0_96, %c0_97] : memref<2x160xf32, #tpu.memory_space<vmem>>, vector<2x160xf32>
    %cst_98 = arith.constant dense<0.000000e+00> : vector<2x512xf32>
    %225 = tpu.matmul %224, %3, %cst_98 {dimension_numbers = #tpu.dot_dimension_numbers<[1], [0], [0], [1], [0, 0, 1, 1], [], []>} : vector<2x160xf32>, vector<160x512xf32>, vector<2x512xf32> -> vector<2x512xf32>
    %226 = vector.broadcast %4 : vector<1x512xf32> to vector<2x512xf32>
    %227 = arith.addf %225, %226 : vector<2x512xf32>
    %228 = vector.extract_strided_slice %227 {offsets = [0, 0], sizes = [2, 128], strides = [1, 1]} : vector<2x512xf32> to vector<2x128xf32>
    %229 = arith.negf %228 : vector<2x128xf32>
    %230 = math.exp %229 : vector<2x128xf32>
    %cst_99 = arith.constant 1.000000e+00 : f32
    %231 = vector.broadcast %cst_99 : f32 to vector<2x128xf32>
    %232 = arith.addf %231, %230 : vector<2x128xf32>
    %233 = arith.divf %231, %232 : vector<2x128xf32>
    %234 = vector.extract_strided_slice %227 {offsets = [0, 128], sizes = [2, 128], strides = [1, 1]} : vector<2x512xf32> to vector<2x128xf32>
    %235 = arith.negf %234 : vector<2x128xf32>
    %236 = math.exp %235 : vector<2x128xf32>
    %cst_100 = arith.constant 1.000000e+00 : f32
    %237 = vector.broadcast %cst_100 : f32 to vector<2x128xf32>
    %238 = arith.addf %237, %236 : vector<2x128xf32>
    %239 = arith.divf %237, %238 : vector<2x128xf32>
    %240 = vector.extract_strided_slice %227 {offsets = [0, 256], sizes = [2, 128], strides = [1, 1]} : vector<2x512xf32> to vector<2x128xf32>
    %241 = math.tanh %240 : vector<2x128xf32>
    %242 = vector.extract_strided_slice %227 {offsets = [0, 384], sizes = [2, 128], strides = [1, 1]} : vector<2x512xf32> to vector<2x128xf32>
    %243 = arith.negf %242 : vector<2x128xf32>
    %244 = math.exp %243 : vector<2x128xf32>
    %cst_101 = arith.constant 1.000000e+00 : f32
    %245 = vector.broadcast %cst_101 : f32 to vector<2x128xf32>
    %246 = arith.addf %245, %244 : vector<2x128xf32>
    %247 = arith.divf %245, %246 : vector<2x128xf32>
    %248 = arith.mulf %239, %180 : vector<2x128xf32>
    %249 = arith.mulf %233, %241 : vector<2x128xf32>
    %250 = arith.addf %248, %249 : vector<2x128xf32>
    %251 = math.tanh %250 : vector<2x128xf32>
    %252 = arith.mulf %247, %251 : vector<2x128xf32>
    %c0_102 = arith.constant 0 : index
    %c32_103 = arith.constant 32 : index
    %253 = vector.load %arg9[%c0_102, %c32_103] : memref<2x160xf32, #tpu.memory_space<vmem>>, vector<2x128xf32>
    tpu.vector_store %arg9[%c0_102, %c32_103], %252 {strides = array<i32>} : memref<2x160xf32, #tpu.memory_space<vmem>>, vector<2x128xf32>,
    %c0_104 = arith.constant 0 : index
    %c0_105 = arith.constant 0 : index
    %254 = vector.load %arg10[%c0_104, %c0_105] : memref<2x256xf32, #tpu.memory_space<vmem>>, vector<2x128xf32>
    tpu.vector_store %arg10[%c0_104, %c0_105], %252 {strides = array<i32>} : memref<2x256xf32, #tpu.memory_space<vmem>>, vector<2x128xf32>,
    %c0_106 = arith.constant 0 : index
    %c0_107 = arith.constant 0 : index
    %255 = vector.load %arg10[%c0_106, %c0_107] : memref<2x256xf32, #tpu.memory_space<vmem>>, vector<2x256xf32>
    %cst_108 = arith.constant dense<0.000000e+00> : vector<2x512xf32>
    %256 = tpu.matmul %255, %5, %cst_108 {dimension_numbers = #tpu.dot_dimension_numbers<[1], [0], [0], [1], [0, 0, 1, 1], [], []>} : vector<2x256xf32>, vector<256x512xf32>, vector<2x512xf32> -> vector<2x512xf32>
    %257 = vector.broadcast %6 : vector<1x512xf32> to vector<2x512xf32>
    %258 = arith.addf %256, %257 : vector<2x512xf32>
    %259 = vector.extract_strided_slice %258 {offsets = [0, 0], sizes = [2, 128], strides = [1, 1]} : vector<2x512xf32> to vector<2x128xf32>
    %260 = arith.negf %259 : vector<2x128xf32>
    %261 = math.exp %260 : vector<2x128xf32>
    %cst_109 = arith.constant 1.000000e+00 : f32
    %262 = vector.broadcast %cst_109 : f32 to vector<2x128xf32>
    %263 = arith.addf %262, %261 : vector<2x128xf32>
    %264 = arith.divf %262, %263 : vector<2x128xf32>
    %265 = vector.extract_strided_slice %258 {offsets = [0, 128], sizes = [2, 128], strides = [1, 1]} : vector<2x512xf32> to vector<2x128xf32>
    %266 = arith.negf %265 : vector<2x128xf32>
    %267 = math.exp %266 : vector<2x128xf32>
    %cst_110 = arith.constant 1.000000e+00 : f32
    %268 = vector.broadcast %cst_110 : f32 to vector<2x128xf32>
    %269 = arith.addf %268, %267 : vector<2x128xf32>
    %270 = arith.divf %268, %269 : vector<2x128xf32>
    %271 = vector.extract_strided_slice %258 {offsets = [0, 256], sizes = [2, 128], strides = [1, 1]} : vector<2x512xf32> to vector<2x128xf32>
    %272 = math.tanh %271 : vector<2x128xf32>
    %273 = vector.extract_strided_slice %258 {offsets = [0, 384], sizes = [2, 128], strides = [1, 1]} : vector<2x512xf32> to vector<2x128xf32>
    %274 = arith.negf %273 : vector<2x128xf32>
    %275 = math.exp %274 : vector<2x128xf32>
    %cst_111 = arith.constant 1.000000e+00 : f32
    %276 = vector.broadcast %cst_111 : f32 to vector<2x128xf32>
    %277 = arith.addf %276, %275 : vector<2x128xf32>
    %278 = arith.divf %276, %277 : vector<2x128xf32>
    %279 = arith.mulf %270, %211 : vector<2x128xf32>
    %280 = arith.mulf %264, %272 : vector<2x128xf32>
    %281 = arith.addf %279, %280 : vector<2x128xf32>
    %282 = math.tanh %281 : vector<2x128xf32>
    %283 = arith.mulf %278, %282 : vector<2x128xf32>
    %c0_112 = arith.constant 0 : index
    %c128_113 = arith.constant 128 : index
    %284 = vector.load %arg10[%c0_112, %c128_113] : memref<2x256xf32, #tpu.memory_space<vmem>>, vector<2x128xf32>
    tpu.vector_store %arg10[%c0_112, %c128_113], %283 {strides = array<i32>} : memref<2x256xf32, #tpu.memory_space<vmem>>, vector<2x128xf32>,
    %cst_114 = arith.constant dense<0.000000e+00> : vector<2x32xf32>
    %285 = tpu.matmul %283, %7, %cst_114 {dimension_numbers = #tpu.dot_dimension_numbers<[1], [0], [0], [1], [0, 0, 1, 1], [], []>} : vector<2x128xf32>, vector<128x32xf32>, vector<2x32xf32> -> vector<2x32xf32>
    %286 = vector.broadcast %8 : vector<1x32xf32> to vector<2x32xf32>
    %287 = arith.addf %285, %286 : vector<2x32xf32>
    %c0_115 = arith.constant 0 : index
    %c3_116 = arith.constant 3 : index
    %c0_117 = arith.constant 0 : index
    %288 = vector.load %arg8[%c0_115, %c3_116, %c0_117] : memref<2x8x32xf32, #tpu.memory_space<vmem>>, vector<2x1x32xf32>
    %289 = vector.shape_cast %288 : vector<2x1x32xf32> to vector<2x32xf32>
    %290 = vector.shape_cast %287 : vector<2x32xf32> to vector<2x1x32xf32>
    tpu.vector_store %arg8[%c0_115, %c3_116, %c0_117], %290 {strides = array<i32>} : memref<2x8x32xf32, #tpu.memory_space<vmem>>, vector<2x1x32xf32>,
    %c0_118 = arith.constant 0 : index
    %c4 = arith.constant 4 : index
    %c0_119 = arith.constant 0 : index
    %291 = vector.load %arg1[%c0_118, %c4, %c0_119] : memref<2x8x32xf32, #tpu.memory_space<vmem>>, vector<2x1x32xf32>
    %292 = vector.shape_cast %291 : vector<2x1x32xf32> to vector<2x32xf32>
    %c0_120 = arith.constant 0 : index
    %c0_121 = arith.constant 0 : index
    %293 = vector.load %arg9[%c0_120, %c0_121] : memref<2x160xf32, #tpu.memory_space<vmem>>, vector<2x32xf32>
    tpu.vector_store %arg9[%c0_120, %c0_121], %292 {strides = array<i32>} : memref<2x160xf32, #tpu.memory_space<vmem>>, vector<2x32xf32>,
    %c0_122 = arith.constant 0 : index
    %c0_123 = arith.constant 0 : index
    %294 = vector.load %arg9[%c0_122, %c0_123] : memref<2x160xf32, #tpu.memory_space<vmem>>, vector<2x160xf32>
    %cst_124 = arith.constant dense<0.000000e+00> : vector<2x512xf32>
    %295 = tpu.matmul %294, %3, %cst_124 {dimension_numbers = #tpu.dot_dimension_numbers<[1], [0], [0], [1], [0, 0, 1, 1], [], []>} : vector<2x160xf32>, vector<160x512xf32>, vector<2x512xf32> -> vector<2x512xf32>
    %296 = vector.broadcast %4 : vector<1x512xf32> to vector<2x512xf32>
    %297 = arith.addf %295, %296 : vector<2x512xf32>
    %298 = vector.extract_strided_slice %297 {offsets = [0, 0], sizes = [2, 128], strides = [1, 1]} : vector<2x512xf32> to vector<2x128xf32>
    %299 = arith.negf %298 : vector<2x128xf32>
    %300 = math.exp %299 : vector<2x128xf32>
    %cst_125 = arith.constant 1.000000e+00 : f32
    %301 = vector.broadcast %cst_125 : f32 to vector<2x128xf32>
    %302 = arith.addf %301, %300 : vector<2x128xf32>
    %303 = arith.divf %301, %302 : vector<2x128xf32>
    %304 = vector.extract_strided_slice %297 {offsets = [0, 128], sizes = [2, 128], strides = [1, 1]} : vector<2x512xf32> to vector<2x128xf32>
    %305 = arith.negf %304 : vector<2x128xf32>
    %306 = math.exp %305 : vector<2x128xf32>
    %cst_126 = arith.constant 1.000000e+00 : f32
    %307 = vector.broadcast %cst_126 : f32 to vector<2x128xf32>
    %308 = arith.addf %307, %306 : vector<2x128xf32>
    %309 = arith.divf %307, %308 : vector<2x128xf32>
    %310 = vector.extract_strided_slice %297 {offsets = [0, 256], sizes = [2, 128], strides = [1, 1]} : vector<2x512xf32> to vector<2x128xf32>
    %311 = math.tanh %310 : vector<2x128xf32>
    %312 = vector.extract_strided_slice %297 {offsets = [0, 384], sizes = [2, 128], strides = [1, 1]} : vector<2x512xf32> to vector<2x128xf32>
    %313 = arith.negf %312 : vector<2x128xf32>
    %314 = math.exp %313 : vector<2x128xf32>
    %cst_127 = arith.constant 1.000000e+00 : f32
    %315 = vector.broadcast %cst_127 : f32 to vector<2x128xf32>
    %316 = arith.addf %315, %314 : vector<2x128xf32>
    %317 = arith.divf %315, %316 : vector<2x128xf32>
    %318 = arith.mulf %309, %250 : vector<2x128xf32>
    %319 = arith.mulf %303, %311 : vector<2x128xf32>
    %320 = arith.addf %318, %319 : vector<2x128xf32>
    %321 = math.tanh %320 : vector<2x128xf32>
    %322 = arith.mulf %317, %321 : vector<2x128xf32>
    %c0_128 = arith.constant 0 : index
    %c32_129 = arith.constant 32 : index
    %323 = vector.load %arg9[%c0_128, %c32_129] : memref<2x160xf32, #tpu.memory_space<vmem>>, vector<2x128xf32>
    tpu.vector_store %arg9[%c0_128, %c32_129], %322 {strides = array<i32>} : memref<2x160xf32, #tpu.memory_space<vmem>>, vector<2x128xf32>,
    %c0_130 = arith.constant 0 : index
    %c0_131 = arith.constant 0 : index
    %324 = vector.load %arg10[%c0_130, %c0_131] : memref<2x256xf32, #tpu.memory_space<vmem>>, vector<2x128xf32>
    tpu.vector_store %arg10[%c0_130, %c0_131], %322 {strides = array<i32>} : memref<2x256xf32, #tpu.memory_space<vmem>>, vector<2x128xf32>,
    %c0_132 = arith.constant 0 : index
    %c0_133 = arith.constant 0 : index
    %325 = vector.load %arg10[%c0_132, %c0_133] : memref<2x256xf32, #tpu.memory_space<vmem>>, vector<2x256xf32>
    %cst_134 = arith.constant dense<0.000000e+00> : vector<2x512xf32>
    %326 = tpu.matmul %325, %5, %cst_134 {dimension_numbers = #tpu.dot_dimension_numbers<[1], [0], [0], [1], [0, 0, 1, 1], [], []>} : vector<2x256xf32>, vector<256x512xf32>, vector<2x512xf32> -> vector<2x512xf32>
    %327 = vector.broadcast %6 : vector<1x512xf32> to vector<2x512xf32>
    %328 = arith.addf %326, %327 : vector<2x512xf32>
    %329 = vector.extract_strided_slice %328 {offsets = [0, 0], sizes = [2, 128], strides = [1, 1]} : vector<2x512xf32> to vector<2x128xf32>
    %330 = arith.negf %329 : vector<2x128xf32>
    %331 = math.exp %330 : vector<2x128xf32>
    %cst_135 = arith.constant 1.000000e+00 : f32
    %332 = vector.broadcast %cst_135 : f32 to vector<2x128xf32>
    %333 = arith.addf %332, %331 : vector<2x128xf32>
    %334 = arith.divf %332, %333 : vector<2x128xf32>
    %335 = vector.extract_strided_slice %328 {offsets = [0, 128], sizes = [2, 128], strides = [1, 1]} : vector<2x512xf32> to vector<2x128xf32>
    %336 = arith.negf %335 : vector<2x128xf32>
    %337 = math.exp %336 : vector<2x128xf32>
    %cst_136 = arith.constant 1.000000e+00 : f32
    %338 = vector.broadcast %cst_136 : f32 to vector<2x128xf32>
    %339 = arith.addf %338, %337 : vector<2x128xf32>
    %340 = arith.divf %338, %339 : vector<2x128xf32>
    %341 = vector.extract_strided_slice %328 {offsets = [0, 256], sizes = [2, 128], strides = [1, 1]} : vector<2x512xf32> to vector<2x128xf32>
    %342 = math.tanh %341 : vector<2x128xf32>
    %343 = vector.extract_strided_slice %328 {offsets = [0, 384], sizes = [2, 128], strides = [1, 1]} : vector<2x512xf32> to vector<2x128xf32>
    %344 = arith.negf %343 : vector<2x128xf32>
    %345 = math.exp %344 : vector<2x128xf32>
    %cst_137 = arith.constant 1.000000e+00 : f32
    %346 = vector.broadcast %cst_137 : f32 to vector<2x128xf32>
    %347 = arith.addf %346, %345 : vector<2x128xf32>
    %348 = arith.divf %346, %347 : vector<2x128xf32>
    %349 = arith.mulf %340, %281 : vector<2x128xf32>
    %350 = arith.mulf %334, %342 : vector<2x128xf32>
    %351 = arith.addf %349, %350 : vector<2x128xf32>
    %352 = math.tanh %351 : vector<2x128xf32>
    %353 = arith.mulf %348, %352 : vector<2x128xf32>
    %c0_138 = arith.constant 0 : index
    %c128_139 = arith.constant 128 : index
    %354 = vector.load %arg10[%c0_138, %c128_139] : memref<2x256xf32, #tpu.memory_space<vmem>>, vector<2x128xf32>
    tpu.vector_store %arg10[%c0_138, %c128_139], %353 {strides = array<i32>} : memref<2x256xf32, #tpu.memory_space<vmem>>, vector<2x128xf32>,
    %cst_140 = arith.constant dense<0.000000e+00> : vector<2x32xf32>
    %355 = tpu.matmul %353, %7, %cst_140 {dimension_numbers = #tpu.dot_dimension_numbers<[1], [0], [0], [1], [0, 0, 1, 1], [], []>} : vector<2x128xf32>, vector<128x32xf32>, vector<2x32xf32> -> vector<2x32xf32>
    %356 = vector.broadcast %8 : vector<1x32xf32> to vector<2x32xf32>
    %357 = arith.addf %355, %356 : vector<2x32xf32>
    %c0_141 = arith.constant 0 : index
    %c4_142 = arith.constant 4 : index
    %c0_143 = arith.constant 0 : index
    %358 = vector.load %arg8[%c0_141, %c4_142, %c0_143] : memref<2x8x32xf32, #tpu.memory_space<vmem>>, vector<2x1x32xf32>
    %359 = vector.shape_cast %358 : vector<2x1x32xf32> to vector<2x32xf32>
    %360 = vector.shape_cast %357 : vector<2x32xf32> to vector<2x1x32xf32>
    tpu.vector_store %arg8[%c0_141, %c4_142, %c0_143], %360 {strides = array<i32>} : memref<2x8x32xf32, #tpu.memory_space<vmem>>, vector<2x1x32xf32>,
    %c0_144 = arith.constant 0 : index
    %c5 = arith.constant 5 : index
    %c0_145 = arith.constant 0 : index
    %361 = vector.load %arg1[%c0_144, %c5, %c0_145] : memref<2x8x32xf32, #tpu.memory_space<vmem>>, vector<2x1x32xf32>
    %362 = vector.shape_cast %361 : vector<2x1x32xf32> to vector<2x32xf32>
    %c0_146 = arith.constant 0 : index
    %c0_147 = arith.constant 0 : index
    %363 = vector.load %arg9[%c0_146, %c0_147] : memref<2x160xf32, #tpu.memory_space<vmem>>, vector<2x32xf32>
    tpu.vector_store %arg9[%c0_146, %c0_147], %362 {strides = array<i32>} : memref<2x160xf32, #tpu.memory_space<vmem>>, vector<2x32xf32>,
    %c0_148 = arith.constant 0 : index
    %c0_149 = arith.constant 0 : index
    %364 = vector.load %arg9[%c0_148, %c0_149] : memref<2x160xf32, #tpu.memory_space<vmem>>, vector<2x160xf32>
    %cst_150 = arith.constant dense<0.000000e+00> : vector<2x512xf32>
    %365 = tpu.matmul %364, %3, %cst_150 {dimension_numbers = #tpu.dot_dimension_numbers<[1], [0], [0], [1], [0, 0, 1, 1], [], []>} : vector<2x160xf32>, vector<160x512xf32>, vector<2x512xf32> -> vector<2x512xf32>
    %366 = vector.broadcast %4 : vector<1x512xf32> to vector<2x512xf32>
    %367 = arith.addf %365, %366 : vector<2x512xf32>
    %368 = vector.extract_strided_slice %367 {offsets = [0, 0], sizes = [2, 128], strides = [1, 1]} : vector<2x512xf32> to vector<2x128xf32>
    %369 = arith.negf %368 : vector<2x128xf32>
    %370 = math.exp %369 : vector<2x128xf32>
    %cst_151 = arith.constant 1.000000e+00 : f32
    %371 = vector.broadcast %cst_151 : f32 to vector<2x128xf32>
    %372 = arith.addf %371, %370 : vector<2x128xf32>
    %373 = arith.divf %371, %372 : vector<2x128xf32>
    %374 = vector.extract_strided_slice %367 {offsets = [0, 128], sizes = [2, 128], strides = [1, 1]} : vector<2x512xf32> to vector<2x128xf32>
    %375 = arith.negf %374 : vector<2x128xf32>
    %376 = math.exp %375 : vector<2x128xf32>
    %cst_152 = arith.constant 1.000000e+00 : f32
    %377 = vector.broadcast %cst_152 : f32 to vector<2x128xf32>
    %378 = arith.addf %377, %376 : vector<2x128xf32>
    %379 = arith.divf %377, %378 : vector<2x128xf32>
    %380 = vector.extract_strided_slice %367 {offsets = [0, 256], sizes = [2, 128], strides = [1, 1]} : vector<2x512xf32> to vector<2x128xf32>
    %381 = math.tanh %380 : vector<2x128xf32>
    %382 = vector.extract_strided_slice %367 {offsets = [0, 384], sizes = [2, 128], strides = [1, 1]} : vector<2x512xf32> to vector<2x128xf32>
    %383 = arith.negf %382 : vector<2x128xf32>
    %384 = math.exp %383 : vector<2x128xf32>
    %cst_153 = arith.constant 1.000000e+00 : f32
    %385 = vector.broadcast %cst_153 : f32 to vector<2x128xf32>
    %386 = arith.addf %385, %384 : vector<2x128xf32>
    %387 = arith.divf %385, %386 : vector<2x128xf32>
    %388 = arith.mulf %379, %320 : vector<2x128xf32>
    %389 = arith.mulf %373, %381 : vector<2x128xf32>
    %390 = arith.addf %388, %389 : vector<2x128xf32>
    %391 = math.tanh %390 : vector<2x128xf32>
    %392 = arith.mulf %387, %391 : vector<2x128xf32>
    %c0_154 = arith.constant 0 : index
    %c32_155 = arith.constant 32 : index
    %393 = vector.load %arg9[%c0_154, %c32_155] : memref<2x160xf32, #tpu.memory_space<vmem>>, vector<2x128xf32>
    tpu.vector_store %arg9[%c0_154, %c32_155], %392 {strides = array<i32>} : memref<2x160xf32, #tpu.memory_space<vmem>>, vector<2x128xf32>,
    %c0_156 = arith.constant 0 : index
    %c0_157 = arith.constant 0 : index
    %394 = vector.load %arg10[%c0_156, %c0_157] : memref<2x256xf32, #tpu.memory_space<vmem>>, vector<2x128xf32>
    tpu.vector_store %arg10[%c0_156, %c0_157], %392 {strides = array<i32>} : memref<2x256xf32, #tpu.memory_space<vmem>>, vector<2x128xf32>,
    %c0_158 = arith.constant 0 : index
    %c0_159 = arith.constant 0 : index
    %395 = vector.load %arg10[%c0_158, %c0_159] : memref<2x256xf32, #tpu.memory_space<vmem>>, vector<2x256xf32>
    %cst_160 = arith.constant dense<0.000000e+00> : vector<2x512xf32>
    %396 = tpu.matmul %395, %5, %cst_160 {dimension_numbers = #tpu.dot_dimension_numbers<[1], [0], [0], [1], [0, 0, 1, 1], [], []>} : vector<2x256xf32>, vector<256x512xf32>, vector<2x512xf32> -> vector<2x512xf32>
    %397 = vector.broadcast %6 : vector<1x512xf32> to vector<2x512xf32>
    %398 = arith.addf %396, %397 : vector<2x512xf32>
    %399 = vector.extract_strided_slice %398 {offsets = [0, 0], sizes = [2, 128], strides = [1, 1]} : vector<2x512xf32> to vector<2x128xf32>
    %400 = arith.negf %399 : vector<2x128xf32>
    %401 = math.exp %400 : vector<2x128xf32>
    %cst_161 = arith.constant 1.000000e+00 : f32
    %402 = vector.broadcast %cst_161 : f32 to vector<2x128xf32>
    %403 = arith.addf %402, %401 : vector<2x128xf32>
    %404 = arith.divf %402, %403 : vector<2x128xf32>
    %405 = vector.extract_strided_slice %398 {offsets = [0, 128], sizes = [2, 128], strides = [1, 1]} : vector<2x512xf32> to vector<2x128xf32>
    %406 = arith.negf %405 : vector<2x128xf32>
    %407 = math.exp %406 : vector<2x128xf32>
    %cst_162 = arith.constant 1.000000e+00 : f32
    %408 = vector.broadcast %cst_162 : f32 to vector<2x128xf32>
    %409 = arith.addf %408, %407 : vector<2x128xf32>
    %410 = arith.divf %408, %409 : vector<2x128xf32>
    %411 = vector.extract_strided_slice %398 {offsets = [0, 256], sizes = [2, 128], strides = [1, 1]} : vector<2x512xf32> to vector<2x128xf32>
    %412 = math.tanh %411 : vector<2x128xf32>
    %413 = vector.extract_strided_slice %398 {offsets = [0, 384], sizes = [2, 128], strides = [1, 1]} : vector<2x512xf32> to vector<2x128xf32>
    %414 = arith.negf %413 : vector<2x128xf32>
    %415 = math.exp %414 : vector<2x128xf32>
    %cst_163 = arith.constant 1.000000e+00 : f32
    %416 = vector.broadcast %cst_163 : f32 to vector<2x128xf32>
    %417 = arith.addf %416, %415 : vector<2x128xf32>
    %418 = arith.divf %416, %417 : vector<2x128xf32>
    %419 = arith.mulf %410, %351 : vector<2x128xf32>
    %420 = arith.mulf %404, %412 : vector<2x128xf32>
    %421 = arith.addf %419, %420 : vector<2x128xf32>
    %422 = math.tanh %421 : vector<2x128xf32>
    %423 = arith.mulf %418, %422 : vector<2x128xf32>
    %c0_164 = arith.constant 0 : index
    %c128_165 = arith.constant 128 : index
    %424 = vector.load %arg10[%c0_164, %c128_165] : memref<2x256xf32, #tpu.memory_space<vmem>>, vector<2x128xf32>
    tpu.vector_store %arg10[%c0_164, %c128_165], %423 {strides = array<i32>} : memref<2x256xf32, #tpu.memory_space<vmem>>, vector<2x128xf32>,
    %cst_166 = arith.constant dense<0.000000e+00> : vector<2x32xf32>
    %425 = tpu.matmul %423, %7, %cst_166 {dimension_numbers = #tpu.dot_dimension_numbers<[1], [0], [0], [1], [0, 0, 1, 1], [], []>} : vector<2x128xf32>, vector<128x32xf32>, vector<2x32xf32> -> vector<2x32xf32>
    %426 = vector.broadcast %8 : vector<1x32xf32> to vector<2x32xf32>
    %427 = arith.addf %425, %426 : vector<2x32xf32>
    %c0_167 = arith.constant 0 : index
    %c5_168 = arith.constant 5 : index
    %c0_169 = arith.constant 0 : index
    %428 = vector.load %arg8[%c0_167, %c5_168, %c0_169] : memref<2x8x32xf32, #tpu.memory_space<vmem>>, vector<2x1x32xf32>
    %429 = vector.shape_cast %428 : vector<2x1x32xf32> to vector<2x32xf32>
    %430 = vector.shape_cast %427 : vector<2x32xf32> to vector<2x1x32xf32>
    tpu.vector_store %arg8[%c0_167, %c5_168, %c0_169], %430 {strides = array<i32>} : memref<2x8x32xf32, #tpu.memory_space<vmem>>, vector<2x1x32xf32>,
    %c0_170 = arith.constant 0 : index
    %c6 = arith.constant 6 : index
    %c0_171 = arith.constant 0 : index
    %431 = vector.load %arg1[%c0_170, %c6, %c0_171] : memref<2x8x32xf32, #tpu.memory_space<vmem>>, vector<2x1x32xf32>
    %432 = vector.shape_cast %431 : vector<2x1x32xf32> to vector<2x32xf32>
    %c0_172 = arith.constant 0 : index
    %c0_173 = arith.constant 0 : index
    %433 = vector.load %arg9[%c0_172, %c0_173] : memref<2x160xf32, #tpu.memory_space<vmem>>, vector<2x32xf32>
    tpu.vector_store %arg9[%c0_172, %c0_173], %432 {strides = array<i32>} : memref<2x160xf32, #tpu.memory_space<vmem>>, vector<2x32xf32>,
    %c0_174 = arith.constant 0 : index
    %c0_175 = arith.constant 0 : index
    %434 = vector.load %arg9[%c0_174, %c0_175] : memref<2x160xf32, #tpu.memory_space<vmem>>, vector<2x160xf32>
    %cst_176 = arith.constant dense<0.000000e+00> : vector<2x512xf32>
    %435 = tpu.matmul %434, %3, %cst_176 {dimension_numbers = #tpu.dot_dimension_numbers<[1], [0], [0], [1], [0, 0, 1, 1], [], []>} : vector<2x160xf32>, vector<160x512xf32>, vector<2x512xf32> -> vector<2x512xf32>
    %436 = vector.broadcast %4 : vector<1x512xf32> to vector<2x512xf32>
    %437 = arith.addf %435, %436 : vector<2x512xf32>
    %438 = vector.extract_strided_slice %437 {offsets = [0, 0], sizes = [2, 128], strides = [1, 1]} : vector<2x512xf32> to vector<2x128xf32>
    %439 = arith.negf %438 : vector<2x128xf32>
    %440 = math.exp %439 : vector<2x128xf32>
    %cst_177 = arith.constant 1.000000e+00 : f32
    %441 = vector.broadcast %cst_177 : f32 to vector<2x128xf32>
    %442 = arith.addf %441, %440 : vector<2x128xf32>
    %443 = arith.divf %441, %442 : vector<2x128xf32>
    %444 = vector.extract_strided_slice %437 {offsets = [0, 128], sizes = [2, 128], strides = [1, 1]} : vector<2x512xf32> to vector<2x128xf32>
    %445 = arith.negf %444 : vector<2x128xf32>
    %446 = math.exp %445 : vector<2x128xf32>
    %cst_178 = arith.constant 1.000000e+00 : f32
    %447 = vector.broadcast %cst_178 : f32 to vector<2x128xf32>
    %448 = arith.addf %447, %446 : vector<2x128xf32>
    %449 = arith.divf %447, %448 : vector<2x128xf32>
    %450 = vector.extract_strided_slice %437 {offsets = [0, 256], sizes = [2, 128], strides = [1, 1]} : vector<2x512xf32> to vector<2x128xf32>
    %451 = math.tanh %450 : vector<2x128xf32>
    %452 = vector.extract_strided_slice %437 {offsets = [0, 384], sizes = [2, 128], strides = [1, 1]} : vector<2x512xf32> to vector<2x128xf32>
    %453 = arith.negf %452 : vector<2x128xf32>
    %454 = math.exp %453 : vector<2x128xf32>
    %cst_179 = arith.constant 1.000000e+00 : f32
    %455 = vector.broadcast %cst_179 : f32 to vector<2x128xf32>
    %456 = arith.addf %455, %454 : vector<2x128xf32>
    %457 = arith.divf %455, %456 : vector<2x128xf32>
    %458 = arith.mulf %449, %390 : vector<2x128xf32>
    %459 = arith.mulf %443, %451 : vector<2x128xf32>
    %460 = arith.addf %458, %459 : vector<2x128xf32>
    %461 = math.tanh %460 : vector<2x128xf32>
    %462 = arith.mulf %457, %461 : vector<2x128xf32>
    %c0_180 = arith.constant 0 : index
    %c32_181 = arith.constant 32 : index
    %463 = vector.load %arg9[%c0_180, %c32_181] : memref<2x160xf32, #tpu.memory_space<vmem>>, vector<2x128xf32>
    tpu.vector_store %arg9[%c0_180, %c32_181], %462 {strides = array<i32>} : memref<2x160xf32, #tpu.memory_space<vmem>>, vector<2x128xf32>,
    %c0_182 = arith.constant 0 : index
    %c0_183 = arith.constant 0 : index
    %464 = vector.load %arg10[%c0_182, %c0_183] : memref<2x256xf32, #tpu.memory_space<vmem>>, vector<2x128xf32>
    tpu.vector_store %arg10[%c0_182, %c0_183], %462 {strides = array<i32>} : memref<2x256xf32, #tpu.memory_space<vmem>>, vector<2x128xf32>,
    %c0_184 = arith.constant 0 : index
    %c0_185 = arith.constant 0 : index
    %465 = vector.load %arg10[%c0_184, %c0_185] : memref<2x256xf32, #tpu.memory_space<vmem>>, vector<2x256xf32>
    %cst_186 = arith.constant dense<0.000000e+00> : vector<2x512xf32>
    %466 = tpu.matmul %465, %5, %cst_186 {dimension_numbers = #tpu.dot_dimension_numbers<[1], [0], [0], [1], [0, 0, 1, 1], [], []>} : vector<2x256xf32>, vector<256x512xf32>, vector<2x512xf32> -> vector<2x512xf32>
    %467 = vector.broadcast %6 : vector<1x512xf32> to vector<2x512xf32>
    %468 = arith.addf %466, %467 : vector<2x512xf32>
    %469 = vector.extract_strided_slice %468 {offsets = [0, 0], sizes = [2, 128], strides = [1, 1]} : vector<2x512xf32> to vector<2x128xf32>
    %470 = arith.negf %469 : vector<2x128xf32>
    %471 = math.exp %470 : vector<2x128xf32>
    %cst_187 = arith.constant 1.000000e+00 : f32
    %472 = vector.broadcast %cst_187 : f32 to vector<2x128xf32>
    %473 = arith.addf %472, %471 : vector<2x128xf32>
    %474 = arith.divf %472, %473 : vector<2x128xf32>
    %475 = vector.extract_strided_slice %468 {offsets = [0, 128], sizes = [2, 128], strides = [1, 1]} : vector<2x512xf32> to vector<2x128xf32>
    %476 = arith.negf %475 : vector<2x128xf32>
    %477 = math.exp %476 : vector<2x128xf32>
    %cst_188 = arith.constant 1.000000e+00 : f32
    %478 = vector.broadcast %cst_188 : f32 to vector<2x128xf32>
    %479 = arith.addf %478, %477 : vector<2x128xf32>
    %480 = arith.divf %478, %479 : vector<2x128xf32>
    %481 = vector.extract_strided_slice %468 {offsets = [0, 256], sizes = [2, 128], strides = [1, 1]} : vector<2x512xf32> to vector<2x128xf32>
    %482 = math.tanh %481 : vector<2x128xf32>
    %483 = vector.extract_strided_slice %468 {offsets = [0, 384], sizes = [2, 128], strides = [1, 1]} : vector<2x512xf32> to vector<2x128xf32>
    %484 = arith.negf %483 : vector<2x128xf32>
    %485 = math.exp %484 : vector<2x128xf32>
    %cst_189 = arith.constant 1.000000e+00 : f32
    %486 = vector.broadcast %cst_189 : f32 to vector<2x128xf32>
    %487 = arith.addf %486, %485 : vector<2x128xf32>
    %488 = arith.divf %486, %487 : vector<2x128xf32>
    %489 = arith.mulf %480, %421 : vector<2x128xf32>
    %490 = arith.mulf %474, %482 : vector<2x128xf32>
    %491 = arith.addf %489, %490 : vector<2x128xf32>
    %492 = math.tanh %491 : vector<2x128xf32>
    %493 = arith.mulf %488, %492 : vector<2x128xf32>
    %c0_190 = arith.constant 0 : index
    %c128_191 = arith.constant 128 : index
    %494 = vector.load %arg10[%c0_190, %c128_191] : memref<2x256xf32, #tpu.memory_space<vmem>>, vector<2x128xf32>
    tpu.vector_store %arg10[%c0_190, %c128_191], %493 {strides = array<i32>} : memref<2x256xf32, #tpu.memory_space<vmem>>, vector<2x128xf32>,
    %cst_192 = arith.constant dense<0.000000e+00> : vector<2x32xf32>
    %495 = tpu.matmul %493, %7, %cst_192 {dimension_numbers = #tpu.dot_dimension_numbers<[1], [0], [0], [1], [0, 0, 1, 1], [], []>} : vector<2x128xf32>, vector<128x32xf32>, vector<2x32xf32> -> vector<2x32xf32>
    %496 = vector.broadcast %8 : vector<1x32xf32> to vector<2x32xf32>
    %497 = arith.addf %495, %496 : vector<2x32xf32>
    %c0_193 = arith.constant 0 : index
    %c6_194 = arith.constant 6 : index
    %c0_195 = arith.constant 0 : index
    %498 = vector.load %arg8[%c0_193, %c6_194, %c0_195] : memref<2x8x32xf32, #tpu.memory_space<vmem>>, vector<2x1x32xf32>
    %499 = vector.shape_cast %498 : vector<2x1x32xf32> to vector<2x32xf32>
    %500 = vector.shape_cast %497 : vector<2x32xf32> to vector<2x1x32xf32>
    tpu.vector_store %arg8[%c0_193, %c6_194, %c0_195], %500 {strides = array<i32>} : memref<2x8x32xf32, #tpu.memory_space<vmem>>, vector<2x1x32xf32>,
    %c0_196 = arith.constant 0 : index
    %c7 = arith.constant 7 : index
    %c0_197 = arith.constant 0 : index
    %501 = vector.load %arg1[%c0_196, %c7, %c0_197] : memref<2x8x32xf32, #tpu.memory_space<vmem>>, vector<2x1x32xf32>
    %502 = vector.shape_cast %501 : vector<2x1x32xf32> to vector<2x32xf32>
    %c0_198 = arith.constant 0 : index
    %c0_199 = arith.constant 0 : index
    %503 = vector.load %arg9[%c0_198, %c0_199] : memref<2x160xf32, #tpu.memory_space<vmem>>, vector<2x32xf32>
    tpu.vector_store %arg9[%c0_198, %c0_199], %502 {strides = array<i32>} : memref<2x160xf32, #tpu.memory_space<vmem>>, vector<2x32xf32>,
    %c0_200 = arith.constant 0 : index
    %c0_201 = arith.constant 0 : index
    %504 = vector.load %arg9[%c0_200, %c0_201] : memref<2x160xf32, #tpu.memory_space<vmem>>, vector<2x160xf32>
    %cst_202 = arith.constant dense<0.000000e+00> : vector<2x512xf32>
    %505 = tpu.matmul %504, %3, %cst_202 {dimension_numbers = #tpu.dot_dimension_numbers<[1], [0], [0], [1], [0, 0, 1, 1], [], []>} : vector<2x160xf32>, vector<160x512xf32>, vector<2x512xf32> -> vector<2x512xf32>
    %506 = vector.broadcast %4 : vector<1x512xf32> to vector<2x512xf32>
    %507 = arith.addf %505, %506 : vector<2x512xf32>
    %508 = vector.extract_strided_slice %507 {offsets = [0, 0], sizes = [2, 128], strides = [1, 1]} : vector<2x512xf32> to vector<2x128xf32>
    %509 = arith.negf %508 : vector<2x128xf32>
    %510 = math.exp %509 : vector<2x128xf32>
    %cst_203 = arith.constant 1.000000e+00 : f32
    %511 = vector.broadcast %cst_203 : f32 to vector<2x128xf32>
    %512 = arith.addf %511, %510 : vector<2x128xf32>
    %513 = arith.divf %511, %512 : vector<2x128xf32>
    %514 = vector.extract_strided_slice %507 {offsets = [0, 128], sizes = [2, 128], strides = [1, 1]} : vector<2x512xf32> to vector<2x128xf32>
    %515 = arith.negf %514 : vector<2x128xf32>
    %516 = math.exp %515 : vector<2x128xf32>
    %cst_204 = arith.constant 1.000000e+00 : f32
    %517 = vector.broadcast %cst_204 : f32 to vector<2x128xf32>
    %518 = arith.addf %517, %516 : vector<2x128xf32>
    %519 = arith.divf %517, %518 : vector<2x128xf32>
    %520 = vector.extract_strided_slice %507 {offsets = [0, 256], sizes = [2, 128], strides = [1, 1]} : vector<2x512xf32> to vector<2x128xf32>
    %521 = math.tanh %520 : vector<2x128xf32>
    %522 = vector.extract_strided_slice %507 {offsets = [0, 384], sizes = [2, 128], strides = [1, 1]} : vector<2x512xf32> to vector<2x128xf32>
    %523 = arith.negf %522 : vector<2x128xf32>
    %524 = math.exp %523 : vector<2x128xf32>
    %cst_205 = arith.constant 1.000000e+00 : f32
    %525 = vector.broadcast %cst_205 : f32 to vector<2x128xf32>
    %526 = arith.addf %525, %524 : vector<2x128xf32>
    %527 = arith.divf %525, %526 : vector<2x128xf32>
    %528 = arith.mulf %519, %460 : vector<2x128xf32>
    %529 = arith.mulf %513, %521 : vector<2x128xf32>
    %530 = arith.addf %528, %529 : vector<2x128xf32>
    %531 = math.tanh %530 : vector<2x128xf32>
    %532 = arith.mulf %527, %531 : vector<2x128xf32>
    %c0_206 = arith.constant 0 : index
    %c32_207 = arith.constant 32 : index
    %533 = vector.load %arg9[%c0_206, %c32_207] : memref<2x160xf32, #tpu.memory_space<vmem>>, vector<2x128xf32>
    tpu.vector_store %arg9[%c0_206, %c32_207], %532 {strides = array<i32>} : memref<2x160xf32, #tpu.memory_space<vmem>>, vector<2x128xf32>,
    %c0_208 = arith.constant 0 : index
    %c0_209 = arith.constant 0 : index
    %534 = vector.load %arg10[%c0_208, %c0_209] : memref<2x256xf32, #tpu.memory_space<vmem>>, vector<2x128xf32>
    tpu.vector_store %arg10[%c0_208, %c0_209], %532 {strides = array<i32>} : memref<2x256xf32, #tpu.memory_space<vmem>>, vector<2x128xf32>,
    %c0_210 = arith.constant 0 : index
    %c0_211 = arith.constant 0 : index
    %535 = vector.load %arg10[%c0_210, %c0_211] : memref<2x256xf32, #tpu.memory_space<vmem>>, vector<2x256xf32>
    %cst_212 = arith.constant dense<0.000000e+00> : vector<2x512xf32>
    %536 = tpu.matmul %535, %5, %cst_212 {dimension_numbers = #tpu.dot_dimension_numbers<[1], [0], [0], [1], [0, 0, 1, 1], [], []>} : vector<2x256xf32>, vector<256x512xf32>, vector<2x512xf32> -> vector<2x512xf32>
    %537 = vector.broadcast %6 : vector<1x512xf32> to vector<2x512xf32>
    %538 = arith.addf %536, %537 : vector<2x512xf32>
    %539 = vector.extract_strided_slice %538 {offsets = [0, 0], sizes = [2, 128], strides = [1, 1]} : vector<2x512xf32> to vector<2x128xf32>
    %540 = arith.negf %539 : vector<2x128xf32>
    %541 = math.exp %540 : vector<2x128xf32>
    %cst_213 = arith.constant 1.000000e+00 : f32
    %542 = vector.broadcast %cst_213 : f32 to vector<2x128xf32>
    %543 = arith.addf %542, %541 : vector<2x128xf32>
    %544 = arith.divf %542, %543 : vector<2x128xf32>
    %545 = vector.extract_strided_slice %538 {offsets = [0, 128], sizes = [2, 128], strides = [1, 1]} : vector<2x512xf32> to vector<2x128xf32>
    %546 = arith.negf %545 : vector<2x128xf32>
    %547 = math.exp %546 : vector<2x128xf32>
    %cst_214 = arith.constant 1.000000e+00 : f32
    %548 = vector.broadcast %cst_214 : f32 to vector<2x128xf32>
    %549 = arith.addf %548, %547 : vector<2x128xf32>
    %550 = arith.divf %548, %549 : vector<2x128xf32>
    %551 = vector.extract_strided_slice %538 {offsets = [0, 256], sizes = [2, 128], strides = [1, 1]} : vector<2x512xf32> to vector<2x128xf32>
    %552 = math.tanh %551 : vector<2x128xf32>
    %553 = vector.extract_strided_slice %538 {offsets = [0, 384], sizes = [2, 128], strides = [1, 1]} : vector<2x512xf32> to vector<2x128xf32>
    %554 = arith.negf %553 : vector<2x128xf32>
    %555 = math.exp %554 : vector<2x128xf32>
    %cst_215 = arith.constant 1.000000e+00 : f32
    %556 = vector.broadcast %cst_215 : f32 to vector<2x128xf32>
    %557 = arith.addf %556, %555 : vector<2x128xf32>
    %558 = arith.divf %556, %557 : vector<2x128xf32>
    %559 = arith.mulf %550, %491 : vector<2x128xf32>
    %560 = arith.mulf %544, %552 : vector<2x128xf32>
    %561 = arith.addf %559, %560 : vector<2x128xf32>
    %562 = math.tanh %561 : vector<2x128xf32>
    %563 = arith.mulf %558, %562 : vector<2x128xf32>
    %c0_216 = arith.constant 0 : index
    %c128_217 = arith.constant 128 : index
    %564 = vector.load %arg10[%c0_216, %c128_217] : memref<2x256xf32, #tpu.memory_space<vmem>>, vector<2x128xf32>
    tpu.vector_store %arg10[%c0_216, %c128_217], %563 {strides = array<i32>} : memref<2x256xf32, #tpu.memory_space<vmem>>, vector<2x128xf32>,
    %cst_218 = arith.constant dense<0.000000e+00> : vector<2x32xf32>
    %565 = tpu.matmul %563, %7, %cst_218 {dimension_numbers = #tpu.dot_dimension_numbers<[1], [0], [0], [1], [0, 0, 1, 1], [], []>} : vector<2x128xf32>, vector<128x32xf32>, vector<2x32xf32> -> vector<2x32xf32>
    %566 = vector.broadcast %8 : vector<1x32xf32> to vector<2x32xf32>
    %567 = arith.addf %565, %566 : vector<2x32xf32>
    %c0_219 = arith.constant 0 : index
    %c7_220 = arith.constant 7 : index
    %c0_221 = arith.constant 0 : index
    %568 = vector.load %arg8[%c0_219, %c7_220, %c0_221] : memref<2x8x32xf32, #tpu.memory_space<vmem>>, vector<2x1x32xf32>
    %569 = vector.shape_cast %568 : vector<2x1x32xf32> to vector<2x32xf32>
    %570 = vector.shape_cast %567 : vector<2x32xf32> to vector<2x1x32xf32>
    tpu.vector_store %arg8[%c0_219, %c7_220, %c0_221], %570 {strides = array<i32>} : memref<2x8x32xf32, #tpu.memory_space<vmem>>, vector<2x1x32xf32>,
    %c0_222 = arith.constant 0 : index
    %c0_223 = arith.constant 0 : index
    %571 = vector.load %arg11[%c0_222, %c0_223] : memref<2x128xf32, #tpu.memory_space<vmem>>, vector<2x128xf32>
    tpu.vector_store %arg11[%c0_222, %c0_223], %530 {strides = array<i32>} : memref<2x128xf32, #tpu.memory_space<vmem>>, vector<2x128xf32>,
    %c0_224 = arith.constant 0 : index
    %c0_225 = arith.constant 0 : index
    %572 = vector.load %arg12[%c0_224, %c0_225] : memref<2x128xf32, #tpu.memory_space<vmem>>, vector<2x128xf32>
    tpu.vector_store %arg12[%c0_224, %c0_225], %561 {strides = array<i32>} : memref<2x128xf32, #tpu.memory_space<vmem>>, vector<2x128xf32>,
    return
  }
  func.func @transform_0(%arg0: i32) -> (i32, i32, i32) {
    %c0_i32 = arith.constant 0 : i32
    %c0_i32_0 = arith.constant 0 : i32
    %c0_i32_1 = arith.constant 0 : i32
    return %c0_i32, %arg0, %c0_i32_0 : i32, i32, i32
  }
  func.func @transform_1(%arg0: i32) -> (i32, i32) {
    %c0_i32 = arith.constant 0 : i32
    %c0_i32_0 = arith.constant 0 : i32
    %c0_i32_1 = arith.constant 0 : i32
    return %c0_i32, %c0_i32_0 : i32, i32
  }
  func.func @transform_2(%arg0: i32) -> (i32, i32) {
    %c0_i32 = arith.constant 0 : i32
    %c0_i32_0 = arith.constant 0 : i32
    %c0_i32_1 = arith.constant 0 : i32
    return %c0_i32, %c0_i32_0 : i32, i32
  }
  func.func @transform_3(%arg0: i32) -> (i32, i32) {
    %c0_i32 = arith.constant 0 : i32
    %c0_i32_0 = arith.constant 0 : i32
    %c0_i32_1 = arith.constant 0 : i32
    return %c0_i32, %c0_i32_0 : i32, i32
  }
  func.func @transform_4(%arg0: i32) -> (i32, i32) {
    %c0_i32 = arith.constant 0 : i32
    %c0_i32_0 = arith.constant 0 : i32
    %c0_i32_1 = arith.constant 0 : i32
    return %c0_i32, %c0_i32_0 : i32, i32
  }
  func.func @transform_5(%arg0: i32) -> (i32, i32) {
    %c0_i32 = arith.constant 0 : i32
    %c0_i32_0 = arith.constant 0 : i32
    %c0_i32_1 = arith.constant 0 : i32
    return %c0_i32, %c0_i32_0 : i32, i32
  }
  func.func @transform_6(%arg0: i32) -> (i32, i32) {
    %c0_i32 = arith.constant 0 : i32
    %c0_i32_0 = arith.constant 0 : i32
    %c0_i32_1 = arith.constant 0 : i32
    return %c0_i32, %c0_i32_0 : i32, i32
  }
  func.func @transform_7(%arg0: i32) -> (i32, i32, i32) {
    %c0_i32 = arith.constant 0 : i32
    %c0_i32_0 = arith.constant 0 : i32
    %c0_i32_1 = arith.constant 0 : i32
    return %c0_i32, %arg0, %c0_i32_0 : i32, i32, i32
  }
}

module attributes {stable_mosaic.version = 11 : i64} {
  func.func @_dense_res_ln_kernel(%arg0: i32, %arg1: i32, %arg2: memref<16x32xf32, #tpu.memory_space<vmem>>, %arg3: memref<32x32xf32, #tpu.memory_space<vmem>>, %arg4: memref<1x32xf32, #tpu.memory_space<vmem>>, %arg5: memref<16x32xf32, #tpu.memory_space<vmem>>, %arg6: memref<1x32xf32, #tpu.memory_space<vmem>>, %arg7: memref<1x32xf32, #tpu.memory_space<vmem>>, %arg8: memref<16x32xf32, #tpu.memory_space<vmem>>, %arg9: memref<16x32xf32, #tpu.memory_space<vmem>>) attributes {dimension_semantics = [#tpu.dimension_semantics<parallel>, #tpu.dimension_semantics<arbitrary>], iteration_bounds = array<i64: 1, 1>, scalar_prefetch = 0 : i64, scratch_operands = 1 : i64, tpu.core_type = #tpu.core_type<tc>, window_params = [{transform_indices = @transform_0, window_bounds = array<i64: 16, 32>}, {transform_indices = @transform_1, window_bounds = array<i64: 32, 32>}, {pipeline_mode = #tpu.pipeline_mode<synchronous>, transform_indices = @transform_2, window_bounds = array<i64: 1, 32>}, {transform_indices = @transform_3, window_bounds = array<i64: 16, 32>}, {pipeline_mode = #tpu.pipeline_mode<synchronous>, transform_indices = @transform_4, window_bounds = array<i64: 1, 32>}, {pipeline_mode = #tpu.pipeline_mode<synchronous>, transform_indices = @transform_5, window_bounds = array<i64: 1, 32>}, {transform_indices = @transform_6, window_bounds = array<i64: 16, 32>}]} {
    %c0_i32 = arith.constant 0 : i32
    %0 = arith.cmpi eq, %arg1, %c0_i32 : i32
    %1 = arith.extui %0 : i1 to i32
    %c0_i32_0 = arith.constant 0 : i32
    %2 = arith.cmpi ne, %1, %c0_i32_0 : i32
    scf.if %2 {
      %cst_10 = arith.constant 0.000000e+00 : f32
      %12 = vector.broadcast %cst_10 : f32 to vector<16x32xf32>
      %c0_11 = arith.constant 0 : index
      %c0_12 = arith.constant 0 : index
      %13 = vector.load %arg9[%c0_11, %c0_12] : memref<16x32xf32, #tpu.memory_space<vmem>>, vector<16x32xf32>
      tpu.vector_store %arg9[%c0_11, %c0_12], %12 {strides = array<i32>} : memref<16x32xf32, #tpu.memory_space<vmem>>, vector<16x32xf32>,
    } else {
    }
    %c0 = arith.constant 0 : index
    %c0_1 = arith.constant 0 : index
    %3 = vector.load %arg9[%c0, %c0_1] : memref<16x32xf32, #tpu.memory_space<vmem>>, vector<16x32xf32>
    %c0_2 = arith.constant 0 : index
    %c0_3 = arith.constant 0 : index
    %4 = vector.load %arg2[%c0_2, %c0_3] : memref<16x32xf32, #tpu.memory_space<vmem>>, vector<16x32xf32>
    %c0_4 = arith.constant 0 : index
    %c0_5 = arith.constant 0 : index
    %5 = vector.load %arg3[%c0_4, %c0_5] : memref<32x32xf32, #tpu.memory_space<vmem>>, vector<32x32xf32>
    %cst = arith.constant dense<0.000000e+00> : vector<16x32xf32>
    %6 = tpu.matmul %4, %5, %cst {dimension_numbers = #tpu.dot_dimension_numbers<[1], [0], [0], [1], [0, 0, 1, 1], [], []>} : vector<16x32xf32>, vector<32x32xf32>, vector<16x32xf32> -> vector<16x32xf32>
    %7 = arith.addf %3, %6 : vector<16x32xf32>
    %c0_6 = arith.constant 0 : index
    %c0_7 = arith.constant 0 : index
    %8 = vector.load %arg9[%c0_6, %c0_7] : memref<16x32xf32, #tpu.memory_space<vmem>>, vector<16x32xf32>
    tpu.vector_store %arg9[%c0_6, %c0_7], %7 {strides = array<i32>} : memref<16x32xf32, #tpu.memory_space<vmem>>, vector<16x32xf32>,
    %c0_i32_8 = arith.constant 0 : i32
    %9 = arith.cmpi eq, %arg1, %c0_i32_8 : i32
    %10 = arith.extui %9 : i1 to i32
    %c0_i32_9 = arith.constant 0 : i32
    %11 = arith.cmpi ne, %10, %c0_i32_9 : i32
    scf.if %11 {
      %c0_10 = arith.constant 0 : index
      %c0_11 = arith.constant 0 : index
      %12 = vector.load %arg9[%c0_10, %c0_11] : memref<16x32xf32, #tpu.memory_space<vmem>>, vector<16x32xf32>
      %c0_12 = arith.constant 0 : index
      %c0_13 = arith.constant 0 : index
      %13 = vector.load %arg4[%c0_12, %c0_13] : memref<1x32xf32, #tpu.memory_space<vmem>>, vector<1x32xf32>
      %14 = vector.broadcast %13 : vector<1x32xf32> to vector<16x32xf32>
      %15 = arith.addf %12, %14 : vector<16x32xf32>
      %c0_14 = arith.constant 0 : index
      %c0_15 = arith.constant 0 : index
      %16 = vector.load %arg5[%c0_14, %c0_15] : memref<16x32xf32, #tpu.memory_space<vmem>>, vector<16x32xf32>
      %17 = arith.addf %15, %16 : vector<16x32xf32>
      %cst_16 = arith.constant dense<0.000000e+00> : vector<16xf32>
      %18 = vector.multi_reduction <add>, %17, %cst_16 [1] : vector<16x32xf32> to vector<16xf32>
      %19 = vector.shape_cast %18 : vector<16xf32> to vector<16x1xf32>
      %cst_17 = arith.constant 3.200000e+01 : f32
      %20 = vector.broadcast %cst_17 : f32 to vector<16x1xf32>
      %21 = arith.divf %19, %20 : vector<16x1xf32>
      %22 = vector.broadcast %21 : vector<16x1xf32> to vector<16x32xf32>
      %23 = arith.subf %17, %22 : vector<16x32xf32>
      %24 = arith.mulf %23, %23 : vector<16x32xf32>
      %cst_18 = arith.constant dense<0.000000e+00> : vector<16xf32>
      %25 = vector.multi_reduction <add>, %24, %cst_18 [1] : vector<16x32xf32> to vector<16xf32>
      %26 = vector.shape_cast %25 : vector<16xf32> to vector<16x1xf32>
      %cst_19 = arith.constant 3.200000e+01 : f32
      %27 = vector.broadcast %cst_19 : f32 to vector<16x1xf32>
      %28 = arith.divf %26, %27 : vector<16x1xf32>
      %29 = vector.broadcast %21 : vector<16x1xf32> to vector<16x32xf32>
      %30 = arith.subf %17, %29 : vector<16x32xf32>
      %cst_20 = arith.constant 9.99999996E-13 : f32
      %31 = vector.broadcast %cst_20 : f32 to vector<16x1xf32>
      %32 = arith.addf %28, %31 : vector<16x1xf32>
      %33 = math.rsqrt %32 : vector<16x1xf32>
      %34 = vector.broadcast %33 : vector<16x1xf32> to vector<16x32xf32>
      %35 = arith.mulf %30, %34 : vector<16x32xf32>
      %c0_21 = arith.constant 0 : index
      %c0_22 = arith.constant 0 : index
      %36 = vector.load %arg6[%c0_21, %c0_22] : memref<1x32xf32, #tpu.memory_space<vmem>>, vector<1x32xf32>
      %37 = vector.broadcast %36 : vector<1x32xf32> to vector<16x32xf32>
      %38 = arith.mulf %35, %37 : vector<16x32xf32>
      %c0_23 = arith.constant 0 : index
      %c0_24 = arith.constant 0 : index
      %39 = vector.load %arg7[%c0_23, %c0_24] : memref<1x32xf32, #tpu.memory_space<vmem>>, vector<1x32xf32>
      %40 = vector.broadcast %39 : vector<1x32xf32> to vector<16x32xf32>
      %41 = arith.addf %38, %40 : vector<16x32xf32>
      %c0_25 = arith.constant 0 : index
      %c0_26 = arith.constant 0 : index
      %42 = vector.load %arg8[%c0_25, %c0_26] : memref<16x32xf32, #tpu.memory_space<vmem>>, vector<16x32xf32>
      tpu.vector_store %arg8[%c0_25, %c0_26], %41 {strides = array<i32>} : memref<16x32xf32, #tpu.memory_space<vmem>>, vector<16x32xf32>,
    } else {
    }
    return
  }
  func.func @transform_0(%arg0: i32, %arg1: i32) -> (i32, i32) {
    %c0_i32 = arith.constant 0 : i32
    return %arg0, %arg1 : i32, i32
  }
  func.func @transform_1(%arg0: i32, %arg1: i32) -> (i32, i32) {
    %c0_i32 = arith.constant 0 : i32
    %c0_i32_0 = arith.constant 0 : i32
    return %arg1, %c0_i32 : i32, i32
  }
  func.func @transform_2(%arg0: i32, %arg1: i32) -> (i32, i32) {
    %c0_i32 = arith.constant 0 : i32
    %c0_i32_0 = arith.constant 0 : i32
    %c0_i32_1 = arith.constant 0 : i32
    return %c0_i32, %c0_i32_0 : i32, i32
  }
  func.func @transform_3(%arg0: i32, %arg1: i32) -> (i32, i32) {
    %c0_i32 = arith.constant 0 : i32
    %c0_i32_0 = arith.constant 0 : i32
    return %arg0, %c0_i32 : i32, i32
  }
  func.func @transform_4(%arg0: i32, %arg1: i32) -> (i32, i32) {
    %c0_i32 = arith.constant 0 : i32
    %c0_i32_0 = arith.constant 0 : i32
    %c0_i32_1 = arith.constant 0 : i32
    return %c0_i32, %c0_i32_0 : i32, i32
  }
  func.func @transform_5(%arg0: i32, %arg1: i32) -> (i32, i32) {
    %c0_i32 = arith.constant 0 : i32
    %c0_i32_0 = arith.constant 0 : i32
    %c0_i32_1 = arith.constant 0 : i32
    return %c0_i32, %c0_i32_0 : i32, i32
  }
  func.func @transform_6(%arg0: i32, %arg1: i32) -> (i32, i32) {
    %c0_i32 = arith.constant 0 : i32
    %c0_i32_0 = arith.constant 0 : i32
    return %arg0, %c0_i32 : i32, i32
  }
}

module attributes {stable_mosaic.version = 11 : i64} {
  func.func @_dense_kernel(%arg0: i32, %arg1: i32, %arg2: i32, %arg3: memref<16x32xf32, #tpu.memory_space<vmem>>, %arg4: memref<32x64xf32, #tpu.memory_space<vmem>>, %arg5: memref<1x64xf32, #tpu.memory_space<vmem>>, %arg6: memref<16x64xf32, #tpu.memory_space<vmem>>, %arg7: memref<16x64xf32, #tpu.memory_space<vmem>>) attributes {dimension_semantics = [#tpu.dimension_semantics<parallel>, #tpu.dimension_semantics<parallel>, #tpu.dimension_semantics<arbitrary>], iteration_bounds = array<i64: 1, 1, 1>, scalar_prefetch = 0 : i64, scratch_operands = 1 : i64, tpu.core_type = #tpu.core_type<tc>, window_params = [{transform_indices = @transform_0, window_bounds = array<i64: 16, 32>}, {transform_indices = @transform_1, window_bounds = array<i64: 32, 64>}, {transform_indices = @transform_2, window_bounds = array<i64: 1, 64>}, {transform_indices = @transform_3, window_bounds = array<i64: 16, 64>}]} {
    %c0_i32 = arith.constant 0 : i32
    %0 = arith.cmpi eq, %arg2, %c0_i32 : i32
    %1 = arith.extui %0 : i1 to i32
    %c0_i32_0 = arith.constant 0 : i32
    %2 = arith.cmpi ne, %1, %c0_i32_0 : i32
    scf.if %2 {
      %cst_10 = arith.constant 0.000000e+00 : f32
      %12 = vector.broadcast %cst_10 : f32 to vector<16x64xf32>
      %c0_11 = arith.constant 0 : index
      %c0_12 = arith.constant 0 : index
      %13 = vector.load %arg7[%c0_11, %c0_12] : memref<16x64xf32, #tpu.memory_space<vmem>>, vector<16x64xf32>
      tpu.vector_store %arg7[%c0_11, %c0_12], %12 {strides = array<i32>} : memref<16x64xf32, #tpu.memory_space<vmem>>, vector<16x64xf32>,
    } else {
    }
    %c0 = arith.constant 0 : index
    %c0_1 = arith.constant 0 : index
    %3 = vector.load %arg7[%c0, %c0_1] : memref<16x64xf32, #tpu.memory_space<vmem>>, vector<16x64xf32>
    %c0_2 = arith.constant 0 : index
    %c0_3 = arith.constant 0 : index
    %4 = vector.load %arg3[%c0_2, %c0_3] : memref<16x32xf32, #tpu.memory_space<vmem>>, vector<16x32xf32>
    %c0_4 = arith.constant 0 : index
    %c0_5 = arith.constant 0 : index
    %5 = vector.load %arg4[%c0_4, %c0_5] : memref<32x64xf32, #tpu.memory_space<vmem>>, vector<32x64xf32>
    %cst = arith.constant dense<0.000000e+00> : vector<16x64xf32>
    %6 = tpu.matmul %4, %5, %cst {dimension_numbers = #tpu.dot_dimension_numbers<[1], [0], [0], [1], [0, 0, 1, 1], [], []>} : vector<16x32xf32>, vector<32x64xf32>, vector<16x64xf32> -> vector<16x64xf32>
    %7 = arith.addf %3, %6 : vector<16x64xf32>
    %c0_6 = arith.constant 0 : index
    %c0_7 = arith.constant 0 : index
    %8 = vector.load %arg7[%c0_6, %c0_7] : memref<16x64xf32, #tpu.memory_space<vmem>>, vector<16x64xf32>
    tpu.vector_store %arg7[%c0_6, %c0_7], %7 {strides = array<i32>} : memref<16x64xf32, #tpu.memory_space<vmem>>, vector<16x64xf32>,
    %c0_i32_8 = arith.constant 0 : i32
    %9 = arith.cmpi eq, %arg2, %c0_i32_8 : i32
    %10 = arith.extui %9 : i1 to i32
    %c0_i32_9 = arith.constant 0 : i32
    %11 = arith.cmpi ne, %10, %c0_i32_9 : i32
    scf.if %11 {
      %c0_10 = arith.constant 0 : index
      %c0_11 = arith.constant 0 : index
      %12 = vector.load %arg7[%c0_10, %c0_11] : memref<16x64xf32, #tpu.memory_space<vmem>>, vector<16x64xf32>
      %c0_12 = arith.constant 0 : index
      %c0_13 = arith.constant 0 : index
      %13 = vector.load %arg5[%c0_12, %c0_13] : memref<1x64xf32, #tpu.memory_space<vmem>>, vector<1x64xf32>
      %14 = vector.broadcast %13 : vector<1x64xf32> to vector<16x64xf32>
      %15 = arith.addf %12, %14 : vector<16x64xf32>
      %cst_14 = arith.constant 5.000000e-01 : f32
      %16 = vector.broadcast %cst_14 : f32 to vector<16x64xf32>
      %17 = arith.mulf %16, %15 : vector<16x64xf32>
      %cst_15 = arith.constant 0.707106769 : f32
      %18 = vector.broadcast %cst_15 : f32 to vector<16x64xf32>
      %19 = arith.mulf %15, %18 : vector<16x64xf32>
      %20 = math.erf %19 : vector<16x64xf32>
      %cst_16 = arith.constant 1.000000e+00 : f32
      %21 = vector.broadcast %cst_16 : f32 to vector<16x64xf32>
      %22 = arith.addf %21, %20 : vector<16x64xf32>
      %23 = arith.mulf %17, %22 : vector<16x64xf32>
      %c0_17 = arith.constant 0 : index
      %c0_18 = arith.constant 0 : index
      %24 = vector.load %arg6[%c0_17, %c0_18] : memref<16x64xf32, #tpu.memory_space<vmem>>, vector<16x64xf32>
      tpu.vector_store %arg6[%c0_17, %c0_18], %23 {strides = array<i32>} : memref<16x64xf32, #tpu.memory_space<vmem>>, vector<16x64xf32>,
    } else {
    }
    return
  }
  func.func @transform_0(%arg0: i32, %arg1: i32, %arg2: i32) -> (i32, i32) {
    %c0_i32 = arith.constant 0 : i32
    return %arg0, %arg2 : i32, i32
  }
  func.func @transform_1(%arg0: i32, %arg1: i32, %arg2: i32) -> (i32, i32) {
    %c0_i32 = arith.constant 0 : i32
    return %arg2, %arg1 : i32, i32
  }
  func.func @transform_2(%arg0: i32, %arg1: i32, %arg2: i32) -> (i32, i32) {
    %c0_i32 = arith.constant 0 : i32
    %c0_i32_0 = arith.constant 0 : i32
    return %c0_i32, %arg1 : i32, i32
  }
  func.func @transform_3(%arg0: i32, %arg1: i32, %arg2: i32) -> (i32, i32) {
    %c0_i32 = arith.constant 0 : i32
    return %arg0, %arg1 : i32, i32
  }
}

module attributes {stable_mosaic.version = 11 : i64} {
  func.func @_dense_res_ln_kernel(%arg0: i32, %arg1: i32, %arg2: memref<16x64xf32, #tpu.memory_space<vmem>>, %arg3: memref<64x32xf32, #tpu.memory_space<vmem>>, %arg4: memref<1x32xf32, #tpu.memory_space<vmem>>, %arg5: memref<16x32xf32, #tpu.memory_space<vmem>>, %arg6: memref<1x32xf32, #tpu.memory_space<vmem>>, %arg7: memref<1x32xf32, #tpu.memory_space<vmem>>, %arg8: memref<16x32xf32, #tpu.memory_space<vmem>>, %arg9: memref<16x32xf32, #tpu.memory_space<vmem>>) attributes {dimension_semantics = [#tpu.dimension_semantics<parallel>, #tpu.dimension_semantics<arbitrary>], iteration_bounds = array<i64: 1, 1>, scalar_prefetch = 0 : i64, scratch_operands = 1 : i64, tpu.core_type = #tpu.core_type<tc>, window_params = [{transform_indices = @transform_0, window_bounds = array<i64: 16, 64>}, {transform_indices = @transform_1, window_bounds = array<i64: 64, 32>}, {pipeline_mode = #tpu.pipeline_mode<synchronous>, transform_indices = @transform_2, window_bounds = array<i64: 1, 32>}, {transform_indices = @transform_3, window_bounds = array<i64: 16, 32>}, {pipeline_mode = #tpu.pipeline_mode<synchronous>, transform_indices = @transform_4, window_bounds = array<i64: 1, 32>}, {pipeline_mode = #tpu.pipeline_mode<synchronous>, transform_indices = @transform_5, window_bounds = array<i64: 1, 32>}, {transform_indices = @transform_6, window_bounds = array<i64: 16, 32>}]} {
    %c0_i32 = arith.constant 0 : i32
    %0 = arith.cmpi eq, %arg1, %c0_i32 : i32
    %1 = arith.extui %0 : i1 to i32
    %c0_i32_0 = arith.constant 0 : i32
    %2 = arith.cmpi ne, %1, %c0_i32_0 : i32
    scf.if %2 {
      %cst_10 = arith.constant 0.000000e+00 : f32
      %12 = vector.broadcast %cst_10 : f32 to vector<16x32xf32>
      %c0_11 = arith.constant 0 : index
      %c0_12 = arith.constant 0 : index
      %13 = vector.load %arg9[%c0_11, %c0_12] : memref<16x32xf32, #tpu.memory_space<vmem>>, vector<16x32xf32>
      tpu.vector_store %arg9[%c0_11, %c0_12], %12 {strides = array<i32>} : memref<16x32xf32, #tpu.memory_space<vmem>>, vector<16x32xf32>,
    } else {
    }
    %c0 = arith.constant 0 : index
    %c0_1 = arith.constant 0 : index
    %3 = vector.load %arg9[%c0, %c0_1] : memref<16x32xf32, #tpu.memory_space<vmem>>, vector<16x32xf32>
    %c0_2 = arith.constant 0 : index
    %c0_3 = arith.constant 0 : index
    %4 = vector.load %arg2[%c0_2, %c0_3] : memref<16x64xf32, #tpu.memory_space<vmem>>, vector<16x64xf32>
    %c0_4 = arith.constant 0 : index
    %c0_5 = arith.constant 0 : index
    %5 = vector.load %arg3[%c0_4, %c0_5] : memref<64x32xf32, #tpu.memory_space<vmem>>, vector<64x32xf32>
    %cst = arith.constant dense<0.000000e+00> : vector<16x32xf32>
    %6 = tpu.matmul %4, %5, %cst {dimension_numbers = #tpu.dot_dimension_numbers<[1], [0], [0], [1], [0, 0, 1, 1], [], []>} : vector<16x64xf32>, vector<64x32xf32>, vector<16x32xf32> -> vector<16x32xf32>
    %7 = arith.addf %3, %6 : vector<16x32xf32>
    %c0_6 = arith.constant 0 : index
    %c0_7 = arith.constant 0 : index
    %8 = vector.load %arg9[%c0_6, %c0_7] : memref<16x32xf32, #tpu.memory_space<vmem>>, vector<16x32xf32>
    tpu.vector_store %arg9[%c0_6, %c0_7], %7 {strides = array<i32>} : memref<16x32xf32, #tpu.memory_space<vmem>>, vector<16x32xf32>,
    %c0_i32_8 = arith.constant 0 : i32
    %9 = arith.cmpi eq, %arg1, %c0_i32_8 : i32
    %10 = arith.extui %9 : i1 to i32
    %c0_i32_9 = arith.constant 0 : i32
    %11 = arith.cmpi ne, %10, %c0_i32_9 : i32
    scf.if %11 {
      %c0_10 = arith.constant 0 : index
      %c0_11 = arith.constant 0 : index
      %12 = vector.load %arg9[%c0_10, %c0_11] : memref<16x32xf32, #tpu.memory_space<vmem>>, vector<16x32xf32>
      %c0_12 = arith.constant 0 : index
      %c0_13 = arith.constant 0 : index
      %13 = vector.load %arg4[%c0_12, %c0_13] : memref<1x32xf32, #tpu.memory_space<vmem>>, vector<1x32xf32>
      %14 = vector.broadcast %13 : vector<1x32xf32> to vector<16x32xf32>
      %15 = arith.addf %12, %14 : vector<16x32xf32>
      %c0_14 = arith.constant 0 : index
      %c0_15 = arith.constant 0 : index
      %16 = vector.load %arg5[%c0_14, %c0_15] : memref<16x32xf32, #tpu.memory_space<vmem>>, vector<16x32xf32>
      %17 = arith.addf %15, %16 : vector<16x32xf32>
      %cst_16 = arith.constant dense<0.000000e+00> : vector<16xf32>
      %18 = vector.multi_reduction <add>, %17, %cst_16 [1] : vector<16x32xf32> to vector<16xf32>
      %19 = vector.shape_cast %18 : vector<16xf32> to vector<16x1xf32>
      %cst_17 = arith.constant 3.200000e+01 : f32
      %20 = vector.broadcast %cst_17 : f32 to vector<16x1xf32>
      %21 = arith.divf %19, %20 : vector<16x1xf32>
      %22 = vector.broadcast %21 : vector<16x1xf32> to vector<16x32xf32>
      %23 = arith.subf %17, %22 : vector<16x32xf32>
      %24 = arith.mulf %23, %23 : vector<16x32xf32>
      %cst_18 = arith.constant dense<0.000000e+00> : vector<16xf32>
      %25 = vector.multi_reduction <add>, %24, %cst_18 [1] : vector<16x32xf32> to vector<16xf32>
      %26 = vector.shape_cast %25 : vector<16xf32> to vector<16x1xf32>
      %cst_19 = arith.constant 3.200000e+01 : f32
      %27 = vector.broadcast %cst_19 : f32 to vector<16x1xf32>
      %28 = arith.divf %26, %27 : vector<16x1xf32>
      %29 = vector.broadcast %21 : vector<16x1xf32> to vector<16x32xf32>
      %30 = arith.subf %17, %29 : vector<16x32xf32>
      %cst_20 = arith.constant 9.99999996E-13 : f32
      %31 = vector.broadcast %cst_20 : f32 to vector<16x1xf32>
      %32 = arith.addf %28, %31 : vector<16x1xf32>
      %33 = math.rsqrt %32 : vector<16x1xf32>
      %34 = vector.broadcast %33 : vector<16x1xf32> to vector<16x32xf32>
      %35 = arith.mulf %30, %34 : vector<16x32xf32>
      %c0_21 = arith.constant 0 : index
      %c0_22 = arith.constant 0 : index
      %36 = vector.load %arg6[%c0_21, %c0_22] : memref<1x32xf32, #tpu.memory_space<vmem>>, vector<1x32xf32>
      %37 = vector.broadcast %36 : vector<1x32xf32> to vector<16x32xf32>
      %38 = arith.mulf %35, %37 : vector<16x32xf32>
      %c0_23 = arith.constant 0 : index
      %c0_24 = arith.constant 0 : index
      %39 = vector.load %arg7[%c0_23, %c0_24] : memref<1x32xf32, #tpu.memory_space<vmem>>, vector<1x32xf32>
      %40 = vector.broadcast %39 : vector<1x32xf32> to vector<16x32xf32>
      %41 = arith.addf %38, %40 : vector<16x32xf32>
      %c0_25 = arith.constant 0 : index
      %c0_26 = arith.constant 0 : index
      %42 = vector.load %arg8[%c0_25, %c0_26] : memref<16x32xf32, #tpu.memory_space<vmem>>, vector<16x32xf32>
      tpu.vector_store %arg8[%c0_25, %c0_26], %41 {strides = array<i32>} : memref<16x32xf32, #tpu.memory_space<vmem>>, vector<16x32xf32>,
    } else {
    }
    return
  }
  func.func @transform_0(%arg0: i32, %arg1: i32) -> (i32, i32) {
    %c0_i32 = arith.constant 0 : i32
    return %arg0, %arg1 : i32, i32
  }
  func.func @transform_1(%arg0: i32, %arg1: i32) -> (i32, i32) {
    %c0_i32 = arith.constant 0 : i32
    %c0_i32_0 = arith.constant 0 : i32
    return %arg1, %c0_i32 : i32, i32
  }
  func.func @transform_2(%arg0: i32, %arg1: i32) -> (i32, i32) {
    %c0_i32 = arith.constant 0 : i32
    %c0_i32_0 = arith.constant 0 : i32
    %c0_i32_1 = arith.constant 0 : i32
    return %c0_i32, %c0_i32_0 : i32, i32
  }
  func.func @transform_3(%arg0: i32, %arg1: i32) -> (i32, i32) {
    %c0_i32 = arith.constant 0 : i32
    %c0_i32_0 = arith.constant 0 : i32
    return %arg0, %c0_i32 : i32, i32
  }
  func.func @transform_4(%arg0: i32, %arg1: i32) -> (i32, i32) {
    %c0_i32 = arith.constant 0 : i32
    %c0_i32_0 = arith.constant 0 : i32
    %c0_i32_1 = arith.constant 0 : i32
    return %c0_i32, %c0_i32_0 : i32, i32
  }
  func.func @transform_5(%arg0: i32, %arg1: i32) -> (i32, i32) {
    %c0_i32 = arith.constant 0 : i32
    %c0_i32_0 = arith.constant 0 : i32
    %c0_i32_1 = arith.constant 0 : i32
    return %c0_i32, %c0_i32_0 : i32, i32
  }
  func.func @transform_6(%arg0: i32, %arg1: i32) -> (i32, i32) {
    %c0_i32 = arith.constant 0 : i32
    %c0_i32_0 = arith.constant 0 : i32
    return %arg0, %c0_i32 : i32, i32
  }
}

</mosaic_0001>

<bundles_post_ra>
// kernel: pointer_block_forward.7
= control target key start
LH: loop header
LB: loop body
LE: loop exit
PB: predicated region body
PF: predicated region fallthrough
CT: control target
= control target key end

     0   :  { %vm35_vm0 = vcmask 261120   ;;  %vm18_vm1 = vcmask 523264   ;;  %v208_v3 = vmov 0.0   ;;  %s284_s1 = inlined_call_operand.vmem [shape: f32[32,64], index: 1, kind: input, shape index: {}]   ;;  %s285_s0 = inlined_call_operand.vmem [shape: f32[32,32], index: 0, kind: input, shape index: {}]   ;;  %s286_s2 = inlined_call_operand.vmem [shape: f32[1,64], index: 2, kind: input, shape index: {}]   ;;  %s287_s3 = inlined_call_operand.vmem [shape: f32[32,64], index: 3, kind: output, shape index: {}]  }
   0x1   :  { %v31_v0 = vld [vmem:[%s284_s1] sm:$0xff]  ;;  %v32_v1 = vld [vmem:[%s284_s1 + $0x8] sm:$0xff]  ;;  %v33_v2 = vld [vmem:[%s284_s1 + $0x10] sm:$0xff]  ;;  %20 = vst.msk [vmem:[#allocation2 + $0x8] sm:$0xff] %vm18_vm1, %v208_v3 }
   0x2   :  { %19 = vst.msk [vmem:[#allocation2] sm:$0xff] %vm18_vm1, %v208_v3  ;;  %21 = vst.msk [vmem:[#allocation2 + $0x10] sm:$0xff] %vm18_vm1, %v208_v3  ;;  %v195_v4 = vpack.c.bf16 %v32_v1, %v31_v0  ;;  %v34_v5 = vld [vmem:[%s284_s1 + $0x18] sm:$0xff]  ;;  %v27_v6 = vld [vmem:[%s285_s0] sm:$0xff] }
   0x3   :  { %22 = vst.msk [vmem:[#allocation2 + $0x18] sm:$0xff] %vm18_vm1, %v208_v3  ;;  %v29_v7 = vld [vmem:[%s285_s0 + $0x10] sm:$0xff]  ;;  %v199_v8 = vpack.c.bf16 %v34_v5, %v33_v2  ;;  %189 = vmatprep.mubr.msk.f32.mxu0 %vm35_vm0, %v27_v6  ;;  %v28_v9 = vld [vmem:[%s285_s0 + $0x8] sm:$0xff]  ;;  %v30_v10 = vld [vmem:[%s285_s0 + $0x18] sm:$0xff] }
   0x4   :  { %192 = vmatprep.mubr.msk.f32.mxu1 %vm35_vm0, %v29_v7  ;;  %196 = vmatprep.subr.bf16.mxu0 %v195_v4  ;;  %v172_v23 = vld [vmem:[%s286_s2] ss:$0 sm:$0xff] }
   0x5   :  { %203 = vmatprep.subr.bf16.mxu1 %v195_v4  ;;  %198 = vmatpush3.bf16.msra.mxu0 %v195_v4 }
   0x6   :  { %205 = vmatpush3.bf16.msra.mxu1 %v195_v4  ;;  %200 = vmatprep.subr.bf16.mxu0 %v199_v8 }
   0x7   :  { %204 = vmatprep.subr.bf16.mxu1 %v199_v8 }
   0x8   :  { %v24_v11 = vld [vmem:[#allocation2 + $0x8] sm:$0xff] }
   0x9   :  { %202 = vmatpush3.bf16.msra.mxu0 %v199_v8  ;;  %v23_v13 = vld [vmem:[#allocation2] sm:$0xff]  ;;  %v25_v14 = vld [vmem:[#allocation2 + $0x10] sm:$0xff] }
   0xa   :  { %206 = vmatpush3.bf16.msra.mxu1 %v199_v8  ;;  %v26_v12 = vld [vmem:[#allocation2 + $0x18] sm:$0xff] }
   0xc   :  { %190 = vmatmul.mubr.msk.f32.vlgmr.msra.gmra.mrb[0].mxu0 %vm35_vm0, %v28_v9 }
   0xd   :  { %193 = vmatmul.mubr.msk.f32.vlgmr.msra.gmra.mrb[0].mxu1 %vm35_vm0, %v30_v10 }
  0xdf   :  { %v191_v15 = vpop.f32.mrb[0].mxu0 }
  0xe0   :  { %v194_v16 = vpop.f32.mrb[0].mxu1  ;;  %v134_v17 = vadd.f32 %v191_v15, %v24_v11  ;;  %v114_v19 = vpop.f32.mrb[1].mxu0 }
  0xe1   :  { %v136_v18 = vadd.f32 %v194_v16, %v26_v12  ;;  %v124_v20 = vpop.f32.mrb[1].mxu1  ;;  %v133_v21 = vadd.f32 %v114_v19, %v23_v13 }
  0xe2   :  { %v135_v22 = vadd.f32 %v124_v20, %v25_v14  ;;  %139 = vst.msk [vmem:[#allocation2 + $0x8] sm:$0xff] %vm18_vm1, %v134_v17 }
  0xe3   :  { %141 = vst.msk [vmem:[#allocation2 + $0x18] sm:$0xff] %vm18_vm1, %v136_v18  ;;  %138 = vst.msk [vmem:[#allocation2] sm:$0xff] %vm18_vm1, %v133_v21 }
  0xe4   :  { %140 = vst.msk [vmem:[#allocation2 + $0x10] sm:$0xff] %vm18_vm1, %v135_v22 }
  0xe9   :  { %v146_v24 = vld [vmem:[#allocation2 + $0x8] sm:$0xff] }
  0xea   :  { %v148_v25 = vld [vmem:[#allocation2 + $0x18] sm:$0xff]  ;;  %v157_v26 = vadd.f32 %v172_v23, %v146_v24  ;;  %v145_v28 = vld [vmem:[#allocation2] sm:$0xff] }
  0xeb   :  { %v159_v27 = vadd.f32 %v172_v23, %v148_v25  ;;  %v147_v29 = vld [vmem:[#allocation2 + $0x10] sm:$0xff]  ;;  %v156_v30 = vadd.f32 %v172_v23, %v145_v28 }
  0xec   :  { %v158_v31 = vadd.f32 %v172_v23, %v147_v29  ;;  %161 = vst.msk [vmem:[%s287_s3 + $0x8] sm:$0xff] %vm18_vm1, %v157_v26 }
  0xed   :  { %163 = vst.msk [vmem:[%s287_s3 + $0x18] sm:$0xff] %vm18_vm1, %v159_v27  ;;  %160 = vst.msk [vmem:[%s287_s3] sm:$0xff] %vm18_vm1, %v156_v30 }
  0xee   :  { %162 = vst.msk [vmem:[%s287_s3 + $0x10] sm:$0xff] %vm18_vm1, %v158_v31 }

// kernel: pointer_block_forward.9
= control target key start
LH: loop header
LB: loop body
LE: loop exit
PB: predicated region body
PF: predicated region fallthrough
CT: control target
= control target key end

     0   :  { %vm27_vm0 = vcmask 261120   ;;  %v228_v3 = vmov 0.0   ;;  %s315_s1 = inlined_call_operand.vmem [shape: f32[32,32], index: 1, kind: input, shape index: {}]   ;;  %s316_s0 = inlined_call_operand.vmem [shape: f32[16,32], index: 0, kind: input, shape index: {}]   ;;  %s317_s2 = inlined_call_operand.vmem [shape: f32[1,32], index: 2, kind: input, shape index: {}]   ;;  %s318_s3 = inlined_call_operand.vmem [shape: f32[16,32], index: 3, kind: input, shape index: {}]   ;;  %s319_s4 = inlined_call_operand.vmem [shape: f32[1,32], index: 4, kind: input, shape index: {}]   ;;  %s320_s5 = inlined_call_operand.vmem [shape: f32[1,32], index: 5, kind: input, shape index: {}]   ;;  %s321_s6 = inlined_call_operand.vmem [shape: f32[16,32], index: 6, kind: output, shape index: {}]  }
   0x1   :  { %v34_v0 = vld [vmem:[%s315_s1] sm:$0xff]  ;;  %v35_v1 = vld [vmem:[%s315_s1 + $0x8] sm:$0xff]  ;;  %v36_v2 = vld [vmem:[%s315_s1 + $0x10] sm:$0xff]  ;;  %29 = vst.msk [vmem:[#allocation2 + $0x8] sm:$0xff] %vm27_vm0, %v228_v3 }
   0x2   :  { %28 = vst.msk [vmem:[#allocation2] sm:$0xff] %vm27_vm0, %v228_v3  ;;  %v215_v4 = vpack.c.bf16 %v35_v1, %v34_v0  ;;  %v37_v5 = vld [vmem:[%s315_s1 + $0x18] sm:$0xff]  ;;  %v32_v6 = vld [vmem:[%s316_s0] sm:$0xff]  ;;  %v33_v8 = vld [vmem:[%s316_s0 + $0x8] sm:$0xff] }
   0x3   :  { %v219_v7 = vpack.c.bf16 %v37_v5, %v36_v2  ;;  %212 = vmatprep.mubr.msk.f32.mxu0 %vm27_vm0, %v32_v6  ;;  %v195_v15 = vld [vmem:[%s317_s2] ss:$0 sm:$0xff]  ;;  %v139_v21 = vld [vmem:[%s318_s3 + $0x8] sm:$0xff] }
   0x4   :  { %216 = vmatprep.subr.bf16.mxu0 %v215_v4  ;;  %v138_v18 = vld [vmem:[%s318_s3] sm:$0xff] }
   0x5   :  { %218 = vmatpush3.bf16.msra.mxu0 %v215_v4  ;;  %v196_v43 = vld [vmem:[%s319_s4] ss:$0 sm:$0xff] }
   0x6   :  { %220 = vmatprep.subr.bf16.mxu0 %v219_v7  ;;  %v197_v45 = vld [vmem:[%s320_s5] ss:$0 sm:$0xff] }
   0x8   :  { %v31_v9 = vld [vmem:[#allocation2 + $0x8] sm:$0xff] }
   0x9   :  { %222 = vmatpush3.bf16.msra.mxu0 %v219_v7  ;;  %v30_v10 = vld [vmem:[#allocation2] sm:$0xff] }
   0xc   :  { %213 = vmatmul.mubr.msk.f32.vlgmr.msra.gmra.mrb[0].mxu0 %vm27_vm0, %v33_v8 }
  0xdf   :  { %v214_v11 = vpop.f32.mrb[0].mxu0 }
  0xe0   :  { %v121_v12 = vadd.f32 %v214_v11, %v31_v9  ;;  %v111_v13 = vpop.f32.mrb[1].mxu0 }
  0xe1   :  { %v120_v14 = vadd.f32 %v111_v13, %v30_v10 }
  0xe2   :  { %123 = vst.msk [vmem:[#allocation2 + $0x8] sm:$0xff] %vm27_vm0, %v121_v12 }
  0xe3   :  { %122 = vst.msk [vmem:[#allocation2] sm:$0xff] %vm27_vm0, %v120_v14 }
  0xe9   :  { %v128_v16 = vld [vmem:[#allocation2 + $0x8] sm:$0xff] }
  0xea   :  { %v127_v17 = vld [vmem:[#allocation2] sm:$0xff]  ;;  %v137_v20 = vadd.f32 %v195_v15, %v128_v16 }
  0xeb   :  { %v136_v19 = vadd.f32 %v195_v15, %v127_v17 }
  0xec   :  { %v141_v24 = vadd.f32 %v139_v21, %v137_v20 }
  0xed   :  { %v140_v22 = vadd.f32 %v138_v18, %v136_v19 }
  0xee   :  { %v145_v25 = vsel %vm27_vm0, %v141_v24, 0.0 }
  0xef   :  { %v142_v23 = vsel %vm27_vm0, %v140_v22, 0.0 }
  0xf0   :  { %143 = vadd.xlane.f32.xlu0 %v142_v23 }
  0xf4   :  { %146 = vadd.xlane.f32.xlu0 %v145_v25 }
 0x17d   :  { %v144_v26 = vpop.xlane.xlu0 %143 }
 0x17e   :  { %v149_v27 = vmul.f32 0.03125, %v144_v26 }
 0x180   :  { %v151_v28 = vsub.f32 %v140_v22, %v149_v27 }
 0x181   :  { %v147_v29 = vpop.xlane.xlu0 %146 }
 0x182   :  { %v150_v30 = vmul.f32 0.03125, %v147_v29  ;;  %v153_v31 = vmul.f32 %v151_v28, %v151_v28 }
 0x184   :  { %v152_v32 = vsub.f32 %v141_v24, %v150_v30  ;;  %v155_v33 = vsel %vm27_vm0, %v153_v31, 0.0 }
 0x185   :  { %156 = vadd.xlane.f32.xlu1 %v155_v33 }
 0x186   :  { %v154_v34 = vmul.f32 %v152_v32, %v152_v32 }
 0x188   :  { %v158_v35 = vsel %vm27_vm0, %v154_v34, 0.0 }
 0x189   :  { %159 = vadd.xlane.f32.xlu1 %v158_v35 }
 0x212   :  { %v157_v36 = vpop.xlane.xlu1 %156 }
 0x213   :  { %v161_v37 = vmul.f32 0.03125, %v157_v36 }
 0x215   :  { %v163_v38 = vadd.f32 1e-12, %v161_v37 }
 0x216   :  { %v160_v39 = vpop.xlane.xlu1 %159 }
 0x217   :  { %224 = vrsqrt.f32 %v163_v38  ;;  %v162_v40 = vmul.f32 0.03125, %v160_v39 }
 0x219   :  { %v164_v41 = vadd.f32 1e-12, %v162_v40 }
 0x21b   :  { %226 = vrsqrt.f32 %v164_v41 }
 0x221   :  { %v225_v42 = vpop.eup %224 }
 0x222   :  { %v167_v44 = vmul.f32 %v225_v42, %v151_v28 }
 0x224   :  { %v176_v46 = vmul.f32 %v196_v43, %v167_v44 }
 0x225   :  { %v227_v47 = vpop.eup %226 }
 0x226   :  { %v185_v48 = vadd.f32 %v197_v45, %v176_v46  ;;  %v168_v49 = vmul.f32 %v227_v47, %v152_v32 }
 0x228   :  { %187 = vst.msk [vmem:[%s321_s6] sm:$0xff] %vm27_vm0, %v185_v48  ;;  %v177_v50 = vmul.f32 %v196_v43, %v168_v49 }
 0x22a   :  { %v186_v51 = vadd.f32 %v197_v45, %v177_v50 }
 0x22c   :  { %188 = vst.msk [vmem:[%s321_s6 + $0x8] sm:$0xff] %vm27_vm0, %v186_v51 }

// kernel: pointer_block_forward.8
= control target key start
LH: loop header
LB: loop body
LE: loop exit
PB: predicated region body
PF: predicated region fallthrough
CT: control target
= control target key end

     0   :  { %10 = vsyncpa [#allocation3], 0  ;;  %s1672_s0 = inlined_call_operand.vmem [shape: f32[2,8,32], index: 0, kind: input, shape index: {}]   ;;  %s1673_s1 = inlined_call_operand.vmem [shape: f32[2,16,64], index: 1, kind: input, shape index: {}]   ;;  %s1674_s2 = inlined_call_operand.vmem [shape: f32[2,1,16], index: 2, kind: input, shape index: {}]   ;;  %s1675_s3 = inlined_call_operand.vmem [shape: f32[2,8,32], index: 3, kind: output, shape index: {0}]   ;;  %s1676_s4 = inlined_call_operand.hbm [shape: f32[2,4,8,16], index: 4, kind: output, shape index: {1}]  }
   0x1   :  { %12 = vsyncpa [#allocation3 + $0x1], 0  ;;  %s1449_s15 = smov 0   ;;  %s1451_s16 = smov 0  }
   0x2   :  { %s1453_s17 = smov 0   ;;  %s1455_s18 = smov 0  }
   0x3 LB: > { %s1470_s19 = sadd.s32 4294967295, %s1407_s18   ;;  %s1097_s20 = sadd.s32 4294967294, %s1407_s18   ;;  %s1407_s18 = sphi %s1455_s18, %s1684_s18   ;;  %s1403_s17 = sphi %s1453_s17, %s1683_s17   ;;  %s1399_s16 = sphi %s1451_s16, %s1682_s16   ;;  %s1395_s15 = sphi %s1449_s15, %s1681_s15  }
   0x4   : > { %s1474_s21 = sadd.s32 1, %s1407_s18   ;;  %s129_s22 = sadd.s32 1, %s1403_s17 }
   0x5   : > { %s126_s23 = ssub.s32 %s1407_s18, %s1474_s21  ;;  %p139_p0 = scmp.ne.s32.totalorder %s1403_s17, %s1399_s16 }
   0x6   : > { %p127_p1 = scmp.eq.s32.totalorder %s126_s23, 0  ;;  %p140_p2 = scmp.eq.s32.totalorder %s1470_s19, 1 }
   0x7   : > { %p145_p3 = scmp.ne.s32.totalorder %s1399_s16, %s1395_s15  ;;  %p146_p4 = scmp.eq.s32.totalorder %s1097_s20, 1 }
   0x8   : > { %s1485_s24 = scalar_select %p127_p1, %s1403_s17, %s129_s22  }
   0x9   : > { %p1487_p5 = por %p140_p2, %p139_p0  ;;  %p1491_p6 = por %p146_p4, %p145_p3 }
   0xa   : > { %p1100_p7 = scmp.ge.s32.totalorder %s1407_s18, 1  ;;  %p185_p8 = scmp.lt.s32.totalorder %s1407_s18, 3 }
   0xc   : > { %p186_p9 = pnand %p1100_p7, %p185_p8 }
   0xd   : > { %p222_p10 = scmp.lt.s32.totalorder (!%p186_p9), %s1470_s19, 1  ;;  %v1409_v0 = vmov (!%p186_p9), 0.0|0.0   ;;  %vm1410_vm0 = vmmov (!%p186_p9), 0   ;;  %v1411_v1 = vmov (!%p186_p9), 0.0   ;;  %vm242_vm1 = vcmask (!%p186_p9), 64512   ;;  %s1412_s13 = smov (!%p186_p9), 96  }
   0xe   : > { %189 = sbr.rel (%p186_p9) target bundleno = 2507 (0x9cb), region = 32  ;;  %1213 = vmatprep.subr.bf16.mxu0 (!%p186_p9), %v1409_v0  ;;  %1161 = vmatprep.mubr.msk.f32.mxu0 (!%p186_p9), %vm1410_vm0, %v1411_v1  ;;  %vm1513_vm2 = vmpackc.low (!%p186_p9), %vm242_vm1, %vm242_vm1  ;;  %vm330_vm3 = vcmask (!%p186_p9), 130048   ;;  %s1413_s14 = smov (!%p186_p9), 120   ;;  %vm603_vm4 = vcmask (!%p186_p9), 130112   ;;  %vm785_vm5 = vcmask (!%p186_p9), 195712  }
   0xf   : > { %1217 = vmatprep.subr.bf16.mxu1 (!%p186_p9), %v1409_v0  ;;  %1168 = vmatprep.mubr.msk.f32.mxu1 (!%p186_p9), %vm1410_vm0, %v1411_v1  ;;  %s219_s20 = sand.u32 (!%p186_p9), 1, %s1399_s16   ;;  %s1417_s7 = smov (!%p186_p9), 104  }
  0x10   : > { %s1101_s22 = sshll.u32 (!%p186_p9), %s219_s20, 5  ;;  %s1418_s8 = smov (!%p186_p9), 72  }
  0x11   : > { %s1550_s23 = scalar_lea.vmem (!%p186_p9), [#allocation2], %s1101_s22  ;;  %s1420_s10 = smov (!%p186_p9), 8  }
  0x12   : > { %s1132_s11 = sshll.u32 (!%p186_p9), %s1470_s19, 9 }
  0x13   : > { %s1623_s22 = scalar_lea.hbm (!%p186_p9), %s1676_s4, %s1132_s11 }
  0x15   : > { %s1502_s27 = scalar_select %p222_p10, %s1470_s19, 1 }
  0x16   : > { %s1421_s19 = smov [#allocation2]  }
  0x17   : > { %s1131_s28 = sshll.u32 %s1502_s27, 4  ;;  %s1102_s6 = sshll.u32 %s1502_s27, 3 }
  0x18   : > { %s230_s5 = scalar_lea.vmem %s1673_s1, %s1131_s28  ;;  %s225_s9 = scalar_lea.vmem %s1672_s0, %s1102_s6 }
  0x19   : > { %v239_v2 = vld [vmem:[%s230_s5] sm:$0xff]  ;;  %v240_v3 = vld [vmem:[%s230_s5 + $0x8] sm:$0xff]  ;;  %s233_s12 = scalar_lea.vmem %s1674_s2, %s1502_s27  ;;  %s1568_s30 = scalar_lea.vmem %s1675_s3, %s1102_s6 }
  0x1a   : > { %v1214_v5 = vpack.c.bf16 %v240_v3, %v239_v2  ;;  %v1526_v6 = vld [vmem:[%s225_s9] sm:$0xff]  ;;  %v1540_v13 = vpack.i.bf16 %v240_v3, %v239_v2  ;;  %s1414_s5 = smov 88   ;;  %s1415_s27 = smov 112  }
  0x1b   : > { %v1536_v8 = vld [vmem:[%s233_s12] ss:$0 sm:$0xff]  ;;  %s1416_s6 = smov 80   ;;  %s1419_s9 = smov 16  }
  0x1c   : > { %1216 = vmatpush3.bf16.xpose.msk.msra.mxu0 %vm1513_vm2, %v1214_v5  ;;  %1295 = vrot.lane.b32.xlu1 %v1540_v13, %s1412_s13  ;;  %s990_s12 = sshll.u32 %s1550_s23, 4  ;;  %s1629_s28 = scalar_lea.sflag [#allocation3], %s219_s20  ;;  %s1625_s12 = int_to_ptr.vmem [resolvable:$true] %s990_s12 }
  0x1d   : > { %1224 = vmatprep.subr.bf16.mxu0 %v1409_v0  ;;  %s1345_s29 = scalar_lea.vmem %s1625_s12, 512 }
  0x1e   : > { %p1346_p11 = scmp.ne.s32.totalorder %s1625_s12, %s1345_s29 }
  0x20   : > { %1300 = vrot.lane.b32.xlu1 %v1540_v13, %s1413_s14  ;;  %p1347_p12 = pnand %p1346_p11, %p1487_p5 }
  0x22   : > { %p1348_p13 = pneg %p1347_p12 }
  0x23   : > { %1162 = vmatmul.mubr.msk.f32.vlgmr.msra.gmra.mrb[0].mxu0 %vm242_vm1, %v1526_v6 }
  0x24   : > { %1182 = vmatprep.mubr.msk.f32.mxu0 %vm1410_vm0, %v1411_v1 }
  0x8e   : > { %v1296_v19 = vpop.permute.xlu1 %1295 }
  0x8f   : > { %v1298_v20 = vunpack.i.h.bf16 %v1296_v19  ;;  %v1297_v21 = vunpack.i.l.bf16 %v1296_v19 }
  0x91   : > { %v1218_v22 = vpack.c.bf16 %v1298_v20, %v1297_v21 }
  0x92   : > { %v1301_v24 = vpop.permute.xlu1 %1300 }
  0x93   : > { %1219 = vmatpush3.bf16.msra.mxu1 %v1218_v22  ;;  %v1303_v25 = vunpack.i.h.bf16 %v1301_v24  ;;  %v1302_v26 = vunpack.i.l.bf16 %v1301_v24 }
  0x94   : > { %1220 = vmatprep.subr.bf16.mxu1 %v1409_v0 }
  0x95   : > { %v1221_v28 = vpack.c.bf16 %v1303_v25, %v1302_v26 }
  0xf6   : > { %v318_v7 = vpop.f32.mrb[0].mxu0 }
  0xf7   : > { %v322_v9 = vmul.f32 0.35355338, %v318_v7  ;;  %v1163_v10 = vpop.f32.mrb[1].mxu0 }
  0xf9   : > { %v329_v11 = vadd.f32 %v1536_v8, %v322_v9 }
  0xfb   : > { %v331_v12 = vsel %vm330_vm3, %v329_v11, -inf }
  0xfc   : > { %332 = vmax.xlane.f32.xlu0 %v331_v12 }
 0x189   : > { %v333_v14 = vpop.xlane.xlu0 %332 }
 0x18a   : > { %v334_v15 = vsub.f32 %v329_v11, %v333_v14 }
 0x18c   : > { %v335_v16 = vmul.f32 1.442695, %v334_v15 }
 0x18e   : > { %1329 = vpow2.f32 %v335_v16 }
 0x198   : > { %v1330_v17 = vpop.eup %1329 }
 0x199   : > { %v337_v18 = vsel %vm330_vm3, %v1330_v17, 0.0 }
 0x19a   : > { %338 = vadd.xlane.f32.xlu0 %v337_v18 }
 0x1b0   : > { %423 = vrot.lane.b32.xlu0 %v1526_v6, %s1413_s14 }
 0x227   : > { %v339_v23 = vpop.xlane.xlu0 %338 }
 0x228   : > { %1331 = vrcp.f32 %v339_v23 }
 0x22b   : > { %v424_v30 = vpop.permute.xlu0 %423 }
 0x232   : > { %v1332_v27 = vpop.eup %1331 }
 0x233   : > { %v341_v29 = vmul.f32 %v1332_v27, %v1330_v17 }
 0x235   : > { %342 = vst.msk [vmem:[%s1550_s23] sm:$0xff] %vm330_vm3, %v341_v29  ;;  %1169 = vmatmul.mubr.msk.f32.vlgmr.msra.gmra.mrb[0].mxu1 %vm330_vm3, %v341_v29 }
 0x236   : > { %1223 = vmatpush3.bf16.xpose.msk.msra.mxu1 %vm1513_vm2, %v1221_v28  ;;  %1175 = vmatprep.mubr.msk.f32.mxu1 %vm1410_vm0, %v1411_v1 }
 0x237   : > { %1231 = vmatprep.subr.bf16.mxu1 %v1409_v0 }
 0x23d   : > { %1176 = vmatmul.mubr.msk.f32.vlgmr.msra.gmra.mrb[2].mxu1 %vm242_vm1, %v424_v30 }
 0x23e   : > { %1196 = vmatprep.mubr.msk.f32.mxu1 %vm1410_vm0, %v1411_v1 }
 0x308   : > { %v418_v31 = vpop.f32.mrb[0].mxu1 }
 0x309   : > { %422 = vst.msk [vmem:[%s1568_s30] sm:$0xff] %vm242_vm1, %v418_v31  ;;  %v1170_v32 = vpop.f32.mrb[1].mxu1 }
 0x310   : > { %v501_v33 = vpop.f32.mrb[2].mxu1 }
 0x311   : > { %v505_v34 = vmul.f32 0.35355338, %v501_v33  ;;  %v1177_v35 = vpop.f32.mrb[3].mxu1 }
 0x313   : > { %v506_v36 = vadd.f32 %v1536_v8, %v505_v34 }
 0x315   : > { %v507_v37 = vsel %vm330_vm3, %v506_v36, -inf }
 0x316   : > { %508 = vmax.xlane.f32.xlu1 %v507_v37 }
 0x327   : > { %1305 = vrot.lane.b32.xlu1 %v1540_v13, %s1414_s5 }
 0x32b   : > { %605 = vrot.lane.b32.xlu1 %v1526_v6, %s1415_s27 }
 0x3a3   : > { %v509_v38 = vpop.xlane.xlu1 %508 }
 0x3a4   : > { %v510_v39 = vsub.f32 %v506_v36, %v509_v38 }
 0x3a6   : > { %v511_v40 = vmul.f32 1.442695, %v510_v39 }
 0x3a7   : > { %v1306_v43 = vpop.permute.xlu1 %1305 }
 0x3a8   : > { %1333 = vpow2.f32 %v511_v40  ;;  %v1308_v44 = vunpack.i.h.bf16 %v1306_v43  ;;  %v1307_v45 = vunpack.i.l.bf16 %v1306_v43 }
 0x3aa   : > { %v1225_v46 = vpack.c.bf16 %v1308_v44, %v1307_v45 }
 0x3ab   : > { %v606_v54 = vpop.permute.xlu1 %605 }
 0x3ac   : > { %1226 = vmatpush3.bf16.msra.mxu0 %v1225_v46 }
 0x3ad   : > { %1227 = vmatprep.subr.bf16.mxu0 %v1409_v0 }
 0x3b2   : > { %v1334_v41 = vpop.eup %1333 }
 0x3b3   : > { %v513_v42 = vsel %vm330_vm3, %v1334_v41, 0.0 }
 0x3b4   : > { %514 = vadd.xlane.f32.xlu0 %v513_v42 }
 0x3ca   : > { %1310 = vrot.lane.b32.xlu0 %v1540_v13, %s1415_s27 }
 0x441   : > { %v515_v47 = vpop.xlane.xlu0 %514 }
 0x442   : > { %1335 = vrcp.f32 %v515_v47 }
 0x445   : > { %v1311_v48 = vpop.permute.xlu0 %1310 }
 0x446   : > { %v1313_v49 = vunpack.i.h.bf16 %v1311_v48  ;;  %v1312_v50 = vunpack.i.l.bf16 %v1311_v48 }
 0x448   : > { %v1228_v52 = vpack.c.bf16 %v1313_v49, %v1312_v50 }
 0x44c   : > { %v1336_v51 = vpop.eup %1335 }
 0x44d   : > { %v517_v53 = vmul.f32 %v1336_v51, %v1334_v41 }
 0x44f   : > { %1114 = vst.msk [vmem:[%s1550_s23 + $0x8] sm:$0xff] %vm330_vm3, %v517_v53  ;;  %1183 = vmatmul.mubr.msk.f32.vlgmr.msra.gmra.mrb[2].mxu0 %vm330_vm3, %v517_v53 }
 0x450   : > { %1230 = vmatpush3.bf16.xpose.msk.msra.mxu0 %vm1513_vm2, %v1228_v52  ;;  %1189 = vmatprep.mubr.msk.f32.mxu0 %vm1410_vm0, %v1411_v1 }
 0x451   : > { %1238 = vmatprep.subr.bf16.mxu0 %v1409_v0 }
 0x457   : > { %1190 = vmatmul.mubr.msk.f32.vlgmr.msra.gmra.mrb[4].mxu0 %vm242_vm1, %v606_v54 }
 0x458   : > { %1210 = vmatprep.mubr.msk.f32.mxu0 %vm1410_vm0, %v1411_v1 }
 0x522   : > { %v1590_v55 = vpop.f32.mrb[2].mxu0 }
 0x523   : > { %v1184_v56 = vpop.f32.mrb[3].mxu0 }
 0x52a   : > { %v683_v57 = vpop.f32.mrb[4].mxu0 }
 0x52b   : > { %v687_v58 = vmul.f32 0.35355338, %v683_v57  ;;  %v1191_v59 = vpop.f32.mrb[5].mxu0 }
 0x52d   : > { %v688_v60 = vadd.f32 %v1536_v8, %v687_v58 }
 0x52f   : > { %v689_v61 = vsel %vm330_vm3, %v688_v60, -inf }
 0x530   : > { %690 = vmax.xlane.f32.xlu1 %v689_v61 }
 0x541   : > { %1315 = vrot.lane.b32.xlu1 %v1540_v13, %s1416_s6 }
 0x545   : > { %787 = vrot.lane.b32.xlu1 %v1526_v6, %s1417_s7 }
 0x5bd   : > { %v691_v62 = vpop.xlane.xlu1 %690 }
 0x5be   : > { %v692_v63 = vsub.f32 %v688_v60, %v691_v62 }
 0x5c0   : > { %v693_v2 = vmul.f32 1.442695, %v692_v63 }
 0x5c1   : > { %v1316_v7 = vpop.permute.xlu1 %1315 }
 0x5c2   : > { %1337 = vpow2.f32 %v693_v2  ;;  %v1318_v9 = vunpack.i.h.bf16 %v1316_v7  ;;  %v1317_v10 = vunpack.i.l.bf16 %v1316_v7 }
 0x5c4   : > { %v1232_v11 = vpack.c.bf16 %v1318_v9, %v1317_v10 }
 0x5c6   : > { %1233 = vmatpush3.bf16.msra.mxu1 %v1232_v11 }
 0x5c7   : > { %1234 = vmatprep.subr.bf16.mxu1 %v1409_v0  ;;  %v788_v0 = vpop.permute.xlu1 %787 }
 0x5cc   : > { %v1338_v3 = vpop.eup %1337 }
 0x5cd   : > { %v695_v5 = vsel %vm330_vm3, %v1338_v3, 0.0 }
 0x5ce   : > { %696 = vadd.xlane.f32.xlu0 %v695_v5 }
 0x5e4   : > { %1320 = vrot.lane.b32.xlu0 %v1540_v13, %s1417_s7 }
 0x65b   : > { %v697_v12 = vpop.xlane.xlu0 %696 }
 0x65c   : > { %1339 = vrcp.f32 %v697_v12 }
 0x65f   : > { %v1321_v6 = vpop.permute.xlu0 %1320 }
 0x660   : > { %v1323_v14 = vunpack.i.h.bf16 %v1321_v6  ;;  %v1322_v15 = vunpack.i.l.bf16 %v1321_v6 }
 0x662   : > { %v1235_v17 = vpack.c.bf16 %v1323_v14, %v1322_v15 }
 0x666   : > { %v1340_v16 = vpop.eup %1339 }
 0x667   : > { %v699_v18 = vmul.f32 %v1340_v16, %v1338_v3 }
 0x669   : > { %1119 = vst.msk [vmem:[%s1550_s23 + $0x10] sm:$0xff] %vm330_vm3, %v699_v18  ;;  %1197 = vmatmul.mubr.msk.f32.vlgmr.msra.gmra.mrb[4].mxu1 %vm330_vm3, %v699_v18 }
 0x66a   : > { %1237 = vmatpush3.bf16.xpose.msk.msra.mxu1 %vm1513_vm2, %v1235_v17  ;;  %1203 = vmatprep.mubr.msk.f32.mxu1 %vm1410_vm0, %v1411_v1 }
 0x671   : > { %1204 = vmatmul.mubr.msk.f32.vlgmr.msra.gmra.mrb[6].mxu1 %vm242_vm1, %v788_v0 }
 0x73c   : > { %v777_v19 = vpop.f32.mrb[4].mxu1 }
 0x73d   : > { %v1198_v20 = vpop.f32.mrb[5].mxu1 }
 0x744   : > { %v865_v21 = vpop.f32.mrb[6].mxu1 }
 0x745   : > { %v869_v22 = vmul.f32 0.35355338, %v865_v21  ;;  %v1205_v23 = vpop.f32.mrb[7].mxu1 }
 0x747   : > { %v870_v24 = vadd.f32 %v1536_v8, %v869_v22 }
 0x749   : > { %v871_v25 = vsel %vm330_vm3, %v870_v24, -inf }
 0x74a   : > { %872 = vmax.xlane.f32.xlu1 %v871_v25 }
 0x75b   : > { %1325 = vrot.lane.b32.xlu1 %v1540_v13, %s1418_s8 }
 0x75f   : > { %782 = vrot.lane.b32.xlu1 %v777_v19, %s1419_s9 }
 0x7d7   : > { %v873_v4 = vpop.xlane.xlu1 %872 }
 0x7d8   : > { %v874_v1 = vsub.f32 %v870_v24, %v873_v4 }
 0x7da   : > { %v875_v26 = vmul.f32 1.442695, %v874_v1 }
 0x7db   : > { %v1326_v27 = vpop.permute.xlu1 %1325 }
 0x7dc   : > { %1341 = vpow2.f32 %v875_v26  ;;  %v1328_v28 = vunpack.i.h.bf16 %v1326_v27  ;;  %v1327_v29 = vunpack.i.l.bf16 %v1326_v27 }
 0x7de   : > { %v1239_v30 = vpack.c.bf16 %v1328_v28, %v1327_v29 }
 0x7df   : > { %v783_v33 = vpop.permute.xlu1 %782 }
 0x7e0   : > { %1240 = vmatpush3.bf16.msra.mxu0 %v1239_v30 }
 0x7e6   : > { %v1342_v8 = vpop.eup %1341 }
 0x7e7   : > { %v877_v31 = vsel %vm330_vm3, %v1342_v8, 0.0 }
 0x7e8   : > { %878 = vadd.xlane.f32.xlu0 %v877_v31 }
 0x7fe   : > { %600 = vrot.lane.b32.xlu0 %v1590_v55, %s1420_s10 }
 0x875   : > { %v879_v13 = vpop.xlane.xlu0 %878 }
 0x876   : > { %1343 = vrcp.f32 %v879_v13 }
 0x879   : > { %v601_v32 = vpop.permute.xlu0 %600 }
 0x87a   : > { %604 = vst.msk [vmem:[%s1568_s30] sm:$0xff] %vm603_vm4, %v601_v32 }
 0x87b   : > { %786 = vst.msk [vmem:[%s1568_s30] sm:$0xff] %vm785_vm5, %v783_v33 }
 0x880   : > { %v1344_v34 = vpop.eup %1343 }
 0x881   : > { %v881_v35 = vmul.f32 %v1344_v34, %v1342_v8 }
 0x883   : > { %1124 = vst.msk [vmem:[%s1550_s23 + $0x18] sm:$0xff] %vm330_vm3, %v881_v35  ;;  %1211 = vmatmul.mubr.msk.f32.vlgmr.msra.gmra.mrb[6].mxu0 %vm330_vm3, %v881_v35  ;;  %s1349_s23 = sshll.u32 %s1421_s19, 4  ;;  %s1350_s23 = int_to_ptr.vmem [resolvable:$false] %s1349_s23 }
 0x884   : > { %s1351_s5 = scalar_lea.vmem %s1350_s23, 1024  ;;  %p1352_p0 = scmp.lt.s32.totalorder %s1625_s12, %s1350_s23 }
 0x885   : > { %p1353_p1 = scmp.lt.s32.totalorder %s1351_s5, %s1345_s29 }
 0x887   : > { %p1354_p2 = por %p1353_p1, %p1352_p0 }
 0x889   : > { %p1355_p3 = pnand %p1354_p2, %p1348_p13 }
 0x88b   : > { %1358 = shalt.err (!%p1355_p3)
}
 0x88c   : > { %s1359_s20 = scalar_lea.hbm %s1623_s22, 512  ;;  %s1363_s7 = scalar_lea.hbm %s1676_s4, 1024 }
 0x88d   : > { %p1360_p4 = scmp.ne.s32.totalorder %s1623_s22, %s1359_s20  ;;  %p1364_p9 = scmp.lt.u32.totalorder %s1623_s22, %s1676_s4 }
 0x88e   : > { %p1365_p10 = scmp.lt.u32.totalorder %s1363_s7, %s1359_s20  ;;  %p1367_p12 = scmp.lt.u32.totalorder %s1359_s20, %s1623_s22 }
 0x88f   : > { %p1361_p7 = pnand %p1360_p4, %p1487_p5 }
 0x890   : > { %p1366_p11 = por %p1365_p10, %p1364_p9 }
 0x891   : > { %p1362_p8 = pneg %p1361_p7 }
 0x892   : > { %p1368_p13 = por %p1367_p12, %p1366_p11 }
 0x894   : > { %p1369_p0 = pnand %p1368_p13, %p1362_p8 }
 0x896   : > { %1372 = shalt.err (!%p1369_p0)
}
 0x897   : > { %s1422_s11 = smov 128   ;;  %s1423_s13 = smov 24   ;;  %vm967_vm6 = vcmask 261312  }
 0x898   : > { %1241 = dma.vmem_to_hbm [thread:$0]  (%p1487_p5), %s1625_s12, 512, %s1623_s22, %s1629_s28, %s1422_s11, %s1422_s11, %s1420_s10  }
 0x956   : > { %v959_v36 = vpop.f32.mrb[6].mxu0 }
 0x957   : > { %964 = vrot.lane.b32.xlu1 %v959_v36, %s1423_s13  ;;  %v1212_v37 = vpop.f32.mrb[7].mxu0 }
 0x9c9   : > { %v965_v38 = vpop.permute.xlu1 %964 }
 0x9ca   : > { %968 = vst.msk [vmem:[%s1568_s30] sm:$0xff] %vm967_vm6, %v965_v38 }
 0x9cb PF: > { %p1247_p1 = scmp.ge.s32.totalorder %s1407_s18, 2  ;;  %s1012_s14 = sand.u32 1, %s1395_s15  }
 0x9cc   : > { %s1013_s25 = scalar_lea.sflag [#allocation3], %s1012_s14 }
 0x9cd   : > { %p1244_p2 = pnand %p1247_p1, %p1491_p6 }
 0x9cf   : > { %1390 = dma.done.wait (!%p1244_p2), %s1013_s25, 512  }
 0x9d0   : > { %1392 = vsyncadd (!%p1244_p2), %s1013_s25, 4294966784  ;;  %p15_p5 = scmp.ge.s32.totalorder %s1474_s21, 4   ;;  %s1681_s15 = smov %s1399_s16 }
 0x9d1   : > { %s1682_s16 = smov %s1403_s17  ;;  %s1683_s17 = smov %s1485_s24 }
 0x9d2   : > { %s1684_s18 = smov %s1474_s21  ;;  %17 = sbr.rel (!%p15_p5) target bundleno = 3 (0x3), region = 88 }
 0x9d9   :  { %1018 = vsyncpa [#allocation3], 1 }
 0x9da   :  { %1020 = vsyncpa [#allocation3 + $0x1], 1 }

// kernel: pointer_block_forward.10
= control target key start
LH: loop header
LB: loop body
LE: loop exit
PB: predicated region body
PF: predicated region fallthrough
CT: control target
= control target key end

     0   :  { %vm29_vm0 = vcmask 261120   ;;  %vm18_vm1 = vcmask 523264   ;;  %v179_v3 = vmov 0.0   ;;  %s235_s1 = inlined_call_operand.vmem [shape: f32[32,64], index: 1, kind: input, shape index: {}]   ;;  %s236_s0 = inlined_call_operand.vmem [shape: f32[16,32], index: 0, kind: input, shape index: {}]   ;;  %s237_s2 = inlined_call_operand.vmem [shape: f32[1,64], index: 2, kind: input, shape index: {}]   ;;  %s238_s3 = inlined_call_operand.vmem [shape: f32[16,64], index: 3, kind: output, shape index: {}]  }
   0x1   :  { %v25_v0 = vld [vmem:[%s235_s1] sm:$0xff]  ;;  %v26_v1 = vld [vmem:[%s235_s1 + $0x8] sm:$0xff]  ;;  %v27_v2 = vld [vmem:[%s235_s1 + $0x10] sm:$0xff]  ;;  %20 = vst.msk [vmem:[#allocation2 + $0x8] sm:$0xff] %vm18_vm1, %v179_v3 }
   0x2   :  { %19 = vst.msk [vmem:[#allocation2] sm:$0xff] %vm18_vm1, %v179_v3  ;;  %v166_v4 = vpack.c.bf16 %v26_v1, %v25_v0  ;;  %v28_v5 = vld [vmem:[%s235_s1 + $0x18] sm:$0xff]  ;;  %v23_v6 = vld [vmem:[%s236_s0] sm:$0xff]  ;;  %v24_v8 = vld [vmem:[%s236_s0 + $0x8] sm:$0xff] }
   0x3   :  { %v170_v7 = vpack.c.bf16 %v28_v5, %v27_v2  ;;  %163 = vmatprep.mubr.msk.f32.mxu0 %vm29_vm0, %v23_v6  ;;  %v148_v15 = vld [vmem:[%s237_s2] ss:$0 sm:$0xff] }
   0x4   :  { %167 = vmatprep.subr.bf16.mxu0 %v166_v4 }
   0x5   :  { %169 = vmatpush3.bf16.msra.mxu0 %v166_v4 }
   0x6   :  { %171 = vmatprep.subr.bf16.mxu0 %v170_v7 }
   0x8   :  { %v22_v9 = vld [vmem:[#allocation2 + $0x8] sm:$0xff] }
   0x9   :  { %173 = vmatpush3.bf16.msra.mxu0 %v170_v7  ;;  %v21_v10 = vld [vmem:[#allocation2] sm:$0xff] }
   0xc   :  { %164 = vmatmul.mubr.msk.f32.vlgmr.msra.gmra.mrb[0].mxu0 %vm29_vm0, %v24_v8 }
  0xdf   :  { %v165_v11 = vpop.f32.mrb[0].mxu0 }
  0xe0   :  { %v112_v12 = vadd.f32 %v165_v11, %v22_v9  ;;  %v102_v13 = vpop.f32.mrb[1].mxu0 }
  0xe1   :  { %v111_v14 = vadd.f32 %v102_v13, %v21_v10 }
  0xe2   :  { %115 = vst.msk [vmem:[#allocation2 + $0x8] sm:$0xff] %vm18_vm1, %v112_v12 }
  0xe3   :  { %114 = vst.msk [vmem:[#allocation2] sm:$0xff] %vm18_vm1, %v111_v14 }
  0xe9   :  { %v120_v16 = vld [vmem:[#allocation2 + $0x8] sm:$0xff] }
  0xea   :  { %v129_v17 = vadd.f32 %v148_v15, %v120_v16  ;;  %v119_v18 = vld [vmem:[#allocation2] sm:$0xff] }
  0xeb   :  { %v128_v19 = vadd.f32 %v148_v15, %v119_v18 }
  0xec   :  { %v133_v20 = vmul.f32 0.70710677, %v129_v17  ;;  %v131_v24 = vmul.f32 0.5, %v129_v17 }
  0xed   :  { %v132_v21 = vmul.f32 0.70710677, %v128_v19  ;;  %v130_v26 = vmul.f32 0.5, %v128_v19 }
  0xee   :  { %175 = verf.f32 %v133_v20 }
  0xef   :  { %177 = verf.f32 %v132_v21 }
  0xf8   :  { %v176_v22 = vpop.eup %175 }
  0xf9   :  { %v178_v23 = vpop.eup %177  ;;  %v137_v25 = vadd.f32 1.0, %v176_v22 }
  0xfa   :  { %v136_v27 = vadd.f32 1.0, %v178_v23 }
  0xfb   :  { %v139_v28 = vmul.f32 %v137_v25, %v131_v24 }
  0xfc   :  { %v138_v29 = vmul.f32 %v136_v27, %v130_v26 }
  0xfd   :  { %141 = vst.msk [vmem:[%s238_s3 + $0x8] sm:$0xff] %vm18_vm1, %v139_v28 }
  0xfe   :  { %140 = vst.msk [vmem:[%s238_s3] sm:$0xff] %vm18_vm1, %v138_v29 }

// kernel: pointer_block_forward.11
= control target key start
LH: loop header
LB: loop body
LE: loop exit
PB: predicated region body
PF: predicated region fallthrough
CT: control target
= control target key end

     0   :  { %vm43_vm0 = vcmask 523264   ;;  %vm28_vm1 = vcmask 261120   ;;  %v293_v5 = vmov 0.0   ;;  %s401_s0 = inlined_call_operand.vmem [shape: f32[16,64], index: 0, kind: input, shape index: {}]   ;;  %s402_s1 = inlined_call_operand.vmem [shape: f32[64,32], index: 1, kind: input, shape index: {}]   ;;  %s403_s2 = inlined_call_operand.vmem [shape: f32[1,32], index: 2, kind: input, shape index: {}]   ;;  %s404_s3 = inlined_call_operand.vmem [shape: f32[16,32], index: 3, kind: input, shape index: {}]   ;;  %s405_s4 = inlined_call_operand.vmem [shape: f32[1,32], index: 4, kind: input, shape index: {}]   ;;  %s406_s5 = inlined_call_operand.vmem [shape: f32[1,32], index: 5, kind: input, shape index: {}]   ;;  %s407_s6 = inlined_call_operand.hbm [shape: f32[16,32], index: 6, kind: output, shape index: {}]  }
   0x1   :  { %v35_v0 = vld [vmem:[%s402_s1] sm:$0xff]  ;;  %v36_v1 = vld [vmem:[%s402_s1 + $0x8] sm:$0xff]  ;;  %v37_v2 = vld [vmem:[%s402_s1 + $0x10] sm:$0xff]  ;;  %30 = vst.msk [vmem:[#allocation2 + $0x8] sm:$0xff] %vm28_vm1, %v293_v5 }
   0x2   :  { %v245_v3 = vpack.c.bf16 %v36_v1, %v35_v0  ;;  %v38_v4 = vld [vmem:[%s402_s1 + $0x18] sm:$0xff]  ;;  %29 = vst.msk [vmem:[#allocation2] sm:$0xff] %vm28_vm1, %v293_v5  ;;  %v39_v7 = vld [vmem:[%s402_s1 + $0x20] sm:$0xff]  ;;  %v40_v8 = vld [vmem:[%s402_s1 + $0x28] sm:$0xff] }
   0x3   :  { %v249_v6 = vpack.c.bf16 %v38_v4, %v37_v2  ;;  %v33_v9 = vld [vmem:[%s401_s0] sm:$0xff] }
   0x4   :  { %246 = vmatprep.subr.bf16.mxu0 %v245_v3  ;;  %242 = vmatprep.mubr.msk.f32.mxu0 %vm43_vm0, %v33_v9 }
   0x5   :  { %11 = vsyncpa [#allocation4], 0  ;;  %248 = vmatpush3.bf16.msra.mxu0 %v245_v3  ;;  %v253_v10 = vpack.c.bf16 %v40_v8, %v39_v7  ;;  %v41_v11 = vld [vmem:[%s402_s1 + $0x30] sm:$0xff]  ;;  %v42_v12 = vld [vmem:[%s402_s1 + $0x38] sm:$0xff]  ;;  %s294_s23 = smov [#allocation3]  }
   0x6   :  { %250 = vmatprep.subr.bf16.mxu0 %v249_v6  ;;  %v257_v13 = vpack.c.bf16 %v42_v12, %v41_v11  ;;  %v34_v14 = vld [vmem:[%s401_s0 + $0x8] sm:$0xff]  ;;  %v213_v21 = vld [vmem:[%s403_s2] ss:$0 sm:$0xff]  ;;  %s200_s24 = sshll.u32 %s294_s23, 4  ;;  %s201_s24 = int_to_ptr.vmem [resolvable:$true] %s200_s24 }
   0x7   :  { %v144_v24 = vld [vmem:[%s404_s3] sm:$0xff]  ;;  %v145_v27 = vld [vmem:[%s404_s3 + $0x8] sm:$0xff]  ;;  %s269_s25 = scalar_lea.vmem %s201_s24, 256  ;;  %p274_p1 = scmp.lt.s32.totalorder %s201_s24, %s201_s24 }
   0x8   :  { %v32_v15 = vld [vmem:[#allocation2 + $0x8] sm:$0xff]  ;;  %v214_v49 = vld [vmem:[%s405_s4] ss:$0 sm:$0xff]  ;;  %p270_p0 = scmp.ne.s32.totalorder %s201_s24, %s269_s25  ;;  %p275_p2 = scmp.lt.s32.totalorder %s269_s25, %s269_s25 }
   0x9   :  { %252 = vmatpush3.bf16.msra.mxu0 %v249_v6  ;;  %v31_v16 = vld [vmem:[#allocation2] sm:$0xff] }
   0xa   :  { %254 = vmatprep.subr.bf16.mxu0 %v253_v10  ;;  %v215_v51 = vld [vmem:[%s406_s5] ss:$0 sm:$0xff]  ;;  %p276_p3 = por %p275_p2, %p274_p1 }
   0xc   :  { %p277_p4 = pnand %p276_p3, %p270_p0 }
   0xd   :  { %256 = vmatpush3.bf16.msra.mxu0 %v253_v10 }
   0xe   :  { %258 = vmatprep.subr.bf16.mxu0 %v257_v13 }
  0x11   :  { %260 = vmatpush3.bf16.msra.mxu0 %v257_v13 }
  0x14   :  { %243 = vmatmul.mubr.msk.f32.vlgmr.msra.gmra.mrb[0].mxu0 %vm43_vm0, %v34_v14 }
  0xe7   :  { %v244_v17 = vpop.f32.mrb[0].mxu0 }
  0xe8   :  { %v126_v18 = vadd.f32 %v244_v17, %v32_v15  ;;  %v116_v19 = vpop.f32.mrb[1].mxu0 }
  0xe9   :  { %v125_v20 = vadd.f32 %v116_v19, %v31_v16 }
  0xea   :  { %129 = vst.msk [vmem:[#allocation2 + $0x8] sm:$0xff] %vm28_vm1, %v126_v18 }
  0xeb   :  { %128 = vst.msk [vmem:[#allocation2] sm:$0xff] %vm28_vm1, %v125_v20 }
  0xf1   :  { %v134_v22 = vld [vmem:[#allocation2 + $0x8] sm:$0xff] }
  0xf2   :  { %v133_v23 = vld [vmem:[#allocation2] sm:$0xff]  ;;  %v143_v26 = vadd.f32 %v213_v21, %v134_v22 }
  0xf3   :  { %v142_v25 = vadd.f32 %v213_v21, %v133_v23 }
  0xf4   :  { %v147_v30 = vadd.f32 %v145_v27, %v143_v26 }
  0xf5   :  { %v146_v28 = vadd.f32 %v144_v24, %v142_v25 }
  0xf6   :  { %v151_v31 = vsel %vm28_vm1, %v147_v30, 0.0 }
  0xf7   :  { %v148_v29 = vsel %vm28_vm1, %v146_v28, 0.0 }
  0xf8   :  { %149 = vadd.xlane.f32.xlu0 %v148_v29 }
  0xfc   :  { %152 = vadd.xlane.f32.xlu0 %v151_v31 }
 0x185   :  { %v150_v32 = vpop.xlane.xlu0 %149 }
 0x186   :  { %v155_v33 = vmul.f32 0.03125, %v150_v32 }
 0x188   :  { %v157_v34 = vsub.f32 %v146_v28, %v155_v33 }
 0x189   :  { %v153_v35 = vpop.xlane.xlu0 %152 }
 0x18a   :  { %v156_v36 = vmul.f32 0.03125, %v153_v35  ;;  %v159_v37 = vmul.f32 %v157_v34, %v157_v34 }
 0x18c   :  { %v158_v38 = vsub.f32 %v147_v30, %v156_v36  ;;  %v161_v39 = vsel %vm28_vm1, %v159_v37, 0.0 }
 0x18d   :  { %162 = vadd.xlane.f32.xlu1 %v161_v39 }
 0x18e   :  { %v160_v40 = vmul.f32 %v158_v38, %v158_v38 }
 0x190   :  { %v164_v41 = vsel %vm28_vm1, %v160_v40, 0.0 }
 0x191   :  { %165 = vadd.xlane.f32.xlu1 %v164_v41 }
 0x21a   :  { %v163_v42 = vpop.xlane.xlu1 %162 }
 0x21b   :  { %v167_v43 = vmul.f32 0.03125, %v163_v42 }
 0x21d   :  { %v169_v44 = vadd.f32 1e-12, %v167_v43 }
 0x21e   :  { %v166_v45 = vpop.xlane.xlu1 %165 }
 0x21f   :  { %265 = vrsqrt.f32 %v169_v44  ;;  %v168_v46 = vmul.f32 0.03125, %v166_v45 }
 0x221   :  { %v170_v47 = vadd.f32 1e-12, %v168_v46 }
 0x223   :  { %267 = vrsqrt.f32 %v170_v47 }
 0x229   :  { %v266_v48 = vpop.eup %265 }
 0x22a   :  { %v173_v50 = vmul.f32 %v266_v48, %v157_v34 }
 0x22c   :  { %v182_v52 = vmul.f32 %v214_v49, %v173_v50 }
 0x22d   :  { %v268_v53 = vpop.eup %267 }
 0x22e   :  { %v174_v54 = vmul.f32 %v268_v53, %v158_v38  ;;  %v191_v55 = vadd.f32 %v215_v51, %v182_v52 }
 0x230   :  { %v183_v56 = vmul.f32 %v214_v49, %v174_v54  ;;  %193 = vst.msk [vmem:[#allocation3] sm:$0xff] %vm28_vm1, %v191_v55 }
 0x232   :  { %v192_v57 = vadd.f32 %v215_v51, %v183_v56 }
 0x234   :  { %194 = vst.msk [vmem:[#allocation3 + $0x8] sm:$0xff] %vm28_vm1, %v192_v57 }
 0x235   :  { %280 = shalt.err (!%p277_p4)
}
 0x236   :  { %s281_s26 = scalar_lea.hbm %s407_s6, 256 }
 0x237   :  { %p282_p5 = scmp.ne.s32.totalorder %s407_s6, %s281_s26  ;;  %p285_p6 = scmp.lt.u32.totalorder %s281_s26, %s407_s6 }
 0x239   :  { %p287_p7 = pnand %p285_p6, %p282_p5 }
 0x23b   :  { %290 = shalt.err (!%p287_p7)
}
 0x23c   :  { %s295_s7 = smov 128   ;;  %s296_s8 = smov 8  }
 0x23d   :  { %206 = dma.vmem_to_hbm [thread:$0]  %s201_s24, 256, %s407_s6, [#allocation4], %s295_s7, %s295_s7, %s296_s8  }
 0x23e   :  { %291 = dma.done.wait [#allocation4], 256  }
 0x23f   :  { %292 = vsyncadd [#allocation4], 4294967040 }
 0x240   :  { %210 = vsyncpa [#allocation4], 1 }

// kernel: pointer_block_forward.6
= control target key start
LH: loop header
LB: loop body
LE: loop exit
PB: predicated region body
PF: predicated region fallthrough
CT: control target
= control target key end

     0   :  { %v9373_v3 = vmov 0.0   ;;  %vm30_vm0 = vcmask 1041408   ;;  %vm31_vm1 = vcmask 257026   ;;  %vm289_vm3 = vcmask 1041409   ;;  %s9365_s1 = inlined_call_operand.vmem [shape: f32[160,512], index: 1, kind: input, shape index: {}]   ;;  %s9366_s0 = inlined_call_operand.vmem [shape: f32[2,8,32], index: 0, kind: input, shape index: {}]   ;;  %s9367_s3 = inlined_call_operand.vmem [shape: f32[256,512], index: 3, kind: input, shape index: {}]   ;;  %s9368_s2 = inlined_call_operand.vmem [shape: f32[1,512], index: 2, kind: input, shape index: {}]   ;;  %s9369_s5 = inlined_call_operand.vmem [shape: f32[128,32], index: 5, kind: input, shape index: {}]   ;;  %s9370_s4 = inlined_call_operand.vmem [shape: f32[1,512], index: 4, kind: input, shape index: {}]   ;;  %s9371_s6 = inlined_call_operand.vmem [shape: f32[1,32], index: 6, kind: input, shape index: {}]   ;;  %s9372_s7 = inlined_call_operand.vmem [shape: f32[2,8,32], index: 7, kind: output, shape index: {}]  }
   0x1   :  { %v38_v0 = vld [vmem:[%s9365_s1 + $0x8] sm:$0xff]  ;;  %v37_v2 = vld [vmem:[%s9365_s1] sm:$0xff]  ;;  %34 = vst [vmem:[#allocation3] sm:$0xf] %v9373_v3  ;;  %35 = vst [vmem:[#allocation4] sm:$0x3] %v9373_v3 }
   0x2   :  { %v42_v1 = vld [vmem:[%s9365_s1 + $0x28] sm:$0xff]  ;;  %36 = vst [vmem:[#allocation5] sm:$0x3] %v9373_v3  ;;  %v41_v5 = vld [vmem:[%s9365_s1 + $0x20] sm:$0xff]  ;;  %v40_v19 = vld [vmem:[%s9365_s1 + $0x18] sm:$0xff]  ;;  %vm291_vm4 = vcmask 1043459  }
   0x3   :  { %v6999_v4 = vpack.c.bf16 %v42_v1, %v38_v0  ;;  %v46_v6 = vld [vmem:[%s9365_s1 + $0x48] sm:$0xff]  ;;  %v7010_v8 = vpack.c.bf16 %v41_v5, %v37_v2  ;;  %v45_v10 = vld [vmem:[%s9365_s1 + $0x40] sm:$0xff]  ;;  %v44_v20 = vld [vmem:[%s9365_s1 + $0x38] sm:$0xff]  ;;  %vm293_vm5 = vcmask 1045509   ;;  %vm295_vm6 = vcmask 1047559  }
   0x4   :  { %v50_v7 = vld [vmem:[%s9365_s1 + $0x68] sm:$0xff]  ;;  %v49_v11 = vld [vmem:[%s9365_s1 + $0x60] sm:$0xff]  ;;  %v7051_v22 = vpack.c.bf16 %v44_v20, %v40_v19  ;;  %v39_v23 = vld [vmem:[%s9365_s1 + $0x10] sm:$0xff]  ;;  %vm298_vm7 = vcmask 254976   ;;  %vm332_vm8 = vcmask 261120   ;;  %vm514_vm9 = vcmask 1041664  }
   0x5   :  { %9588 = vst [vmem:[#allocation6_spill] sm:$0xff] %v6999_v4  ;;  %v7012_v9 = vpack.c.bf16 %v50_v7, %v46_v6  ;;  %v54_v12 = vld [vmem:[%s9365_s1 + $0x88] sm:$0xff]  ;;  %4822 = vmatprep.subr.bf16.mxu0 %v6999_v4  ;;  %v7028_v14 = vpack.c.bf16 %v49_v11, %v45_v10  ;;  %v53_v15 = vld [vmem:[%s9365_s1 + $0x80] sm:$0xff]  ;;  %v43_v24 = vld [vmem:[%s9365_s1 + $0x30] sm:$0xff]  ;;  %vm6945_vm11 = vmmov 0   ;;  %vm820_vm12 = vcmask 253952  }
   0x6   :  { %v58_v13 = vld [vmem:[%s9365_s1 + $0xa8] sm:$0xff]  ;;  %4824 = vmatpush1.bf16.msra.mxu0 %v7010_v8  ;;  %v57_v16 = vld [vmem:[%s9365_s1 + $0xa0] sm:$0xff]  ;;  %9589 = vst [vmem:[#allocation7_spill] sm:$0xff] %v7051_v22  ;;  %v7059_v25 = vpack.c.bf16 %v43_v24, %v39_v23  ;;  %4862 = vmatprep.subr.bf16.mxu1 %v7051_v22  ;;  %v48_v27 = vld [vmem:[%s9365_s1 + $0x58] sm:$0xff] }
   0x7   :  { %4826 = vmatprep.subr.bf16.mxu0 %v7012_v9  ;;  %v7037_v17 = vpack.c.bf16 %v58_v13, %v54_v12  ;;  %v62_v18 = vld [vmem:[%s9365_s1 + $0xc8] sm:$0xff]  ;;  %v7062_v26 = vpack.c.bf16 %v57_v16, %v53_v15  ;;  %v52_v28 = vld [vmem:[%s9365_s1 + $0x78] sm:$0xff]  ;;  %v47_v29 = vld [vmem:[%s9365_s1 + $0x50] sm:$0xff] }
   0x8   :  { %v66_v21 = vld [vmem:[%s9365_s1 + $0xe8] sm:$0xff]  ;;  %9590 = vst [vmem:[#allocation8_spill] sm:$0xff] %v7059_v25  ;;  %v61_v31 = vld [vmem:[%s9365_s1 + $0xc0] sm:$0xff]  ;;  %4864 = vmatpush1.bf16.msra.mxu1 %v7059_v25  ;;  %v7084_v33 = vpack.c.bf16 %v52_v28, %v48_v27  ;;  %v51_v34 = vld [vmem:[%s9365_s1 + $0x70] sm:$0xff] }
   0x9   :  { %v7075_v30 = vpack.c.bf16 %v66_v21, %v62_v18  ;;  %v65_v32 = vld [vmem:[%s9365_s1 + $0xe0] sm:$0xff]  ;;  %v70_v35 = vld [vmem:[%s9365_s1 + $0x108] sm:$0xff]  ;;  %v7095_v37 = vpack.c.bf16 %v51_v34, %v47_v29  ;;  %v56_v38 = vld [vmem:[%s9365_s1 + $0x98] sm:$0xff] }
   0xa   :  { %4828 = vmatpush1.bf16.msra.mxu0 %v7028_v14  ;;  %9591 = vst [vmem:[#allocation9_spill] sm:$0xff] %v7084_v33  ;;  %v74_v36 = vld [vmem:[%s9365_s1 + $0x128] sm:$0xff]  ;;  %4866 = vmatprep.subr.bf16.mxu1 %v7084_v33  ;;  %v60_v39 = vld [vmem:[%s9365_s1 + $0xb8] sm:$0xff]  ;;  %v55_v40 = vld [vmem:[%s9365_s1 + $0x90] sm:$0xff]  ;;  %v7111_v42 = vpack.c.bf16 %v65_v32, %v61_v31 }
   0xb   :  { %4830 = vmatprep.subr.bf16.mxu0 %v7037_v17  ;;  %9592 = vst [vmem:[#allocation10_spill] sm:$0xff] %v7095_v37  ;;  %v59_v41 = vld [vmem:[%s9365_s1 + $0xb0] sm:$0xff]  ;;  %v69_v43 = vld [vmem:[%s9365_s1 + $0x100] sm:$0xff]  ;;  %v7119_v45 = vpack.c.bf16 %v60_v39, %v56_v38  ;;  %v7122_v46 = vpack.c.bf16 %v74_v36, %v70_v35  ;;  %v78_v47 = vld [vmem:[%s9365_s1 + $0x148] sm:$0xff] }
   0xc   :  { %v73_v44 = vld [vmem:[%s9365_s1 + $0x120] sm:$0xff]  ;;  %4868 = vmatpush1.bf16.msra.mxu1 %v7095_v37  ;;  %v7128_v48 = vpack.c.bf16 %v59_v41, %v55_v40  ;;  %v64_v49 = vld [vmem:[%s9365_s1 + $0xd8] sm:$0xff]  ;;  %v82_v51 = vld [vmem:[%s9365_s1 + $0x168] sm:$0xff] }
   0xd   :  { %9593 = vst [vmem:[#allocation11_spill] sm:$0xff] %v7119_v45  ;;  %v68_v50 = vld [vmem:[%s9365_s1 + $0xf8] sm:$0xff]  ;;  %4870 = vmatprep.subr.bf16.mxu1 %v7119_v45  ;;  %v63_v53 = vld [vmem:[%s9365_s1 + $0xd0] sm:$0xff]  ;;  %v7149_v55 = vpack.c.bf16 %v73_v44, %v69_v43  ;;  %v7158_v58 = vpack.c.bf16 %v82_v51, %v78_v47  ;;  %v77_v59 = vld [vmem:[%s9365_s1 + $0x140] sm:$0xff] }
   0xe   :  { %4832 = vmatpush1.bf16.msra.mxu0 %v7062_v26  ;;  %9594 = vst [vmem:[#allocation12_spill] sm:$0xff] %v7128_v48  ;;  %v7140_v52 = vpack.c.bf16 %v68_v50, %v64_v49  ;;  %v67_v54 = vld [vmem:[%s9365_s1 + $0xf0] sm:$0xff]  ;;  %v72_v56 = vld [vmem:[%s9365_s1 + $0x118] sm:$0xff]  ;;  %v81_v60 = vld [vmem:[%s9365_s1 + $0x160] sm:$0xff] }
   0xf   :  { %4834 = vmatprep.subr.bf16.mxu0 %v7075_v30  ;;  %v76_v57 = vld [vmem:[%s9365_s1 + $0x138] sm:$0xff]  ;;  %v86_v61 = vld [vmem:[%s9365_s1 + $0x188] sm:$0xff]  ;;  %v7170_v62 = vpack.c.bf16 %v67_v54, %v63_v53  ;;  %v71_v1 = vld [vmem:[%s9365_s1 + $0x110] sm:$0xff]  ;;  %v7191_v7 = vpack.c.bf16 %v81_v60, %v77_v59 }
  0x10   :  { %9595 = vst [vmem:[#allocation13_spill] sm:$0xff] %v7140_v52  ;;  %4872 = vmatpush1.bf16.msra.mxu1 %v7128_v48  ;;  %v90_v63 = vld [vmem:[%s9365_s1 + $0x1a8] sm:$0xff]  ;;  %v7176_v0 = vpack.c.bf16 %v76_v57, %v72_v56  ;;  %v75_v2 = vld [vmem:[%s9365_s1 + $0x130] sm:$0xff]  ;;  %v80_v5 = vld [vmem:[%s9365_s1 + $0x158] sm:$0xff] }
  0x11   :  { %9596 = vst [vmem:[#allocation14_spill] sm:$0xff] %v7170_v62  ;;  %4874 = vmatprep.subr.bf16.mxu1 %v7140_v52  ;;  %v84_v6 = vld [vmem:[%s9365_s1 + $0x178] sm:$0xff]  ;;  %v85_v10 = vld [vmem:[%s9365_s1 + $0x180] sm:$0xff]  ;;  %v7200_v12 = vpack.c.bf16 %v90_v63, %v86_v61  ;;  %v94_v13 = vld [vmem:[%s9365_s1 + $0x1c8] sm:$0xff]  ;;  %v7209_v16 = vpack.c.bf16 %v75_v2, %v71_v1 }
  0x12   :  { %4836 = vmatpush1.bf16.msra.mxu0 %v7111_v42  ;;  %9597 = vst [vmem:[#allocation15_spill] sm:$0xff] %v7176_v0  ;;  %v89_v11 = vld [vmem:[%s9365_s1 + $0x1a0] sm:$0xff]  ;;  %v98_v15 = vld [vmem:[%s9365_s1 + $0x1e8] sm:$0xff]  ;;  %v79_v18 = vld [vmem:[%s9365_s1 + $0x150] sm:$0xff]  ;;  %v7215_v19 = vpack.c.bf16 %v84_v6, %v80_v5 }
  0x13   :  { %4838 = vmatprep.subr.bf16.mxu0 %v7122_v46  ;;  %9598 = vst [vmem:[#allocation16_spill] sm:$0xff] %v7209_v16  ;;  %v83_v20 = vld [vmem:[%s9365_s1 + $0x170] sm:$0xff]  ;;  %vm32_vm2 = vmor %vm31_vm1, %vm30_vm0  ;;  %v4308_v21 = vld.sshfl [vmem:[%s9366_s0] sm:$0x1 pattern:$0x76325410]  ;;  %v7236_v28 = vpack.c.bf16 %v89_v11, %v85_v10  ;;  %v7239_v31 = vpack.c.bf16 %v98_v15, %v94_v13 }
  0x14   :  { %4876 = vmatpush1.bf16.msra.mxu1 %v7170_v62  ;;  %9599 = vst [vmem:[#allocation17_spill] sm:$0xff] %v7215_v19  ;;  %v88_v23 = vld [vmem:[%s9365_s1 + $0x198] sm:$0xff]  ;;  %33 = vst.msk [vmem:[#allocation2] sm:$0xf] %vm32_vm2, %v9373_v3  ;;  %v93_v32 = vld [vmem:[%s9365_s1 + $0x1c0] sm:$0xff]  ;;  %v7251_v36 = vpack.c.bf16 %v83_v20, %v79_v18 }
  0x15   :  { %4878 = vmatprep.subr.bf16.mxu1 %v7176_v0  ;;  %v92_v24 = vld [vmem:[%s9365_s1 + $0x1b8] sm:$0xff]  ;;  %v4309_v27 = vld.sshfl [vmem:[%s9366_s0 + $0x8] sm:$0x1 pattern:$0x76325410]  ;;  %v97_v34 = vld [vmem:[%s9365_s1 + $0x1e0] sm:$0xff] }
  0x16   :  { %4840 = vmatpush1.bf16.msra.mxu0 %v7149_v55  ;;  %v288_v29 = vrot.slane %v4309_v27, 7  ;;  %v102_v35 = vld [vmem:[%s9365_s1 + $0x208] sm:$0xff]  ;;  %9600 = vst [vmem:[#allocation18_spill] sm:$0xff] %v7251_v36  ;;  %v7257_v39 = vpack.c.bf16 %v92_v24, %v88_v23  ;;  %v87_v41 = vld [vmem:[%s9365_s1 + $0x190] sm:$0xff]  ;;  %v96_v47 = vld [vmem:[%s9365_s1 + $0x1d8] sm:$0xff]  ;;  %v7274_v50 = vpack.c.bf16 %v97_v34, %v93_v32 }
  0x17   :  { %4842 = vmatprep.subr.bf16.mxu0 %v7158_v58  ;;  %v106_v38 = vld [vmem:[%s9365_s1 + $0x228] sm:$0xff]  ;;  %v91_v43 = vld [vmem:[%s9365_s1 + $0x1b0] sm:$0xff]  ;;  %v100_v49 = vld [vmem:[%s9365_s1 + $0x1f8] sm:$0xff] }
  0x18   :  { %4880 = vmatpush1.bf16.msra.mxu1 %v7209_v16  ;;  %9601 = vst [vmem:[#allocation19_spill] sm:$0xff] %v7257_v39  ;;  %v290_v40 = vsel %vm289_vm3, %v288_v29, %v4308_v21  ;;  %9602 = vst [vmem:[#allocation20_spill] sm:$0xff] %v7274_v50  ;;  %v7278_v53 = vpack.c.bf16 %v106_v38, %v102_v35  ;;  %v101_v54 = vld [vmem:[%s9365_s1 + $0x200] sm:$0xff]  ;;  %v110_v57 = vld [vmem:[%s9365_s1 + $0x248] sm:$0xff]  ;;  %v7291_v60 = vpack.c.bf16 %v91_v43, %v87_v41 }
  0x19   :  { %4882 = vmatprep.subr.bf16.mxu1 %v7215_v19  ;;  %v292_v44 = vsel %vm291_vm4, %v288_v29, %v290_v40  ;;  %v105_v56 = vld [vmem:[%s9365_s1 + $0x220] sm:$0xff]  ;;  %v114_v61 = vld [vmem:[%s9365_s1 + $0x268] sm:$0xff]  ;;  %v7298_v63 = vpack.c.bf16 %v100_v49, %v96_v47  ;;  %v95_v1 = vld [vmem:[%s9365_s1 + $0x1d0] sm:$0xff] }
  0x1a   :  { %4844 = vmatpush1.bf16.msra.mxu0 %v7191_v7  ;;  %v294_v51 = vsel %vm293_vm5, %v288_v29, %v292_v44  ;;  %9603 = vst [vmem:[#allocation21_spill] sm:$0xff] %v7278_v53  ;;  %9604 = vst [vmem:[#allocation22_spill] sm:$0xff] %v7291_v60  ;;  %v99_v2 = vld [vmem:[%s9365_s1 + $0x1f0] sm:$0xff]  ;;  %v104_v5 = vld [vmem:[%s9365_s1 + $0x218] sm:$0xff]  ;;  %v7313_v10 = vpack.c.bf16 %v105_v56, %v101_v54  ;;  %v7316_v11 = vpack.c.bf16 %v114_v61, %v110_v57 }
  0x1b   :  { %4846 = vmatprep.subr.bf16.mxu0 %v7200_v12  ;;  %v296_v59 = vsel %vm295_vm6, %v288_v29, %v294_v51  ;;  %9605 = vst [vmem:[#allocation23_spill] sm:$0xff] %v7298_v63  ;;  %v108_v6 = vld [vmem:[%s9365_s1 + $0x238] sm:$0xff]  ;;  %v109_v13 = vld [vmem:[%s9365_s1 + $0x240] sm:$0xff]  ;;  %v7325_v18 = vpack.c.bf16 %v99_v2, %v95_v1  ;;  %v103_v21 = vld [vmem:[%s9365_s1 + $0x210] sm:$0xff] }
  0x1c   :  { %4884 = vmatpush1.bf16.msra.mxu1 %v7251_v36  ;;  %299 = vst.msk [vmem:[#allocation2] sm:$0x3] %vm298_vm7, %v296_v59  ;;  %9606 = vst [vmem:[#allocation24_spill] sm:$0xff] %v7313_v10  ;;  %v113_v15 = vld [vmem:[%s9365_s1 + $0x260] sm:$0xff]  ;;  %v7328_v20 = vpack.c.bf16 %v108_v6, %v104_v5  ;;  %v107_v23 = vld [vmem:[%s9365_s1 + $0x230] sm:$0xff] }
  0x1d   :  { %4886 = vmatprep.subr.bf16.mxu1 %v7257_v39  ;;  %9607 = vst [vmem:[#allocation25_spill] sm:$0xff] %v7316_v11  ;;  %9608 = vst [vmem:[#allocation26_spill] sm:$0xff] %v7325_v18  ;;  %v112_v24 = vld [vmem:[%s9365_s1 + $0x258] sm:$0xff]  ;;  %v119_v29 = vld [vmem:[%s9367_s3 + $0x8] sm:$0xff]  ;;  %v7349_v34 = vpack.c.bf16 %v113_v15, %v109_v13  ;;  %v7356_v40 = vpack.c.bf16 %v107_v23, %v103_v21 }
  0x1e   :  { %4848 = vmatpush1.bf16.msra.mxu0 %v7236_v28  ;;  %9609 = vst [vmem:[#allocation27_spill] sm:$0xff] %v7328_v20  ;;  %v116_v27 = vld [vmem:[%s9365_s1 + $0x278] sm:$0xff]  ;;  %v123_v32 = vld [vmem:[%s9367_s3 + $0x28] sm:$0xff]  ;;  %v111_v35 = vld [vmem:[%s9365_s1 + $0x250] sm:$0xff] }
  0x1f   :  { %4850 = vmatprep.subr.bf16.mxu0 %v7239_v31  ;;  %9610 = vst [vmem:[#allocation28_spill] sm:$0xff] %v7349_v34  ;;  %9611 = vst [vmem:[#allocation29_spill] sm:$0xff] %v7356_v40  ;;  %v118_v41 = vld [vmem:[%s9367_s3] sm:$0xff]  ;;  %v7365_v47 = vpack.c.bf16 %v116_v27, %v112_v24  ;;  %v115_v49 = vld [vmem:[%s9365_s1 + $0x270] sm:$0xff]  ;;  %v7370_v51 = vpack.c.bf16 %v123_v32, %v119_v29 }
  0x20   :  { %4888 = vmatpush1.bf16.msra.mxu1 %v7291_v60  ;;  %v122_v43 = vld [vmem:[%s9367_s3 + $0x20] sm:$0xff]  ;;  %v127_v54 = vld [vmem:[%s9367_s3 + $0x48] sm:$0xff]  ;;  %v121_v57 = vld [vmem:[%s9367_s3 + $0x18] sm:$0xff]  ;;  %v7389_v1 = vpack.c.bf16 %v115_v49, %v111_v35 }
  0x21   :  { %4890 = vmatprep.subr.bf16.mxu1 %v7298_v63  ;;  %9612 = vst [vmem:[#allocation30_spill] sm:$0xff] %v7365_v47  ;;  %9613 = vst [vmem:[#allocation31_spill] sm:$0xff] %v7370_v51  ;;  %v131_v56 = vld [vmem:[%s9367_s3 + $0x68] sm:$0xff]  ;;  %v125_v59 = vld [vmem:[%s9367_s3 + $0x38] sm:$0xff]  ;;  %v7386_v61 = vpack.c.bf16 %v122_v43, %v118_v41 }
  0x22   :  { %4852 = vmatpush1.bf16.msra.mxu0 %v7274_v50  ;;  %9615 = vst [vmem:[#allocation33_spill] sm:$0xff] %v7389_v1  ;;  %v7392_v2 = vpack.c.bf16 %v131_v56, %v127_v54  ;;  %v126_v5 = vld [vmem:[%s9367_s3 + $0x40] sm:$0xff]  ;;  %v7402_v13 = vpack.c.bf16 %v125_v59, %v121_v57  ;;  %v120_v15 = vld [vmem:[%s9367_s3 + $0x10] sm:$0xff]  ;;  %v129_v23 = vld [vmem:[%s9367_s3 + $0x58] sm:$0xff] }
  0x23   :  { %4854 = vmatprep.subr.bf16.mxu0 %v7278_v53  ;;  %v4310_v38 = vld.sshfl [vmem:[#allocation2] sm:$0x33 pattern:$0x76325410]  ;;  %9614 = vst [vmem:[#allocation32_spill] sm:$0xff] %v7386_v61  ;;  %v124_v21 = vld [vmem:[%s9367_s3 + $0x30] sm:$0xff]  ;;  %vm8039_vm10 = vmor %vm31_vm1, %vm514_vm9 }
  0x24   :  { %4892 = vmatpush1.bf16.msra.mxu1 %v7325_v18  ;;  %v330_v44 = vcombine.high %v4310_v38, %v4310_v38  ;;  %9616 = vst [vmem:[#allocation34_spill] sm:$0xff] %v7392_v2  ;;  %v130_v6 = vld [vmem:[%s9367_s3 + $0x60] sm:$0xff]  ;;  %9617 = vst [vmem:[#allocation35_spill] sm:$0xff] %v7402_v13  ;;  %v133_v24 = vld [vmem:[%s9367_s3 + $0x78] sm:$0xff]  ;;  %v7420_v29 = vpack.c.bf16 %v124_v21, %v120_v15 }
  0x25   :  { %4894 = vmatprep.subr.bf16.mxu1 %v7328_v20  ;;  %v7417_v27 = vpack.c.bf16 %v130_v6, %v126_v5  ;;  %v7424_v32 = vpack.c.bf16 %v133_v24, %v129_v23  ;;  %v128_v35 = vld [vmem:[%s9367_s3 + $0x50] sm:$0xff]  ;;  %v139_v49 = vld [vmem:[%s9367_s3 + $0xa8] sm:$0xff]  ;;  %v141_v56 = vld [vmem:[%s9367_s3 + $0xb8] sm:$0xff] }
  0x26   :  { %4856 = vmatpush1.bf16.msra.mxu0 %v7313_v10  ;;  %4311 = vmatprep.mubr.msk.f32.mxu0 %vm332_vm8, %v330_v44  ;;  %9619 = vst [vmem:[#allocation37_spill] sm:$0xff] %v7420_v29  ;;  %v132_v41 = vld [vmem:[%s9367_s3 + $0x70] sm:$0xff]  ;;  %v134_v57 = vld [vmem:[%s9367_s3 + $0x80] sm:$0xff]  ;;  %v143_v24 = vld [vmem:[%s9367_s3 + $0xc8] sm:$0xff] }
  0x27   :  { %4858 = vmatprep.subr.bf16.mxu0 %v7316_v11  ;;  %4312 = vmatprep.mubr.msk.f32.mxu1 %vm332_vm8, %v330_v44  ;;  %9618 = vst [vmem:[#allocation36_spill] sm:$0xff] %v7417_v27  ;;  %9620 = vst [vmem:[#allocation38_spill] sm:$0xff] %v7424_v32  ;;  %v7434_v43 = vpack.c.bf16 %v132_v41, %v128_v35  ;;  %v135_v44 = vld [vmem:[%s9367_s3 + $0x88] sm:$0xff]  ;;  %v138_v59 = vld [vmem:[%s9367_s3 + $0xa0] sm:$0xff] }
  0x28   :  { %4896 = vmatpush1.bf16.msra.mxu1 %v7356_v40  ;;  %v7447_v54 = vpack.c.bf16 %v139_v49, %v135_v44  ;;  %v7460_v6 = vpack.c.bf16 %v138_v59, %v134_v57  ;;  %v136_v15 = vld [vmem:[%s9367_s3 + $0x90] sm:$0xff]  ;;  %v147_v35 = vld [vmem:[%s9367_s3 + $0xe8] sm:$0xff]  ;;  %v145_v41 = vld [vmem:[%s9367_s3 + $0xd8] sm:$0xff] }
  0x29   :  { %4898 = vmatprep.subr.bf16.mxu1 %v7365_v47  ;;  %9621 = vst [vmem:[#allocation39_spill] sm:$0xff] %v7434_v43  ;;  %v140_v21 = vld [vmem:[%s9367_s3 + $0xb0] sm:$0xff]  ;;  %v7483_v44 = vpack.c.bf16 %v147_v35, %v143_v24  ;;  %v149_v49 = vld [vmem:[%s9367_s3 + $0xf8] sm:$0xff]  ;;  %v151_v35 = vld [vmem:[%s9367_s3 + $0x108] sm:$0xff] }
  0x2a   :  { %4860 = vmatpush1.bf16.msra.mxu0 %v7349_v34  ;;  %9622 = vst [vmem:[#allocation40_spill] sm:$0xff] %v7447_v54  ;;  %9624 = vst [vmem:[#allocation42_spill] sm:$0xff] %v7460_v6  ;;  %v7469_v23 = vpack.c.bf16 %v140_v21, %v136_v15  ;;  %v7494_v57 = vpack.c.bf16 %v149_v49, %v145_v41  ;;  %v144_v15 = vld [vmem:[%s9367_s3 + $0xd0] sm:$0xff]  ;;  %v155_v41 = vld [vmem:[%s9367_s3 + $0x128] sm:$0xff] }
  0x2b   :  { %4902 = vmatprep.subr.bf16.mxu0 %v7370_v51  ;;  %9626 = vst [vmem:[#allocation44_spill] sm:$0xff] %v7483_v44  ;;  %v148_v21 = vld [vmem:[%s9367_s3 + $0xf0] sm:$0xff]  ;;  %v153_v49 = vld [vmem:[%s9367_s3 + $0x118] sm:$0xff]  ;;  %v210_v39 = vld [vmem:[%s9367_s3 + $0x2e0] sm:$0xff] }
  0x2c   :  { %4900 = vmatpush1.bf16.msra.mxu1 %v7389_v1  ;;  %9625 = vst [vmem:[#allocation43_spill] sm:$0xff] %v7469_v23  ;;  %9627 = vst [vmem:[#allocation45_spill] sm:$0xff] %v7494_v57  ;;  %v7505_v24 = vpack.c.bf16 %v148_v21, %v144_v15  ;;  %v150_v15 = vld [vmem:[%s9367_s3 + $0x100] sm:$0xff]  ;;  %v208_v36 = vld [vmem:[%s9367_s3 + $0x2d0] sm:$0xff] }
  0x2d   :  { %400 = vmatmul.mubr.f32.vlgmr.msra.gmra.mrb[0].mxu0 %v4310_v38  ;;  %4966 = vmatprep.subr.bf16.mxu1 %v7402_v13  ;;  %v154_v21 = vld [vmem:[%s9367_s3 + $0x120] sm:$0xff] }
  0x2e   :  { %4904 = vmatpush1.bf16.msra.mxu0 %v7386_v61  ;;  %9629 = vst [vmem:[#allocation47_spill] sm:$0xff] %v7505_v24  ;;  %v214_v19 = vld [vmem:[%s9367_s3 + $0x300] sm:$0xff] }
  0x2f   :  { %4906 = vmatprep.subr.bf16.mxu0 %v7392_v2  ;;  %471 = vmatmul.mubr.f32.vlgmr.msra.gmra.mrb[0].mxu1 %v4310_v38  ;;  %v137_v38 = vld [vmem:[%s9367_s3 + $0x98] sm:$0xff]  ;;  %v222_v62 = vld [vmem:[%s9367_s3 + $0x340] sm:$0xff] }
  0x30   :  { %4968 = vmatpush1.bf16.msra.mxu1 %v7420_v29  ;;  %v7458_v5 = vpack.c.bf16 %v141_v56, %v137_v38  ;;  %v142_v38 = vld [vmem:[%s9367_s3 + $0xc0] sm:$0xff] }
  0x31   :  { %4970 = vmatprep.subr.bf16.mxu1 %v7424_v32  ;;  %v146_v56 = vld [vmem:[%s9367_s3 + $0xe0] sm:$0xff] }
  0x32   :  { %4908 = vmatpush1.bf16.msra.mxu0 %v7417_v27  ;;  %9623 = vst [vmem:[#allocation41_spill] sm:$0xff] %v7458_v5  ;;  %v7496_v59 = vpack.c.bf16 %v146_v56, %v142_v38  ;;  %v7519_v38 = vpack.c.bf16 %v155_v41, %v151_v35  ;;  %v157_v56 = vld [vmem:[%s9367_s3 + $0x138] sm:$0xff]  ;;  %v152_v35 = vld [vmem:[%s9367_s3 + $0x110] sm:$0xff]  ;;  %v226_v52 = vld [vmem:[%s9367_s3 + $0x360] sm:$0xff] }
  0x33   :  { %4910 = vmatprep.subr.bf16.mxu0 %v7447_v54  ;;  %v7530_v3 = vpack.c.bf16 %v157_v56, %v153_v49  ;;  %v156_v41 = vld [vmem:[%s9367_s3 + $0x130] sm:$0xff]  ;;  %v159_v49 = vld [vmem:[%s9367_s3 + $0x148] sm:$0xff] }
  0x34   :  { %4972 = vmatpush1.bf16.msra.mxu1 %v7434_v43  ;;  %9628 = vst [vmem:[#allocation46_spill] sm:$0xff] %v7496_v59  ;;  %9630 = vst [vmem:[#allocation48_spill] sm:$0xff] %v7519_v38  ;;  %v163_v56 = vld [vmem:[%s9367_s3 + $0x168] sm:$0xff] }
  0x35   :  { %4974 = vmatprep.subr.bf16.mxu1 %v7458_v5  ;;  %9631 = vst [vmem:[#allocation49_spill] sm:$0xff] %v7530_v3 }
  0x36   :  { %4912 = vmatpush1.bf16.msra.mxu0 %v7460_v6 }
  0x37   :  { %4914 = vmatprep.subr.bf16.mxu0 %v7483_v44 }
  0x38   :  { %4976 = vmatpush1.bf16.msra.mxu1 %v7469_v23 }
  0x39   :  { %4978 = vmatprep.subr.bf16.mxu1 %v7494_v57  ;;  %v7532_v57 = vpack.c.bf16 %v154_v21, %v150_v15  ;;  %v161_v15 = vld [vmem:[%s9367_s3 + $0x158] sm:$0xff]  ;;  %v7555_v21 = vpack.c.bf16 %v163_v56, %v159_v49  ;;  %v160_v49 = vld [vmem:[%s9367_s3 + $0x150] sm:$0xff] }
  0x3a   :  { %4916 = vmatpush1.bf16.msra.mxu0 %v7496_v59  ;;  %v164_v56 = vld [vmem:[%s9367_s3 + $0x170] sm:$0xff] }
  0x3b   :  { %9632 = vst [vmem:[#allocation50_spill] sm:$0xff] %v7532_v57  ;;  %4918 = vmatprep.subr.bf16.mxu0 %v7519_v38  ;;  %9634 = vst [vmem:[#allocation52_spill] sm:$0xff] %v7555_v21 }
  0x3c   :  { %4980 = vmatpush1.bf16.msra.mxu1 %v7505_v24  ;;  %v7541_v24 = vpack.c.bf16 %v156_v41, %v152_v35  ;;  %v165_v35 = vld [vmem:[%s9367_s3 + $0x178] sm:$0xff]  ;;  %v158_v41 = vld [vmem:[%s9367_s3 + $0x140] sm:$0xff] }
  0x3d   :  { %4982 = vmatprep.subr.bf16.mxu1 %v7530_v3  ;;  %v162_v3 = vld [vmem:[%s9367_s3 + $0x160] sm:$0xff]  ;;  %v7566_v23 = vpack.c.bf16 %v165_v35, %v161_v15  ;;  %v171_v15 = vld [vmem:[%s9367_s3 + $0x1a8] sm:$0xff]  ;;  %v169_v35 = vld [vmem:[%s9367_s3 + $0x198] sm:$0xff] }
  0x3e   :  { %9633 = vst [vmem:[#allocation51_spill] sm:$0xff] %v7541_v24  ;;  %4920 = vmatpush1.bf16.msra.mxu0 %v7532_v57  ;;  %v7568_v5 = vpack.c.bf16 %v162_v3, %v158_v41  ;;  %v167_v3 = vld [vmem:[%s9367_s3 + $0x188] sm:$0xff] }
  0x3f   :  { %9635 = vst [vmem:[#allocation53_spill] sm:$0xff] %v7566_v23  ;;  %4922 = vmatprep.subr.bf16.mxu0 %v7555_v21  ;;  %v7591_v41 = vpack.c.bf16 %v171_v15, %v167_v3  ;;  %v168_v3 = vld [vmem:[%s9367_s3 + $0x190] sm:$0xff] }
  0x40   :  { %4984 = vmatpush1.bf16.msra.mxu1 %v7541_v24  ;;  %9636 = vst [vmem:[#allocation54_spill] sm:$0xff] %v7568_v5  ;;  %v7577_v24 = vpack.c.bf16 %v164_v56, %v160_v49  ;;  %v173_v49 = vld [vmem:[%s9367_s3 + $0x1b8] sm:$0xff]  ;;  %v166_v56 = vld [vmem:[%s9367_s3 + $0x180] sm:$0xff]  ;;  %v172_v15 = vld [vmem:[%s9367_s3 + $0x1b0] sm:$0xff] }
  0x41   :  { %4986 = vmatprep.subr.bf16.mxu1 %v7566_v23  ;;  %9638 = vst [vmem:[#allocation56_spill] sm:$0xff] %v7591_v41  ;;  %v170_v23 = vld [vmem:[%s9367_s3 + $0x1a0] sm:$0xff]  ;;  %v7602_v43 = vpack.c.bf16 %v173_v49, %v169_v35  ;;  %v179_v35 = vld [vmem:[%s9367_s3 + $0x1e8] sm:$0xff]  ;;  %v177_v49 = vld [vmem:[%s9367_s3 + $0x1d8] sm:$0xff] }
  0x42   :  { %9637 = vst [vmem:[#allocation55_spill] sm:$0xff] %v7577_v24  ;;  %4924 = vmatpush1.bf16.msra.mxu0 %v7568_v5  ;;  %v7604_v32 = vpack.c.bf16 %v170_v23, %v166_v56  ;;  %v175_v23 = vld [vmem:[%s9367_s3 + $0x1c8] sm:$0xff] }
  0x43   :  { %9639 = vst [vmem:[#allocation57_spill] sm:$0xff] %v7602_v43  ;;  %4926 = vmatprep.subr.bf16.mxu0 %v7591_v41  ;;  %v7627_v56 = vpack.c.bf16 %v179_v35, %v175_v23  ;;  %v176_v23 = vld [vmem:[%s9367_s3 + $0x1d0] sm:$0xff] }
  0x44   :  { %4988 = vmatpush1.bf16.msra.mxu1 %v7577_v24  ;;  %9640 = vst [vmem:[#allocation58_spill] sm:$0xff] %v7604_v32  ;;  %v7613_v24 = vpack.c.bf16 %v172_v15, %v168_v3  ;;  %v181_v3 = vld [vmem:[%s9367_s3 + $0x1f8] sm:$0xff]  ;;  %v174_v15 = vld [vmem:[%s9367_s3 + $0x1c0] sm:$0xff]  ;;  %v180_v35 = vld [vmem:[%s9367_s3 + $0x1f0] sm:$0xff] }
  0x45   :  { %4990 = vmatprep.subr.bf16.mxu1 %v7602_v43  ;;  %9642 = vst [vmem:[#allocation60_spill] sm:$0xff] %v7627_v56  ;;  %v178_v43 = vld [vmem:[%s9367_s3 + $0x1e0] sm:$0xff]  ;;  %v7638_v29 = vpack.c.bf16 %v181_v3, %v177_v49  ;;  %v187_v49 = vld [vmem:[%s9367_s3 + $0x228] sm:$0xff]  ;;  %v185_v3 = vld [vmem:[%s9367_s3 + $0x218] sm:$0xff] }
  0x46   :  { %9641 = vst [vmem:[#allocation59_spill] sm:$0xff] %v7613_v24  ;;  %4928 = vmatpush1.bf16.msra.mxu0 %v7604_v32  ;;  %v7640_v13 = vpack.c.bf16 %v178_v43, %v174_v15  ;;  %v183_v43 = vld [vmem:[%s9367_s3 + $0x208] sm:$0xff] }
  0x47   :  { %9643 = vst [vmem:[#allocation61_spill] sm:$0xff] %v7638_v29  ;;  %4930 = vmatprep.subr.bf16.mxu0 %v7627_v56  ;;  %v7663_v15 = vpack.c.bf16 %v187_v49, %v183_v43  ;;  %v184_v43 = vld [vmem:[%s9367_s3 + $0x210] sm:$0xff] }
  0x48   :  { %4992 = vmatpush1.bf16.msra.mxu1 %v7613_v24  ;;  %9644 = vst [vmem:[#allocation62_spill] sm:$0xff] %v7640_v13  ;;  %v7649_v24 = vpack.c.bf16 %v180_v35, %v176_v23  ;;  %v189_v23 = vld [vmem:[%s9367_s3 + $0x238] sm:$0xff]  ;;  %v182_v35 = vld [vmem:[%s9367_s3 + $0x200] sm:$0xff]  ;;  %v188_v49 = vld [vmem:[%s9367_s3 + $0x230] sm:$0xff] }
  0x49   :  { %4994 = vmatprep.subr.bf16.mxu1 %v7638_v29  ;;  %9646 = vst [vmem:[#allocation64_spill] sm:$0xff] %v7663_v15  ;;  %v186_v29 = vld [vmem:[%s9367_s3 + $0x220] sm:$0xff]  ;;  %v7674_v1 = vpack.c.bf16 %v189_v23, %v185_v3  ;;  %v195_v3 = vld [vmem:[%s9367_s3 + $0x268] sm:$0xff]  ;;  %v193_v23 = vld [vmem:[%s9367_s3 + $0x258] sm:$0xff] }
  0x4a   :  { %9645 = vst [vmem:[#allocation63_spill] sm:$0xff] %v7649_v24  ;;  %4932 = vmatpush1.bf16.msra.mxu0 %v7640_v13  ;;  %v7676_v47 = vpack.c.bf16 %v186_v29, %v182_v35  ;;  %v191_v29 = vld [vmem:[%s9367_s3 + $0x248] sm:$0xff] }
  0x4b   :  { %9647 = vst [vmem:[#allocation65_spill] sm:$0xff] %v7674_v1  ;;  %4934 = vmatprep.subr.bf16.mxu0 %v7663_v15  ;;  %v7699_v35 = vpack.c.bf16 %v195_v3, %v191_v29  ;;  %v192_v29 = vld [vmem:[%s9367_s3 + $0x250] sm:$0xff] }
  0x4c   :  { %4996 = vmatpush1.bf16.msra.mxu1 %v7649_v24  ;;  %9648 = vst [vmem:[#allocation66_spill] sm:$0xff] %v7676_v47  ;;  %v7685_v24 = vpack.c.bf16 %v188_v49, %v184_v43  ;;  %v197_v43 = vld [vmem:[%s9367_s3 + $0x278] sm:$0xff]  ;;  %v190_v49 = vld [vmem:[%s9367_s3 + $0x240] sm:$0xff]  ;;  %v196_v3 = vld [vmem:[%s9367_s3 + $0x270] sm:$0xff] }
  0x4d   :  { %4998 = vmatprep.subr.bf16.mxu1 %v7674_v1  ;;  %9650 = vst [vmem:[#allocation68_spill] sm:$0xff] %v7699_v35  ;;  %v194_v1 = vld [vmem:[%s9367_s3 + $0x260] sm:$0xff]  ;;  %v7710_v40 = vpack.c.bf16 %v197_v43, %v193_v23  ;;  %v203_v23 = vld [vmem:[%s9367_s3 + $0x2a8] sm:$0xff]  ;;  %v201_v43 = vld [vmem:[%s9367_s3 + $0x298] sm:$0xff] }
  0x4e   :  { %9649 = vst [vmem:[#allocation67_spill] sm:$0xff] %v7685_v24  ;;  %4936 = vmatpush1.bf16.msra.mxu0 %v7676_v47  ;;  %v7712_v20 = vpack.c.bf16 %v194_v1, %v190_v49  ;;  %v199_v1 = vld [vmem:[%s9367_s3 + $0x288] sm:$0xff] }
  0x4f   :  { %9651 = vst [vmem:[#allocation69_spill] sm:$0xff] %v7710_v40  ;;  %4938 = vmatprep.subr.bf16.mxu0 %v7699_v35  ;;  %v7735_v49 = vpack.c.bf16 %v203_v23, %v199_v1  ;;  %v200_v1 = vld [vmem:[%s9367_s3 + $0x290] sm:$0xff] }
  0x50   :  { %5000 = vmatpush1.bf16.msra.mxu1 %v7685_v24  ;;  %9652 = vst [vmem:[#allocation70_spill] sm:$0xff] %v7712_v20  ;;  %v7721_v24 = vpack.c.bf16 %v196_v3, %v192_v29  ;;  %v205_v29 = vld [vmem:[%s9367_s3 + $0x2b8] sm:$0xff]  ;;  %v198_v3 = vld [vmem:[%s9367_s3 + $0x280] sm:$0xff]  ;;  %v204_v23 = vld [vmem:[%s9367_s3 + $0x2b0] sm:$0xff] }
  0x51   :  { %5002 = vmatprep.subr.bf16.mxu1 %v7710_v40  ;;  %9654 = vst [vmem:[#allocation72_spill] sm:$0xff] %v7735_v49  ;;  %v202_v40 = vld [vmem:[%s9367_s3 + $0x2a0] sm:$0xff]  ;;  %v7746_v18 = vpack.c.bf16 %v205_v29, %v201_v43  ;;  %v7760_v60 = vpack.c.bf16 %v204_v23, %v200_v1  ;;  %v209_v43 = vld [vmem:[%s9367_s3 + $0x2d8] sm:$0xff] }
  0x52   :  { %9653 = vst [vmem:[#allocation71_spill] sm:$0xff] %v7721_v24  ;;  %4940 = vmatpush1.bf16.msra.mxu0 %v7712_v20  ;;  %v7748_v63 = vpack.c.bf16 %v202_v40, %v198_v3  ;;  %v211_v40 = vld [vmem:[%s9367_s3 + $0x2e8] sm:$0xff]  ;;  %v213_v29 = vld [vmem:[%s9367_s3 + $0x2f8] sm:$0xff]  ;;  %v206_v23 = vld [vmem:[%s9367_s3 + $0x2c0] sm:$0xff] }
  0x53   :  { %9655 = vst [vmem:[#allocation73_spill] sm:$0xff] %v7746_v18  ;;  %4942 = vmatprep.subr.bf16.mxu0 %v7735_v49  ;;  %9657 = vst [vmem:[#allocation75_spill] sm:$0xff] %v7760_v60  ;;  %v7775_v1 = vpack.c.bf16 %v213_v29, %v209_v43  ;;  %v219_v43 = vld [vmem:[%s9367_s3 + $0x328] sm:$0xff] }
  0x54   :  { %5004 = vmatpush1.bf16.msra.mxu1 %v7721_v24  ;;  %9656 = vst [vmem:[#allocation74_spill] sm:$0xff] %v7748_v63  ;;  %v207_v24 = vld [vmem:[%s9367_s3 + $0x2c8] sm:$0xff] }
  0x55   :  { %5006 = vmatprep.subr.bf16.mxu1 %v7746_v18  ;;  %v7773_v3 = vpack.c.bf16 %v211_v40, %v207_v24  ;;  %9659 = vst [vmem:[#allocation77_spill] sm:$0xff] %v7775_v1  ;;  %v7787_v18 = vpack.c.bf16 %v210_v39, %v206_v23  ;;  %v212_v24 = vld [vmem:[%s9367_s3 + $0x2f0] sm:$0xff]  ;;  %v215_v40 = vld [vmem:[%s9367_s3 + $0x308] sm:$0xff]  ;;  %v217_v23 = vld [vmem:[%s9367_s3 + $0x318] sm:$0xff] }
  0x56   :  { %4944 = vmatpush1.bf16.msra.mxu0 %v7748_v63  ;;  %v7800_v29 = vpack.c.bf16 %v212_v24, %v208_v36  ;;  %v7802_v39 = vpack.c.bf16 %v219_v43, %v215_v40  ;;  %v218_v36 = vld [vmem:[%s9367_s3 + $0x320] sm:$0xff]  ;;  %v216_v24 = vld [vmem:[%s9367_s3 + $0x310] sm:$0xff] }
  0x57   :  { %9658 = vst [vmem:[#allocation76_spill] sm:$0xff] %v7773_v3  ;;  %9660 = vst [vmem:[#allocation78_spill] sm:$0xff] %v7787_v18  ;;  %4946 = vmatprep.subr.bf16.mxu0 %v7773_v3  ;;  %v220_v40 = vld [vmem:[%s9367_s3 + $0x330] sm:$0xff]  ;;  %v7825_v43 = vpack.c.bf16 %v218_v36, %v214_v19  ;;  %v229_v36 = vld [vmem:[%s9367_s3 + $0x378] sm:$0xff] }
  0x58   :  { %5008 = vmatpush1.bf16.msra.mxu1 %v7760_v60  ;;  %9661 = vst [vmem:[#allocation79_spill] sm:$0xff] %v7800_v29  ;;  %9662 = vst [vmem:[#allocation80_spill] sm:$0xff] %v7802_v39  ;;  %v221_v60 = vld [vmem:[%s9367_s3 + $0x338] sm:$0xff]  ;;  %v7838_v0 = vpack.c.bf16 %v220_v40, %v216_v24  ;;  %v224_v24 = vld [vmem:[%s9367_s3 + $0x350] sm:$0xff] }
  0x59   :  { %5010 = vmatprep.subr.bf16.mxu1 %v7775_v1  ;;  %v7813_v16 = vpack.c.bf16 %v221_v60, %v217_v23  ;;  %9664 = vst [vmem:[#allocation82_spill] sm:$0xff] %v7825_v43  ;;  %v223_v60 = vld [vmem:[%s9367_s3 + $0x348] sm:$0xff]  ;;  %v225_v1 = vld [vmem:[%s9367_s3 + $0x358] sm:$0xff]  ;;  %v228_v40 = vld [vmem:[%s9367_s3 + $0x370] sm:$0xff] }
  0x5a   :  { %4948 = vmatpush1.bf16.msra.mxu0 %v7787_v18  ;;  %v227_v23 = vld [vmem:[%s9367_s3 + $0x368] sm:$0xff]  ;;  %9665 = vst [vmem:[#allocation83_spill] sm:$0xff] %v7838_v0 }
  0x5b   :  { %9663 = vst [vmem:[#allocation81_spill] sm:$0xff] %v7813_v16  ;;  %4950 = vmatprep.subr.bf16.mxu0 %v7802_v39  ;;  %v7840_v19 = vpack.c.bf16 %v227_v23, %v223_v60  ;;  %v7861_v60 = vpack.c.bf16 %v226_v52, %v222_v62  ;;  %v7865_v23 = vpack.c.bf16 %v228_v40, %v224_v24  ;;  %v233_v52 = vld [vmem:[%s9367_s3 + $0x398] sm:$0xff]  ;;  %v230_v40 = vld [vmem:[%s9367_s3 + $0x380] sm:$0xff] }
  0x5c   :  { %5012 = vmatpush1.bf16.msra.mxu1 %v7800_v29  ;;  %v7852_v29 = vpack.c.bf16 %v229_v36, %v225_v1  ;;  %v231_v1 = vld [vmem:[%s9367_s3 + $0x388] sm:$0xff]  ;;  %v237_v24 = vld [vmem:[%s9367_s3 + $0x3b8] sm:$0xff] }
  0x5d   :  { %9666 = vst [vmem:[#allocation84_spill] sm:$0xff] %v7840_v19  ;;  %5014 = vmatprep.subr.bf16.mxu1 %v7813_v16  ;;  %9668 = vst [vmem:[#allocation86_spill] sm:$0xff] %v7861_v60  ;;  %v235_v36 = vld [vmem:[%s9367_s3 + $0x3a8] sm:$0xff] }
  0x5e   :  { %9667 = vst [vmem:[#allocation85_spill] sm:$0xff] %v7852_v29  ;;  %4952 = vmatpush1.bf16.msra.mxu0 %v7825_v43  ;;  %9669 = vst [vmem:[#allocation87_spill] sm:$0xff] %v7865_v23  ;;  %v7879_v62 = vpack.c.bf16 %v235_v36, %v231_v1  ;;  %v232_v1 = vld [vmem:[%s9367_s3 + $0x390] sm:$0xff] }
  0x5f   :  { %4954 = vmatprep.subr.bf16.mxu0 %v7840_v19  ;;  %v236_v36 = vld [vmem:[%s9367_s3 + $0x3b0] sm:$0xff] }
  0x60   :  { %5016 = vmatpush1.bf16.msra.mxu1 %v7838_v0  ;;  %9670 = vst [vmem:[#allocation88_spill] sm:$0xff] %v7879_v62  ;;  %v7890_v0 = vpack.c.bf16 %v237_v24, %v233_v52  ;;  %v243_v52 = vld [vmem:[%s9367_s3 + $0x3e8] sm:$0xff]  ;;  %v241_v24 = vld [vmem:[%s9367_s3 + $0x3d8] sm:$0xff] }
  0x61   :  { %5018 = vmatprep.subr.bf16.mxu1 %v7852_v29  ;;  %v234_v29 = vld [vmem:[%s9367_s3 + $0x3a0] sm:$0xff] }
  0x62   :  { %4956 = vmatpush1.bf16.msra.mxu0 %v7861_v60  ;;  %9671 = vst [vmem:[#allocation89_spill] sm:$0xff] %v7890_v0  ;;  %v7892_v16 = vpack.c.bf16 %v234_v29, %v230_v40  ;;  %v239_v29 = vld [vmem:[%s9367_s3 + $0x3c8] sm:$0xff] }
  0x63   :  { %4958 = vmatprep.subr.bf16.mxu0 %v7879_v62  ;;  %v7915_v40 = vpack.c.bf16 %v243_v52, %v239_v29  ;;  %v240_v29 = vld [vmem:[%s9367_s3 + $0x3d0] sm:$0xff]  ;;  %v264_v60 = vld [vmem:[#allocation4] sm:$0x3] }
  0x64   :  { %5020 = vmatpush1.bf16.msra.mxu1 %v7865_v23  ;;  %9672 = vst [vmem:[#allocation90_spill] sm:$0xff] %v7892_v16  ;;  %v7901_v23 = vpack.c.bf16 %v236_v36, %v232_v1  ;;  %v245_v1 = vld [vmem:[%s9367_s3 + $0x3f8] sm:$0xff]  ;;  %v238_v36 = vld [vmem:[%s9367_s3 + $0x3c0] sm:$0xff]  ;;  %v244_v52 = vld [vmem:[%s9367_s3 + $0x3f0] sm:$0xff] }
  0x65   :  { %5022 = vmatprep.subr.bf16.mxu1 %v7890_v0  ;;  %9674 = vst [vmem:[#allocation92_spill] sm:$0xff] %v7915_v40  ;;  %v242_v0 = vld [vmem:[%s9367_s3 + $0x3e0] sm:$0xff]  ;;  %v7926_v48 = vpack.c.bf16 %v245_v1, %v241_v24 }
  0x66   :  { %9673 = vst [vmem:[#allocation91_spill] sm:$0xff] %v7901_v23  ;;  %4960 = vmatpush1.bf16.msra.mxu0 %v7892_v16  ;;  %v7928_v45 = vpack.c.bf16 %v242_v0, %v238_v36  ;;  %v302_v0 = vlaneseq  ;;  %v117_v36 = vld [vmem:[%s9368_s2] sm:$0xf]  ;;  %s6943_s2 = smov 32  }
  0x67   :  { %9675 = vst [vmem:[#allocation93_spill] sm:$0xff] %v7926_v48  ;;  %4962 = vmatprep.subr.bf16.mxu0 %v7915_v40 }
  0x68   :  { %5024 = vmatpush1.bf16.msra.mxu1 %v7901_v23  ;;  %9676 = vst [vmem:[#allocation94_spill] sm:$0xff] %v7928_v45  ;;  %v7937_v23 = vpack.c.bf16 %v244_v52, %v240_v29  ;;  %v7943_v24 = vshrl.u32 %v302_v0, 7 }
  0x69   :  { %5026 = vmatprep.subr.bf16.mxu1 %v7926_v48 }
  0x6a   :  { %9677 = vst [vmem:[#allocation95_spill] sm:$0xff] %v7937_v23  ;;  %4964 = vmatpush1.bf16.msra.mxu0 %v7928_v45  ;;  %v9483_v1 = vsub.s32 0, %v7943_v24  ;;  %v9486_v29 = vsub.s32 1, %v7943_v24 }
  0x6c   :  { %5028 = vmatpush1.bf16.msra.mxu1 %v7937_v23  ;;  %v7952_v52 = vrot.slane %v117_v36, %v9483_v1  ;;  %v7956_v23 = vrot.slane %v117_v36, %v9486_v29  ;;  %v9502_v1 = vsub.s32 2, %v7943_v24 }
  0x6d   :  { %5054 = vmatprep.subr.bf16.mxu1 %v6999_v4  ;;  %v9491_v4 = vsub.s32 3, %v7943_v24 }
  0x6e   :  { %9678 = vst [vmem:[#allocation96_spill] sm:$0xff] %v7952_v52  ;;  %9679 = vst [vmem:[#allocation97_spill] sm:$0xff] %v7956_v23 }
  0x6f   :  { %v7963_v45 = vrot.slane %v117_v36, %v9491_v4 }
  0x71   :  { %9680 = vst [vmem:[#allocation98_spill] sm:$0xff] %v7963_v45 }
 0x100   :  { %v401_v0 = vpop.f32.mrb[0].mxu0 }
 0x101   :  { %v402_v48 = vadd.f32 %v401_v0, %v7952_v52  ;;  %v403_v37 = vpop.f32.mrb[1].mxu0  ;;  %v7969_v0 = vrot.slane %v117_v36, %v9502_v1 }
 0x102   :  { %v404_v33 = vadd.f32 %v403_v37, %v7956_v23  ;;  %v472_v16 = vpop.f32.mrb[0].mxu1 }
 0x103   :  { %v4313_v25 = vmul.f32 -1.442695, %v402_v48  ;;  %v474_v29 = vpop.f32.mrb[1].mxu1  ;;  %v473_v37 = vadd.f32 %v472_v16, %v7969_v0  ;;  %v6942_v16 = vmov 1983009808  }
 0x104   :  { %v4314_v40 = vmul.f32 -1.442695, %v404_v33  ;;  %v475_v62 = vadd.f32 %v474_v29, %v7963_v45 }
 0x105   :  { %6683 = vpow2.f32 %v4313_v25 }
 0x106   :  { %6685 = vpow2.f32 %v4314_v40  ;;  %v4315_v52 = vmul.f32 -1.442695, %v475_v62  ;;  %v503_v62 = vunpack.c.l.s4 %v6942_v16 }
 0x108   :  { %6687 = vpow2.f32 %v4315_v52  ;;  %v504_v52 = vunpack.c.0.s8 %v503_v62  ;;  %v9505_v62 = vmov 0.0|0.0  }
 0x109   :  { %6689 = vtanh.f32 %v473_v37  ;;  %5029 = vmatprep.subr.bf16.mxu0 %v9505_v62 }
 0x10f   :  { %v6684_v48 = vpop.eup %6683 }
 0x110   :  { %v6686_v4 = vpop.eup %6685  ;;  %v480_v23 = vadd.f32 1.0, %v6684_v48 }
 0x111   :  { %v486_v33 = vadd.f32 1.0, %v6686_v4  ;;  %v7976_v4 = vsub.s32 %v504_v52, %v7943_v24  ;;  %v249_v52 = vld [vmem:[%s9369_s5 + $0x10] sm:$0xff] }
 0x112   :  { %6691 = vrcp.f32 %v480_v23  ;;  %v6688_v25 = vpop.eup %6687 }
 0x113   :  { %6693 = vrcp.f32 %v486_v33  ;;  %v6690_v40 = vpop.eup %6689  ;;  %v493_v29 = vadd.f32 1.0, %v6688_v25  ;;  %v4321_v25 = vld.sshfl [vmem:[%s9366_s0 + $0x1] sm:$0x1 pattern:$0x76325410] }
 0x115   :  { %6695 = vrcp.f32 %v493_v29  ;;  %v248_v29 = vld [vmem:[%s9369_s5 + $0x8] sm:$0xff] }
 0x11c   :  { %v6692_v19 = vpop.eup %6691 }
 0x11d   :  { %v6694_v45 = vpop.eup %6693  ;;  %v497_v43 = vmul.f32 %v6692_v19, %v6690_v40  ;;  %v4322_v19 = vld.sshfl [vmem:[%s9366_s0 + $0x9] sm:$0x1 pattern:$0x76325410]  ;;  %v247_v40 = vld [vmem:[%s9369_s5] sm:$0xff] }
 0x11e   :  { %v496_v36 = vmul.f32 %v6694_v45, %v264_v60  ;;  %v843_v60 = vrot.slane %v4322_v19, 7 }
 0x11f   :  { %v6696_v37 = vpop.eup %6695 }
 0x120   :  { %v7972_v1 = vadd.f32 %v497_v43, %v496_v36  ;;  %v8012_v36 = vpack.c.bf16 %v248_v29, %v247_v40  ;;  %v844_v16 = vsel %vm289_vm3, %v843_v60, %v4321_v25  ;;  %v9681_v40 = vmov 0 }
 0x121   :  { %v9682_v40 = vsel %vm8039_vm10, 4294967295, %v9681_v40 }
 0x122   :  { %6697 = vtanh.f32 %v7972_v1  ;;  %9683 = vst [vmem:[#allocation99_spill] sm:$0xff] %v9682_v40  ;;  %v262_v40 = vld [vmem:[%s9369_s5 + $0x78] sm:$0xff] }
 0x12c   :  { %v6698_v23 = vpop.eup %6697 }
 0x12d   :  { %v500_v48 = vmul.f32 %v6698_v23, %v6696_v37  ;;  %v250_v37 = vld [vmem:[%s9369_s5 + $0x18] sm:$0xff]  ;;  %v845_v23 = vsel %vm291_vm4, %v843_v60, %v844_v16 }
 0x12f   :  { %v508_v33 = vrot.slane %v500_v48, %v7976_v4  ;;  %518 = vst [vmem:[#allocation3] sm:$0x3] %v500_v48  ;;  %v8025_v48 = vpack.c.bf16 %v250_v37, %v249_v52  ;;  %v253_v37 = vld [vmem:[%s9369_s5 + $0x30] sm:$0xff] }
 0x131   :  { %509 = vrot.lane.b32.xlu0 %v508_v33, %s6943_s2  ;;  %v846_v33 = vsel %vm293_vm5, %v843_v60, %v845_v23  ;;  %v254_v23 = vld [vmem:[%s9369_s5 + $0x38] sm:$0xff] }
 0x132   :  { %v847_v16 = vsel %vm295_vm6, %v843_v60, %v846_v33  ;;  %v255_v60 = vld [vmem:[%s9369_s5 + $0x40] sm:$0xff]  ;;  %v256_v33 = vld [vmem:[%s9369_s5 + $0x48] sm:$0xff] }
 0x136   :  { %v4316_v45 = vld.sshfl [vmem:[#allocation3] sm:$0x33 pattern:$0x76325410] }
 0x137   :  { %v549_v43 = vcombine.high %v4316_v45, %v4316_v45 }
 0x139   :  { %616 = vmatprep.mubr.f32.mxu0 %v549_v43  ;;  %687 = vmatprep.mubr.f32.mxu1 %v549_v43  ;;  %v252_v43 = vld [vmem:[%s9369_s5 + $0x28] sm:$0xff] }
 0x13a   :  { %617 = vmatmul.mubr.f32.vlgmr.msra.gmra.mrb[2].mxu0 %v4316_v45  ;;  %688 = vmatmul.mubr.f32.vlgmr.msra.gmra.mrb[2].mxu1 %v4316_v45  ;;  %v251_v45 = vld [vmem:[%s9369_s5 + $0x20] sm:$0xff] }
 0x13b   :  { %5056 = vmatpush1.bf16.msra.mxu1 %v7010_v8  ;;  %5031 = vmatpush3.bf16.msra.mxu0 %v8012_v36  ;;  %v8036_v25 = vpack.c.bf16 %v252_v43, %v251_v45  ;;  %v8055_v45 = vpack.c.bf16 %v254_v23, %v253_v37  ;;  %v8066_v43 = vpack.c.bf16 %v256_v33, %v255_v60  ;;  %v260_v37 = vld [vmem:[%s9369_s5 + $0x68] sm:$0xff]  ;;  %v9684_v23 = vmov 0.0  }
 0x13c   :  { %5058 = vmatprep.subr.bf16.mxu1 %v7012_v9  ;;  %5032 = vmatprep.subr.bf16.mxu0 %v9505_v62 }
 0x13d   :  { %4573 = vmatprep.mubr.msk.f32.mxu0 %vm6945_vm11, %v9684_v23 }
 0x13f   :  { %5060 = vmatpush1.bf16.msra.mxu1 %v7028_v14  ;;  %5034 = vmatpush3.bf16.msra.mxu0 %v8025_v48 }
 0x140   :  { %5062 = vmatprep.subr.bf16.mxu1 %v7037_v17  ;;  %5035 = vmatprep.subr.bf16.mxu0 %v9505_v62 }
 0x143   :  { %5064 = vmatpush1.bf16.msra.mxu1 %v7062_v26  ;;  %5037 = vmatpush3.bf16.msra.mxu0 %v8036_v25 }
 0x144   :  { %5066 = vmatprep.subr.bf16.mxu1 %v7075_v30  ;;  %5038 = vmatprep.subr.bf16.mxu0 %v9505_v62 }
 0x147   :  { %5068 = vmatpush1.bf16.msra.mxu1 %v7111_v42  ;;  %5040 = vmatpush3.bf16.msra.mxu0 %v8055_v45 }
 0x148   :  { %5070 = vmatprep.subr.bf16.mxu1 %v7122_v46  ;;  %5041 = vmatprep.subr.bf16.mxu0 %v9505_v62 }
 0x14b   :  { %5072 = vmatpush1.bf16.msra.mxu1 %v7149_v55  ;;  %5043 = vmatpush3.bf16.msra.mxu0 %v8066_v43 }
 0x14c   :  { %5074 = vmatprep.subr.bf16.mxu1 %v7158_v58  ;;  %5044 = vmatprep.subr.bf16.mxu0 %v9505_v62 }
 0x14f   :  { %5076 = vmatpush1.bf16.msra.mxu1 %v7191_v7 }
 0x150   :  { %5078 = vmatprep.subr.bf16.mxu1 %v7200_v12 }
 0x153   :  { %5080 = vmatpush1.bf16.msra.mxu1 %v7236_v28 }
 0x154   :  { %5082 = vmatprep.subr.bf16.mxu1 %v7239_v31 }
 0x157   :  { %5084 = vmatpush1.bf16.msra.mxu1 %v7274_v50 }
 0x158   :  { %5086 = vmatprep.subr.bf16.mxu1 %v7278_v53 }
 0x15b   :  { %5088 = vmatpush1.bf16.msra.mxu1 %v7313_v10 }
 0x15c   :  { %5090 = vmatprep.subr.bf16.mxu1 %v7316_v11 }
 0x15f   :  { %5092 = vmatpush1.bf16.msra.mxu1 %v7349_v34 }
 0x160   :  { %5134 = vmatprep.subr.bf16.mxu1 %v7370_v51 }
 0x1a3   :  { %v510_v19 = vpop.permute.xlu0 %509 }
 0x1a4   :  { %v511_v29 = vrot.slane %v510_v19, 6 }
 0x1a6   :  { %v512_v52 = vsel %vm332_vm8, %v511_v29, %v510_v19  ;;  %v257_v19 = vld [vmem:[%s9369_s5 + $0x50] sm:$0xff]  ;;  %v258_v29 = vld [vmem:[%s9369_s5 + $0x58] sm:$0xff] }
 0x1a7   :  { %517 = vst.msk [vmem:[#allocation2] sm:$0xf] %vm8039_vm10, %v512_v52  ;;  %v259_v52 = vld [vmem:[%s9369_s5 + $0x60] sm:$0xff] }
 0x1a8   :  { %849 = vst.msk [vmem:[#allocation2] sm:$0x3] %vm298_vm7, %v847_v16  ;;  %v8076_v16 = vpack.c.bf16 %v258_v29, %v257_v19  ;;  %v8093_v19 = vpack.c.bf16 %v260_v37, %v259_v52  ;;  %v261_v29 = vld [vmem:[%s9369_s5 + $0x70] sm:$0xff]  ;;  %v9687_v37 = vld [vmem:[#allocation84_spill] sm:$0xff] }
 0x1a9   :  { %v8107_v52 = vpack.c.bf16 %v262_v40, %v261_v29  ;;  %v9686_v40 = vld [vmem:[#allocation82_spill] sm:$0xff] }
 0x1aa   :  { %5046 = vmatpush3.bf16.msra.mxu0 %v8076_v16  ;;  %v9688_v29 = vld [vmem:[#allocation86_spill] sm:$0xff] }
 0x1ab   :  { %5047 = vmatprep.subr.bf16.mxu0 %v9505_v62  ;;  %9685 = vst [vmem:[#allocation100_spill] sm:$0xff] %v8107_v52 }
 0x1ae   :  { %5049 = vmatpush3.bf16.msra.mxu0 %v8093_v19 }
 0x1af   :  { %v8086_v60 = vld.sshfl [vmem:[#allocation2] sm:$0x33 pattern:$0x76325410]  ;;  %5050 = vmatprep.subr.bf16.mxu0 %v9505_v62 }
 0x1b0   :  { %v8090_v33 = vcombine.high %v8086_v60, %v8086_v60  ;;  %v9689_v62 = vld [vmem:[#allocation88_spill] sm:$0xff] }
 0x1b2   :  { %4324 = vmatprep.mubr.msk.f32.mxu1 %vm332_vm8, %v8090_v33  ;;  %5052 = vmatpush3.bf16.msra.mxu0 %v8107_v52 }
 0x1b3   :  { %928 = vmatmul.mubr.f32.vlgmr.msra.gmra.mrb[4].mxu1 %v8086_v60  ;;  %5094 = vmatprep.subr.bf16.mxu0 %v7051_v22 }
 0x1b4   :  { %5136 = vmatpush1.bf16.msra.mxu1 %v7386_v61 }
 0x1b5   :  { %5138 = vmatprep.subr.bf16.mxu1 %v7392_v2 }
 0x1b8   :  { %5140 = vmatpush1.bf16.msra.mxu1 %v7417_v27 }
 0x1b9   :  { %5142 = vmatprep.subr.bf16.mxu1 %v7447_v54 }
 0x1bc   :  { %5144 = vmatpush1.bf16.msra.mxu1 %v7460_v6 }
 0x1bd   :  { %5146 = vmatprep.subr.bf16.mxu1 %v7483_v44 }
 0x1c0   :  { %5148 = vmatpush1.bf16.msra.mxu1 %v7496_v59 }
 0x1c1   :  { %5150 = vmatprep.subr.bf16.mxu1 %v7519_v38 }
 0x1c4   :  { %5152 = vmatpush1.bf16.msra.mxu1 %v7532_v57 }
 0x1c5   :  { %5154 = vmatprep.subr.bf16.mxu1 %v7555_v21 }
 0x1c8   :  { %5156 = vmatpush1.bf16.msra.mxu1 %v7568_v5 }
 0x1c9   :  { %5158 = vmatprep.subr.bf16.mxu1 %v7591_v41 }
 0x1cc   :  { %5160 = vmatpush1.bf16.msra.mxu1 %v7604_v32 }
 0x1cd   :  { %5162 = vmatprep.subr.bf16.mxu1 %v7627_v56  ;;  %v9698_v56 = vsub.s32 3, %v7943_v24 }
 0x1d0   :  { %5164 = vmatpush1.bf16.msra.mxu1 %v7640_v13 }
 0x1d1   :  { %5166 = vmatprep.subr.bf16.mxu1 %v7663_v15 }
 0x1d4   :  { %5168 = vmatpush1.bf16.msra.mxu1 %v7676_v47 }
 0x1d5   :  { %5170 = vmatprep.subr.bf16.mxu1 %v7699_v35  ;;  %v9690_v35 = vld [vmem:[#allocation90_spill] sm:$0xff] }
 0x1d8   :  { %5172 = vmatpush1.bf16.msra.mxu1 %v7712_v20  ;;  %v9691_v20 = vld [vmem:[#allocation92_spill] sm:$0xff] }
 0x1d9   :  { %5174 = vmatprep.subr.bf16.mxu1 %v7735_v49  ;;  %v9692_v49 = vld [vmem:[#allocation94_spill] sm:$0xff] }
 0x1dc   :  { %5176 = vmatpush1.bf16.msra.mxu1 %v7748_v63  ;;  %v9693_v63 = vmov 0.0|0.0  }
 0x1dd   :  { %5178 = vmatprep.subr.bf16.mxu1 %v7773_v3 }
 0x1e0   :  { %5180 = vmatpush1.bf16.msra.mxu1 %v7787_v18 }
 0x1e1   :  { %5182 = vmatprep.subr.bf16.mxu1 %v7802_v39  ;;  %v246_v39 = vld [vmem:[%s9370_s4] sm:$0xf] }
 0x1e2   :  { %v8158_v32 = vrot.slane %v246_v39, %v9698_v56 }
 0x1e4   :  { %5184 = vmatpush1.bf16.msra.mxu1 %v9686_v40  ;;  %v9694_v40 = vsub.s32 0, %v7943_v24  ;;  %9699 = vst [vmem:[#allocation103_spill] sm:$0xff] %v8158_v32 }
 0x1e5   :  { %5186 = vmatprep.subr.bf16.mxu1 %v9687_v37 }
 0x1e6   :  { %v8148_v18 = vrot.slane %v246_v39, %v9694_v40 }
 0x1e8   :  { %5188 = vmatpush1.bf16.msra.mxu1 %v9688_v29  ;;  %9695 = vst [vmem:[#allocation101_spill] sm:$0xff] %v8148_v18  ;;  %v9696_v29 = vsub.s32 1, %v7943_v24 }
 0x1e9   :  { %5190 = vmatprep.subr.bf16.mxu1 %v9689_v62 }
 0x1ea   :  { %v8152_v37 = vrot.slane %v246_v39, %v9696_v29  ;;  %v9700_v29 = vsub.s32 2, %v7943_v24 }
 0x1ec   :  { %5192 = vmatpush1.bf16.msra.mxu1 %v9690_v35  ;;  %9697 = vst [vmem:[#allocation102_spill] sm:$0xff] %v8152_v37  ;;  %v8163_v41 = vrot.slane %v246_v39, %v9700_v29 }
 0x1ed   :  { %5194 = vmatprep.subr.bf16.mxu1 %v9691_v20 }
 0x1f0   :  { %5196 = vmatpush1.bf16.msra.mxu1 %v9692_v49 }
 0x1f1   :  { %5261 = vmatprep.subr.bf16.mxu1 %v9693_v63 }
 0x20d   :  { %v618_v62 = vpop.f32.mrb[2].mxu0  ;;  %v689_v35 = vpop.f32.mrb[2].mxu1 }
 0x20e   :  { %v619_v20 = vadd.f32 %v618_v62, %v8148_v18  ;;  %v620_v3 = vpop.f32.mrb[3].mxu0  ;;  %v691_v49 = vpop.f32.mrb[3].mxu1  ;;  %v690_v62 = vadd.f32 %v689_v35, %v8163_v41 }
 0x20f   :  { %v621_v47 = vadd.f32 %v620_v3, %v8152_v37  ;;  %v692_v40 = vadd.f32 %v691_v49, %v8158_v32 }
 0x210   :  { %v4317_v15 = vmul.f32 -1.442695, %v619_v20 }
 0x211   :  { %v4318_v13 = vmul.f32 -1.442695, %v621_v47  ;;  %v4319_v5 = vmul.f32 -1.442695, %v692_v40  ;;  %v9702_v40 = vld [vmem:[#allocation9_spill] sm:$0xff] }
 0x212   :  { %6699 = vpow2.f32 %v4317_v15 }
 0x213   :  { %6701 = vpow2.f32 %v4318_v13  ;;  %v265_v13 = vld [vmem:[#allocation5] sm:$0x3] }
 0x214   :  { %6703 = vpow2.f32 %v4319_v5 }
 0x215   :  { %6705 = vtanh.f32 %v690_v62  ;;  %v9703_v62 = vld [vmem:[#allocation10_spill] sm:$0xff] }
 0x21c   :  { %v6700_v18 = vpop.eup %6699 }
 0x21d   :  { %v6702_v21 = vpop.eup %6701  ;;  %v697_v3 = vadd.f32 1.0, %v6700_v18 }
 0x21e   :  { %v703_v20 = vadd.f32 1.0, %v6702_v21  ;;  %v6704_v47 = vpop.eup %6703  ;;  %v9701_v21 = vld [vmem:[#allocation8_spill] sm:$0xff] }
 0x21f   :  { %6707 = vrcp.f32 %v697_v3  ;;  %v6706_v56 = vpop.eup %6705  ;;  %v710_v37 = vadd.f32 1.0, %v6704_v47  ;;  %v9704_v3 = vld [vmem:[#allocation11_spill] sm:$0xff] }
 0x220   :  { %6709 = vrcp.f32 %v703_v20  ;;  %v9707_v20 = vld [vmem:[#allocation14_spill] sm:$0xff]  ;;  %v9708_v47 = vld [vmem:[#allocation15_spill] sm:$0xff] }
 0x221   :  { %6711 = vrcp.f32 %v710_v37  ;;  %v9706_v37 = vld [vmem:[#allocation13_spill] sm:$0xff] }
 0x229   :  { %v6708_v15 = vpop.eup %6707 }
 0x22a   :  { %v6710_v49 = vpop.eup %6709  ;;  %v714_v32 = vmul.f32 %v6708_v15, %v6706_v56  ;;  %v9709_v56 = vld [vmem:[#allocation16_spill] sm:$0xff]  ;;  %v9711_v15 = vld [vmem:[#allocation18_spill] sm:$0xff] }
 0x22b   :  { %v713_v39 = vmul.f32 %v6710_v49, %v265_v13  ;;  %v6712_v35 = vpop.eup %6711  ;;  %v9710_v13 = vld [vmem:[#allocation17_spill] sm:$0xff]  ;;  %v9713_v49 = vld [vmem:[#allocation22_spill] sm:$0xff] }
 0x22d   :  { %v8166_v29 = vadd.f32 %v714_v32, %v713_v39  ;;  %v9705_v32 = vld [vmem:[#allocation12_spill] sm:$0xff]  ;;  %v9714_v39 = vld [vmem:[#allocation23_spill] sm:$0xff] }
 0x22f   :  { %6713 = vtanh.f32 %v8166_v29 }
 0x239   :  { %v6714_v18 = vpop.eup %6713 }
 0x23a   :  { %v717_v5 = vmul.f32 %v6714_v18, %v6712_v35  ;;  %v9715_v35 = vld [vmem:[#allocation26_spill] sm:$0xff]  ;;  %v9716_v18 = vld [vmem:[#allocation27_spill] sm:$0xff] }
 0x23c   :  { %718 = vst [vmem:[#allocation3 + $0x2] sm:$0x3] %v717_v5  ;;  %4574 = vmatmul.mubr.f32.vlgmr.msra.gmra.mrb[4].mxu0 %v717_v5  ;;  %v9717_v5 = vld [vmem:[#allocation29_spill] sm:$0xff] }
 0x23d   :  { %5096 = vmatpush1.bf16.msra.mxu0 %v9701_v21  ;;  %4325 = vmatprep.mubr.msk.f32.mxu0 %vm332_vm8, %v8090_v33  ;;  %v9712_v33 = vld [vmem:[#allocation19_spill] sm:$0xff] }
 0x23e   :  { %5098 = vmatprep.subr.bf16.mxu0 %v9702_v40 }
 0x241   :  { %5100 = vmatpush1.bf16.msra.mxu0 %v9703_v62  ;;  %v9757_v62 = vld [vmem:[#allocation98_spill] sm:$0xff] }
 0x242   :  { %5102 = vmatprep.subr.bf16.mxu0 %v9704_v3 }
 0x245   :  { %5104 = vmatpush1.bf16.msra.mxu0 %v9705_v32 }
 0x246   :  { %5106 = vmatprep.subr.bf16.mxu0 %v9706_v37  ;;  %v9749_v37 = vld [vmem:[#allocation91_spill] sm:$0xff] }
 0x249   :  { %5108 = vmatpush1.bf16.msra.mxu0 %v9707_v20  ;;  %v9718_v20 = vld [vmem:[#allocation30_spill] sm:$0xff] }
 0x24a   :  { %5110 = vmatprep.subr.bf16.mxu0 %v9708_v47  ;;  %v9719_v47 = vld [vmem:[#allocation33_spill] sm:$0xff] }
 0x24d   :  { %5112 = vmatpush1.bf16.msra.mxu0 %v9709_v56  ;;  %v9720_v56 = vld [vmem:[#allocation35_spill] sm:$0xff] }
 0x24e   :  { %5114 = vmatprep.subr.bf16.mxu0 %v9710_v13  ;;  %v9739_v13 = vld [vmem:[#allocation71_spill] sm:$0xff] }
 0x251   :  { %5116 = vmatpush1.bf16.msra.mxu0 %v9711_v15  ;;  %v9721_v15 = vld [vmem:[#allocation37_spill] sm:$0xff] }
 0x252   :  { %5118 = vmatprep.subr.bf16.mxu0 %v9712_v33  ;;  %v9722_v33 = vld [vmem:[#allocation38_spill] sm:$0xff] }
 0x255   :  { %5120 = vmatpush1.bf16.msra.mxu0 %v9713_v49  ;;  %v9723_v49 = vld [vmem:[#allocation39_spill] sm:$0xff] }
 0x256   :  { %5122 = vmatprep.subr.bf16.mxu0 %v9714_v39  ;;  %v9724_v39 = vld [vmem:[#allocation41_spill] sm:$0xff] }
 0x259   :  { %5124 = vmatpush1.bf16.msra.mxu0 %v9715_v35  ;;  %v9725_v35 = vld [vmem:[#allocation43_spill] sm:$0xff] }
 0x25a   :  { %5126 = vmatprep.subr.bf16.mxu0 %v9716_v18  ;;  %v9726_v18 = vld [vmem:[#allocation45_spill] sm:$0xff] }
 0x25d   :  { %5128 = vmatpush1.bf16.msra.mxu0 %v9717_v5  ;;  %v9727_v5 = vld [vmem:[#allocation47_spill] sm:$0xff] }
 0x25e   :  { %5130 = vmatprep.subr.bf16.mxu0 %v9718_v20  ;;  %v9728_v20 = vld [vmem:[#allocation49_spill] sm:$0xff] }
 0x261   :  { %5132 = vmatpush1.bf16.msra.mxu0 %v9719_v47  ;;  %v9729_v47 = vld [vmem:[#allocation51_spill] sm:$0xff] }
 0x262   :  { %5198 = vmatprep.subr.bf16.mxu0 %v9720_v56  ;;  %v9730_v56 = vld [vmem:[#allocation53_spill] sm:$0xff] }
 0x264   :  { %999 = vmatmul.mubr.f32.vlgmr.msra.gmra.mrb[6].mxu0 %v8086_v60  ;;  %v9731_v60 = vld [vmem:[#allocation55_spill] sm:$0xff] }
 0x265   :  { %5200 = vmatpush1.bf16.msra.mxu0 %v9721_v15  ;;  %v9732_v15 = vld [vmem:[#allocation57_spill] sm:$0xff] }
 0x266   :  { %5202 = vmatprep.subr.bf16.mxu0 %v9722_v33  ;;  %v9733_v33 = vld [vmem:[#allocation59_spill] sm:$0xff] }
 0x269   :  { %5204 = vmatpush1.bf16.msra.mxu0 %v9723_v49  ;;  %v9734_v49 = vld [vmem:[#allocation61_spill] sm:$0xff] }
 0x26a   :  { %5206 = vmatprep.subr.bf16.mxu0 %v9724_v39  ;;  %v9735_v39 = vld [vmem:[#allocation63_spill] sm:$0xff] }
 0x26d   :  { %5208 = vmatpush1.bf16.msra.mxu0 %v9725_v35  ;;  %v9736_v35 = vld [vmem:[#allocation65_spill] sm:$0xff] }
 0x26e   :  { %5210 = vmatprep.subr.bf16.mxu0 %v9726_v18  ;;  %v9737_v18 = vld [vmem:[#allocation67_spill] sm:$0xff] }
 0x271   :  { %5212 = vmatpush1.bf16.msra.mxu0 %v9727_v5 }
 0x272   :  { %5214 = vmatprep.subr.bf16.mxu0 %v9728_v20  ;;  %v9738_v20 = vld [vmem:[#allocation69_spill] sm:$0xff] }
 0x275   :  { %5216 = vmatpush1.bf16.msra.mxu0 %v9729_v47 }
 0x276   :  { %5218 = vmatprep.subr.bf16.mxu0 %v9730_v56  ;;  %v9740_v56 = vld [vmem:[#allocation73_spill] sm:$0xff] }
 0x279   :  { %5220 = vmatpush1.bf16.msra.mxu0 %v9731_v60  ;;  %v9741_v60 = vld [vmem:[#allocation75_spill] sm:$0xff] }
 0x27a   :  { %5222 = vmatprep.subr.bf16.mxu0 %v9732_v15  ;;  %v9742_v15 = vld [vmem:[#allocation77_spill] sm:$0xff] }
 0x27d   :  { %5224 = vmatpush1.bf16.msra.mxu0 %v9733_v33  ;;  %v9743_v33 = vld [vmem:[#allocation79_spill] sm:$0xff] }
 0x27e   :  { %5226 = vmatprep.subr.bf16.mxu0 %v9734_v49  ;;  %v9744_v49 = vld [vmem:[#allocation81_spill] sm:$0xff] }
 0x281   :  { %5228 = vmatpush1.bf16.msra.mxu0 %v9735_v39  ;;  %v9745_v39 = vld [vmem:[#allocation83_spill] sm:$0xff] }
 0x282   :  { %5230 = vmatprep.subr.bf16.mxu0 %v9736_v35  ;;  %v9746_v35 = vld [vmem:[#allocation85_spill] sm:$0xff] }
 0x285   :  { %5232 = vmatpush1.bf16.msra.mxu0 %v9737_v18  ;;  %v9747_v18 = vld [vmem:[#allocation87_spill] sm:$0xff] }
 0x286   :  { %v929_v5 = vpop.f32.mrb[4].mxu1  ;;  %5234 = vmatprep.subr.bf16.mxu0 %v9738_v20  ;;  %v9748_v20 = vld [vmem:[#allocation89_spill] sm:$0xff] }
 0x287   :  { %v931_v47 = vpop.f32.mrb[5].mxu1 }
 0x289   :  { %5236 = vmatpush1.bf16.msra.mxu0 %v9739_v13  ;;  %v9750_v13 = vld [vmem:[#allocation93_spill] sm:$0xff] }
 0x28a   :  { %5238 = vmatprep.subr.bf16.mxu0 %v9740_v56  ;;  %v9751_v56 = vld [vmem:[#allocation95_spill] sm:$0xff] }
 0x28d   :  { %5240 = vmatpush1.bf16.msra.mxu0 %v9741_v60  ;;  %v9752_v60 = vld [vmem:[#allocation6_spill] sm:$0xff] }
 0x28e   :  { %5242 = vmatprep.subr.bf16.mxu0 %v9742_v15  ;;  %v6946_v15 = vmov 1966171168  }
 0x291   :  { %5244 = vmatpush1.bf16.msra.mxu0 %v9743_v33  ;;  %v797_v33 = vunpack.c.l.s4 %v6946_v15 }
 0x292   :  { %5246 = vmatprep.subr.bf16.mxu0 %v9744_v49 }
 0x293   :  { %v798_v32 = vunpack.c.0.s8 %v797_v33 }
 0x295   :  { %5248 = vmatpush1.bf16.msra.mxu0 %v9745_v39  ;;  %v8227_v39 = vld [vmem:[%s9371_s6] ss:$0 sm:$0xff] }
 0x296   :  { %5250 = vmatprep.subr.bf16.mxu0 %v9746_v35  ;;  %9753 = vst [vmem:[#allocation8_spill] sm:$0xff] %v8227_v39 }
 0x299   :  { %5252 = vmatpush1.bf16.msra.mxu0 %v9747_v18  ;;  %v8230_v18 = vsub.s32 %v798_v32, %v7943_v24  ;;  %v9755_v24 = vld [vmem:[#allocation97_spill] sm:$0xff] }
 0x29a   :  { %5254 = vmatprep.subr.bf16.mxu0 %v9748_v20  ;;  %v932_v32 = vadd.f32 %v931_v47, %v9755_v24 }
 0x29b   :  { %9754 = vst [vmem:[#allocation9_spill] sm:$0xff] %v8230_v18 }
 0x29c   :  { %v4327_v33 = vmul.f32 -1.442695, %v932_v32 }
 0x29d   :  { %5256 = vmatpush1.bf16.msra.mxu0 %v9749_v37 }
 0x29e   :  { %5258 = vmatprep.subr.bf16.mxu0 %v9750_v13  ;;  %6715 = vpow2.f32 %v4327_v33 }
 0x2a1   :  { %5260 = vmatpush1.bf16.msra.mxu0 %v9751_v56 }
 0x2a2   :  { %5286 = vmatprep.subr.bf16.mxu0 %v9752_v60 }
 0x30f   :  { %v791_v20 = vpop.f32.mrb[4].mxu0 }
 0x310   :  { %v792_v37 = vadd.f32 %v8227_v39, %v791_v20  ;;  %v4575_v35 = vpop.f32.mrb[5].mxu0  ;;  %v9756_v20 = vld [vmem:[#allocation96_spill] sm:$0xff] }
 0x312   :  { %v802_v13 = vrot.slane %v792_v37, %v8230_v18  ;;  %v930_v37 = vadd.f32 %v929_v5, %v9756_v20 }
 0x314   :  { %v803_v56 = vcombine.high %v802_v13, %v802_v13  ;;  %v810_v60 = vrot.slane %v802_v13, %v8230_v18  ;;  %v4326_v35 = vmul.f32 -1.442695, %v930_v37  ;;  %v6716_v13 = vpop.eup %6715 }
 0x316   :  { %v817_v15 = vrot.slane %v803_v56, %v8230_v18  ;;  %821 = vst.msk [vmem:[%s9372_s7] sm:$0x1] %vm820_vm12, %v810_v60  ;;  %6717 = vpow2.f32 %v4326_v35  ;;  %v1014_v18 = vadd.f32 1.0, %v6716_v13 }
 0x318   :  { %822 = vst.msk [vmem:[%s9372_s7 + $0x8] sm:$0x1] %vm820_vm12, %v817_v15  ;;  %6719 = vrcp.f32 %v1014_v18 }
 0x320   :  { %v6718_v56 = vpop.eup %6717 }
 0x321   :  { %v1008_v39 = vadd.f32 1.0, %v6718_v56 }
 0x322   :  { %v6720_v5 = vpop.eup %6719 }
 0x323   :  { %6721 = vrcp.f32 %v1008_v39  ;;  %v1024_v33 = vmul.f32 %v6720_v5, %v7972_v1  ;;  %v4334_v1 = vld.sshfl [vmem:[%s9366_s0 + $0xa] sm:$0x1 pattern:$0x76325410] }
 0x32d   :  { %v6722_v32 = vpop.eup %6721 }
 0x337   :  { %v1000_v49 = vpop.f32.mrb[6].mxu0 }
 0x338   :  { %v1001_v60 = vadd.f32 %v1000_v49, %v7969_v0  ;;  %v1002_v3 = vpop.f32.mrb[7].mxu0 }
 0x339   :  { %v1003_v15 = vadd.f32 %v1002_v3, %v9757_v62 }
 0x33a   :  { %6723 = vtanh.f32 %v1001_v60 }
 0x33b   :  { %v4328_v47 = vmul.f32 -1.442695, %v1003_v15 }
 0x33d   :  { %6725 = vpow2.f32 %v4328_v47  ;;  %v4333_v47 = vld.sshfl [vmem:[%s9366_s0 + $0x2] sm:$0x1 pattern:$0x76325410] }
 0x344   :  { %v6724_v37 = vpop.eup %6723 }
 0x345   :  { %v1025_v35 = vmul.f32 %v6724_v37, %v6722_v32 }
 0x347   :  { %v6726_v20 = vpop.eup %6725  ;;  %v8249_v13 = vadd.f32 %v1025_v35, %v1024_v33 }
 0x348   :  { %v1021_v56 = vadd.f32 1.0, %v6726_v20  ;;  %v1340_v20 = vrot.slane %v4334_v1, 7  ;;  %v9761_v1 = vld [vmem:[#allocation56_spill] sm:$0xff] }
 0x349   :  { %6727 = vtanh.f32 %v8249_v13 }
 0x34a   :  { %6729 = vrcp.f32 %v1021_v56  ;;  %v1341_v5 = vsel %vm289_vm3, %v1340_v20, %v4333_v47  ;;  %v9763_v47 = vld [vmem:[#allocation60_spill] sm:$0xff] }
 0x34b   :  { %v1342_v32 = vsel %vm291_vm4, %v1340_v20, %v1341_v5  ;;  %v9764_v5 = vld [vmem:[#allocation62_spill] sm:$0xff] }
 0x34c   :  { %v1343_v37 = vsel %vm293_vm5, %v1340_v20, %v1342_v32  ;;  %v9765_v32 = vld [vmem:[#allocation64_spill] sm:$0xff] }
 0x34d   :  { %v1344_v56 = vsel %vm295_vm6, %v1340_v20, %v1343_v37  ;;  %v9762_v20 = vld [vmem:[#allocation58_spill] sm:$0xff] }
 0x34e   :  { %v9766_v37 = vld [vmem:[#allocation66_spill] sm:$0xff] }
 0x353   :  { %v6728_v49 = vpop.eup %6727 }
 0x354   :  { %v6730_v39 = vpop.eup %6729 }
 0x355   :  { %v1028_v18 = vmul.f32 %v6730_v39, %v6728_v49 }
 0x357   :  { %v1036_v3 = vrot.slane %v1028_v18, %v7976_v4  ;;  %1043 = vst [vmem:[#allocation3] sm:$0x3] %v1028_v18 }
 0x359   :  { %1037 = vrot.lane.b32.xlu0 %v1036_v3, %s6943_s2 }
 0x35e   :  { %v4329_v60 = vld.sshfl [vmem:[#allocation3] sm:$0x33 pattern:$0x76325410] }
 0x35f   :  { %v1053_v15 = vcombine.high %v4329_v60, %v4329_v60 }
 0x361   :  { %1120 = vmatprep.mubr.f32.mxu1 %v1053_v15  ;;  %1191 = vmatprep.mubr.f32.mxu0 %v1053_v15  ;;  %v9760_v15 = vld [vmem:[#allocation54_spill] sm:$0xff] }
 0x362   :  { %1121 = vmatmul.mubr.f32.vlgmr.msra.gmra.mrb[6].mxu1 %v4329_v60  ;;  %1192 = vmatmul.mubr.f32.vlgmr.msra.gmra.mrb[8].mxu0 %v4329_v60  ;;  %v9759_v60 = vld [vmem:[#allocation52_spill] sm:$0xff] }
 0x363   :  { %5288 = vmatpush1.bf16.msra.mxu0 %v7010_v8  ;;  %5263 = vmatpush3.bf16.msra.mxu1 %v8012_v36 }
 0x364   :  { %5290 = vmatprep.subr.bf16.mxu0 %v7012_v9  ;;  %5264 = vmatprep.subr.bf16.mxu1 %v9693_v63 }
 0x365   :  { %4608 = vmatprep.mubr.msk.f32.mxu1 %vm6945_vm11, %v9684_v23 }
 0x367   :  { %5292 = vmatpush1.bf16.msra.mxu0 %v7028_v14  ;;  %5266 = vmatpush3.bf16.msra.mxu1 %v8025_v48 }
 0x368   :  { %5294 = vmatprep.subr.bf16.mxu0 %v7037_v17  ;;  %5267 = vmatprep.subr.bf16.mxu1 %v9693_v63 }
 0x36b   :  { %5296 = vmatpush1.bf16.msra.mxu0 %v7062_v26  ;;  %5269 = vmatpush3.bf16.msra.mxu1 %v8036_v25 }
 0x36c   :  { %5298 = vmatprep.subr.bf16.mxu0 %v7075_v30  ;;  %5270 = vmatprep.subr.bf16.mxu1 %v9693_v63 }
 0x36f   :  { %5300 = vmatpush1.bf16.msra.mxu0 %v7111_v42  ;;  %5272 = vmatpush3.bf16.msra.mxu1 %v8055_v45 }
 0x370   :  { %5302 = vmatprep.subr.bf16.mxu0 %v7122_v46  ;;  %5273 = vmatprep.subr.bf16.mxu1 %v9693_v63 }
 0x373   :  { %5304 = vmatpush1.bf16.msra.mxu0 %v7149_v55  ;;  %5275 = vmatpush3.bf16.msra.mxu1 %v8066_v43 }
 0x374   :  { %5306 = vmatprep.subr.bf16.mxu0 %v7158_v58  ;;  %5276 = vmatprep.subr.bf16.mxu1 %v9693_v63 }
 0x377   :  { %5308 = vmatpush1.bf16.msra.mxu0 %v7191_v7  ;;  %5278 = vmatpush3.bf16.msra.mxu1 %v8076_v16 }
 0x378   :  { %5310 = vmatprep.subr.bf16.mxu0 %v7200_v12  ;;  %5279 = vmatprep.subr.bf16.mxu1 %v9693_v63 }
 0x37b   :  { %5312 = vmatpush1.bf16.msra.mxu0 %v7236_v28  ;;  %5281 = vmatpush3.bf16.msra.mxu1 %v8093_v19 }
 0x37c   :  { %5314 = vmatprep.subr.bf16.mxu0 %v7239_v31  ;;  %5282 = vmatprep.subr.bf16.mxu1 %v9693_v63 }
 0x37f   :  { %5316 = vmatpush1.bf16.msra.mxu0 %v7274_v50  ;;  %5284 = vmatpush3.bf16.msra.mxu1 %v8107_v52 }
 0x380   :  { %5318 = vmatprep.subr.bf16.mxu0 %v7278_v53  ;;  %5326 = vmatprep.subr.bf16.mxu1 %v7051_v22 }
 0x383   :  { %5320 = vmatpush1.bf16.msra.mxu0 %v7313_v10 }
 0x384   :  { %5322 = vmatprep.subr.bf16.mxu0 %v7316_v11 }
 0x387   :  { %5324 = vmatpush1.bf16.msra.mxu0 %v7349_v34 }
 0x388   :  { %5366 = vmatprep.subr.bf16.mxu0 %v7370_v51 }
 0x3cb   :  { %v1038_v33 = vpop.permute.xlu0 %1037 }
 0x3cc   :  { %v1039_v35 = vrot.slane %v1038_v33, 6 }
 0x3ce   :  { %v1040_v49 = vsel %vm332_vm8, %v1039_v35, %v1038_v33  ;;  %v9767_v33 = vld [vmem:[#allocation68_spill] sm:$0xff]  ;;  %v9768_v35 = vld [vmem:[#allocation70_spill] sm:$0xff] }
 0x3cf   :  { %1042 = vst.msk [vmem:[#allocation2] sm:$0xf] %vm8039_vm10, %v1040_v49  ;;  %v9770_v49 = vld [vmem:[#allocation74_spill] sm:$0xff] }
 0x3d0   :  { %1346 = vst.msk [vmem:[#allocation2] sm:$0x3] %vm298_vm7, %v1344_v56  ;;  %v9769_v56 = vld [vmem:[#allocation72_spill] sm:$0xff] }
 0x3d7   :  { %v8306_v18 = vld.sshfl [vmem:[#allocation2] sm:$0x33 pattern:$0x76325410] }
 0x3d8   :  { %v8310_v3 = vcombine.high %v8306_v18, %v8306_v18 }
 0x3da   :  { %4336 = vmatprep.mubr.msk.f32.mxu0 %vm332_vm8, %v8310_v3 }
 0x3db   :  { %1425 = vmatmul.mubr.f32.vlgmr.msra.gmra.mrb[10].mxu0 %v8306_v18 }
 0x3dc   :  { %5368 = vmatpush1.bf16.msra.mxu0 %v7386_v61 }
 0x3dd   :  { %5370 = vmatprep.subr.bf16.mxu0 %v7392_v2 }
 0x3e0   :  { %5372 = vmatpush1.bf16.msra.mxu0 %v7417_v27 }
 0x3e1   :  { %5374 = vmatprep.subr.bf16.mxu0 %v7447_v54 }
 0x3e4   :  { %5376 = vmatpush1.bf16.msra.mxu0 %v7460_v6 }
 0x3e5   :  { %5378 = vmatprep.subr.bf16.mxu0 %v7483_v44 }
 0x3e8   :  { %5380 = vmatpush1.bf16.msra.mxu0 %v7496_v59 }
 0x3e9   :  { %5382 = vmatprep.subr.bf16.mxu0 %v7519_v38 }
 0x3ec   :  { %5384 = vmatpush1.bf16.msra.mxu0 %v7532_v57  ;;  %v9782_v57 = vld [vmem:[#allocation102_spill] sm:$0xff] }
 0x3ed   :  { %5386 = vmatprep.subr.bf16.mxu0 %v9759_v60 }
 0x3f0   :  { %5388 = vmatpush1.bf16.msra.mxu0 %v9760_v15  ;;  %v9771_v15 = vld [vmem:[#allocation76_spill] sm:$0xff] }
 0x3f1   :  { %5390 = vmatprep.subr.bf16.mxu0 %v9761_v1  ;;  %v9772_v1 = vld [vmem:[#allocation78_spill] sm:$0xff] }
 0x3f4   :  { %5392 = vmatpush1.bf16.msra.mxu0 %v9762_v20  ;;  %v9773_v20 = vld [vmem:[#allocation80_spill] sm:$0xff] }
 0x3f5   :  { %5394 = vmatprep.subr.bf16.mxu0 %v9763_v47  ;;  %v9774_v47 = vld [vmem:[#allocation82_spill] sm:$0xff] }
 0x3f8   :  { %5396 = vmatpush1.bf16.msra.mxu0 %v9764_v5  ;;  %v9775_v5 = vld [vmem:[#allocation84_spill] sm:$0xff] }
 0x3f9   :  { %5398 = vmatprep.subr.bf16.mxu0 %v9765_v32  ;;  %v9776_v32 = vld [vmem:[#allocation86_spill] sm:$0xff] }
 0x3fc   :  { %5400 = vmatpush1.bf16.msra.mxu0 %v9766_v37  ;;  %v9777_v37 = vld [vmem:[#allocation88_spill] sm:$0xff] }
 0x3fd   :  { %5402 = vmatprep.subr.bf16.mxu0 %v9767_v33  ;;  %v9778_v33 = vld [vmem:[#allocation90_spill] sm:$0xff] }
 0x400   :  { %5404 = vmatpush1.bf16.msra.mxu0 %v9768_v35  ;;  %v9779_v35 = vld [vmem:[#allocation92_spill] sm:$0xff] }
 0x401   :  { %5406 = vmatprep.subr.bf16.mxu0 %v9769_v56  ;;  %v9780_v56 = vld [vmem:[#allocation94_spill] sm:$0xff] }
 0x404   :  { %5408 = vmatpush1.bf16.msra.mxu0 %v9770_v49  ;;  %v9781_v49 = vld [vmem:[#allocation101_spill] sm:$0xff] }
 0x405   :  { %5410 = vmatprep.subr.bf16.mxu0 %v9771_v15 }
 0x408   :  { %5412 = vmatpush1.bf16.msra.mxu0 %v9772_v1 }
 0x409   :  { %5414 = vmatprep.subr.bf16.mxu0 %v9773_v20 }
 0x40c   :  { %5416 = vmatpush1.bf16.msra.mxu0 %v9774_v47 }
 0x40d   :  { %5418 = vmatprep.subr.bf16.mxu0 %v9775_v5 }
 0x410   :  { %5420 = vmatpush1.bf16.msra.mxu0 %v9776_v32 }
 0x411   :  { %5422 = vmatprep.subr.bf16.mxu0 %v9777_v37  ;;  %v9783_v37 = vld [vmem:[#allocation103_spill] sm:$0xff] }
 0x414   :  { %5424 = vmatpush1.bf16.msra.mxu0 %v9778_v33 }
 0x415   :  { %5426 = vmatprep.subr.bf16.mxu0 %v9779_v35 }
 0x418   :  { %5428 = vmatpush1.bf16.msra.mxu0 %v9780_v56 }
 0x419   :  { %5493 = vmatprep.subr.bf16.mxu0 %v9693_v63 }
 0x435   :  { %v1122_v15 = vpop.f32.mrb[6].mxu1  ;;  %v1193_v1 = vpop.f32.mrb[8].mxu0 }
 0x436   :  { %v1123_v20 = vadd.f32 %v1122_v15, %v9781_v49  ;;  %v1124_v60 = vpop.f32.mrb[7].mxu1  ;;  %v1195_v47 = vpop.f32.mrb[9].mxu0  ;;  %v1194_v35 = vadd.f32 %v1193_v1, %v8163_v41 }
 0x437   :  { %v1125_v5 = vadd.f32 %v1124_v60, %v9782_v57  ;;  %v1196_v33 = vadd.f32 %v1195_v47, %v9783_v37 }
 0x438   :  { %v4330_v38 = vmul.f32 -1.442695, %v1123_v20 }
 0x439   :  { %v4331_v32 = vmul.f32 -1.442695, %v1125_v5  ;;  %v4332_v59 = vmul.f32 -1.442695, %v1196_v33 }
 0x43a   :  { %6731 = vpow2.f32 %v4330_v38 }
 0x43b   :  { %6733 = vpow2.f32 %v4331_v32 }
 0x43c   :  { %6735 = vpow2.f32 %v4332_v59 }
 0x43d   :  { %6737 = vtanh.f32 %v1194_v35  ;;  %v9788_v35 = vld [vmem:[#allocation14_spill] sm:$0xff] }
 0x444   :  { %v6732_v56 = vpop.eup %6731 }
 0x445   :  { %v6734_v44 = vpop.eup %6733  ;;  %v1201_v6 = vadd.f32 1.0, %v6732_v56  ;;  %v9789_v56 = vld [vmem:[#allocation15_spill] sm:$0xff] }
 0x446   :  { %v1207_v54 = vadd.f32 1.0, %v6734_v44  ;;  %v6736_v15 = vpop.eup %6735  ;;  %v9786_v44 = vld [vmem:[#allocation12_spill] sm:$0xff] }
 0x447   :  { %6739 = vrcp.f32 %v1201_v6  ;;  %v6738_v49 = vpop.eup %6737  ;;  %v1214_v38 = vadd.f32 1.0, %v6736_v15  ;;  %v9785_v6 = vld [vmem:[#allocation11_spill] sm:$0xff]  ;;  %v9791_v15 = vld [vmem:[#allocation17_spill] sm:$0xff] }
 0x448   :  { %6741 = vrcp.f32 %v1207_v54  ;;  %v9784_v54 = vld [vmem:[#allocation10_spill] sm:$0xff] }
 0x449   :  { %6743 = vrcp.f32 %v1214_v38  ;;  %v9796_v38 = vld [vmem:[#allocation26_spill] sm:$0xff] }
 0x451   :  { %v6740_v60 = vpop.eup %6739 }
 0x452   :  { %v6742_v20 = vpop.eup %6741  ;;  %v1218_v5 = vmul.f32 %v6740_v60, %v6738_v49  ;;  %v9790_v49 = vld [vmem:[#allocation16_spill] sm:$0xff]  ;;  %v9792_v60 = vld [vmem:[#allocation18_spill] sm:$0xff] }
 0x453   :  { %v1217_v32 = vmul.f32 %v6742_v20, %v8166_v29  ;;  %v6744_v1 = vpop.eup %6743  ;;  %v9787_v29 = vld [vmem:[#allocation13_spill] sm:$0xff]  ;;  %v9794_v20 = vld [vmem:[#allocation22_spill] sm:$0xff] }
 0x455   :  { %v8352_v47 = vadd.f32 %v1218_v5, %v1217_v32  ;;  %v9795_v5 = vld [vmem:[#allocation23_spill] sm:$0xff] }
 0x456   :  { %v9797_v32 = vld [vmem:[#allocation27_spill] sm:$0xff] }
 0x457   :  { %6745 = vtanh.f32 %v8352_v47 }
 0x461   :  { %v6746_v33 = vpop.eup %6745 }
 0x462   :  { %v1221_v59 = vmul.f32 %v6746_v33, %v6744_v1  ;;  %v9798_v1 = vld [vmem:[#allocation29_spill] sm:$0xff]  ;;  %v9799_v33 = vld [vmem:[#allocation30_spill] sm:$0xff] }
 0x464   :  { %1222 = vst [vmem:[#allocation3 + $0x2] sm:$0x3] %v1221_v59  ;;  %4609 = vmatmul.mubr.f32.vlgmr.msra.gmra.mrb[8].mxu1 %v1221_v59  ;;  %v9800_v59 = vld [vmem:[#allocation33_spill] sm:$0xff] }
 0x465   :  { %5328 = vmatpush1.bf16.msra.mxu1 %v9701_v21  ;;  %4337 = vmatprep.mubr.msk.f32.mxu1 %vm332_vm8, %v8310_v3  ;;  %v9793_v3 = vld [vmem:[#allocation19_spill] sm:$0xff] }
 0x466   :  { %5330 = vmatprep.subr.bf16.mxu1 %v9702_v40 }
 0x469   :  { %5332 = vmatpush1.bf16.msra.mxu1 %v9784_v54 }
 0x46a   :  { %5334 = vmatprep.subr.bf16.mxu1 %v9785_v6 }
 0x46d   :  { %5336 = vmatpush1.bf16.msra.mxu1 %v9786_v44 }
 0x46e   :  { %5338 = vmatprep.subr.bf16.mxu1 %v9787_v29  ;;  %v9835_v29 = vld [vmem:[#allocation9_spill] sm:$0xff] }
 0x471   :  { %5340 = vmatpush1.bf16.msra.mxu1 %v9788_v35 }
 0x472   :  { %5342 = vmatprep.subr.bf16.mxu1 %v9789_v56  ;;  %v9830_v56 = vld [vmem:[#allocation91_spill] sm:$0xff] }
 0x475   :  { %5344 = vmatpush1.bf16.msra.mxu1 %v9790_v49  ;;  %v9801_v49 = vld [vmem:[#allocation35_spill] sm:$0xff] }
 0x476   :  { %5346 = vmatprep.subr.bf16.mxu1 %v9791_v15  ;;  %v9820_v15 = vld [vmem:[#allocation71_spill] sm:$0xff] }
 0x479   :  { %5348 = vmatpush1.bf16.msra.mxu1 %v9792_v60  ;;  %v9802_v60 = vld [vmem:[#allocation37_spill] sm:$0xff] }
 0x47a   :  { %5350 = vmatprep.subr.bf16.mxu1 %v9793_v3  ;;  %v9803_v3 = vld [vmem:[#allocation38_spill] sm:$0xff] }
 0x47d   :  { %5352 = vmatpush1.bf16.msra.mxu1 %v9794_v20  ;;  %v9804_v20 = vld [vmem:[#allocation39_spill] sm:$0xff] }
 0x47e   :  { %5354 = vmatprep.subr.bf16.mxu1 %v9795_v5  ;;  %v9805_v5 = vld [vmem:[#allocation41_spill] sm:$0xff] }
 0x481   :  { %5356 = vmatpush1.bf16.msra.mxu1 %v9796_v38  ;;  %v9806_v38 = vld [vmem:[#allocation43_spill] sm:$0xff] }
 0x482   :  { %5358 = vmatprep.subr.bf16.mxu1 %v9797_v32  ;;  %v9807_v32 = vld [vmem:[#allocation45_spill] sm:$0xff] }
 0x485   :  { %5360 = vmatpush1.bf16.msra.mxu1 %v9798_v1  ;;  %v9808_v1 = vld [vmem:[#allocation47_spill] sm:$0xff] }
 0x486   :  { %5362 = vmatprep.subr.bf16.mxu1 %v9799_v33  ;;  %v9809_v33 = vld [vmem:[#allocation49_spill] sm:$0xff] }
 0x489   :  { %5364 = vmatpush1.bf16.msra.mxu1 %v9800_v59  ;;  %v9810_v59 = vld [vmem:[#allocation51_spill] sm:$0xff] }
 0x48a   :  { %5430 = vmatprep.subr.bf16.mxu1 %v9801_v49  ;;  %v9811_v49 = vld [vmem:[#allocation53_spill] sm:$0xff] }
 0x48c   :  { %1496 = vmatmul.mubr.f32.vlgmr.msra.gmra.mrb[10].mxu1 %v8306_v18  ;;  %v9812_v18 = vld [vmem:[#allocation55_spill] sm:$0xff] }
 0x48d   :  { %5432 = vmatpush1.bf16.msra.mxu1 %v9802_v60  ;;  %v9813_v60 = vld [vmem:[#allocation57_spill] sm:$0xff] }
 0x48e   :  { %5434 = vmatprep.subr.bf16.mxu1 %v9803_v3  ;;  %v9814_v3 = vld [vmem:[#allocation59_spill] sm:$0xff] }
 0x491   :  { %5436 = vmatpush1.bf16.msra.mxu1 %v9804_v20  ;;  %v9815_v20 = vld [vmem:[#allocation61_spill] sm:$0xff] }
 0x492   :  { %5438 = vmatprep.subr.bf16.mxu1 %v9805_v5  ;;  %v9816_v5 = vld [vmem:[#allocation63_spill] sm:$0xff] }
 0x495   :  { %5440 = vmatpush1.bf16.msra.mxu1 %v9806_v38  ;;  %v9817_v38 = vld [vmem:[#allocation65_spill] sm:$0xff] }
 0x496   :  { %5442 = vmatprep.subr.bf16.mxu1 %v9807_v32  ;;  %v9818_v32 = vld [vmem:[#allocation67_spill] sm:$0xff] }
 0x499   :  { %5444 = vmatpush1.bf16.msra.mxu1 %v9808_v1 }
 0x49a   :  { %5446 = vmatprep.subr.bf16.mxu1 %v9809_v33  ;;  %v9819_v33 = vld [vmem:[#allocation69_spill] sm:$0xff] }
 0x49d   :  { %5448 = vmatpush1.bf16.msra.mxu1 %v9810_v59 }
 0x49e   :  { %5450 = vmatprep.subr.bf16.mxu1 %v9811_v49  ;;  %v9821_v49 = vld [vmem:[#allocation73_spill] sm:$0xff] }
 0x4a1   :  { %5452 = vmatpush1.bf16.msra.mxu1 %v9812_v18  ;;  %v9822_v18 = vld [vmem:[#allocation75_spill] sm:$0xff] }
 0x4a2   :  { %5454 = vmatprep.subr.bf16.mxu1 %v9813_v60  ;;  %v9823_v60 = vld [vmem:[#allocation77_spill] sm:$0xff] }
 0x4a5   :  { %5456 = vmatpush1.bf16.msra.mxu1 %v9814_v3  ;;  %v9824_v3 = vld [vmem:[#allocation79_spill] sm:$0xff] }
 0x4a6   :  { %5458 = vmatprep.subr.bf16.mxu1 %v9815_v20  ;;  %v9825_v20 = vld [vmem:[#allocation81_spill] sm:$0xff] }
 0x4a9   :  { %5460 = vmatpush1.bf16.msra.mxu1 %v9816_v5  ;;  %v9826_v5 = vld [vmem:[#allocation83_spill] sm:$0xff] }
 0x4aa   :  { %5462 = vmatprep.subr.bf16.mxu1 %v9817_v38  ;;  %v9827_v38 = vld [vmem:[#allocation85_spill] sm:$0xff] }
 0x4ad   :  { %5464 = vmatpush1.bf16.msra.mxu1 %v9818_v32  ;;  %v9828_v32 = vld [vmem:[#allocation87_spill] sm:$0xff] }
 0x4ae   :  { %v1426_v1 = vpop.f32.mrb[10].mxu0  ;;  %5466 = vmatprep.subr.bf16.mxu1 %v9819_v33  ;;  %v9829_v33 = vld [vmem:[#allocation89_spill] sm:$0xff] }
 0x4af   :  { %v1428_v59 = vpop.f32.mrb[11].mxu0 }
 0x4b1   :  { %5468 = vmatpush1.bf16.msra.mxu1 %v9820_v15  ;;  %v9831_v15 = vld [vmem:[#allocation93_spill] sm:$0xff] }
 0x4b2   :  { %5470 = vmatprep.subr.bf16.mxu1 %v9821_v49  ;;  %v9832_v49 = vld [vmem:[#allocation95_spill] sm:$0xff] }
 0x4b5   :  { %5472 = vmatpush1.bf16.msra.mxu1 %v9822_v18  ;;  %v9833_v18 = vld [vmem:[#allocation6_spill] sm:$0xff] }
 0x4b6   :  { %5474 = vmatprep.subr.bf16.mxu1 %v9823_v60 }
 0x4b9   :  { %5476 = vmatpush1.bf16.msra.mxu1 %v9824_v3  ;;  %v9834_v3 = vld [vmem:[#allocation8_spill] sm:$0xff] }
 0x4ba   :  { %5478 = vmatprep.subr.bf16.mxu1 %v9825_v20 }
 0x4bd   :  { %5480 = vmatpush1.bf16.msra.mxu1 %v9826_v5 }
 0x4be   :  { %5482 = vmatprep.subr.bf16.mxu1 %v9827_v38 }
 0x4c1   :  { %5484 = vmatpush1.bf16.msra.mxu1 %v9828_v32 }
 0x4c2   :  { %5486 = vmatprep.subr.bf16.mxu1 %v9829_v33 }
 0x4c5   :  { %5488 = vmatpush1.bf16.msra.mxu1 %v9830_v56 }
 0x4c6   :  { %5490 = vmatprep.subr.bf16.mxu1 %v9831_v15 }
 0x4c9   :  { %5492 = vmatpush1.bf16.msra.mxu1 %v9832_v49 }
 0x4ca   :  { %5518 = vmatprep.subr.bf16.mxu1 %v9833_v18 }
 0x537   :  { %v1289_v60 = vpop.f32.mrb[8].mxu1 }
 0x538   :  { %v1290_v35 = vadd.f32 %v9834_v3, %v1289_v60  ;;  %v4610_v20 = vpop.f32.mrb[9].mxu1  ;;  %v1429_v60 = vadd.f32 %v1428_v59, %v9755_v24 }
 0x539   :  { %v9836_v20 = vld [vmem:[#allocation96_spill] sm:$0xff] }
 0x53a   :  { %v1300_v5 = vrot.slane %v1290_v35, %v9835_v29  ;;  %v1427_v3 = vadd.f32 %v1426_v1, %v9836_v20  ;;  %v4339_v35 = vmul.f32 -1.442695, %v1429_v60 }
 0x53c   :  { %v1301_v44 = vcombine.high %v1300_v5, %v1300_v5  ;;  %v1308_v38 = vrot.slane %v1300_v5, %v9835_v29  ;;  %v4338_v18 = vmul.f32 -1.442695, %v1427_v3  ;;  %6747 = vpow2.f32 %v4339_v35 }
 0x53e   :  { %v1315_v32 = vrot.slane %v1301_v44, %v9835_v29  ;;  %1318 = vst.msk [vmem:[%s9372_s7 + $0x1] sm:$0x1] %vm820_vm12, %v1308_v38  ;;  %6749 = vpow2.f32 %v4338_v18 }
 0x540   :  { %1319 = vst.msk [vmem:[%s9372_s7 + $0x9] sm:$0x1] %vm820_vm12, %v1315_v32 }
 0x546   :  { %v6748_v5 = vpop.eup %6747 }
 0x547   :  { %v1511_v29 = vadd.f32 1.0, %v6748_v5 }
 0x548   :  { %v6750_v44 = vpop.eup %6749 }
 0x549   :  { %v1505_v49 = vadd.f32 1.0, %v6750_v44  ;;  %6751 = vrcp.f32 %v1511_v29 }
 0x54b   :  { %6753 = vrcp.f32 %v1505_v49 }
 0x553   :  { %v6752_v1 = vpop.eup %6751 }
 0x554   :  { %v1521_v18 = vmul.f32 %v6752_v1, %v8249_v13  ;;  %v4346_v13 = vld.sshfl [vmem:[%s9366_s0 + $0xb] sm:$0x1 pattern:$0x76325410] }
 0x555   :  { %v6754_v60 = vpop.eup %6753 }
 0x55f   :  { %v1497_v15 = vpop.f32.mrb[10].mxu1 }
 0x560   :  { %v1498_v38 = vadd.f32 %v1497_v15, %v7969_v0  ;;  %v1499_v56 = vpop.f32.mrb[11].mxu1 }
 0x561   :  { %v1500_v32 = vadd.f32 %v1499_v56, %v9757_v62 }
 0x562   :  { %6755 = vtanh.f32 %v1498_v38 }
 0x563   :  { %v4340_v59 = vmul.f32 -1.442695, %v1500_v32 }
 0x565   :  { %6757 = vpow2.f32 %v4340_v59  ;;  %v4345_v59 = vld.sshfl [vmem:[%s9366_s0 + $0x3] sm:$0x1 pattern:$0x76325410] }
 0x56c   :  { %v6756_v3 = vpop.eup %6755 }
 0x56d   :  { %v1522_v35 = vmul.f32 %v6756_v3, %v6754_v60 }
 0x56f   :  { %v6758_v20 = vpop.eup %6757  ;;  %v8427_v5 = vadd.f32 %v1522_v35, %v1521_v18 }
 0x570   :  { %v1518_v44 = vadd.f32 1.0, %v6758_v20  ;;  %v1837_v20 = vrot.slane %v4346_v13, 7  ;;  %v9840_v13 = vld [vmem:[#allocation46_spill] sm:$0xff] }
 0x571   :  { %6759 = vtanh.f32 %v8427_v5 }
 0x572   :  { %6761 = vrcp.f32 %v1518_v44  ;;  %v1838_v1 = vsel %vm289_vm3, %v1837_v20, %v4345_v59  ;;  %v9842_v59 = vld [vmem:[#allocation50_spill] sm:$0xff] }
 0x573   :  { %v1839_v60 = vsel %vm291_vm4, %v1837_v20, %v1838_v1  ;;  %v9843_v1 = vld [vmem:[#allocation52_spill] sm:$0xff] }
 0x574   :  { %v1840_v3 = vsel %vm293_vm5, %v1837_v20, %v1839_v60  ;;  %v9844_v60 = vld [vmem:[#allocation54_spill] sm:$0xff] }
 0x575   :  { %v1841_v44 = vsel %vm295_vm6, %v1837_v20, %v1840_v3  ;;  %v9841_v20 = vld [vmem:[#allocation48_spill] sm:$0xff] }
 0x576   :  { %v9845_v3 = vld [vmem:[#allocation56_spill] sm:$0xff] }
 0x57b   :  { %v6760_v29 = vpop.eup %6759 }
 0x57c   :  { %v6762_v49 = vpop.eup %6761 }
 0x57d   :  { %v1525_v15 = vmul.f32 %v6762_v49, %v6760_v29 }
 0x57f   :  { %v1533_v56 = vrot.slane %v1525_v15, %v7976_v4  ;;  %1540 = vst [vmem:[#allocation3] sm:$0x3] %v1525_v15 }
 0x581   :  { %1534 = vrot.lane.b32.xlu1 %v1533_v56, %s6943_s2  ;;  %v9837_v56 = vld [vmem:[#allocation40_spill] sm:$0xff] }
 0x586   :  { %v4341_v38 = vld.sshfl [vmem:[#allocation3] sm:$0x33 pattern:$0x76325410] }
 0x587   :  { %v1550_v32 = vcombine.high %v4341_v38, %v4341_v38 }
 0x589   :  { %1617 = vmatprep.mubr.f32.mxu0 %v1550_v32  ;;  %1688 = vmatprep.mubr.f32.mxu1 %v1550_v32  ;;  %v9839_v32 = vld [vmem:[#allocation44_spill] sm:$0xff] }
 0x58a   :  { %1618 = vmatmul.mubr.f32.vlgmr.msra.gmra.mrb[12].mxu0 %v4341_v38  ;;  %1689 = vmatmul.mubr.f32.vlgmr.msra.gmra.mrb[12].mxu1 %v4341_v38  ;;  %v9838_v38 = vld [vmem:[#allocation42_spill] sm:$0xff] }
 0x58b   :  { %5520 = vmatpush1.bf16.msra.mxu1 %v7010_v8  ;;  %5495 = vmatpush3.bf16.msra.mxu0 %v8012_v36 }
 0x58c   :  { %5522 = vmatprep.subr.bf16.mxu1 %v7012_v9  ;;  %5496 = vmatprep.subr.bf16.mxu0 %v9693_v63 }
 0x58d   :  { %4643 = vmatprep.mubr.msk.f32.mxu0 %vm6945_vm11, %v9684_v23 }
 0x58f   :  { %5524 = vmatpush1.bf16.msra.mxu1 %v7028_v14  ;;  %5498 = vmatpush3.bf16.msra.mxu0 %v8025_v48 }
 0x590   :  { %5526 = vmatprep.subr.bf16.mxu1 %v7037_v17  ;;  %5499 = vmatprep.subr.bf16.mxu0 %v9693_v63 }
 0x593   :  { %5528 = vmatpush1.bf16.msra.mxu1 %v7062_v26  ;;  %5501 = vmatpush3.bf16.msra.mxu0 %v8036_v25 }
 0x594   :  { %5530 = vmatprep.subr.bf16.mxu1 %v7075_v30  ;;  %5502 = vmatprep.subr.bf16.mxu0 %v9693_v63 }
 0x597   :  { %5532 = vmatpush1.bf16.msra.mxu1 %v7111_v42  ;;  %5504 = vmatpush3.bf16.msra.mxu0 %v8055_v45 }
 0x598   :  { %5534 = vmatprep.subr.bf16.mxu1 %v7122_v46  ;;  %5505 = vmatprep.subr.bf16.mxu0 %v9693_v63 }
 0x59b   :  { %5536 = vmatpush1.bf16.msra.mxu1 %v7149_v55  ;;  %5507 = vmatpush3.bf16.msra.mxu0 %v8066_v43 }
 0x59c   :  { %5538 = vmatprep.subr.bf16.mxu1 %v7158_v58  ;;  %5508 = vmatprep.subr.bf16.mxu0 %v9693_v63 }
 0x59f   :  { %5540 = vmatpush1.bf16.msra.mxu1 %v7191_v7  ;;  %5510 = vmatpush3.bf16.msra.mxu0 %v8076_v16 }
 0x5a0   :  { %5542 = vmatprep.subr.bf16.mxu1 %v7200_v12  ;;  %5511 = vmatprep.subr.bf16.mxu0 %v9693_v63 }
 0x5a3   :  { %5544 = vmatpush1.bf16.msra.mxu1 %v7236_v28  ;;  %5513 = vmatpush3.bf16.msra.mxu0 %v8093_v19 }
 0x5a4   :  { %5546 = vmatprep.subr.bf16.mxu1 %v7239_v31  ;;  %5514 = vmatprep.subr.bf16.mxu0 %v9693_v63 }
 0x5a7   :  { %5548 = vmatpush1.bf16.msra.mxu1 %v7274_v50  ;;  %5516 = vmatpush3.bf16.msra.mxu0 %v8107_v52 }
 0x5a8   :  { %5550 = vmatprep.subr.bf16.mxu1 %v7278_v53  ;;  %5558 = vmatprep.subr.bf16.mxu0 %v7051_v22 }
 0x5ab   :  { %5552 = vmatpush1.bf16.msra.mxu1 %v7313_v10 }
 0x5ac   :  { %5554 = vmatprep.subr.bf16.mxu1 %v7316_v11 }
 0x5af   :  { %5556 = vmatpush1.bf16.msra.mxu1 %v7349_v34 }
 0x5b0   :  { %5598 = vmatprep.subr.bf16.mxu1 %v7370_v51 }
 0x5f3   :  { %v1535_v18 = vpop.permute.xlu1 %1534 }
 0x5f4   :  { %v1536_v35 = vrot.slane %v1535_v18, 6 }
 0x5f6   :  { %v1537_v29 = vsel %vm332_vm8, %v1536_v35, %v1535_v18  ;;  %v9846_v18 = vld [vmem:[#allocation58_spill] sm:$0xff]  ;;  %v9847_v35 = vld [vmem:[#allocation60_spill] sm:$0xff] }
 0x5f7   :  { %1539 = vst.msk [vmem:[#allocation2] sm:$0xf] %vm8039_vm10, %v1537_v29  ;;  %v9849_v29 = vld [vmem:[#allocation64_spill] sm:$0xff] }
 0x5f8   :  { %1843 = vst.msk [vmem:[#allocation2] sm:$0x3] %vm298_vm7, %v1841_v44  ;;  %v9848_v44 = vld [vmem:[#allocation62_spill] sm:$0xff] }
 0x5ff   :  { %v8484_v49 = vld.sshfl [vmem:[#allocation2] sm:$0x33 pattern:$0x76325410] }
 0x600   :  { %v8488_v15 = vcombine.high %v8484_v49, %v8484_v49 }
 0x602   :  { %4348 = vmatprep.mubr.msk.f32.mxu1 %vm332_vm8, %v8488_v15 }
 0x603   :  { %1922 = vmatmul.mubr.f32.vlgmr.msra.gmra.mrb[14].mxu1 %v8484_v49 }
 0x604   :  { %5600 = vmatpush1.bf16.msra.mxu1 %v7386_v61 }
 0x605   :  { %5602 = vmatprep.subr.bf16.mxu1 %v7392_v2 }
 0x608   :  { %5604 = vmatpush1.bf16.msra.mxu1 %v7417_v27 }
 0x609   :  { %5606 = vmatprep.subr.bf16.mxu1 %v9837_v56 }
 0x60c   :  { %5608 = vmatpush1.bf16.msra.mxu1 %v9838_v38 }
 0x60d   :  { %5610 = vmatprep.subr.bf16.mxu1 %v9839_v32  ;;  %v9850_v32 = vld [vmem:[#allocation66_spill] sm:$0xff] }
 0x610   :  { %5612 = vmatpush1.bf16.msra.mxu1 %v9840_v13  ;;  %v9851_v13 = vld [vmem:[#allocation68_spill] sm:$0xff] }
 0x611   :  { %5614 = vmatprep.subr.bf16.mxu1 %v9841_v20  ;;  %v9852_v20 = vld [vmem:[#allocation70_spill] sm:$0xff] }
 0x614   :  { %5616 = vmatpush1.bf16.msra.mxu1 %v9842_v59  ;;  %v9853_v59 = vld [vmem:[#allocation72_spill] sm:$0xff] }
 0x615   :  { %5618 = vmatprep.subr.bf16.mxu1 %v9843_v1  ;;  %v9854_v1 = vld [vmem:[#allocation74_spill] sm:$0xff] }
 0x618   :  { %5620 = vmatpush1.bf16.msra.mxu1 %v9844_v60  ;;  %v9855_v60 = vld [vmem:[#allocation76_spill] sm:$0xff] }
 0x619   :  { %5622 = vmatprep.subr.bf16.mxu1 %v9845_v3  ;;  %v9856_v3 = vld [vmem:[#allocation78_spill] sm:$0xff] }
 0x61c   :  { %5624 = vmatpush1.bf16.msra.mxu1 %v9846_v18  ;;  %v9857_v18 = vld [vmem:[#allocation80_spill] sm:$0xff] }
 0x61d   :  { %5626 = vmatprep.subr.bf16.mxu1 %v9847_v35  ;;  %v9858_v35 = vld [vmem:[#allocation82_spill] sm:$0xff] }
 0x620   :  { %5628 = vmatpush1.bf16.msra.mxu1 %v9848_v44  ;;  %v9859_v44 = vld [vmem:[#allocation84_spill] sm:$0xff] }
 0x621   :  { %5630 = vmatprep.subr.bf16.mxu1 %v9849_v29  ;;  %v9860_v29 = vld [vmem:[#allocation86_spill] sm:$0xff] }
 0x624   :  { %5632 = vmatpush1.bf16.msra.mxu1 %v9850_v32  ;;  %v9861_v32 = vld [vmem:[#allocation88_spill] sm:$0xff] }
 0x625   :  { %5634 = vmatprep.subr.bf16.mxu1 %v9851_v13  ;;  %v9862_v13 = vld [vmem:[#allocation90_spill] sm:$0xff] }
 0x628   :  { %5636 = vmatpush1.bf16.msra.mxu1 %v9852_v20  ;;  %v9863_v20 = vld [vmem:[#allocation92_spill] sm:$0xff] }
 0x629   :  { %5638 = vmatprep.subr.bf16.mxu1 %v9853_v59  ;;  %v9864_v59 = vld [vmem:[#allocation94_spill] sm:$0xff] }
 0x62c   :  { %5640 = vmatpush1.bf16.msra.mxu1 %v9854_v1  ;;  %v9865_v1 = vld [vmem:[#allocation101_spill] sm:$0xff] }
 0x62d   :  { %5642 = vmatprep.subr.bf16.mxu1 %v9855_v60 }
 0x630   :  { %5644 = vmatpush1.bf16.msra.mxu1 %v9856_v3 }
 0x631   :  { %5646 = vmatprep.subr.bf16.mxu1 %v9857_v18 }
 0x634   :  { %5648 = vmatpush1.bf16.msra.mxu1 %v9858_v35 }
 0x635   :  { %5650 = vmatprep.subr.bf16.mxu1 %v9859_v44 }
 0x638   :  { %5652 = vmatpush1.bf16.msra.mxu1 %v9860_v29 }
 0x639   :  { %5654 = vmatprep.subr.bf16.mxu1 %v9861_v32 }
 0x63c   :  { %5656 = vmatpush1.bf16.msra.mxu1 %v9862_v13 }
 0x63d   :  { %5658 = vmatprep.subr.bf16.mxu1 %v9863_v20 }
 0x640   :  { %5660 = vmatpush1.bf16.msra.mxu1 %v9864_v59 }
 0x641   :  { %5725 = vmatprep.subr.bf16.mxu1 %v9693_v63 }
 0x65d   :  { %v1619_v60 = vpop.f32.mrb[12].mxu0  ;;  %v1690_v3 = vpop.f32.mrb[12].mxu1 }
 0x65e   :  { %v1620_v18 = vadd.f32 %v1619_v60, %v9865_v1  ;;  %v1621_v38 = vpop.f32.mrb[13].mxu0  ;;  %v1692_v35 = vpop.f32.mrb[13].mxu1  ;;  %v1691_v20 = vadd.f32 %v1690_v3, %v8163_v41  ;;  %v9872_v3 = vld [vmem:[#allocation18_spill] sm:$0xff] }
 0x65f   :  { %v1622_v44 = vadd.f32 %v1621_v38, %v9782_v57  ;;  %v1693_v13 = vadd.f32 %v1692_v35, %v9783_v37 }
 0x660   :  { %v4342_v56 = vmul.f32 -1.442695, %v1620_v18 }
 0x661   :  { %v4343_v29 = vmul.f32 -1.442695, %v1622_v44  ;;  %v4344_v32 = vmul.f32 -1.442695, %v1693_v13 }
 0x662   :  { %6763 = vpow2.f32 %v4342_v56 }
 0x663   :  { %6765 = vpow2.f32 %v4343_v29 }
 0x664   :  { %6767 = vpow2.f32 %v4344_v32 }
 0x665   :  { %6769 = vtanh.f32 %v1691_v20  ;;  %v9870_v20 = vld [vmem:[#allocation16_spill] sm:$0xff] }
 0x66c   :  { %v6764_v59 = vpop.eup %6763 }
 0x66d   :  { %v6766_v27 = vpop.eup %6765  ;;  %v1698_v2 = vadd.f32 1.0, %v6764_v59 }
 0x66e   :  { %v1704_v61 = vadd.f32 1.0, %v6766_v27  ;;  %v6768_v60 = vpop.eup %6767  ;;  %v9868_v27 = vld [vmem:[#allocation14_spill] sm:$0xff] }
 0x66f   :  { %6771 = vrcp.f32 %v1698_v2  ;;  %v6770_v1 = vpop.eup %6769  ;;  %v1711_v56 = vadd.f32 1.0, %v6768_v60  ;;  %v9867_v2 = vld [vmem:[#allocation13_spill] sm:$0xff]  ;;  %v9874_v60 = vld [vmem:[#allocation22_spill] sm:$0xff] }
 0x670   :  { %6773 = vrcp.f32 %v1704_v61  ;;  %v9866_v61 = vld [vmem:[#allocation12_spill] sm:$0xff] }
 0x671   :  { %6775 = vrcp.f32 %v1711_v56  ;;  %v9878_v56 = vld [vmem:[#allocation29_spill] sm:$0xff] }
 0x679   :  { %v6772_v38 = vpop.eup %6771 }
 0x67a   :  { %v6774_v18 = vpop.eup %6773  ;;  %v1715_v44 = vmul.f32 %v6772_v38, %v6770_v1  ;;  %v9871_v1 = vld [vmem:[#allocation17_spill] sm:$0xff]  ;;  %v9875_v38 = vld [vmem:[#allocation23_spill] sm:$0xff] }
 0x67b   :  { %v1714_v29 = vmul.f32 %v6774_v18, %v8352_v47  ;;  %v6776_v13 = vpop.eup %6775  ;;  %v9869_v47 = vld [vmem:[#allocation15_spill] sm:$0xff]  ;;  %v9876_v18 = vld [vmem:[#allocation26_spill] sm:$0xff] }
 0x67d   :  { %v8530_v35 = vadd.f32 %v1715_v44, %v1714_v29  ;;  %v9877_v44 = vld [vmem:[#allocation27_spill] sm:$0xff]  ;;  %v9879_v29 = vld [vmem:[#allocation30_spill] sm:$0xff] }
 0x67f   :  { %6777 = vtanh.f32 %v8530_v35 }
 0x689   :  { %v6778_v59 = vpop.eup %6777 }
 0x68a   :  { %v1718_v32 = vmul.f32 %v6778_v59, %v6776_v13  ;;  %v9880_v13 = vld [vmem:[#allocation33_spill] sm:$0xff]  ;;  %v9881_v59 = vld [vmem:[#allocation35_spill] sm:$0xff] }
 0x68c   :  { %1719 = vst [vmem:[#allocation3 + $0x2] sm:$0x3] %v1718_v32  ;;  %4644 = vmatmul.mubr.f32.vlgmr.msra.gmra.mrb[14].mxu0 %v1718_v32  ;;  %v9882_v32 = vld [vmem:[#allocation37_spill] sm:$0xff] }
 0x68d   :  { %5560 = vmatpush1.bf16.msra.mxu0 %v9701_v21  ;;  %4349 = vmatprep.mubr.msk.f32.mxu0 %vm332_vm8, %v8488_v15  ;;  %v9873_v15 = vld [vmem:[#allocation19_spill] sm:$0xff] }
 0x68e   :  { %5562 = vmatprep.subr.bf16.mxu0 %v9702_v40 }
 0x691   :  { %5564 = vmatpush1.bf16.msra.mxu0 %v9784_v54 }
 0x692   :  { %5566 = vmatprep.subr.bf16.mxu0 %v9785_v6 }
 0x695   :  { %5568 = vmatpush1.bf16.msra.mxu0 %v9866_v61 }
 0x696   :  { %5570 = vmatprep.subr.bf16.mxu0 %v9867_v2 }
 0x699   :  { %5572 = vmatpush1.bf16.msra.mxu0 %v9868_v27 }
 0x69a   :  { %5574 = vmatprep.subr.bf16.mxu0 %v9869_v47 }
 0x69d   :  { %5576 = vmatpush1.bf16.msra.mxu0 %v9870_v20  ;;  %v9914_v20 = vld [vmem:[#allocation9_spill] sm:$0xff] }
 0x69e   :  { %5578 = vmatprep.subr.bf16.mxu0 %v9871_v1 }
 0x6a1   :  { %5580 = vmatpush1.bf16.msra.mxu0 %v9872_v3  ;;  %v9900_v3 = vld [vmem:[#allocation71_spill] sm:$0xff] }
 0x6a2   :  { %5582 = vmatprep.subr.bf16.mxu0 %v9873_v15  ;;  %v9883_v15 = vld [vmem:[#allocation38_spill] sm:$0xff] }
 0x6a5   :  { %5584 = vmatpush1.bf16.msra.mxu0 %v9874_v60  ;;  %v9884_v60 = vld [vmem:[#allocation39_spill] sm:$0xff] }
 0x6a6   :  { %5586 = vmatprep.subr.bf16.mxu0 %v9875_v38  ;;  %v9885_v38 = vld [vmem:[#allocation41_spill] sm:$0xff] }
 0x6a9   :  { %5588 = vmatpush1.bf16.msra.mxu0 %v9876_v18  ;;  %v9886_v18 = vld [vmem:[#allocation43_spill] sm:$0xff] }
 0x6aa   :  { %5590 = vmatprep.subr.bf16.mxu0 %v9877_v44  ;;  %v9887_v44 = vld [vmem:[#allocation45_spill] sm:$0xff] }
 0x6ad   :  { %5592 = vmatpush1.bf16.msra.mxu0 %v9878_v56  ;;  %v9888_v56 = vld [vmem:[#allocation47_spill] sm:$0xff] }
 0x6ae   :  { %5594 = vmatprep.subr.bf16.mxu0 %v9879_v29  ;;  %v9889_v29 = vld [vmem:[#allocation49_spill] sm:$0xff] }
 0x6b1   :  { %5596 = vmatpush1.bf16.msra.mxu0 %v9880_v13  ;;  %v9890_v13 = vld [vmem:[#allocation51_spill] sm:$0xff] }
 0x6b2   :  { %5662 = vmatprep.subr.bf16.mxu0 %v9881_v59  ;;  %v9891_v59 = vld [vmem:[#allocation53_spill] sm:$0xff] }
 0x6b4   :  { %1993 = vmatmul.mubr.f32.vlgmr.msra.gmra.mrb[16].mxu0 %v8484_v49  ;;  %v9892_v49 = vld [vmem:[#allocation55_spill] sm:$0xff] }
 0x6b5   :  { %5664 = vmatpush1.bf16.msra.mxu0 %v9882_v32  ;;  %v9893_v32 = vld [vmem:[#allocation57_spill] sm:$0xff] }
 0x6b6   :  { %5666 = vmatprep.subr.bf16.mxu0 %v9883_v15  ;;  %v9894_v15 = vld [vmem:[#allocation59_spill] sm:$0xff] }
 0x6b9   :  { %5668 = vmatpush1.bf16.msra.mxu0 %v9884_v60  ;;  %v9895_v60 = vld [vmem:[#allocation61_spill] sm:$0xff] }
 0x6ba   :  { %5670 = vmatprep.subr.bf16.mxu0 %v9885_v38  ;;  %v9896_v38 = vld [vmem:[#allocation63_spill] sm:$0xff] }
 0x6bd   :  { %5672 = vmatpush1.bf16.msra.mxu0 %v9886_v18  ;;  %v9897_v18 = vld [vmem:[#allocation65_spill] sm:$0xff] }
 0x6be   :  { %5674 = vmatprep.subr.bf16.mxu0 %v9887_v44  ;;  %v9898_v44 = vld [vmem:[#allocation67_spill] sm:$0xff] }
 0x6c1   :  { %5676 = vmatpush1.bf16.msra.mxu0 %v9888_v56 }
 0x6c2   :  { %5678 = vmatprep.subr.bf16.mxu0 %v9889_v29  ;;  %v9899_v29 = vld [vmem:[#allocation69_spill] sm:$0xff] }
 0x6c5   :  { %5680 = vmatpush1.bf16.msra.mxu0 %v9890_v13 }
 0x6c6   :  { %5682 = vmatprep.subr.bf16.mxu0 %v9891_v59  ;;  %v9901_v59 = vld [vmem:[#allocation73_spill] sm:$0xff] }
 0x6c9   :  { %5684 = vmatpush1.bf16.msra.mxu0 %v9892_v49  ;;  %v9902_v49 = vld [vmem:[#allocation75_spill] sm:$0xff] }
 0x6ca   :  { %5686 = vmatprep.subr.bf16.mxu0 %v9893_v32  ;;  %v9903_v32 = vld [vmem:[#allocation77_spill] sm:$0xff] }
 0x6cd   :  { %5688 = vmatpush1.bf16.msra.mxu0 %v9894_v15  ;;  %v9904_v15 = vld [vmem:[#allocation79_spill] sm:$0xff] }
 0x6ce   :  { %5690 = vmatprep.subr.bf16.mxu0 %v9895_v60  ;;  %v9905_v60 = vld [vmem:[#allocation81_spill] sm:$0xff] }
 0x6d1   :  { %5692 = vmatpush1.bf16.msra.mxu0 %v9896_v38  ;;  %v9906_v38 = vld [vmem:[#allocation83_spill] sm:$0xff] }
 0x6d2   :  { %5694 = vmatprep.subr.bf16.mxu0 %v9897_v18  ;;  %v9907_v18 = vld [vmem:[#allocation85_spill] sm:$0xff] }
 0x6d5   :  { %5696 = vmatpush1.bf16.msra.mxu0 %v9898_v44  ;;  %v9908_v44 = vld [vmem:[#allocation87_spill] sm:$0xff] }
 0x6d6   :  { %v1923_v56 = vpop.f32.mrb[14].mxu1  ;;  %5698 = vmatprep.subr.bf16.mxu0 %v9899_v29  ;;  %v9909_v29 = vld [vmem:[#allocation91_spill] sm:$0xff] }
 0x6d7   :  { %v1925_v13 = vpop.f32.mrb[15].mxu1 }
 0x6d9   :  { %5700 = vmatpush1.bf16.msra.mxu0 %v9900_v3  ;;  %v9910_v3 = vld [vmem:[#allocation93_spill] sm:$0xff] }
 0x6da   :  { %5702 = vmatprep.subr.bf16.mxu0 %v9901_v59  ;;  %v9911_v59 = vld [vmem:[#allocation95_spill] sm:$0xff] }
 0x6dd   :  { %5704 = vmatpush1.bf16.msra.mxu0 %v9902_v49  ;;  %v9912_v49 = vld [vmem:[#allocation6_spill] sm:$0xff] }
 0x6de   :  { %5706 = vmatprep.subr.bf16.mxu0 %v9903_v32 }
 0x6e1   :  { %5708 = vmatpush1.bf16.msra.mxu0 %v9904_v15  ;;  %v9913_v15 = vld [vmem:[#allocation8_spill] sm:$0xff] }
 0x6e2   :  { %5710 = vmatprep.subr.bf16.mxu0 %v9905_v60 }
 0x6e5   :  { %5712 = vmatpush1.bf16.msra.mxu0 %v9906_v38 }
 0x6e6   :  { %5714 = vmatprep.subr.bf16.mxu0 %v9907_v18 }
 0x6e9   :  { %5716 = vmatpush1.bf16.msra.mxu0 %v9908_v44 }
 0x6ea   :  { %5718 = vmatprep.subr.bf16.mxu0 %v9829_v33 }
 0x6ed   :  { %5720 = vmatpush1.bf16.msra.mxu0 %v9909_v29 }
 0x6ee   :  { %5722 = vmatprep.subr.bf16.mxu0 %v9910_v3 }
 0x6f1   :  { %5724 = vmatpush1.bf16.msra.mxu0 %v9911_v59 }
 0x6f2   :  { %5750 = vmatprep.subr.bf16.mxu0 %v9912_v49 }
 0x75f   :  { %v1786_v32 = vpop.f32.mrb[14].mxu0 }
 0x760   :  { %v1787_v1 = vadd.f32 %v9913_v15, %v1786_v32  ;;  %v4645_v60 = vpop.f32.mrb[15].mxu0  ;;  %v1926_v15 = vadd.f32 %v1925_v13, %v9755_v24 }
 0x761   :  { %v9915_v60 = vld [vmem:[#allocation96_spill] sm:$0xff] }
 0x762   :  { %v1797_v38 = vrot.slane %v1787_v1, %v9914_v20  ;;  %v1924_v32 = vadd.f32 %v1923_v56, %v9915_v60  ;;  %v4351_v1 = vmul.f32 -1.442695, %v1926_v15 }
 0x764   :  { %v1798_v47 = vcombine.high %v1797_v38, %v1797_v38  ;;  %v1805_v18 = vrot.slane %v1797_v38, %v9914_v20  ;;  %v4350_v49 = vmul.f32 -1.442695, %v1924_v32  ;;  %6779 = vpow2.f32 %v4351_v1 }
 0x766   :  { %v1812_v44 = vrot.slane %v1798_v47, %v9914_v20  ;;  %1815 = vst.msk [vmem:[%s9372_s7 + $0x2] sm:$0x1] %vm820_vm12, %v1805_v18  ;;  %6781 = vpow2.f32 %v4350_v49 }
 0x768   :  { %1816 = vst.msk [vmem:[%s9372_s7 + $0xa] sm:$0x1] %vm820_vm12, %v1812_v44 }
 0x76e   :  { %v6780_v38 = vpop.eup %6779 }
 0x76f   :  { %v2008_v20 = vadd.f32 1.0, %v6780_v38 }
 0x770   :  { %v6782_v47 = vpop.eup %6781 }
 0x771   :  { %v2002_v59 = vadd.f32 1.0, %v6782_v47  ;;  %6783 = vrcp.f32 %v2008_v20 }
 0x773   :  { %6785 = vrcp.f32 %v2002_v59 }
 0x77b   :  { %v6784_v56 = vpop.eup %6783 }
 0x77c   :  { %v2018_v49 = vmul.f32 %v6784_v56, %v8427_v5  ;;  %v4358_v5 = vld.sshfl [vmem:[%s9366_s0 + $0xc] sm:$0x1 pattern:$0x76325410] }
 0x77d   :  { %v6786_v15 = vpop.eup %6785 }
 0x787   :  { %v1994_v3 = vpop.f32.mrb[16].mxu0 }
 0x788   :  { %v1995_v18 = vadd.f32 %v1994_v3, %v7969_v0  ;;  %v1996_v29 = vpop.f32.mrb[17].mxu0 }
 0x789   :  { %v1997_v44 = vadd.f32 %v1996_v29, %v9757_v62 }
 0x78a   :  { %6787 = vtanh.f32 %v1995_v18 }
 0x78b   :  { %v4352_v13 = vmul.f32 -1.442695, %v1997_v44 }
 0x78d   :  { %6789 = vpow2.f32 %v4352_v13  ;;  %v4357_v13 = vld.sshfl [vmem:[%s9366_s0 + $0x4] sm:$0x1 pattern:$0x76325410] }
 0x794   :  { %v6788_v32 = vpop.eup %6787 }
 0x795   :  { %v2019_v1 = vmul.f32 %v6788_v32, %v6786_v15 }
 0x797   :  { %v6790_v60 = vpop.eup %6789  ;;  %v8605_v38 = vadd.f32 %v2019_v1, %v2018_v49 }
 0x798   :  { %v2015_v47 = vadd.f32 1.0, %v6790_v60  ;;  %v2334_v60 = vrot.slane %v4358_v5, 7  ;;  %v9919_v5 = vld [vmem:[#allocation40_spill] sm:$0xff] }
 0x799   :  { %6791 = vtanh.f32 %v8605_v38 }
 0x79a   :  { %6793 = vrcp.f32 %v2015_v47  ;;  %v2335_v56 = vsel %vm289_vm3, %v2334_v60, %v4357_v13  ;;  %v9921_v13 = vld [vmem:[#allocation44_spill] sm:$0xff] }
 0x79b   :  { %v2336_v15 = vsel %vm291_vm4, %v2334_v60, %v2335_v56  ;;  %v9922_v56 = vld [vmem:[#allocation46_spill] sm:$0xff] }
 0x79c   :  { %v2337_v32 = vsel %vm293_vm5, %v2334_v60, %v2336_v15  ;;  %v9923_v15 = vld [vmem:[#allocation48_spill] sm:$0xff] }
 0x79d   :  { %v2338_v47 = vsel %vm295_vm6, %v2334_v60, %v2337_v32  ;;  %v9920_v60 = vld [vmem:[#allocation42_spill] sm:$0xff] }
 0x79e   :  { %v9924_v32 = vld [vmem:[#allocation50_spill] sm:$0xff] }
 0x7a3   :  { %v6792_v20 = vpop.eup %6791 }
 0x7a4   :  { %v6794_v3 = vpop.eup %6793 }
 0x7a5   :  { %v2022_v59 = vmul.f32 %v6794_v3, %v6792_v20 }
 0x7a7   :  { %v2030_v29 = vrot.slane %v2022_v59, %v7976_v4  ;;  %2037 = vst [vmem:[#allocation3] sm:$0x3] %v2022_v59 }
 0x7a9   :  { %2031 = vrot.lane.b32.xlu1 %v2030_v29, %s6943_s2  ;;  %v9916_v29 = vld [vmem:[#allocation32_spill] sm:$0xff] }
 0x7ae   :  { %v4353_v18 = vld.sshfl [vmem:[#allocation3] sm:$0x33 pattern:$0x76325410] }
 0x7af   :  { %v2047_v44 = vcombine.high %v4353_v18, %v4353_v18 }
 0x7b1   :  { %2114 = vmatprep.mubr.f32.mxu1 %v2047_v44  ;;  %2185 = vmatprep.mubr.f32.mxu0 %v2047_v44  ;;  %v9918_v44 = vld [vmem:[#allocation36_spill] sm:$0xff] }
 0x7b2   :  { %2115 = vmatmul.mubr.f32.vlgmr.msra.gmra.mrb[16].mxu1 %v4353_v18  ;;  %2186 = vmatmul.mubr.f32.vlgmr.msra.gmra.mrb[18].mxu0 %v4353_v18  ;;  %v9917_v18 = vld [vmem:[#allocation34_spill] sm:$0xff] }
 0x7b3   :  { %5752 = vmatpush1.bf16.msra.mxu0 %v7010_v8  ;;  %5727 = vmatpush3.bf16.msra.mxu1 %v8012_v36 }
 0x7b4   :  { %5754 = vmatprep.subr.bf16.mxu0 %v7012_v9  ;;  %5728 = vmatprep.subr.bf16.mxu1 %v9693_v63 }
 0x7b5   :  { %4678 = vmatprep.mubr.msk.f32.mxu1 %vm6945_vm11, %v9684_v23 }
 0x7b7   :  { %5756 = vmatpush1.bf16.msra.mxu0 %v7028_v14  ;;  %5730 = vmatpush3.bf16.msra.mxu1 %v8025_v48 }
 0x7b8   :  { %5758 = vmatprep.subr.bf16.mxu0 %v7037_v17  ;;  %5731 = vmatprep.subr.bf16.mxu1 %v9693_v63 }
 0x7bb   :  { %5760 = vmatpush1.bf16.msra.mxu0 %v7062_v26  ;;  %5733 = vmatpush3.bf16.msra.mxu1 %v8036_v25 }
 0x7bc   :  { %5762 = vmatprep.subr.bf16.mxu0 %v7075_v30  ;;  %5734 = vmatprep.subr.bf16.mxu1 %v9693_v63 }
 0x7bf   :  { %5764 = vmatpush1.bf16.msra.mxu0 %v7111_v42  ;;  %5736 = vmatpush3.bf16.msra.mxu1 %v8055_v45 }
 0x7c0   :  { %5766 = vmatprep.subr.bf16.mxu0 %v7122_v46  ;;  %5737 = vmatprep.subr.bf16.mxu1 %v9693_v63 }
 0x7c3   :  { %5768 = vmatpush1.bf16.msra.mxu0 %v7149_v55  ;;  %5739 = vmatpush3.bf16.msra.mxu1 %v8066_v43 }
 0x7c4   :  { %5770 = vmatprep.subr.bf16.mxu0 %v7158_v58  ;;  %5740 = vmatprep.subr.bf16.mxu1 %v9693_v63 }
 0x7c7   :  { %5772 = vmatpush1.bf16.msra.mxu0 %v7191_v7  ;;  %5742 = vmatpush3.bf16.msra.mxu1 %v8076_v16 }
 0x7c8   :  { %5774 = vmatprep.subr.bf16.mxu0 %v7200_v12  ;;  %5743 = vmatprep.subr.bf16.mxu1 %v9693_v63 }
 0x7cb   :  { %5776 = vmatpush1.bf16.msra.mxu0 %v7236_v28  ;;  %5745 = vmatpush3.bf16.msra.mxu1 %v8093_v19 }
 0x7cc   :  { %5778 = vmatprep.subr.bf16.mxu0 %v7239_v31  ;;  %5746 = vmatprep.subr.bf16.mxu1 %v9693_v63 }
 0x7cf   :  { %5780 = vmatpush1.bf16.msra.mxu0 %v7274_v50  ;;  %5748 = vmatpush3.bf16.msra.mxu1 %v8107_v52 }
 0x7d0   :  { %5782 = vmatprep.subr.bf16.mxu0 %v7278_v53  ;;  %5790 = vmatprep.subr.bf16.mxu1 %v7051_v22 }
 0x7d3   :  { %5784 = vmatpush1.bf16.msra.mxu0 %v7313_v10 }
 0x7d4   :  { %5786 = vmatprep.subr.bf16.mxu0 %v7316_v11 }
 0x7d7   :  { %5788 = vmatpush1.bf16.msra.mxu0 %v7349_v34 }
 0x7d8   :  { %5830 = vmatprep.subr.bf16.mxu0 %v7370_v51 }
 0x81b   :  { %v2032_v49 = vpop.permute.xlu1 %2031 }
 0x81c   :  { %v2033_v1 = vrot.slane %v2032_v49, 6 }
 0x81e   :  { %v2034_v20 = vsel %vm332_vm8, %v2033_v1, %v2032_v49  ;;  %v9925_v49 = vld [vmem:[#allocation52_spill] sm:$0xff]  ;;  %v9926_v1 = vld [vmem:[#allocation54_spill] sm:$0xff] }
 0x81f   :  { %2036 = vst.msk [vmem:[#allocation2] sm:$0xf] %vm8039_vm10, %v2034_v20  ;;  %v9928_v20 = vld [vmem:[#allocation58_spill] sm:$0xff] }
 0x820   :  { %2340 = vst.msk [vmem:[#allocation2] sm:$0x3] %vm298_vm7, %v2338_v47  ;;  %v9927_v47 = vld [vmem:[#allocation56_spill] sm:$0xff] }
 0x827   :  { %v8662_v3 = vld.sshfl [vmem:[#allocation2] sm:$0x33 pattern:$0x76325410] }
 0x828   :  { %v8666_v59 = vcombine.high %v8662_v3, %v8662_v3 }
 0x82a   :  { %4360 = vmatprep.mubr.msk.f32.mxu0 %vm332_vm8, %v8666_v59 }
 0x82b   :  { %2419 = vmatmul.mubr.f32.vlgmr.msra.gmra.mrb[20].mxu0 %v8662_v3 }
 0x82c   :  { %5832 = vmatpush1.bf16.msra.mxu0 %v9916_v29 }
 0x82d   :  { %5834 = vmatprep.subr.bf16.mxu0 %v9917_v18 }
 0x830   :  { %5836 = vmatpush1.bf16.msra.mxu0 %v9918_v44  ;;  %v9929_v44 = vld [vmem:[#allocation60_spill] sm:$0xff] }
 0x831   :  { %5838 = vmatprep.subr.bf16.mxu0 %v9919_v5  ;;  %v9930_v5 = vld [vmem:[#allocation62_spill] sm:$0xff] }
 0x834   :  { %5840 = vmatpush1.bf16.msra.mxu0 %v9920_v60  ;;  %v9931_v60 = vld [vmem:[#allocation64_spill] sm:$0xff] }
 0x835   :  { %5842 = vmatprep.subr.bf16.mxu0 %v9921_v13  ;;  %v9932_v13 = vld [vmem:[#allocation66_spill] sm:$0xff] }
 0x838   :  { %5844 = vmatpush1.bf16.msra.mxu0 %v9922_v56  ;;  %v9933_v56 = vld [vmem:[#allocation68_spill] sm:$0xff] }
 0x839   :  { %5846 = vmatprep.subr.bf16.mxu0 %v9923_v15  ;;  %v9934_v15 = vld [vmem:[#allocation70_spill] sm:$0xff] }
 0x83c   :  { %5848 = vmatpush1.bf16.msra.mxu0 %v9924_v32  ;;  %v9935_v32 = vld [vmem:[#allocation72_spill] sm:$0xff] }
 0x83d   :  { %5850 = vmatprep.subr.bf16.mxu0 %v9925_v49  ;;  %v9936_v49 = vld [vmem:[#allocation74_spill] sm:$0xff] }
 0x840   :  { %5852 = vmatpush1.bf16.msra.mxu0 %v9926_v1  ;;  %v9937_v1 = vld [vmem:[#allocation76_spill] sm:$0xff] }
 0x841   :  { %5854 = vmatprep.subr.bf16.mxu0 %v9927_v47  ;;  %v9938_v47 = vld [vmem:[#allocation78_spill] sm:$0xff] }
 0x844   :  { %5856 = vmatpush1.bf16.msra.mxu0 %v9928_v20  ;;  %v9939_v20 = vld [vmem:[#allocation80_spill] sm:$0xff] }
 0x845   :  { %5858 = vmatprep.subr.bf16.mxu0 %v9929_v44  ;;  %v9940_v44 = vld [vmem:[#allocation82_spill] sm:$0xff] }
 0x848   :  { %5860 = vmatpush1.bf16.msra.mxu0 %v9930_v5  ;;  %v9941_v5 = vld [vmem:[#allocation84_spill] sm:$0xff] }
 0x849   :  { %5862 = vmatprep.subr.bf16.mxu0 %v9931_v60  ;;  %v9942_v60 = vld [vmem:[#allocation86_spill] sm:$0xff] }
 0x84c   :  { %5864 = vmatpush1.bf16.msra.mxu0 %v9932_v13  ;;  %v9943_v13 = vld [vmem:[#allocation88_spill] sm:$0xff] }
 0x84d   :  { %5866 = vmatprep.subr.bf16.mxu0 %v9933_v56  ;;  %v9944_v56 = vld [vmem:[#allocation90_spill] sm:$0xff] }
 0x850   :  { %5868 = vmatpush1.bf16.msra.mxu0 %v9934_v15  ;;  %v9945_v15 = vld [vmem:[#allocation92_spill] sm:$0xff] }
 0x851   :  { %5870 = vmatprep.subr.bf16.mxu0 %v9935_v32  ;;  %v9946_v32 = vld [vmem:[#allocation94_spill] sm:$0xff] }
 0x854   :  { %5872 = vmatpush1.bf16.msra.mxu0 %v9936_v49  ;;  %v9947_v49 = vld [vmem:[#allocation101_spill] sm:$0xff] }
 0x855   :  { %5874 = vmatprep.subr.bf16.mxu0 %v9937_v1 }
 0x858   :  { %5876 = vmatpush1.bf16.msra.mxu0 %v9938_v47 }
 0x859   :  { %5878 = vmatprep.subr.bf16.mxu0 %v9939_v20 }
 0x85c   :  { %5880 = vmatpush1.bf16.msra.mxu0 %v9940_v44 }
 0x85d   :  { %5882 = vmatprep.subr.bf16.mxu0 %v9941_v5 }
 0x860   :  { %5884 = vmatpush1.bf16.msra.mxu0 %v9942_v60 }
 0x861   :  { %5886 = vmatprep.subr.bf16.mxu0 %v9943_v13 }
 0x864   :  { %5888 = vmatpush1.bf16.msra.mxu0 %v9944_v56 }
 0x865   :  { %5890 = vmatprep.subr.bf16.mxu0 %v9945_v15 }
 0x868   :  { %5892 = vmatpush1.bf16.msra.mxu0 %v9946_v32 }
 0x869   :  { %5957 = vmatprep.subr.bf16.mxu0 %v9693_v63 }
 0x885   :  { %v2116_v1 = vpop.f32.mrb[16].mxu1  ;;  %v2187_v47 = vpop.f32.mrb[18].mxu0 }
 0x886   :  { %v2117_v20 = vadd.f32 %v2116_v1, %v9947_v49  ;;  %v2118_v18 = vpop.f32.mrb[17].mxu1  ;;  %v2189_v44 = vpop.f32.mrb[19].mxu0  ;;  %v2188_v15 = vadd.f32 %v2187_v47, %v8163_v41  ;;  %v9955_v47 = vld [vmem:[#allocation26_spill] sm:$0xff] }
 0x887   :  { %v2119_v5 = vadd.f32 %v2118_v18, %v9782_v57  ;;  %v2190_v56 = vadd.f32 %v2189_v44, %v9783_v37 }
 0x888   :  { %v4354_v29 = vmul.f32 -1.442695, %v2117_v20 }
 0x889   :  { %v4355_v60 = vmul.f32 -1.442695, %v2119_v5  ;;  %v4356_v13 = vmul.f32 -1.442695, %v2190_v56 }
 0x88a   :  { %6795 = vpow2.f32 %v4354_v29 }
 0x88b   :  { %6797 = vpow2.f32 %v4355_v60 }
 0x88c   :  { %6799 = vpow2.f32 %v4356_v13 }
 0x88d   :  { %6801 = vtanh.f32 %v2188_v15  ;;  %v9953_v15 = vld [vmem:[#allocation22_spill] sm:$0xff] }
 0x894   :  { %v6796_v32 = vpop.eup %6795 }
 0x895   :  { %v6798_v39 = vpop.eup %6797  ;;  %v2195_v51 = vadd.f32 1.0, %v6796_v32 }
 0x896   :  { %v2201_v34 = vadd.f32 1.0, %v6798_v39  ;;  %v6800_v1 = vpop.eup %6799  ;;  %v9950_v39 = vld [vmem:[#allocation17_spill] sm:$0xff] }
 0x897   :  { %6803 = vrcp.f32 %v2195_v51  ;;  %v6802_v49 = vpop.eup %6801  ;;  %v2208_v29 = vadd.f32 1.0, %v6800_v1  ;;  %v9949_v51 = vld [vmem:[#allocation16_spill] sm:$0xff]  ;;  %v9956_v1 = vld [vmem:[#allocation27_spill] sm:$0xff] }
 0x898   :  { %6805 = vrcp.f32 %v2201_v34  ;;  %v9948_v34 = vld [vmem:[#allocation15_spill] sm:$0xff] }
 0x899   :  { %6807 = vrcp.f32 %v2208_v29  ;;  %v9960_v29 = vld [vmem:[#allocation35_spill] sm:$0xff] }
 0x8a1   :  { %v6804_v18 = vpop.eup %6803 }
 0x8a2   :  { %v6806_v20 = vpop.eup %6805  ;;  %v2212_v5 = vmul.f32 %v6804_v18, %v6802_v49  ;;  %v9954_v49 = vld [vmem:[#allocation23_spill] sm:$0xff]  ;;  %v9957_v18 = vld [vmem:[#allocation29_spill] sm:$0xff] }
 0x8a3   :  { %v2211_v60 = vmul.f32 %v6806_v20, %v8530_v35  ;;  %v6808_v56 = vpop.eup %6807  ;;  %v9951_v35 = vld [vmem:[#allocation18_spill] sm:$0xff] }
 0x8a4   :  { %v9958_v20 = vld [vmem:[#allocation30_spill] sm:$0xff] }
 0x8a5   :  { %v8708_v44 = vadd.f32 %v2212_v5, %v2211_v60  ;;  %v9959_v5 = vld [vmem:[#allocation33_spill] sm:$0xff] }
 0x8a6   :  { %v9961_v60 = vld [vmem:[#allocation37_spill] sm:$0xff] }
 0x8a7   :  { %6809 = vtanh.f32 %v8708_v44 }
 0x8b1   :  { %v6810_v32 = vpop.eup %6809 }
 0x8b2   :  { %v2215_v13 = vmul.f32 %v6810_v32, %v6808_v56  ;;  %v9962_v56 = vld [vmem:[#allocation38_spill] sm:$0xff]  ;;  %v9963_v32 = vld [vmem:[#allocation39_spill] sm:$0xff] }
 0x8b4   :  { %2216 = vst [vmem:[#allocation3 + $0x2] sm:$0x3] %v2215_v13  ;;  %4679 = vmatmul.mubr.f32.vlgmr.msra.gmra.mrb[18].mxu1 %v2215_v13  ;;  %v9964_v13 = vld [vmem:[#allocation41_spill] sm:$0xff] }
 0x8b5   :  { %5792 = vmatpush1.bf16.msra.mxu1 %v9701_v21  ;;  %4361 = vmatprep.mubr.msk.f32.mxu1 %vm332_vm8, %v8666_v59  ;;  %v9952_v59 = vld [vmem:[#allocation19_spill] sm:$0xff] }
 0x8b6   :  { %5794 = vmatprep.subr.bf16.mxu1 %v9702_v40 }
 0x8b9   :  { %5796 = vmatpush1.bf16.msra.mxu1 %v9784_v54 }
 0x8ba   :  { %5798 = vmatprep.subr.bf16.mxu1 %v9785_v6 }
 0x8bd   :  { %5800 = vmatpush1.bf16.msra.mxu1 %v9866_v61 }
 0x8be   :  { %5802 = vmatprep.subr.bf16.mxu1 %v9867_v2 }
 0x8c1   :  { %5804 = vmatpush1.bf16.msra.mxu1 %v9868_v27 }
 0x8c2   :  { %5806 = vmatprep.subr.bf16.mxu1 %v9948_v34 }
 0x8c5   :  { %5808 = vmatpush1.bf16.msra.mxu1 %v9949_v51 }
 0x8c6   :  { %5810 = vmatprep.subr.bf16.mxu1 %v9950_v39 }
 0x8c9   :  { %5812 = vmatpush1.bf16.msra.mxu1 %v9951_v35 }
 0x8ca   :  { %5814 = vmatprep.subr.bf16.mxu1 %v9952_v59 }
 0x8cd   :  { %5816 = vmatpush1.bf16.msra.mxu1 %v9953_v15 }
 0x8ce   :  { %5818 = vmatprep.subr.bf16.mxu1 %v9954_v49  ;;  %v9979_v49 = vld [vmem:[#allocation71_spill] sm:$0xff] }
 0x8d1   :  { %5820 = vmatpush1.bf16.msra.mxu1 %v9955_v47  ;;  %v9965_v47 = vld [vmem:[#allocation43_spill] sm:$0xff] }
 0x8d2   :  { %5822 = vmatprep.subr.bf16.mxu1 %v9956_v1  ;;  %v9966_v1 = vld [vmem:[#allocation45_spill] sm:$0xff] }
 0x8d5   :  { %5824 = vmatpush1.bf16.msra.mxu1 %v9957_v18  ;;  %v9967_v18 = vld [vmem:[#allocation47_spill] sm:$0xff] }
 0x8d6   :  { %5826 = vmatprep.subr.bf16.mxu1 %v9958_v20  ;;  %v9968_v20 = vld [vmem:[#allocation49_spill] sm:$0xff] }
 0x8d9   :  { %5828 = vmatpush1.bf16.msra.mxu1 %v9959_v5  ;;  %v9969_v5 = vld [vmem:[#allocation51_spill] sm:$0xff] }
 0x8da   :  { %5894 = vmatprep.subr.bf16.mxu1 %v9960_v29  ;;  %v9970_v29 = vld [vmem:[#allocation53_spill] sm:$0xff] }
 0x8dc   :  { %2490 = vmatmul.mubr.f32.vlgmr.msra.gmra.mrb[20].mxu1 %v8662_v3  ;;  %v9971_v3 = vld [vmem:[#allocation55_spill] sm:$0xff] }
 0x8dd   :  { %5896 = vmatpush1.bf16.msra.mxu1 %v9961_v60  ;;  %v9972_v60 = vld [vmem:[#allocation57_spill] sm:$0xff] }
 0x8de   :  { %5898 = vmatprep.subr.bf16.mxu1 %v9962_v56  ;;  %v9973_v56 = vld [vmem:[#allocation59_spill] sm:$0xff] }
 0x8e1   :  { %5900 = vmatpush1.bf16.msra.mxu1 %v9963_v32  ;;  %v9974_v32 = vld [vmem:[#allocation61_spill] sm:$0xff] }
 0x8e2   :  { %5902 = vmatprep.subr.bf16.mxu1 %v9964_v13  ;;  %v9975_v13 = vld [vmem:[#allocation63_spill] sm:$0xff] }
 0x8e5   :  { %5904 = vmatpush1.bf16.msra.mxu1 %v9965_v47  ;;  %v9976_v47 = vld [vmem:[#allocation65_spill] sm:$0xff] }
 0x8e6   :  { %5906 = vmatprep.subr.bf16.mxu1 %v9966_v1  ;;  %v9977_v1 = vld [vmem:[#allocation67_spill] sm:$0xff] }
 0x8e9   :  { %5908 = vmatpush1.bf16.msra.mxu1 %v9967_v18 }
 0x8ea   :  { %5910 = vmatprep.subr.bf16.mxu1 %v9968_v20  ;;  %v9978_v20 = vld [vmem:[#allocation69_spill] sm:$0xff] }
 0x8ed   :  { %5912 = vmatpush1.bf16.msra.mxu1 %v9969_v5 }
 0x8ee   :  { %5914 = vmatprep.subr.bf16.mxu1 %v9970_v29  ;;  %v9980_v29 = vld [vmem:[#allocation73_spill] sm:$0xff] }
 0x8f1   :  { %5916 = vmatpush1.bf16.msra.mxu1 %v9971_v3  ;;  %v9981_v3 = vld [vmem:[#allocation75_spill] sm:$0xff] }
 0x8f2   :  { %5918 = vmatprep.subr.bf16.mxu1 %v9972_v60  ;;  %v9982_v60 = vld [vmem:[#allocation77_spill] sm:$0xff] }
 0x8f5   :  { %5920 = vmatpush1.bf16.msra.mxu1 %v9973_v56  ;;  %v9983_v56 = vld [vmem:[#allocation79_spill] sm:$0xff] }
 0x8f6   :  { %5922 = vmatprep.subr.bf16.mxu1 %v9974_v32  ;;  %v9984_v32 = vld [vmem:[#allocation81_spill] sm:$0xff] }
 0x8f9   :  { %5924 = vmatpush1.bf16.msra.mxu1 %v9975_v13  ;;  %v9985_v13 = vld [vmem:[#allocation83_spill] sm:$0xff] }
 0x8fa   :  { %5926 = vmatprep.subr.bf16.mxu1 %v9976_v47  ;;  %v9986_v47 = vld [vmem:[#allocation85_spill] sm:$0xff] }
 0x8fd   :  { %5928 = vmatpush1.bf16.msra.mxu1 %v9977_v1  ;;  %v9987_v1 = vld [vmem:[#allocation87_spill] sm:$0xff] }
 0x8fe   :  { %v2420_v18 = vpop.f32.mrb[20].mxu0  ;;  %5930 = vmatprep.subr.bf16.mxu1 %v9978_v20  ;;  %v9988_v20 = vld [vmem:[#allocation91_spill] sm:$0xff] }
 0x8ff   :  { %v2422_v5 = vpop.f32.mrb[21].mxu0 }
 0x901   :  { %5932 = vmatpush1.bf16.msra.mxu1 %v9979_v49  ;;  %v9989_v49 = vld [vmem:[#allocation93_spill] sm:$0xff] }
 0x902   :  { %5934 = vmatprep.subr.bf16.mxu1 %v9980_v29  ;;  %v9990_v29 = vld [vmem:[#allocation95_spill] sm:$0xff] }
 0x905   :  { %5936 = vmatpush1.bf16.msra.mxu1 %v9981_v3  ;;  %v9991_v3 = vld [vmem:[#allocation6_spill] sm:$0xff] }
 0x906   :  { %5938 = vmatprep.subr.bf16.mxu1 %v9982_v60 }
 0x909   :  { %5940 = vmatpush1.bf16.msra.mxu1 %v9983_v56 }
 0x90a   :  { %5942 = vmatprep.subr.bf16.mxu1 %v9984_v32  ;;  %v8769_v32 = vld [vmem:[%s9371_s6] ss:$0 sm:$0xff] }
 0x90b   :  { %9992 = vst [vmem:[#allocation97_spill] sm:$0xff] %v8769_v32 }
 0x90d   :  { %5944 = vmatpush1.bf16.msra.mxu1 %v9985_v13 }
 0x90e   :  { %5946 = vmatprep.subr.bf16.mxu1 %v9986_v47 }
 0x911   :  { %5948 = vmatpush1.bf16.msra.mxu1 %v9987_v1  ;;  %v9993_v1 = vld [vmem:[#allocation9_spill] sm:$0xff] }
 0x912   :  { %5950 = vmatprep.subr.bf16.mxu1 %v9829_v33 }
 0x915   :  { %5952 = vmatpush1.bf16.msra.mxu1 %v9988_v20 }
 0x916   :  { %5954 = vmatprep.subr.bf16.mxu1 %v9989_v49 }
 0x919   :  { %5956 = vmatpush1.bf16.msra.mxu1 %v9990_v29 }
 0x91a   :  { %5982 = vmatprep.subr.bf16.mxu1 %v9991_v3 }
 0x987   :  { %v2283_v60 = vpop.f32.mrb[18].mxu1 }
 0x988   :  { %v2284_v47 = vadd.f32 %v8769_v32, %v2283_v60  ;;  %v4680_v13 = vpop.f32.mrb[19].mxu1  ;;  %v2423_v60 = vadd.f32 %v2422_v5, %v9755_v24 }
 0x989   :  { %v9994_v13 = vld [vmem:[#allocation96_spill] sm:$0xff] }
 0x98a   :  { %v2294_v56 = vrot.slane %v2284_v47, %v9993_v1  ;;  %v2421_v32 = vadd.f32 %v2420_v18, %v9994_v13  ;;  %v4363_v47 = vmul.f32 -1.442695, %v2423_v60 }
 0x98c   :  { %v2295_v33 = vcombine.high %v2294_v56, %v2294_v56  ;;  %v2302_v20 = vrot.slane %v2294_v56, %v9993_v1  ;;  %v4362_v3 = vmul.f32 -1.442695, %v2421_v32  ;;  %6811 = vpow2.f32 %v4363_v47 }
 0x98e   :  { %v2309_v49 = vrot.slane %v2295_v33, %v9993_v1  ;;  %2312 = vst.msk [vmem:[%s9372_s7 + $0x3] sm:$0x1] %vm820_vm12, %v2302_v20  ;;  %6813 = vpow2.f32 %v4362_v3 }
 0x990   :  { %2313 = vst.msk [vmem:[%s9372_s7 + $0xb] sm:$0x1] %vm820_vm12, %v2309_v49 }
 0x996   :  { %v6812_v56 = vpop.eup %6811 }
 0x997   :  { %v2505_v1 = vadd.f32 1.0, %v6812_v56 }
 0x998   :  { %v6814_v33 = vpop.eup %6813 }
 0x999   :  { %v2499_v29 = vadd.f32 1.0, %v6814_v33  ;;  %6815 = vrcp.f32 %v2505_v1 }
 0x99b   :  { %6817 = vrcp.f32 %v2499_v29 }
 0x9a3   :  { %v6816_v18 = vpop.eup %6815 }
 0x9a4   :  { %v2515_v3 = vmul.f32 %v6816_v18, %v8605_v38  ;;  %v9995_v38 = vld [vmem:[#allocation28_spill] sm:$0xff] }
 0x9a5   :  { %v6818_v60 = vpop.eup %6817 }
 0x9af   :  { %v2491_v15 = vpop.f32.mrb[20].mxu1 }
 0x9b0   :  { %v2492_v20 = vadd.f32 %v2491_v15, %v7969_v0  ;;  %v2493_v59 = vpop.f32.mrb[21].mxu1 }
 0x9b1   :  { %v2494_v49 = vadd.f32 %v2493_v59, %v9757_v62 }
 0x9b2   :  { %6819 = vtanh.f32 %v2492_v20 }
 0x9b3   :  { %v4364_v5 = vmul.f32 -1.442695, %v2494_v49 }
 0x9b5   :  { %6821 = vpow2.f32 %v4364_v5  ;;  %v4370_v5 = vld.sshfl [vmem:[%s9366_s0 + $0xd] sm:$0x1 pattern:$0x76325410] }
 0x9b6   :  { %v2831_v18 = vrot.slane %v4370_v5, 7  ;;  %v9998_v5 = vld [vmem:[#allocation32_spill] sm:$0xff] }
 0x9bc   :  { %v6820_v32 = vpop.eup %6819 }
 0x9bd   :  { %v2516_v47 = vmul.f32 %v6820_v32, %v6818_v60  ;;  %v4369_v60 = vld.sshfl [vmem:[%s9366_s0 + $0x5] sm:$0x1 pattern:$0x76325410] }
 0x9be   :  { %v2832_v32 = vsel %vm289_vm3, %v2831_v18, %v4369_v60  ;;  %v10000_v60 = vld [vmem:[#allocation36_spill] sm:$0xff] }
 0x9bf   :  { %v6822_v13 = vpop.eup %6821  ;;  %v8788_v56 = vadd.f32 %v2516_v47, %v2515_v3  ;;  %v2833_v3 = vsel %vm291_vm4, %v2831_v18, %v2832_v32  ;;  %v10001_v32 = vld [vmem:[#allocation40_spill] sm:$0xff] }
 0x9c0   :  { %v2512_v33 = vadd.f32 1.0, %v6822_v13  ;;  %v9996_v13 = vld [vmem:[#allocation31_spill] sm:$0xff]  ;;  %v2834_v47 = vsel %vm293_vm5, %v2831_v18, %v2833_v3  ;;  %v10002_v3 = vld [vmem:[#allocation42_spill] sm:$0xff] }
 0x9c1   :  { %6823 = vtanh.f32 %v8788_v56 }
 0x9c2   :  { %6825 = vrcp.f32 %v2512_v33 }
 0x9cb   :  { %v6824_v15 = vpop.eup %6823 }
 0x9cc   :  { %v6826_v1 = vpop.eup %6825 }
 0x9cd   :  { %v2519_v29 = vmul.f32 %v6826_v1, %v6824_v15  ;;  %v2835_v1 = vsel %vm295_vm6, %v2831_v18, %v2834_v47  ;;  %v9999_v18 = vld [vmem:[#allocation34_spill] sm:$0xff]  ;;  %v10003_v47 = vld [vmem:[#allocation44_spill] sm:$0xff] }
 0x9cf   :  { %v2527_v59 = vrot.slane %v2519_v29, %v7976_v4  ;;  %2534 = vst [vmem:[#allocation3] sm:$0x3] %v2519_v29 }
 0x9d1   :  { %2528 = vrot.lane.b32.xlu0 %v2527_v59, %s6943_s2  ;;  %v10008_v59 = vld [vmem:[#allocation54_spill] sm:$0xff] }
 0x9d6   :  { %v4365_v20 = vld.sshfl [vmem:[#allocation3] sm:$0x33 pattern:$0x76325410] }
 0x9d7   :  { %v2544_v49 = vcombine.high %v4365_v20, %v4365_v20 }
 0x9d9   :  { %2611 = vmatprep.mubr.f32.mxu0 %v2544_v49  ;;  %2682 = vmatprep.mubr.f32.mxu1 %v2544_v49 }
 0x9da   :  { %2612 = vmatmul.mubr.f32.vlgmr.msra.gmra.mrb[22].mxu0 %v4365_v20  ;;  %2683 = vmatmul.mubr.f32.vlgmr.msra.gmra.mrb[22].mxu1 %v4365_v20 }
 0x9db   :  { %5984 = vmatpush1.bf16.msra.mxu1 %v7010_v8  ;;  %5959 = vmatpush3.bf16.msra.mxu0 %v8012_v36 }
 0x9dc   :  { %5986 = vmatprep.subr.bf16.mxu1 %v7012_v9  ;;  %5960 = vmatprep.subr.bf16.mxu0 %v9693_v63 }
 0x9dd   :  { %4713 = vmatprep.mubr.msk.f32.mxu0 %vm6945_vm11, %v9684_v23 }
 0x9df   :  { %5988 = vmatpush1.bf16.msra.mxu1 %v7028_v14  ;;  %5962 = vmatpush3.bf16.msra.mxu0 %v8025_v48 }
 0x9e0   :  { %5990 = vmatprep.subr.bf16.mxu1 %v7037_v17  ;;  %5963 = vmatprep.subr.bf16.mxu0 %v9693_v63 }
 0x9e3   :  { %5992 = vmatpush1.bf16.msra.mxu1 %v7062_v26  ;;  %5965 = vmatpush3.bf16.msra.mxu0 %v8036_v25 }
 0x9e4   :  { %5994 = vmatprep.subr.bf16.mxu1 %v7075_v30  ;;  %5966 = vmatprep.subr.bf16.mxu0 %v9693_v63 }
 0x9e7   :  { %5996 = vmatpush1.bf16.msra.mxu1 %v7111_v42  ;;  %5968 = vmatpush3.bf16.msra.mxu0 %v8055_v45 }
 0x9e8   :  { %5998 = vmatprep.subr.bf16.mxu1 %v7122_v46  ;;  %5969 = vmatprep.subr.bf16.mxu0 %v9693_v63 }
 0x9eb   :  { %6000 = vmatpush1.bf16.msra.mxu1 %v7149_v55  ;;  %5971 = vmatpush3.bf16.msra.mxu0 %v8066_v43 }
 0x9ec   :  { %6002 = vmatprep.subr.bf16.mxu1 %v7158_v58  ;;  %5972 = vmatprep.subr.bf16.mxu0 %v9693_v63 }
 0x9ef   :  { %6004 = vmatpush1.bf16.msra.mxu1 %v7191_v7  ;;  %5974 = vmatpush3.bf16.msra.mxu0 %v8076_v16 }
 0x9f0   :  { %6006 = vmatprep.subr.bf16.mxu1 %v7200_v12  ;;  %5975 = vmatprep.subr.bf16.mxu0 %v9693_v63 }
 0x9f3   :  { %6008 = vmatpush1.bf16.msra.mxu1 %v7236_v28  ;;  %5977 = vmatpush3.bf16.msra.mxu0 %v8093_v19 }
 0x9f4   :  { %6010 = vmatprep.subr.bf16.mxu1 %v7239_v31  ;;  %5978 = vmatprep.subr.bf16.mxu0 %v9693_v63 }
 0x9f7   :  { %6012 = vmatpush1.bf16.msra.mxu1 %v7274_v50  ;;  %5980 = vmatpush3.bf16.msra.mxu0 %v8107_v52 }
 0x9f8   :  { %6014 = vmatprep.subr.bf16.mxu1 %v7278_v53  ;;  %6022 = vmatprep.subr.bf16.mxu0 %v7051_v22 }
 0x9fb   :  { %6016 = vmatpush1.bf16.msra.mxu1 %v7313_v10 }
 0x9fc   :  { %6018 = vmatprep.subr.bf16.mxu1 %v7316_v11 }
 0x9ff   :  { %6020 = vmatpush1.bf16.msra.mxu1 %v9995_v38 }
 0xa00   :  { %6062 = vmatprep.subr.bf16.mxu1 %v9996_v13 }
 0xa43   :  { %v2529_v33 = vpop.permute.xlu0 %2528 }
 0xa44   :  { %v2530_v15 = vrot.slane %v2529_v33, 6 }
 0xa46   :  { %v2531_v29 = vsel %vm332_vm8, %v2530_v15, %v2529_v33  ;;  %v10004_v33 = vld [vmem:[#allocation46_spill] sm:$0xff]  ;;  %v10005_v15 = vld [vmem:[#allocation48_spill] sm:$0xff] }
 0xa47   :  { %2533 = vst.msk [vmem:[#allocation2] sm:$0xf] %vm8039_vm10, %v2531_v29  ;;  %v10007_v29 = vld [vmem:[#allocation52_spill] sm:$0xff] }
 0xa48   :  { %2837 = vst.msk [vmem:[#allocation2] sm:$0x3] %vm298_vm7, %v2835_v1  ;;  %v10006_v1 = vld [vmem:[#allocation50_spill] sm:$0xff] }
 0xa4f   :  { %v8845_v20 = vld.sshfl [vmem:[#allocation2] sm:$0x33 pattern:$0x76325410] }
 0xa50   :  { %v8849_v49 = vcombine.high %v8845_v20, %v8845_v20 }
 0xa52   :  { %4372 = vmatprep.mubr.msk.f32.mxu1 %vm332_vm8, %v8849_v49 }
 0xa53   :  { %2916 = vmatmul.mubr.f32.vlgmr.msra.gmra.mrb[24].mxu1 %v8845_v20 }
 0xa54   :  { %6064 = vmatpush1.bf16.msra.mxu1 %v9998_v5  ;;  %v10009_v5 = vld [vmem:[#allocation56_spill] sm:$0xff] }
 0xa55   :  { %6066 = vmatprep.subr.bf16.mxu1 %v9999_v18  ;;  %v10010_v18 = vld [vmem:[#allocation58_spill] sm:$0xff] }
 0xa58   :  { %6068 = vmatpush1.bf16.msra.mxu1 %v10000_v60  ;;  %v10011_v60 = vld [vmem:[#allocation60_spill] sm:$0xff] }
 0xa59   :  { %6070 = vmatprep.subr.bf16.mxu1 %v10001_v32  ;;  %v10012_v32 = vld [vmem:[#allocation62_spill] sm:$0xff] }
 0xa5c   :  { %6072 = vmatpush1.bf16.msra.mxu1 %v10002_v3  ;;  %v10013_v3 = vld [vmem:[#allocation64_spill] sm:$0xff] }
 0xa5d   :  { %6074 = vmatprep.subr.bf16.mxu1 %v10003_v47  ;;  %v10014_v47 = vld [vmem:[#allocation66_spill] sm:$0xff] }
 0xa60   :  { %6076 = vmatpush1.bf16.msra.mxu1 %v10004_v33  ;;  %v10015_v33 = vld [vmem:[#allocation68_spill] sm:$0xff] }
 0xa61   :  { %6078 = vmatprep.subr.bf16.mxu1 %v10005_v15  ;;  %v10016_v15 = vld [vmem:[#allocation70_spill] sm:$0xff] }
 0xa64   :  { %6080 = vmatpush1.bf16.msra.mxu1 %v10006_v1  ;;  %v10017_v1 = vld [vmem:[#allocation72_spill] sm:$0xff] }
 0xa65   :  { %6082 = vmatprep.subr.bf16.mxu1 %v10007_v29  ;;  %v10018_v29 = vld [vmem:[#allocation74_spill] sm:$0xff] }
 0xa68   :  { %6084 = vmatpush1.bf16.msra.mxu1 %v10008_v59  ;;  %v10019_v59 = vld [vmem:[#allocation76_spill] sm:$0xff] }
 0xa69   :  { %6086 = vmatprep.subr.bf16.mxu1 %v10009_v5  ;;  %v10020_v5 = vld [vmem:[#allocation78_spill] sm:$0xff] }
 0xa6c   :  { %6088 = vmatpush1.bf16.msra.mxu1 %v10010_v18  ;;  %v10021_v18 = vld [vmem:[#allocation80_spill] sm:$0xff] }
 0xa6d   :  { %6090 = vmatprep.subr.bf16.mxu1 %v10011_v60  ;;  %v10022_v60 = vld [vmem:[#allocation82_spill] sm:$0xff] }
 0xa70   :  { %6092 = vmatpush1.bf16.msra.mxu1 %v10012_v32  ;;  %v10023_v32 = vld [vmem:[#allocation84_spill] sm:$0xff] }
 0xa71   :  { %6094 = vmatprep.subr.bf16.mxu1 %v10013_v3  ;;  %v10024_v3 = vld [vmem:[#allocation86_spill] sm:$0xff] }
 0xa74   :  { %6096 = vmatpush1.bf16.msra.mxu1 %v10014_v47  ;;  %v10025_v47 = vld [vmem:[#allocation88_spill] sm:$0xff] }
 0xa75   :  { %6098 = vmatprep.subr.bf16.mxu1 %v10015_v33  ;;  %v10026_v33 = vld [vmem:[#allocation90_spill] sm:$0xff] }
 0xa78   :  { %6100 = vmatpush1.bf16.msra.mxu1 %v10016_v15  ;;  %v10027_v15 = vld [vmem:[#allocation92_spill] sm:$0xff] }
 0xa79   :  { %6102 = vmatprep.subr.bf16.mxu1 %v10017_v1  ;;  %v10028_v1 = vld [vmem:[#allocation94_spill] sm:$0xff] }
 0xa7c   :  { %6104 = vmatpush1.bf16.msra.mxu1 %v10018_v29  ;;  %v10029_v29 = vld [vmem:[#allocation101_spill] sm:$0xff] }
 0xa7d   :  { %6106 = vmatprep.subr.bf16.mxu1 %v10019_v59 }
 0xa80   :  { %6108 = vmatpush1.bf16.msra.mxu1 %v10020_v5 }
 0xa81   :  { %6110 = vmatprep.subr.bf16.mxu1 %v10021_v18 }
 0xa84   :  { %6112 = vmatpush1.bf16.msra.mxu1 %v10022_v60 }
 0xa85   :  { %6114 = vmatprep.subr.bf16.mxu1 %v10023_v32 }
 0xa88   :  { %6116 = vmatpush1.bf16.msra.mxu1 %v10024_v3 }
 0xa89   :  { %6118 = vmatprep.subr.bf16.mxu1 %v10025_v47 }
 0xa8c   :  { %6120 = vmatpush1.bf16.msra.mxu1 %v10026_v33 }
 0xa8d   :  { %6122 = vmatprep.subr.bf16.mxu1 %v10027_v15 }
 0xa90   :  { %6124 = vmatpush1.bf16.msra.mxu1 %v10028_v1 }
 0xa91   :  { %6189 = vmatprep.subr.bf16.mxu1 %v9693_v63 }
 0xaad   :  { %v2613_v59 = vpop.f32.mrb[22].mxu0  ;;  %v2684_v5 = vpop.f32.mrb[22].mxu1 }
 0xaae   :  { %v2614_v18 = vadd.f32 %v2613_v59, %v10029_v29  ;;  %v2615_v13 = vpop.f32.mrb[23].mxu0  ;;  %v2686_v60 = vpop.f32.mrb[23].mxu1  ;;  %v2685_v15 = vadd.f32 %v2684_v5, %v8163_v41 }
 0xaaf   :  { %v2616_v32 = vadd.f32 %v2615_v13, %v9782_v57  ;;  %v2687_v33 = vadd.f32 %v2686_v60, %v9783_v37 }
 0xab0   :  { %v4366_v38 = vmul.f32 -1.442695, %v2614_v18 }
 0xab1   :  { %v4367_v3 = vmul.f32 -1.442695, %v2616_v32  ;;  %v4368_v47 = vmul.f32 -1.442695, %v2687_v33 }
 0xab2   :  { %6827 = vpow2.f32 %v4366_v38 }
 0xab3   :  { %6829 = vpow2.f32 %v4367_v3 }
 0xab4   :  { %6831 = vpow2.f32 %v4368_v47 }
 0xab5   :  { %6833 = vtanh.f32 %v2685_v15  ;;  %v10035_v15 = vld [vmem:[#allocation29_spill] sm:$0xff] }
 0xabc   :  { %v6828_v1 = vpop.eup %6827 }
 0xabd   :  { %v6830_v11 = vpop.eup %6829  ;;  %v2692_v10 = vadd.f32 1.0, %v6828_v1  ;;  %v10036_v1 = vld [vmem:[#allocation30_spill] sm:$0xff] }
 0xabe   :  { %v2698_v22 = vadd.f32 1.0, %v6830_v11  ;;  %v6832_v59 = vpop.eup %6831  ;;  %v10032_v11 = vld [vmem:[#allocation23_spill] sm:$0xff] }
 0xabf   :  { %6835 = vrcp.f32 %v2692_v10  ;;  %v6834_v29 = vpop.eup %6833  ;;  %v2705_v38 = vadd.f32 1.0, %v6832_v59  ;;  %v10031_v10 = vld [vmem:[#allocation22_spill] sm:$0xff]  ;;  %v10038_v59 = vld [vmem:[#allocation35_spill] sm:$0xff] }
 0xac0   :  { %6837 = vrcp.f32 %v2698_v22  ;;  %v10030_v22 = vld [vmem:[#allocation19_spill] sm:$0xff] }
 0xac1   :  { %6839 = vrcp.f32 %v2705_v38  ;;  %v10042_v38 = vld [vmem:[#allocation41_spill] sm:$0xff] }
 0xac9   :  { %v6836_v13 = vpop.eup %6835 }
 0xaca   :  { %v6838_v18 = vpop.eup %6837  ;;  %v2709_v32 = vmul.f32 %v6836_v13, %v6834_v29  ;;  %v10037_v29 = vld [vmem:[#allocation33_spill] sm:$0xff] }
 0xacb   :  { %v2708_v3 = vmul.f32 %v6838_v18, %v8708_v44  ;;  %v6840_v5 = vpop.eup %6839  ;;  %v10033_v44 = vld [vmem:[#allocation26_spill] sm:$0xff]  ;;  %v10039_v13 = vld [vmem:[#allocation37_spill] sm:$0xff] }
 0xacc   :  { %v10040_v18 = vld [vmem:[#allocation38_spill] sm:$0xff] }
 0xacd   :  { %v8891_v60 = vadd.f32 %v2709_v32, %v2708_v3  ;;  %v10041_v32 = vld [vmem:[#allocation39_spill] sm:$0xff] }
 0xace   :  { %v10043_v3 = vld [vmem:[#allocation43_spill] sm:$0xff] }
 0xacf   :  { %6841 = vtanh.f32 %v8891_v60 }
 0xad9   :  { %v6842_v33 = vpop.eup %6841 }
 0xada   :  { %v2712_v47 = vmul.f32 %v6842_v33, %v6840_v5  ;;  %v10044_v5 = vld [vmem:[#allocation45_spill] sm:$0xff]  ;;  %v10045_v33 = vld [vmem:[#allocation47_spill] sm:$0xff] }
 0xadc   :  { %2713 = vst [vmem:[#allocation3 + $0x2] sm:$0x3] %v2712_v47  ;;  %4714 = vmatmul.mubr.f32.vlgmr.msra.gmra.mrb[24].mxu0 %v2712_v47  ;;  %v10046_v47 = vld [vmem:[#allocation49_spill] sm:$0xff] }
 0xadd   :  { %6024 = vmatpush1.bf16.msra.mxu0 %v9701_v21  ;;  %4373 = vmatprep.mubr.msk.f32.mxu0 %vm332_vm8, %v8849_v49  ;;  %v10034_v49 = vld [vmem:[#allocation27_spill] sm:$0xff] }
 0xade   :  { %6026 = vmatprep.subr.bf16.mxu0 %v9702_v40 }
 0xae1   :  { %6028 = vmatpush1.bf16.msra.mxu0 %v9784_v54 }
 0xae2   :  { %6030 = vmatprep.subr.bf16.mxu0 %v9785_v6 }
 0xae5   :  { %6032 = vmatpush1.bf16.msra.mxu0 %v9866_v61 }
 0xae6   :  { %6034 = vmatprep.subr.bf16.mxu0 %v9867_v2 }
 0xae9   :  { %6036 = vmatpush1.bf16.msra.mxu0 %v9868_v27 }
 0xaea   :  { %6038 = vmatprep.subr.bf16.mxu0 %v9948_v34 }
 0xaed   :  { %6040 = vmatpush1.bf16.msra.mxu0 %v9949_v51 }
 0xaee   :  { %6042 = vmatprep.subr.bf16.mxu0 %v9950_v39 }
 0xaf1   :  { %6044 = vmatpush1.bf16.msra.mxu0 %v9951_v35 }
 0xaf2   :  { %6046 = vmatprep.subr.bf16.mxu0 %v10030_v22 }
 0xaf5   :  { %6048 = vmatpush1.bf16.msra.mxu0 %v10031_v10 }
 0xaf6   :  { %6050 = vmatprep.subr.bf16.mxu0 %v10032_v11 }
 0xaf9   :  { %6052 = vmatpush1.bf16.msra.mxu0 %v10033_v44  ;;  %v10072_v44 = vld [vmem:[#allocation9_spill] sm:$0xff] }
 0xafa   :  { %6054 = vmatprep.subr.bf16.mxu0 %v10034_v49 }
 0xafd   :  { %6056 = vmatpush1.bf16.msra.mxu0 %v10035_v15  ;;  %v10067_v15 = vld [vmem:[#allocation91_spill] sm:$0xff] }
 0xafe   :  { %6058 = vmatprep.subr.bf16.mxu0 %v10036_v1  ;;  %v10057_v1 = vld [vmem:[#allocation71_spill] sm:$0xff] }
 0xb01   :  { %6060 = vmatpush1.bf16.msra.mxu0 %v10037_v29  ;;  %v10047_v29 = vld [vmem:[#allocation51_spill] sm:$0xff] }
 0xb02   :  { %6126 = vmatprep.subr.bf16.mxu0 %v10038_v59  ;;  %v10048_v59 = vld [vmem:[#allocation53_spill] sm:$0xff] }
 0xb04   :  { %2987 = vmatmul.mubr.f32.vlgmr.msra.gmra.mrb[26].mxu0 %v8845_v20  ;;  %v10049_v20 = vld [vmem:[#allocation55_spill] sm:$0xff] }
 0xb05   :  { %6128 = vmatpush1.bf16.msra.mxu0 %v10039_v13  ;;  %v10050_v13 = vld [vmem:[#allocation57_spill] sm:$0xff] }
 0xb06   :  { %6130 = vmatprep.subr.bf16.mxu0 %v10040_v18  ;;  %v10051_v18 = vld [vmem:[#allocation59_spill] sm:$0xff] }
 0xb09   :  { %6132 = vmatpush1.bf16.msra.mxu0 %v10041_v32  ;;  %v10052_v32 = vld [vmem:[#allocation61_spill] sm:$0xff] }
 0xb0a   :  { %6134 = vmatprep.subr.bf16.mxu0 %v10042_v38  ;;  %v10053_v38 = vld [vmem:[#allocation63_spill] sm:$0xff] }
 0xb0d   :  { %6136 = vmatpush1.bf16.msra.mxu0 %v10043_v3  ;;  %v10054_v3 = vld [vmem:[#allocation65_spill] sm:$0xff] }
 0xb0e   :  { %6138 = vmatprep.subr.bf16.mxu0 %v10044_v5  ;;  %v10055_v5 = vld [vmem:[#allocation67_spill] sm:$0xff] }
 0xb11   :  { %6140 = vmatpush1.bf16.msra.mxu0 %v10045_v33 }
 0xb12   :  { %6142 = vmatprep.subr.bf16.mxu0 %v10046_v47  ;;  %v10056_v47 = vld [vmem:[#allocation69_spill] sm:$0xff] }
 0xb15   :  { %6144 = vmatpush1.bf16.msra.mxu0 %v10047_v29 }
 0xb16   :  { %6146 = vmatprep.subr.bf16.mxu0 %v10048_v59  ;;  %v10058_v59 = vld [vmem:[#allocation73_spill] sm:$0xff] }
 0xb19   :  { %6148 = vmatpush1.bf16.msra.mxu0 %v10049_v20  ;;  %v10059_v20 = vld [vmem:[#allocation75_spill] sm:$0xff] }
 0xb1a   :  { %6150 = vmatprep.subr.bf16.mxu0 %v10050_v13  ;;  %v10060_v13 = vld [vmem:[#allocation77_spill] sm:$0xff] }
 0xb1d   :  { %6152 = vmatpush1.bf16.msra.mxu0 %v10051_v18  ;;  %v10061_v18 = vld [vmem:[#allocation79_spill] sm:$0xff] }
 0xb1e   :  { %6154 = vmatprep.subr.bf16.mxu0 %v10052_v32  ;;  %v10062_v32 = vld [vmem:[#allocation81_spill] sm:$0xff] }
 0xb21   :  { %6156 = vmatpush1.bf16.msra.mxu0 %v10053_v38  ;;  %v10063_v38 = vld [vmem:[#allocation83_spill] sm:$0xff] }
 0xb22   :  { %6158 = vmatprep.subr.bf16.mxu0 %v10054_v3  ;;  %v10064_v3 = vld [vmem:[#allocation85_spill] sm:$0xff] }
 0xb25   :  { %6160 = vmatpush1.bf16.msra.mxu0 %v10055_v5  ;;  %v10065_v5 = vld [vmem:[#allocation87_spill] sm:$0xff] }
 0xb26   :  { %v2917_v33 = vpop.f32.mrb[24].mxu1  ;;  %6162 = vmatprep.subr.bf16.mxu0 %v10056_v47  ;;  %v10066_v47 = vld [vmem:[#allocation89_spill] sm:$0xff] }
 0xb27   :  { %v2919_v29 = vpop.f32.mrb[25].mxu1 }
 0xb29   :  { %6164 = vmatpush1.bf16.msra.mxu0 %v10057_v1  ;;  %v10068_v1 = vld [vmem:[#allocation93_spill] sm:$0xff] }
 0xb2a   :  { %6166 = vmatprep.subr.bf16.mxu0 %v10058_v59  ;;  %v10069_v59 = vld [vmem:[#allocation95_spill] sm:$0xff] }
 0xb2d   :  { %6168 = vmatpush1.bf16.msra.mxu0 %v10059_v20  ;;  %v10070_v20 = vld [vmem:[#allocation6_spill] sm:$0xff] }
 0xb2e   :  { %6170 = vmatprep.subr.bf16.mxu0 %v10060_v13 }
 0xb31   :  { %6172 = vmatpush1.bf16.msra.mxu0 %v10061_v18  ;;  %v10071_v18 = vld [vmem:[#allocation97_spill] sm:$0xff] }
 0xb32   :  { %6174 = vmatprep.subr.bf16.mxu0 %v10062_v32 }
 0xb35   :  { %6176 = vmatpush1.bf16.msra.mxu0 %v10063_v38 }
 0xb36   :  { %6178 = vmatprep.subr.bf16.mxu0 %v10064_v3 }
 0xb39   :  { %6180 = vmatpush1.bf16.msra.mxu0 %v10065_v5 }
 0xb3a   :  { %6182 = vmatprep.subr.bf16.mxu0 %v10066_v47 }
 0xb3d   :  { %6184 = vmatpush1.bf16.msra.mxu0 %v10067_v15 }
 0xb3e   :  { %6186 = vmatprep.subr.bf16.mxu0 %v10068_v1 }
 0xb41   :  { %6188 = vmatpush1.bf16.msra.mxu0 %v10069_v59 }
 0xb42   :  { %6214 = vmatprep.subr.bf16.mxu0 %v10070_v20 }
 0xbaf   :  { %v2780_v13 = vpop.f32.mrb[24].mxu0 }
 0xbb0   :  { %v2781_v49 = vadd.f32 %v10071_v18, %v2780_v13  ;;  %v4715_v32 = vpop.f32.mrb[25].mxu0  ;;  %v2920_v13 = vadd.f32 %v2919_v29, %v9755_v24 }
 0xbb1   :  { %v10073_v32 = vld [vmem:[#allocation96_spill] sm:$0xff] }
 0xbb2   :  { %v2791_v38 = vrot.slane %v2781_v49, %v10072_v44  ;;  %v2918_v18 = vadd.f32 %v2917_v33, %v10073_v32  ;;  %v4375_v49 = vmul.f32 -1.442695, %v2920_v13 }
 0xbb4   :  { %v2792_v11 = vcombine.high %v2791_v38, %v2791_v38  ;;  %v2799_v3 = vrot.slane %v2791_v38, %v10072_v44  ;;  %v4374_v20 = vmul.f32 -1.442695, %v2918_v18  ;;  %6843 = vpow2.f32 %v4375_v49 }
 0xbb6   :  { %v2806_v5 = vrot.slane %v2792_v11, %v10072_v44  ;;  %2809 = vst.msk [vmem:[%s9372_s7 + $0x4] sm:$0x1] %vm820_vm12, %v2799_v3  ;;  %6845 = vpow2.f32 %v4374_v20 }
 0xbb8   :  { %2810 = vst.msk [vmem:[%s9372_s7 + $0xc] sm:$0x1] %vm820_vm12, %v2806_v5 }
 0xbbe   :  { %v6844_v38 = vpop.eup %6843 }
 0xbbf   :  { %v3002_v44 = vadd.f32 1.0, %v6844_v38 }
 0xbc0   :  { %v6846_v11 = vpop.eup %6845 }
 0xbc1   :  { %v2996_v59 = vadd.f32 1.0, %v6846_v11  ;;  %6847 = vrcp.f32 %v3002_v44 }
 0xbc3   :  { %6849 = vrcp.f32 %v2996_v59 }
 0xbcb   :  { %v6848_v33 = vpop.eup %6847 }
 0xbcc   :  { %v3012_v20 = vmul.f32 %v6848_v33, %v8788_v56  ;;  %v10074_v56 = vld [vmem:[#allocation7_spill] sm:$0xff]  ;;  %v10077_v33 = vld [vmem:[#allocation28_spill] sm:$0xff] }
 0xbcd   :  { %v6850_v13 = vpop.eup %6849 }
 0xbd7   :  { %v2988_v1 = vpop.f32.mrb[26].mxu0 }
 0xbd8   :  { %v2989_v3 = vadd.f32 %v2988_v1, %v7969_v0  ;;  %v2990_v15 = vpop.f32.mrb[27].mxu0 }
 0xbd9   :  { %v2991_v5 = vadd.f32 %v2990_v15, %v9757_v62 }
 0xbda   :  { %6851 = vtanh.f32 %v2989_v3 }
 0xbdb   :  { %v4376_v29 = vmul.f32 -1.442695, %v2991_v5 }
 0xbdd   :  { %6853 = vpow2.f32 %v4376_v29  ;;  %v10076_v29 = vld [vmem:[#allocation25_spill] sm:$0xff] }
 0xbe4   :  { %v6852_v18 = vpop.eup %6851 }
 0xbe5   :  { %v3013_v49 = vmul.f32 %v6852_v18, %v6850_v13  ;;  %v10078_v13 = vld [vmem:[#allocation31_spill] sm:$0xff]  ;;  %v4382_v18 = vld.sshfl [vmem:[%s9366_s0 + $0xe] sm:$0x1 pattern:$0x76325410] }
 0xbe7   :  { %v6854_v32 = vpop.eup %6853  ;;  %v8966_v38 = vadd.f32 %v3013_v49, %v3012_v20  ;;  %v3328_v20 = vrot.slane %v4382_v18, 7  ;;  %v4381_v49 = vld.sshfl [vmem:[%s9366_s0 + $0x6] sm:$0x1 pattern:$0x76325410] }
 0xbe8   :  { %v3009_v11 = vadd.f32 1.0, %v6854_v32  ;;  %v10075_v32 = vld [vmem:[#allocation24_spill] sm:$0xff] }
 0xbe9   :  { %6855 = vtanh.f32 %v8966_v38 }
 0xbea   :  { %6857 = vrcp.f32 %v3009_v11  ;;  %v3329_v11 = vsel %vm289_vm3, %v3328_v20, %v4381_v49 }
 0xbf3   :  { %v6856_v44 = vpop.eup %6855 }
 0xbf4   :  { %v6858_v1 = vpop.eup %6857 }
 0xbf5   :  { %v3016_v59 = vmul.f32 %v6858_v1, %v6856_v44  ;;  %v3330_v44 = vsel %vm291_vm4, %v3328_v20, %v3329_v11  ;;  %v10080_v11 = vld [vmem:[#allocation32_spill] sm:$0xff] }
 0xbf6   :  { %v3331_v1 = vsel %vm293_vm5, %v3328_v20, %v3330_v44  ;;  %v10082_v44 = vld [vmem:[#allocation36_spill] sm:$0xff] }
 0xbf7   :  { %v3024_v15 = vrot.slane %v3016_v59, %v7976_v4  ;;  %3031 = vst [vmem:[#allocation3] sm:$0x3] %v3016_v59 }
 0xbf9   :  { %3025 = vrot.lane.b32.xlu1 %v3024_v15, %s6943_s2 }
 0xbfe   :  { %v4377_v3 = vld.sshfl [vmem:[#allocation3] sm:$0x33 pattern:$0x76325410] }
 0xbff   :  { %v3041_v5 = vcombine.high %v4377_v3, %v4377_v3 }
 0xc01   :  { %3108 = vmatprep.mubr.f32.mxu1 %v3041_v5  ;;  %3179 = vmatprep.mubr.f32.mxu0 %v3041_v5 }
 0xc02   :  { %3109 = vmatmul.mubr.f32.vlgmr.msra.gmra.mrb[26].mxu1 %v4377_v3  ;;  %3180 = vmatmul.mubr.f32.vlgmr.msra.gmra.mrb[28].mxu0 %v4377_v3  ;;  %v3332_v3 = vsel %vm295_vm6, %v3328_v20, %v3331_v1  ;;  %v10081_v20 = vld [vmem:[#allocation34_spill] sm:$0xff]  ;;  %v10083_v1 = vld [vmem:[#allocation40_spill] sm:$0xff] }
 0xc03   :  { %6216 = vmatpush1.bf16.msra.mxu0 %v7010_v8  ;;  %6191 = vmatpush3.bf16.msra.mxu1 %v8012_v36 }
 0xc04   :  { %6218 = vmatprep.subr.bf16.mxu0 %v7012_v9  ;;  %6192 = vmatprep.subr.bf16.mxu1 %v9693_v63 }
 0xc05   :  { %4748 = vmatprep.mubr.msk.f32.mxu1 %vm6945_vm11, %v9684_v23 }
 0xc07   :  { %6220 = vmatpush1.bf16.msra.mxu0 %v7028_v14  ;;  %6194 = vmatpush3.bf16.msra.mxu1 %v8025_v48 }
 0xc08   :  { %6222 = vmatprep.subr.bf16.mxu0 %v7037_v17  ;;  %6195 = vmatprep.subr.bf16.mxu1 %v9693_v63 }
 0xc0b   :  { %6224 = vmatpush1.bf16.msra.mxu0 %v7062_v26  ;;  %6197 = vmatpush3.bf16.msra.mxu1 %v8036_v25 }
 0xc0c   :  { %6226 = vmatprep.subr.bf16.mxu0 %v7075_v30  ;;  %6198 = vmatprep.subr.bf16.mxu1 %v9693_v63 }
 0xc0f   :  { %6228 = vmatpush1.bf16.msra.mxu0 %v7111_v42  ;;  %6200 = vmatpush3.bf16.msra.mxu1 %v8055_v45 }
 0xc10   :  { %6230 = vmatprep.subr.bf16.mxu0 %v7122_v46  ;;  %6201 = vmatprep.subr.bf16.mxu1 %v9693_v63 }
 0xc13   :  { %6232 = vmatpush1.bf16.msra.mxu0 %v7149_v55  ;;  %6203 = vmatpush3.bf16.msra.mxu1 %v8066_v43 }
 0xc14   :  { %6234 = vmatprep.subr.bf16.mxu0 %v7158_v58  ;;  %6204 = vmatprep.subr.bf16.mxu1 %v9693_v63 }
 0xc17   :  { %6236 = vmatpush1.bf16.msra.mxu0 %v7191_v7  ;;  %6206 = vmatpush3.bf16.msra.mxu1 %v8076_v16 }
 0xc18   :  { %6238 = vmatprep.subr.bf16.mxu0 %v7200_v12  ;;  %6207 = vmatprep.subr.bf16.mxu1 %v9693_v63 }
 0xc1b   :  { %6240 = vmatpush1.bf16.msra.mxu0 %v7236_v28  ;;  %6209 = vmatpush3.bf16.msra.mxu1 %v8093_v19 }
 0xc1c   :  { %6242 = vmatprep.subr.bf16.mxu0 %v7239_v31  ;;  %6210 = vmatprep.subr.bf16.mxu1 %v9693_v63 }
 0xc1f   :  { %6244 = vmatpush1.bf16.msra.mxu0 %v7274_v50  ;;  %6212 = vmatpush3.bf16.msra.mxu1 %v8107_v52 }
 0xc20   :  { %6246 = vmatprep.subr.bf16.mxu0 %v7278_v53  ;;  %6254 = vmatprep.subr.bf16.mxu1 %v10074_v56 }
 0xc23   :  { %6248 = vmatpush1.bf16.msra.mxu0 %v10075_v32 }
 0xc24   :  { %6250 = vmatprep.subr.bf16.mxu0 %v10076_v29  ;;  %v10090_v29 = vld [vmem:[#allocation54_spill] sm:$0xff] }
 0xc27   :  { %6252 = vmatpush1.bf16.msra.mxu0 %v10077_v33  ;;  %v10089_v33 = vld [vmem:[#allocation52_spill] sm:$0xff] }
 0xc28   :  { %6294 = vmatprep.subr.bf16.mxu0 %v10078_v13  ;;  %v10088_v13 = vld [vmem:[#allocation50_spill] sm:$0xff] }
 0xc6b   :  { %v3026_v59 = vpop.permute.xlu1 %3025 }
 0xc6c   :  { %v3027_v15 = vrot.slane %v3026_v59, 6 }
 0xc6e   :  { %v3028_v5 = vsel %vm332_vm8, %v3027_v15, %v3026_v59  ;;  %v10084_v59 = vld [vmem:[#allocation42_spill] sm:$0xff]  ;;  %v10085_v15 = vld [vmem:[#allocation44_spill] sm:$0xff] }
 0xc6f   :  { %3030 = vst.msk [vmem:[#allocation2] sm:$0xf] %vm8039_vm10, %v3028_v5  ;;  %v10087_v5 = vld [vmem:[#allocation48_spill] sm:$0xff] }
 0xc70   :  { %3334 = vst.msk [vmem:[#allocation2] sm:$0x3] %vm298_vm7, %v3332_v3  ;;  %v10086_v3 = vld [vmem:[#allocation46_spill] sm:$0xff] }
 0xc77   :  { %v9023_v18 = vld.sshfl [vmem:[#allocation2] sm:$0x33 pattern:$0x76325410] }
 0xc78   :  { %v9027_v49 = vcombine.high %v9023_v18, %v9023_v18 }
 0xc7a   :  { %4384 = vmatprep.mubr.msk.f32.mxu0 %vm332_vm8, %v9027_v49 }
 0xc7b   :  { %3413 = vmatmul.mubr.f32.vlgmr.msra.gmra.mrb[30].mxu0 %v9023_v18 }
 0xc7c   :  { %6296 = vmatpush1.bf16.msra.mxu0 %v10080_v11  ;;  %v10091_v11 = vld [vmem:[#allocation56_spill] sm:$0xff] }
 0xc7d   :  { %6298 = vmatprep.subr.bf16.mxu0 %v10081_v20  ;;  %v10092_v20 = vld [vmem:[#allocation58_spill] sm:$0xff] }
 0xc80   :  { %6300 = vmatpush1.bf16.msra.mxu0 %v10082_v44  ;;  %v10093_v44 = vld [vmem:[#allocation60_spill] sm:$0xff] }
 0xc81   :  { %6302 = vmatprep.subr.bf16.mxu0 %v10083_v1  ;;  %v10094_v1 = vld [vmem:[#allocation62_spill] sm:$0xff] }
 0xc84   :  { %6304 = vmatpush1.bf16.msra.mxu0 %v10084_v59  ;;  %v10095_v59 = vld [vmem:[#allocation64_spill] sm:$0xff] }
 0xc85   :  { %6306 = vmatprep.subr.bf16.mxu0 %v10085_v15  ;;  %v10096_v15 = vld [vmem:[#allocation66_spill] sm:$0xff] }
 0xc88   :  { %6308 = vmatpush1.bf16.msra.mxu0 %v10086_v3  ;;  %v10097_v3 = vld [vmem:[#allocation68_spill] sm:$0xff] }
 0xc89   :  { %6310 = vmatprep.subr.bf16.mxu0 %v10087_v5  ;;  %v10098_v5 = vld [vmem:[#allocation70_spill] sm:$0xff] }
 0xc8c   :  { %6312 = vmatpush1.bf16.msra.mxu0 %v10088_v13  ;;  %v10099_v13 = vld [vmem:[#allocation72_spill] sm:$0xff] }
 0xc8d   :  { %6314 = vmatprep.subr.bf16.mxu0 %v10089_v33  ;;  %v10100_v33 = vld [vmem:[#allocation74_spill] sm:$0xff] }
 0xc90   :  { %6316 = vmatpush1.bf16.msra.mxu0 %v10090_v29  ;;  %v10101_v29 = vld [vmem:[#allocation76_spill] sm:$0xff] }
 0xc91   :  { %6318 = vmatprep.subr.bf16.mxu0 %v10091_v11  ;;  %v10102_v11 = vld [vmem:[#allocation78_spill] sm:$0xff] }
 0xc94   :  { %6320 = vmatpush1.bf16.msra.mxu0 %v10092_v20  ;;  %v10103_v20 = vld [vmem:[#allocation80_spill] sm:$0xff] }
 0xc95   :  { %6322 = vmatprep.subr.bf16.mxu0 %v10093_v44  ;;  %v10104_v44 = vld [vmem:[#allocation82_spill] sm:$0xff] }
 0xc98   :  { %6324 = vmatpush1.bf16.msra.mxu0 %v10094_v1  ;;  %v10105_v1 = vld [vmem:[#allocation84_spill] sm:$0xff] }
 0xc99   :  { %6326 = vmatprep.subr.bf16.mxu0 %v10095_v59  ;;  %v10106_v59 = vld [vmem:[#allocation86_spill] sm:$0xff] }
 0xc9c   :  { %6328 = vmatpush1.bf16.msra.mxu0 %v10096_v15  ;;  %v10107_v15 = vld [vmem:[#allocation88_spill] sm:$0xff] }
 0xc9d   :  { %6330 = vmatprep.subr.bf16.mxu0 %v10097_v3  ;;  %v10108_v3 = vld [vmem:[#allocation90_spill] sm:$0xff] }
 0xca0   :  { %6332 = vmatpush1.bf16.msra.mxu0 %v10098_v5  ;;  %v10109_v5 = vld [vmem:[#allocation92_spill] sm:$0xff] }
 0xca1   :  { %6334 = vmatprep.subr.bf16.mxu0 %v10099_v13  ;;  %v10110_v13 = vld [vmem:[#allocation94_spill] sm:$0xff] }
 0xca4   :  { %6336 = vmatpush1.bf16.msra.mxu0 %v10100_v33  ;;  %v10111_v33 = vld [vmem:[#allocation101_spill] sm:$0xff] }
 0xca5   :  { %6338 = vmatprep.subr.bf16.mxu0 %v10101_v29 }
 0xca8   :  { %6340 = vmatpush1.bf16.msra.mxu0 %v10102_v11 }
 0xca9   :  { %6342 = vmatprep.subr.bf16.mxu0 %v10103_v20 }
 0xcac   :  { %6344 = vmatpush1.bf16.msra.mxu0 %v10104_v44 }
 0xcad   :  { %6346 = vmatprep.subr.bf16.mxu0 %v10105_v1 }
 0xcb0   :  { %6348 = vmatpush1.bf16.msra.mxu0 %v10106_v59 }
 0xcb1   :  { %6350 = vmatprep.subr.bf16.mxu0 %v10107_v15 }
 0xcb4   :  { %6352 = vmatpush1.bf16.msra.mxu0 %v10108_v3 }
 0xcb5   :  { %6354 = vmatprep.subr.bf16.mxu0 %v10109_v5 }
 0xcb8   :  { %6356 = vmatpush1.bf16.msra.mxu0 %v10110_v13 }
 0xcb9   :  { %6421 = vmatprep.subr.bf16.mxu0 %v9693_v63 }
 0xcd5   :  { %v3110_v29 = vpop.f32.mrb[26].mxu1  ;;  %v3181_v11 = vpop.f32.mrb[28].mxu0 }
 0xcd6   :  { %v3111_v20 = vadd.f32 %v3110_v29, %v10111_v33  ;;  %v3112_v32 = vpop.f32.mrb[27].mxu1  ;;  %v3183_v44 = vpop.f32.mrb[29].mxu0  ;;  %v3182_v5 = vadd.f32 %v3181_v11, %v8163_v41 }
 0xcd7   :  { %v3113_v1 = vadd.f32 %v3112_v32, %v9782_v57  ;;  %v3184_v3 = vadd.f32 %v3183_v44, %v9783_v37 }
 0xcd8   :  { %v4378_v56 = vmul.f32 -1.442695, %v3111_v20 }
 0xcd9   :  { %v4379_v59 = vmul.f32 -1.442695, %v3113_v1  ;;  %v4380_v15 = vmul.f32 -1.442695, %v3184_v3  ;;  %v10118_v3 = vld [vmem:[#allocation35_spill] sm:$0xff] }
 0xcda   :  { %6859 = vpow2.f32 %v4378_v56 }
 0xcdb   :  { %6861 = vpow2.f32 %v4379_v59 }
 0xcdc   :  { %6863 = vpow2.f32 %v4380_v15 }
 0xcdd   :  { %6865 = vtanh.f32 %v3182_v5  ;;  %v10119_v5 = vld [vmem:[#allocation37_spill] sm:$0xff] }
 0xce4   :  { %v6860_v13 = vpop.eup %6859 }
 0xce5   :  { %v6862_v53 = vpop.eup %6861  ;;  %v3189_v52 = vadd.f32 1.0, %v6860_v13 }
 0xce6   :  { %v3195_v50 = vadd.f32 1.0, %v6862_v53  ;;  %v6864_v29 = vpop.eup %6863  ;;  %v10113_v53 = vld [vmem:[#allocation26_spill] sm:$0xff] }
 0xce7   :  { %6867 = vrcp.f32 %v3189_v52  ;;  %v6866_v33 = vpop.eup %6865  ;;  %v3202_v56 = vadd.f32 1.0, %v6864_v29  ;;  %v10114_v52 = vld [vmem:[#allocation27_spill] sm:$0xff]  ;;  %v10120_v29 = vld [vmem:[#allocation38_spill] sm:$0xff] }
 0xce8   :  { %6869 = vrcp.f32 %v3195_v50  ;;  %v10112_v50 = vld [vmem:[#allocation23_spill] sm:$0xff] }
 0xce9   :  { %6871 = vrcp.f32 %v3202_v56  ;;  %v10124_v56 = vld [vmem:[#allocation45_spill] sm:$0xff] }
 0xcf1   :  { %v6868_v32 = vpop.eup %6867 }
 0xcf2   :  { %v6870_v20 = vpop.eup %6869  ;;  %v3206_v1 = vmul.f32 %v6868_v32, %v6866_v33  ;;  %v10116_v33 = vld [vmem:[#allocation30_spill] sm:$0xff]  ;;  %v10121_v32 = vld [vmem:[#allocation39_spill] sm:$0xff] }
 0xcf3   :  { %v3205_v59 = vmul.f32 %v6870_v20, %v8891_v60  ;;  %v6872_v11 = vpop.eup %6871  ;;  %v10115_v60 = vld [vmem:[#allocation29_spill] sm:$0xff] }
 0xcf4   :  { %v10122_v20 = vld [vmem:[#allocation41_spill] sm:$0xff] }
 0xcf5   :  { %v9069_v44 = vadd.f32 %v3206_v1, %v3205_v59  ;;  %v10123_v1 = vld [vmem:[#allocation43_spill] sm:$0xff] }
 0xcf6   :  { %v10125_v59 = vld [vmem:[#allocation47_spill] sm:$0xff] }
 0xcf7   :  { %6873 = vtanh.f32 %v9069_v44 }
 0xd01   :  { %v6874_v13 = vpop.eup %6873 }
 0xd02   :  { %v3209_v15 = vmul.f32 %v6874_v13, %v6872_v11  ;;  %v10126_v11 = vld [vmem:[#allocation49_spill] sm:$0xff]  ;;  %v10127_v13 = vld [vmem:[#allocation51_spill] sm:$0xff] }
 0xd04   :  { %3210 = vst [vmem:[#allocation3 + $0x2] sm:$0x3] %v3209_v15  ;;  %4749 = vmatmul.mubr.f32.vlgmr.msra.gmra.mrb[28].mxu1 %v3209_v15  ;;  %v10128_v15 = vld [vmem:[#allocation53_spill] sm:$0xff] }
 0xd05   :  { %6256 = vmatpush1.bf16.msra.mxu1 %v9701_v21  ;;  %4385 = vmatprep.mubr.msk.f32.mxu1 %vm332_vm8, %v9027_v49  ;;  %v10117_v49 = vld [vmem:[#allocation33_spill] sm:$0xff] }
 0xd06   :  { %6258 = vmatprep.subr.bf16.mxu1 %v9702_v40 }
 0xd09   :  { %6260 = vmatpush1.bf16.msra.mxu1 %v9784_v54 }
 0xd0a   :  { %6262 = vmatprep.subr.bf16.mxu1 %v9785_v6 }
 0xd0d   :  { %6264 = vmatpush1.bf16.msra.mxu1 %v9866_v61 }
 0xd0e   :  { %6266 = vmatprep.subr.bf16.mxu1 %v9867_v2 }
 0xd11   :  { %6268 = vmatpush1.bf16.msra.mxu1 %v9868_v27 }
 0xd12   :  { %6270 = vmatprep.subr.bf16.mxu1 %v9948_v34 }
 0xd15   :  { %6272 = vmatpush1.bf16.msra.mxu1 %v9949_v51 }
 0xd16   :  { %6274 = vmatprep.subr.bf16.mxu1 %v9950_v39 }
 0xd19   :  { %6276 = vmatpush1.bf16.msra.mxu1 %v9951_v35 }
 0xd1a   :  { %6278 = vmatprep.subr.bf16.mxu1 %v10030_v22 }
 0xd1d   :  { %6280 = vmatpush1.bf16.msra.mxu1 %v10031_v10 }
 0xd1e   :  { %6282 = vmatprep.subr.bf16.mxu1 %v10112_v50 }
 0xd21   :  { %6284 = vmatpush1.bf16.msra.mxu1 %v10113_v53 }
 0xd22   :  { %6286 = vmatprep.subr.bf16.mxu1 %v10114_v52 }
 0xd25   :  { %6288 = vmatpush1.bf16.msra.mxu1 %v10115_v60 }
 0xd26   :  { %6290 = vmatprep.subr.bf16.mxu1 %v10116_v33  ;;  %v10151_v33 = vld [vmem:[#allocation9_spill] sm:$0xff] }
 0xd29   :  { %6292 = vmatpush1.bf16.msra.mxu1 %v10117_v49 }
 0xd2a   :  { %6358 = vmatprep.subr.bf16.mxu1 %v10118_v3  ;;  %v10137_v3 = vld [vmem:[#allocation71_spill] sm:$0xff] }
 0xd2c   :  { %3484 = vmatmul.mubr.f32.vlgmr.msra.gmra.mrb[30].mxu1 %v9023_v18  ;;  %v10129_v18 = vld [vmem:[#allocation55_spill] sm:$0xff] }
 0xd2d   :  { %6360 = vmatpush1.bf16.msra.mxu1 %v10119_v5  ;;  %v10130_v5 = vld [vmem:[#allocation57_spill] sm:$0xff] }
 0xd2e   :  { %6362 = vmatprep.subr.bf16.mxu1 %v10120_v29  ;;  %v10131_v29 = vld [vmem:[#allocation59_spill] sm:$0xff] }
 0xd31   :  { %6364 = vmatpush1.bf16.msra.mxu1 %v10121_v32  ;;  %v10132_v32 = vld [vmem:[#allocation61_spill] sm:$0xff] }
 0xd32   :  { %6366 = vmatprep.subr.bf16.mxu1 %v10122_v20  ;;  %v10133_v20 = vld [vmem:[#allocation63_spill] sm:$0xff] }
 0xd35   :  { %6368 = vmatpush1.bf16.msra.mxu1 %v10123_v1  ;;  %v10134_v1 = vld [vmem:[#allocation65_spill] sm:$0xff] }
 0xd36   :  { %6370 = vmatprep.subr.bf16.mxu1 %v10124_v56  ;;  %v10135_v56 = vld [vmem:[#allocation67_spill] sm:$0xff] }
 0xd39   :  { %6372 = vmatpush1.bf16.msra.mxu1 %v10125_v59 }
 0xd3a   :  { %6374 = vmatprep.subr.bf16.mxu1 %v10126_v11  ;;  %v10136_v11 = vld [vmem:[#allocation69_spill] sm:$0xff] }
 0xd3d   :  { %6376 = vmatpush1.bf16.msra.mxu1 %v10127_v13 }
 0xd3e   :  { %6378 = vmatprep.subr.bf16.mxu1 %v10128_v15  ;;  %v10138_v15 = vld [vmem:[#allocation73_spill] sm:$0xff] }
 0xd41   :  { %6380 = vmatpush1.bf16.msra.mxu1 %v10129_v18  ;;  %v10139_v18 = vld [vmem:[#allocation75_spill] sm:$0xff] }
 0xd42   :  { %6382 = vmatprep.subr.bf16.mxu1 %v10130_v5  ;;  %v10140_v5 = vld [vmem:[#allocation77_spill] sm:$0xff] }
 0xd45   :  { %6384 = vmatpush1.bf16.msra.mxu1 %v10131_v29  ;;  %v10141_v29 = vld [vmem:[#allocation79_spill] sm:$0xff] }
 0xd46   :  { %6386 = vmatprep.subr.bf16.mxu1 %v10132_v32  ;;  %v10142_v32 = vld [vmem:[#allocation81_spill] sm:$0xff] }
 0xd49   :  { %6388 = vmatpush1.bf16.msra.mxu1 %v10133_v20  ;;  %v10143_v20 = vld [vmem:[#allocation83_spill] sm:$0xff] }
 0xd4a   :  { %6390 = vmatprep.subr.bf16.mxu1 %v10134_v1  ;;  %v10144_v1 = vld [vmem:[#allocation85_spill] sm:$0xff] }
 0xd4d   :  { %6392 = vmatpush1.bf16.msra.mxu1 %v10135_v56  ;;  %v10145_v56 = vld [vmem:[#allocation87_spill] sm:$0xff] }
 0xd4e   :  { %v3414_v59 = vpop.f32.mrb[30].mxu0  ;;  %6394 = vmatprep.subr.bf16.mxu1 %v10136_v11  ;;  %v10146_v11 = vld [vmem:[#allocation91_spill] sm:$0xff] }
 0xd4f   :  { %v3416_v13 = vpop.f32.mrb[31].mxu0 }
 0xd51   :  { %6396 = vmatpush1.bf16.msra.mxu1 %v10137_v3  ;;  %v10147_v3 = vld [vmem:[#allocation93_spill] sm:$0xff] }
 0xd52   :  { %6398 = vmatprep.subr.bf16.mxu1 %v10138_v15  ;;  %v10148_v15 = vld [vmem:[#allocation95_spill] sm:$0xff] }
 0xd55   :  { %6400 = vmatpush1.bf16.msra.mxu1 %v10139_v18  ;;  %v10149_v18 = vld [vmem:[#allocation6_spill] sm:$0xff] }
 0xd56   :  { %6402 = vmatprep.subr.bf16.mxu1 %v10140_v5 }
 0xd59   :  { %6404 = vmatpush1.bf16.msra.mxu1 %v10141_v29  ;;  %v10150_v29 = vld [vmem:[#allocation97_spill] sm:$0xff] }
 0xd5a   :  { %6406 = vmatprep.subr.bf16.mxu1 %v10142_v32 }
 0xd5d   :  { %6408 = vmatpush1.bf16.msra.mxu1 %v10143_v20 }
 0xd5e   :  { %6410 = vmatprep.subr.bf16.mxu1 %v10144_v1 }
 0xd61   :  { %6412 = vmatpush1.bf16.msra.mxu1 %v10145_v56 }
 0xd62   :  { %6414 = vmatprep.subr.bf16.mxu1 %v10066_v47 }
 0xd65   :  { %6416 = vmatpush1.bf16.msra.mxu1 %v10146_v11 }
 0xd66   :  { %6418 = vmatprep.subr.bf16.mxu1 %v10147_v3 }
 0xd69   :  { %6420 = vmatpush1.bf16.msra.mxu1 %v10148_v15 }
 0xd6a   :  { %6446 = vmatprep.subr.bf16.mxu1 %v10149_v18 }
 0xdd7   :  { %v3277_v5 = vpop.f32.mrb[28].mxu1 }
 0xdd8   :  { %v3278_v49 = vadd.f32 %v10150_v29, %v3277_v5  ;;  %v4750_v32 = vpop.f32.mrb[29].mxu1  ;;  %v3417_v5 = vadd.f32 %v3416_v13, %v9755_v24  ;;  %v10152_v29 = vld [vmem:[#allocation96_spill] sm:$0xff] }
 0xdd9   :  { %v3415_v32 = vadd.f32 %v3414_v59, %v10152_v29 }
 0xdda   :  { %v3288_v20 = vrot.slane %v3278_v49, %v10151_v33  ;;  %v4387_v49 = vmul.f32 -1.442695, %v3417_v5 }
 0xddb   :  { %v4386_v18 = vmul.f32 -1.442695, %v3415_v32 }
 0xddc   :  { %v3289_v60 = vcombine.high %v3288_v20, %v3288_v20  ;;  %v3296_v1 = vrot.slane %v3288_v20, %v10151_v33  ;;  %6875 = vpow2.f32 %v4387_v49 }
 0xddd   :  { %6877 = vpow2.f32 %v4386_v18 }
 0xdde   :  { %v3303_v56 = vrot.slane %v3289_v60, %v10151_v33  ;;  %3306 = vst.msk [vmem:[%s9372_s7 + $0x5] sm:$0x1] %vm820_vm12, %v3296_v1 }
 0xde0   :  { %3307 = vst.msk [vmem:[%s9372_s7 + $0xd] sm:$0x1] %vm820_vm12, %v3303_v56 }
 0xde6   :  { %v6876_v20 = vpop.eup %6875 }
 0xde7   :  { %v6878_v60 = vpop.eup %6877  ;;  %v3499_v33 = vadd.f32 1.0, %v6876_v20 }
 0xde8   :  { %v3493_v15 = vadd.f32 1.0, %v6878_v60 }
 0xde9   :  { %6879 = vrcp.f32 %v3499_v33 }
 0xdea   :  { %6881 = vrcp.f32 %v3493_v15 }
 0xdf3   :  { %v6880_v59 = vpop.eup %6879 }
 0xdf4   :  { %v6882_v5 = vpop.eup %6881  ;;  %v3509_v49 = vmul.f32 %v6880_v59, %v8966_v38 }
 0xdff   :  { %v3485_v3 = vpop.f32.mrb[30].mxu1 }
 0xe00   :  { %v3486_v1 = vadd.f32 %v3485_v3, %v7969_v0  ;;  %v3487_v11 = vpop.f32.mrb[31].mxu1 }
 0xe01   :  { %v3488_v56 = vadd.f32 %v3487_v11, %v9757_v62 }
 0xe02   :  { %6883 = vtanh.f32 %v3486_v1 }
 0xe03   :  { %v4388_v13 = vmul.f32 -1.442695, %v3488_v56 }
 0xe05   :  { %6885 = vpow2.f32 %v4388_v13 }
 0xe0c   :  { %v6884_v32 = vpop.eup %6883 }
 0xe0d   :  { %v3510_v18 = vmul.f32 %v6884_v32, %v6882_v5 }
 0xe0f   :  { %v6886_v29 = vpop.eup %6885  ;;  %v9144_v20 = vadd.f32 %v3510_v18, %v3509_v49  ;;  %v10162_v18 = vld [vmem:[#allocation32_spill] sm:$0xff] }
 0xe10   :  { %v3506_v60 = vadd.f32 1.0, %v6886_v29 }
 0xe11   :  { %6887 = vtanh.f32 %v9144_v20 }
 0xe12   :  { %6889 = vrcp.f32 %v3506_v60  ;;  %v10163_v60 = vld [vmem:[#allocation34_spill] sm:$0xff] }
 0xe1b   :  { %v6888_v33 = vpop.eup %6887 }
 0xe1c   :  { %v6890_v3 = vpop.eup %6889 }
 0xe1d   :  { %v3513_v15 = vmul.f32 %v6890_v3, %v6888_v33  ;;  %v10164_v33 = vld [vmem:[#allocation36_spill] sm:$0xff] }
 0xe1e   :  { %v10165_v3 = vld [vmem:[#allocation40_spill] sm:$0xff] }
 0xe1f   :  { %v3521_v11 = vrot.slane %v3513_v15, %v7976_v4  ;;  %3528 = vst [vmem:[#allocation3] sm:$0x3] %v3513_v15  ;;  %v10166_v15 = vld [vmem:[#allocation42_spill] sm:$0xff] }
 0xe21   :  { %3522 = vrot.lane.b32.xlu0 %v3521_v11, %s6943_s2  ;;  %v10167_v11 = vld [vmem:[#allocation44_spill] sm:$0xff] }
 0xe26   :  { %v4389_v1 = vld.sshfl [vmem:[#allocation3] sm:$0x33 pattern:$0x76325410] }
 0xe27   :  { %v3538_v56 = vcombine.high %v4389_v1, %v4389_v1 }
 0xe29   :  { %3605 = vmatprep.mubr.f32.mxu0 %v3538_v56  ;;  %3676 = vmatprep.mubr.f32.mxu1 %v3538_v56  ;;  %v10169_v56 = vld [vmem:[#allocation48_spill] sm:$0xff] }
 0xe2a   :  { %3606 = vmatmul.mubr.f32.vlgmr.msra.gmra.mrb[32].mxu0 %v4389_v1  ;;  %3677 = vmatmul.mubr.f32.vlgmr.msra.gmra.mrb[32].mxu1 %v4389_v1  ;;  %v10168_v1 = vld [vmem:[#allocation46_spill] sm:$0xff] }
 0xe2b   :  { %6448 = vmatpush1.bf16.msra.mxu1 %v7010_v8  ;;  %6423 = vmatpush3.bf16.msra.mxu0 %v8012_v36  ;;  %v10153_v8 = vld [vmem:[#allocation20_spill] sm:$0xff] }
 0xe2c   :  { %6450 = vmatprep.subr.bf16.mxu1 %v7012_v9  ;;  %6424 = vmatprep.subr.bf16.mxu0 %v9693_v63  ;;  %v10154_v9 = vld [vmem:[#allocation100_spill] sm:$0xff] }
 0xe2d   :  { %4783 = vmatprep.mubr.msk.f32.mxu0 %vm6945_vm11, %v9684_v23 }
 0xe2f   :  { %6452 = vmatpush1.bf16.msra.mxu1 %v7028_v14  ;;  %6426 = vmatpush3.bf16.msra.mxu0 %v8025_v48  ;;  %v10155_v14 = vld [vmem:[#allocation21_spill] sm:$0xff] }
 0xe30   :  { %6454 = vmatprep.subr.bf16.mxu1 %v7037_v17  ;;  %6427 = vmatprep.subr.bf16.mxu0 %v9693_v63  ;;  %v10156_v17 = vld [vmem:[#allocation7_spill] sm:$0xff] }
 0xe33   :  { %6456 = vmatpush1.bf16.msra.mxu1 %v7062_v26  ;;  %6429 = vmatpush3.bf16.msra.mxu0 %v8036_v25  ;;  %v10157_v26 = vld [vmem:[#allocation24_spill] sm:$0xff] }
 0xe34   :  { %6458 = vmatprep.subr.bf16.mxu1 %v7075_v30  ;;  %6430 = vmatprep.subr.bf16.mxu0 %v9693_v63  ;;  %v10158_v30 = vld [vmem:[#allocation25_spill] sm:$0xff] }
 0xe37   :  { %6460 = vmatpush1.bf16.msra.mxu1 %v7111_v42  ;;  %6432 = vmatpush3.bf16.msra.mxu0 %v8055_v45  ;;  %v10159_v42 = vld [vmem:[#allocation28_spill] sm:$0xff] }
 0xe38   :  { %6462 = vmatprep.subr.bf16.mxu1 %v7122_v46  ;;  %6433 = vmatprep.subr.bf16.mxu0 %v9693_v63  ;;  %v10160_v46 = vld [vmem:[#allocation31_spill] sm:$0xff] }
 0xe3b   :  { %6464 = vmatpush1.bf16.msra.mxu1 %v7149_v55  ;;  %6435 = vmatpush3.bf16.msra.mxu0 %v8066_v43  ;;  %v4394_v55 = vld.sshfl [vmem:[%s9366_s0 + $0xf] sm:$0x1 pattern:$0x76325410] }
 0xe3c   :  { %6466 = vmatprep.subr.bf16.mxu1 %v7158_v58  ;;  %6436 = vmatprep.subr.bf16.mxu0 %v9693_v63  ;;  %v3825_v58 = vrot.slane %v4394_v55, 7  ;;  %v10177_v55 = vld [vmem:[#allocation64_spill] sm:$0xff] }
 0xe3f   :  { %6468 = vmatpush1.bf16.msra.mxu1 %v7191_v7  ;;  %6438 = vmatpush3.bf16.msra.mxu0 %v8076_v16  ;;  %v4393_v7 = vld.sshfl [vmem:[%s9366_s0 + $0x7] sm:$0x1 pattern:$0x76325410] }
 0xe40   :  { %6470 = vmatprep.subr.bf16.mxu1 %v7200_v12  ;;  %6439 = vmatprep.subr.bf16.mxu0 %v9693_v63  ;;  %v3826_v12 = vsel %vm289_vm3, %v3825_v58, %v4393_v7  ;;  %v10179_v7 = vld [vmem:[#allocation68_spill] sm:$0xff] }
 0xe43   :  { %6472 = vmatpush1.bf16.msra.mxu1 %v7236_v28  ;;  %6441 = vmatpush3.bf16.msra.mxu0 %v8093_v19  ;;  %v3827_v28 = vsel %vm291_vm4, %v3825_v58, %v3826_v12  ;;  %v10180_v12 = vld [vmem:[#allocation70_spill] sm:$0xff] }
 0xe44   :  { %6474 = vmatprep.subr.bf16.mxu1 %v7239_v31  ;;  %6442 = vmatprep.subr.bf16.mxu0 %v9693_v63  ;;  %v3828_v31 = vsel %vm293_vm5, %v3825_v58, %v3827_v28  ;;  %v10181_v28 = vld [vmem:[#allocation72_spill] sm:$0xff] }
 0xe45   :  { %v3829_v13 = vsel %vm295_vm6, %v3825_v58, %v3828_v31  ;;  %v10178_v58 = vld [vmem:[#allocation66_spill] sm:$0xff] }
 0xe46   :  { %v10182_v31 = vld [vmem:[#allocation74_spill] sm:$0xff] }
 0xe47   :  { %6476 = vmatpush1.bf16.msra.mxu1 %v10153_v8  ;;  %6444 = vmatpush3.bf16.msra.mxu0 %v10154_v9  ;;  %v10170_v8 = vld [vmem:[#allocation50_spill] sm:$0xff] }
 0xe48   :  { %6478 = vmatprep.subr.bf16.mxu1 %v10155_v14  ;;  %6486 = vmatprep.subr.bf16.mxu0 %v10156_v17  ;;  %v10171_v14 = vld [vmem:[#allocation52_spill] sm:$0xff]  ;;  %v10172_v17 = vld [vmem:[#allocation54_spill] sm:$0xff] }
 0xe4b   :  { %6480 = vmatpush1.bf16.msra.mxu1 %v10157_v26  ;;  %v10173_v26 = vld [vmem:[#allocation56_spill] sm:$0xff] }
 0xe4c   :  { %6482 = vmatprep.subr.bf16.mxu1 %v10158_v30  ;;  %v10174_v30 = vld [vmem:[#allocation58_spill] sm:$0xff] }
 0xe4f   :  { %6484 = vmatpush1.bf16.msra.mxu1 %v10159_v42  ;;  %v10175_v42 = vld [vmem:[#allocation60_spill] sm:$0xff] }
 0xe50   :  { %6526 = vmatprep.subr.bf16.mxu1 %v10160_v46  ;;  %v10176_v46 = vld [vmem:[#allocation62_spill] sm:$0xff] }
 0xe93   :  { %v3523_v38 = vpop.permute.xlu0 %3522 }
 0xe94   :  { %v3524_v29 = vrot.slane %v3523_v38, 6 }
 0xe96   :  { %v3525_v59 = vsel %vm332_vm8, %v3524_v29, %v3523_v38  ;;  %v10183_v38 = vld [vmem:[#allocation76_spill] sm:$0xff]  ;;  %v10184_v29 = vld [vmem:[#allocation78_spill] sm:$0xff] }
 0xe97   :  { %3527 = vst.msk [vmem:[#allocation2] sm:$0xf] %vm8039_vm10, %v3525_v59  ;;  %v10186_v59 = vld [vmem:[#allocation82_spill] sm:$0xff] }
 0xe98   :  { %3831 = vst.msk [vmem:[#allocation2] sm:$0x3] %vm298_vm7, %v3829_v13  ;;  %v10185_v13 = vld [vmem:[#allocation80_spill] sm:$0xff] }
 0xe9f   :  { %v9201_v32 = vld.sshfl [vmem:[#allocation2] sm:$0x33 pattern:$0x76325410] }
 0xea0   :  { %v9205_v49 = vcombine.high %v9201_v32, %v9201_v32 }
 0xea2   :  { %4396 = vmatprep.mubr.msk.f32.mxu1 %vm332_vm8, %v9205_v49 }
 0xea3   :  { %3910 = vmatmul.mubr.f32.vlgmr.msra.gmra.mrb[34].mxu1 %v9201_v32 }
 0xea4   :  { %6528 = vmatpush1.bf16.msra.mxu1 %v10162_v18  ;;  %v10187_v18 = vld [vmem:[#allocation84_spill] sm:$0xff] }
 0xea5   :  { %6530 = vmatprep.subr.bf16.mxu1 %v10163_v60  ;;  %v10188_v60 = vld [vmem:[#allocation86_spill] sm:$0xff] }
 0xea8   :  { %6532 = vmatpush1.bf16.msra.mxu1 %v10164_v33  ;;  %v10189_v33 = vld [vmem:[#allocation88_spill] sm:$0xff] }
 0xea9   :  { %6534 = vmatprep.subr.bf16.mxu1 %v10165_v3  ;;  %v10190_v3 = vld [vmem:[#allocation90_spill] sm:$0xff] }
 0xeac   :  { %6536 = vmatpush1.bf16.msra.mxu1 %v10166_v15  ;;  %v10191_v15 = vld [vmem:[#allocation92_spill] sm:$0xff] }
 0xead   :  { %6538 = vmatprep.subr.bf16.mxu1 %v10167_v11  ;;  %v10192_v11 = vld [vmem:[#allocation94_spill] sm:$0xff] }
 0xeb0   :  { %6540 = vmatpush1.bf16.msra.mxu1 %v10168_v1 }
 0xeb1   :  { %6542 = vmatprep.subr.bf16.mxu1 %v10169_v56 }
 0xeb4   :  { %6544 = vmatpush1.bf16.msra.mxu1 %v10170_v8  ;;  %v10193_v8 = vld [vmem:[#allocation101_spill] sm:$0xff] }
 0xeb5   :  { %6546 = vmatprep.subr.bf16.mxu1 %v10171_v14 }
 0xeb8   :  { %6548 = vmatpush1.bf16.msra.mxu1 %v10172_v17 }
 0xeb9   :  { %6550 = vmatprep.subr.bf16.mxu1 %v10173_v26 }
 0xebc   :  { %6552 = vmatpush1.bf16.msra.mxu1 %v10174_v30 }
 0xebd   :  { %6554 = vmatprep.subr.bf16.mxu1 %v10175_v42 }
 0xec0   :  { %6556 = vmatpush1.bf16.msra.mxu1 %v10176_v46 }
 0xec1   :  { %6558 = vmatprep.subr.bf16.mxu1 %v10177_v55 }
 0xec4   :  { %6560 = vmatpush1.bf16.msra.mxu1 %v10178_v58 }
 0xec5   :  { %6562 = vmatprep.subr.bf16.mxu1 %v10179_v7 }
 0xec8   :  { %6564 = vmatpush1.bf16.msra.mxu1 %v10180_v12 }
 0xec9   :  { %6566 = vmatprep.subr.bf16.mxu1 %v10181_v28 }
 0xecc   :  { %6568 = vmatpush1.bf16.msra.mxu1 %v10182_v31 }
 0xecd   :  { %6570 = vmatprep.subr.bf16.mxu1 %v10183_v38 }
 0xed0   :  { %6572 = vmatpush1.bf16.msra.mxu1 %v10184_v29 }
 0xed1   :  { %6574 = vmatprep.subr.bf16.mxu1 %v10185_v13 }
 0xed4   :  { %6576 = vmatpush1.bf16.msra.mxu1 %v10186_v59 }
 0xed5   :  { %6578 = vmatprep.subr.bf16.mxu1 %v10187_v18 }
 0xed8   :  { %6580 = vmatpush1.bf16.msra.mxu1 %v10188_v60 }
 0xed9   :  { %6582 = vmatprep.subr.bf16.mxu1 %v10189_v33 }
 0xedc   :  { %6584 = vmatpush1.bf16.msra.mxu1 %v10190_v3 }
 0xedd   :  { %6586 = vmatprep.subr.bf16.mxu1 %v10191_v15 }
 0xee0   :  { %6588 = vmatpush1.bf16.msra.mxu1 %v10192_v11 }
 0xee1   :  { %6653 = vmatprep.subr.bf16.mxu1 %v9693_v63 }
 0xefd   :  { %v3607_v1 = vpop.f32.mrb[32].mxu0  ;;  %v3678_v56 = vpop.f32.mrb[32].mxu1 }
 0xefe   :  { %v3608_v14 = vadd.f32 %v3607_v1, %v10193_v8  ;;  %v3609_v17 = vpop.f32.mrb[33].mxu0  ;;  %v3680_v26 = vpop.f32.mrb[33].mxu1  ;;  %v3679_v7 = vadd.f32 %v3678_v56, %v8163_v41 }
 0xeff   :  { %v3610_v30 = vadd.f32 %v3609_v17, %v9782_v57  ;;  %v3681_v55 = vadd.f32 %v3680_v26, %v9783_v37  ;;  %v10214_v17 = vld [vmem:[#allocation67_spill] sm:$0xff] }
 0xf00   :  { %v4390_v42 = vmul.f32 -1.442695, %v3608_v14  ;;  %v10213_v14 = vld [vmem:[#allocation65_spill] sm:$0xff] }
 0xf01   :  { %v4391_v46 = vmul.f32 -1.442695, %v3610_v30  ;;  %v4392_v58 = vmul.f32 -1.442695, %v3681_v55  ;;  %v10215_v30 = vld [vmem:[#allocation69_spill] sm:$0xff] }
 0xf02   :  { %6891 = vpow2.f32 %v4390_v42  ;;  %v10217_v55 = vld [vmem:[#allocation73_spill] sm:$0xff] }
 0xf03   :  { %6893 = vpow2.f32 %v4391_v46  ;;  %v10216_v46 = vld [vmem:[#allocation71_spill] sm:$0xff] }
 0xf04   :  { %6895 = vpow2.f32 %v4392_v58  ;;  %v10218_v58 = vld [vmem:[#allocation75_spill] sm:$0xff] }
 0xf05   :  { %6897 = vtanh.f32 %v3679_v7  ;;  %v10219_v7 = vld [vmem:[#allocation77_spill] sm:$0xff] }
 0xf0c   :  { %v6892_v12 = vpop.eup %6891 }
 0xf0d   :  { %v6894_v28 = vpop.eup %6893  ;;  %v3686_v31 = vadd.f32 1.0, %v6892_v12  ;;  %v10220_v12 = vld [vmem:[#allocation79_spill] sm:$0xff] }
 0xf0e   :  { %v3692_v38 = vadd.f32 1.0, %v6894_v28  ;;  %v6896_v29 = vpop.eup %6895  ;;  %v10221_v28 = vld [vmem:[#allocation81_spill] sm:$0xff] }
 0xf0f   :  { %6899 = vrcp.f32 %v3686_v31  ;;  %v6898_v13 = vpop.eup %6897  ;;  %v3699_v33 = vadd.f32 1.0, %v6896_v29  ;;  %v10222_v31 = vld [vmem:[#allocation83_spill] sm:$0xff] }
 0xf10   :  { %6901 = vrcp.f32 %v3692_v38  ;;  %v10223_v38 = vld [vmem:[#allocation85_spill] sm:$0xff]  ;;  %v10224_v29 = vld [vmem:[#allocation87_spill] sm:$0xff] }
 0xf11   :  { %6903 = vrcp.f32 %v3699_v33  ;;  %v9307_v33 = vld [vmem:[%s9371_s6] ss:$0 sm:$0xff] }
 0xf19   :  { %v6900_v59 = vpop.eup %6899 }
 0xf1a   :  { %v6902_v18 = vpop.eup %6901  ;;  %v3703_v60 = vmul.f32 %v6900_v59, %v6898_v13  ;;  %v10225_v13 = vld [vmem:[#allocation91_spill] sm:$0xff]  ;;  %v10226_v59 = vld [vmem:[#allocation93_spill] sm:$0xff] }
 0xf1b   :  { %v3702_v3 = vmul.f32 %v6902_v18, %v9069_v44  ;;  %v6904_v11 = vpop.eup %6903  ;;  %v10207_v44 = vld [vmem:[#allocation53_spill] sm:$0xff]  ;;  %v10227_v18 = vld [vmem:[#allocation95_spill] sm:$0xff] }
 0xf1d   :  { %v9247_v15 = vadd.f32 %v3703_v60, %v3702_v3 }
 0xf1f   :  { %6905 = vtanh.f32 %v9247_v15 }
 0xf29   :  { %v6906_v1 = vpop.eup %6905 }
 0xf2a   :  { %v3706_v56 = vmul.f32 %v6906_v1, %v6904_v11  ;;  %v10228_v1 = vld [vmem:[#allocation9_spill] sm:$0xff] }
 0xf2c   :  { %4784 = vmatmul.mubr.f32.vlgmr.msra.gmra.mrb[34].mxu0 %v3706_v56  ;;  %3707 = vst [vmem:[#allocation3 + $0x2] sm:$0x3] %v3706_v56 }
 0xf2d   :  { %6488 = vmatpush1.bf16.msra.mxu0 %v9701_v21  ;;  %4397 = vmatprep.mubr.msk.f32.mxu0 %vm332_vm8, %v9205_v49  ;;  %v10194_v21 = vld [vmem:[#allocation29_spill] sm:$0xff]  ;;  %v10212_v49 = vld [vmem:[#allocation63_spill] sm:$0xff] }
 0xf2e   :  { %6490 = vmatprep.subr.bf16.mxu0 %v9702_v40  ;;  %v10195_v40 = vld [vmem:[#allocation30_spill] sm:$0xff] }
 0xf31   :  { %6492 = vmatpush1.bf16.msra.mxu0 %v9784_v54  ;;  %v10196_v54 = vld [vmem:[#allocation33_spill] sm:$0xff] }
 0xf32   :  { %6494 = vmatprep.subr.bf16.mxu0 %v9785_v6  ;;  %v10197_v6 = vld [vmem:[#allocation35_spill] sm:$0xff] }
 0xf35   :  { %6496 = vmatpush1.bf16.msra.mxu0 %v9866_v61  ;;  %v10198_v61 = vld [vmem:[#allocation37_spill] sm:$0xff] }
 0xf36   :  { %6498 = vmatprep.subr.bf16.mxu0 %v9867_v2  ;;  %v10199_v2 = vld [vmem:[#allocation38_spill] sm:$0xff] }
 0xf39   :  { %6500 = vmatpush1.bf16.msra.mxu0 %v9868_v27  ;;  %v10200_v27 = vld [vmem:[#allocation39_spill] sm:$0xff] }
 0xf3a   :  { %6502 = vmatprep.subr.bf16.mxu0 %v9948_v34  ;;  %v10201_v34 = vld [vmem:[#allocation41_spill] sm:$0xff] }
 0xf3d   :  { %6504 = vmatpush1.bf16.msra.mxu0 %v9949_v51  ;;  %v10202_v51 = vld [vmem:[#allocation43_spill] sm:$0xff] }
 0xf3e   :  { %6506 = vmatprep.subr.bf16.mxu0 %v9950_v39  ;;  %v10203_v39 = vld [vmem:[#allocation45_spill] sm:$0xff] }
 0xf41   :  { %6508 = vmatpush1.bf16.msra.mxu0 %v9951_v35  ;;  %v10204_v35 = vld [vmem:[#allocation47_spill] sm:$0xff] }
 0xf42   :  { %6510 = vmatprep.subr.bf16.mxu0 %v10030_v22  ;;  %v10205_v22 = vld [vmem:[#allocation49_spill] sm:$0xff] }
 0xf45   :  { %6512 = vmatpush1.bf16.msra.mxu0 %v10031_v10  ;;  %v10206_v10 = vld [vmem:[#allocation51_spill] sm:$0xff] }
 0xf46   :  { %6514 = vmatprep.subr.bf16.mxu0 %v10112_v50  ;;  %v10208_v50 = vld [vmem:[#allocation55_spill] sm:$0xff] }
 0xf49   :  { %6516 = vmatpush1.bf16.msra.mxu0 %v10113_v53  ;;  %v10209_v53 = vld [vmem:[#allocation57_spill] sm:$0xff] }
 0xf4a   :  { %6518 = vmatprep.subr.bf16.mxu0 %v10114_v52  ;;  %v10210_v52 = vld [vmem:[#allocation59_spill] sm:$0xff] }
 0xf4d   :  { %6520 = vmatpush1.bf16.msra.mxu0 %v10194_v21 }
 0xf4e   :  { %6522 = vmatprep.subr.bf16.mxu0 %v10195_v40 }
 0xf51   :  { %6524 = vmatpush1.bf16.msra.mxu0 %v10196_v54 }
 0xf52   :  { %6590 = vmatprep.subr.bf16.mxu0 %v10197_v6  ;;  %v10229_v6 = vld [vmem:[#allocation96_spill] sm:$0xff] }
 0xf54   :  { %3981 = vmatmul.mubr.f32.vlgmr.msra.gmra.mrb[36].mxu0 %v9201_v32  ;;  %v10211_v32 = vld [vmem:[#allocation61_spill] sm:$0xff] }
 0xf55   :  { %6592 = vmatpush1.bf16.msra.mxu0 %v10198_v61 }
 0xf56   :  { %6594 = vmatprep.subr.bf16.mxu0 %v10199_v2 }
 0xf59   :  { %6596 = vmatpush1.bf16.msra.mxu0 %v10200_v27 }
 0xf5a   :  { %6598 = vmatprep.subr.bf16.mxu0 %v10201_v34 }
 0xf5d   :  { %6600 = vmatpush1.bf16.msra.mxu0 %v10202_v51 }
 0xf5e   :  { %6602 = vmatprep.subr.bf16.mxu0 %v10203_v39 }
 0xf61   :  { %6604 = vmatpush1.bf16.msra.mxu0 %v10204_v35 }
 0xf62   :  { %6606 = vmatprep.subr.bf16.mxu0 %v10205_v22 }
 0xf65   :  { %6608 = vmatpush1.bf16.msra.mxu0 %v10206_v10 }
 0xf66   :  { %6610 = vmatprep.subr.bf16.mxu0 %v10207_v44 }
 0xf69   :  { %6612 = vmatpush1.bf16.msra.mxu0 %v10208_v50 }
 0xf6a   :  { %6614 = vmatprep.subr.bf16.mxu0 %v10209_v53 }
 0xf6d   :  { %6616 = vmatpush1.bf16.msra.mxu0 %v10210_v52 }
 0xf6e   :  { %6618 = vmatprep.subr.bf16.mxu0 %v10211_v32 }
 0xf71   :  { %6620 = vmatpush1.bf16.msra.mxu0 %v10212_v49 }
 0xf72   :  { %6622 = vmatprep.subr.bf16.mxu0 %v10213_v14 }
 0xf75   :  { %6624 = vmatpush1.bf16.msra.mxu0 %v10214_v17 }
 0xf76   :  { %v3911_v26 = vpop.f32.mrb[34].mxu1  ;;  %6626 = vmatprep.subr.bf16.mxu0 %v10215_v30 }
 0xf77   :  { %v3913_v42 = vpop.f32.mrb[35].mxu1  ;;  %v3912_v61 = vadd.f32 %v3911_v26, %v10229_v6 }
 0xf78   :  { %v3914_v54 = vadd.f32 %v3913_v42, %v9755_v24 }
 0xf79   :  { %6628 = vmatpush1.bf16.msra.mxu0 %v10216_v46  ;;  %v4398_v27 = vmul.f32 -1.442695, %v3912_v61 }
 0xf7a   :  { %6630 = vmatprep.subr.bf16.mxu0 %v10217_v55  ;;  %v4399_v2 = vmul.f32 -1.442695, %v3914_v54 }
 0xf7c   :  { %6907 = vpow2.f32 %v4399_v2 }
 0xf7d   :  { %6632 = vmatpush1.bf16.msra.mxu0 %v10218_v58  ;;  %6909 = vpow2.f32 %v4398_v27 }
 0xf7e   :  { %6634 = vmatprep.subr.bf16.mxu0 %v10219_v7 }
 0xf81   :  { %6636 = vmatpush1.bf16.msra.mxu0 %v10220_v12 }
 0xf82   :  { %6638 = vmatprep.subr.bf16.mxu0 %v10221_v28 }
 0xf85   :  { %6640 = vmatpush1.bf16.msra.mxu0 %v10222_v31 }
 0xf86   :  { %6642 = vmatprep.subr.bf16.mxu0 %v10223_v38  ;;  %v6908_v34 = vpop.eup %6907 }
 0xf87   :  { %v6910_v51 = vpop.eup %6909  ;;  %v3996_v39 = vadd.f32 1.0, %v6908_v34 }
 0xf88   :  { %v3990_v35 = vadd.f32 1.0, %v6910_v51 }
 0xf89   :  { %6644 = vmatpush1.bf16.msra.mxu0 %v10224_v29  ;;  %6911 = vrcp.f32 %v3996_v39 }
 0xf8a   :  { %6646 = vmatprep.subr.bf16.mxu0 %v10066_v47  ;;  %6913 = vrcp.f32 %v3990_v35 }
 0xf8d   :  { %6648 = vmatpush1.bf16.msra.mxu0 %v10225_v13 }
 0xf8e   :  { %6650 = vmatprep.subr.bf16.mxu0 %v10226_v59 }
 0xf91   :  { %6652 = vmatpush1.bf16.msra.mxu0 %v10227_v18 }
 0xf93   :  { %v6912_v53 = vpop.eup %6911 }
 0xf94   :  { %v6914_v52 = vpop.eup %6913  ;;  %v4006_v49 = vmul.f32 %v6912_v53, %v9144_v20 }
 0xfff   :  { %v3774_v60 = vpop.f32.mrb[34].mxu0 }
0x1000   :  { %v3775_v3 = vadd.f32 %v9307_v33, %v3774_v60  ;;  %v4785_v11 = vpop.f32.mrb[35].mxu0 }
0x1002   :  { %v3785_v56 = vrot.slane %v3775_v3, %v10228_v1 }
0x1004   :  { %v3786_v21 = vcombine.high %v3785_v56, %v3785_v56  ;;  %v3793_v47 = vrot.slane %v3785_v56, %v10228_v1 }
0x1006   :  { %v3800_v40 = vrot.slane %v3786_v21, %v10228_v1  ;;  %3803 = vst.msk [vmem:[%s9372_s7 + $0x6] sm:$0x1] %vm820_vm12, %v3793_v47 }
0x1008   :  { %3804 = vst.msk [vmem:[%s9372_s7 + $0xe] sm:$0x1] %vm820_vm12, %v3800_v40 }
0x1027   :  { %v3982_v22 = vpop.f32.mrb[36].mxu0 }
0x1028   :  { %v3983_v10 = vadd.f32 %v3982_v22, %v7969_v0  ;;  %v3984_v44 = vpop.f32.mrb[37].mxu0 }
0x1029   :  { %v3985_v50 = vadd.f32 %v3984_v44, %v9757_v62 }
0x102a   :  { %6915 = vtanh.f32 %v3983_v10 }
0x102b   :  { %v4400_v24 = vmul.f32 -1.442695, %v3985_v50 }
0x102d   :  { %6917 = vpow2.f32 %v4400_v24 }
0x1034   :  { %v6916_v32 = vpop.eup %6915 }
0x1035   :  { %v4007_v14 = vmul.f32 %v6916_v32, %v6914_v52 }
0x1037   :  { %v6918_v17 = vpop.eup %6917  ;;  %v4008_v26 = vadd.f32 %v4007_v14, %v4006_v49 }
0x1038   :  { %v4003_v30 = vadd.f32 1.0, %v6918_v17 }
0x1039   :  { %6919 = vtanh.f32 %v4008_v26  ;;  %4302 = vst [vmem:[#allocation4] sm:$0x3] %v4008_v26 }
0x103a   :  { %6921 = vrcp.f32 %v4003_v30 }
0x1043   :  { %v6920_v0 = vpop.eup %6919 }
0x1044   :  { %v6922_v42 = vpop.eup %6921 }
0x1045   :  { %v4010_v46 = vmul.f32 %v6922_v42, %v6920_v0 }
0x1047   :  { %v4018_v62 = vrot.slane %v4010_v46, %v7976_v4  ;;  %4025 = vst [vmem:[#allocation3] sm:$0x3] %v4010_v46 }
0x1049   :  { %4019 = vrot.lane.b32.xlu1 %v4018_v62, %s6943_s2 }
0x104e   :  { %v4401_v55 = vld.sshfl [vmem:[#allocation3] sm:$0x33 pattern:$0x76325410] }
0x104f   :  { %v4035_v58 = vcombine.high %v4401_v55, %v4401_v55 }
0x1051   :  { %4102 = vmatprep.mubr.f32.mxu1 %v4035_v58  ;;  %4173 = vmatprep.mubr.f32.mxu0 %v4035_v58 }
0x1052   :  { %4103 = vmatmul.mubr.f32.vlgmr.msra.gmra.mrb[36].mxu1 %v4401_v55  ;;  %4174 = vmatmul.mubr.f32.vlgmr.msra.gmra.mrb[38].mxu0 %v4401_v55 }
0x1053   :  { %6655 = vmatpush3.bf16.msra.mxu1 %v8012_v36  ;;  %4818 = vmatprep.mubr.msk.f32.mxu1 %vm6945_vm11, %v9684_v23 }
0x1054   :  { %6656 = vmatprep.subr.bf16.mxu1 %v9693_v63 }
0x1057   :  { %6658 = vmatpush3.bf16.msra.mxu1 %v8025_v48 }
0x1058   :  { %6659 = vmatprep.subr.bf16.mxu1 %v9693_v63 }
0x105b   :  { %6661 = vmatpush3.bf16.msra.mxu1 %v8036_v25 }
0x105c   :  { %6662 = vmatprep.subr.bf16.mxu1 %v9693_v63 }
0x105f   :  { %6664 = vmatpush3.bf16.msra.mxu1 %v8055_v45 }
0x1060   :  { %6665 = vmatprep.subr.bf16.mxu1 %v9693_v63 }
0x1063   :  { %6667 = vmatpush3.bf16.msra.mxu1 %v8066_v43 }
0x1064   :  { %6668 = vmatprep.subr.bf16.mxu1 %v9693_v63 }
0x1067   :  { %6670 = vmatpush3.bf16.msra.mxu1 %v8076_v16 }
0x1068   :  { %6671 = vmatprep.subr.bf16.mxu1 %v9693_v63 }
0x106b   :  { %6673 = vmatpush3.bf16.msra.mxu1 %v8093_v19 }
0x106c   :  { %6674 = vmatprep.subr.bf16.mxu1 %v9693_v63 }
0x106f   :  { %6676 = vmatpush3.bf16.msra.mxu1 %v10154_v9 }
0x10bb   :  { %v4020_v4 = vpop.permute.xlu1 %4019 }
0x10bc   :  { %v4021_v36 = vrot.slane %v4020_v4, 6 }
0x10be   :  { %v4022_v48 = vsel %vm332_vm8, %v4021_v36, %v4020_v4 }
0x10bf   :  { %4024 = vst.msk [vmem:[#allocation2] sm:$0xf] %vm8039_vm10, %v4022_v48 }
0x1125   :  { %v4104_v25 = vpop.f32.mrb[36].mxu1  ;;  %v4175_v45 = vpop.f32.mrb[38].mxu0 }
0x1126   :  { %v4105_v43 = vadd.f32 %v4104_v25, %v10193_v8  ;;  %v4106_v16 = vpop.f32.mrb[37].mxu1  ;;  %v4177_v23 = vpop.f32.mrb[39].mxu0  ;;  %v4176_v12 = vadd.f32 %v4175_v45, %v8163_v41 }
0x1127   :  { %v4107_v20 = vadd.f32 %v4106_v16, %v9782_v57  ;;  %v4178_v63 = vadd.f32 %v4177_v23, %v9783_v37 }
0x1128   :  { %v4402_v19 = vmul.f32 -1.442695, %v4105_v43 }
0x1129   :  { %v4403_v7 = vmul.f32 -1.442695, %v4107_v20  ;;  %v4404_v9 = vmul.f32 -1.442695, %v4178_v63 }
0x112a   :  { %6923 = vpow2.f32 %v4402_v19 }
0x112b   :  { %6925 = vpow2.f32 %v4403_v7 }
0x112c   :  { %6927 = vpow2.f32 %v4404_v9 }
0x112d   :  { %6929 = vtanh.f32 %v4176_v12 }
0x1134   :  { %v6924_v28 = vpop.eup %6923 }
0x1135   :  { %v6926_v5 = vpop.eup %6925  ;;  %v4183_v31 = vadd.f32 1.0, %v6924_v28 }
0x1136   :  { %v4189_v38 = vadd.f32 1.0, %v6926_v5  ;;  %v6928_v8 = vpop.eup %6927 }
0x1137   :  { %6931 = vrcp.f32 %v4183_v31  ;;  %v6930_v29 = vpop.eup %6929  ;;  %v4196_v18 = vadd.f32 1.0, %v6928_v8 }
0x1138   :  { %6933 = vrcp.f32 %v4189_v38 }
0x1139   :  { %6935 = vrcp.f32 %v4196_v18 }
0x1141   :  { %v6932_v57 = vpop.eup %6931 }
0x1142   :  { %v6934_v13 = vpop.eup %6933  ;;  %v4200_v59 = vmul.f32 %v6932_v57, %v6930_v29 }
0x1143   :  { %v4199_v60 = vmul.f32 %v6934_v13, %v9247_v15  ;;  %v6936_v41 = vpop.eup %6935 }
0x1145   :  { %v4201_v37 = vadd.f32 %v4200_v59, %v4199_v60 }
0x1147   :  { %4303 = vst [vmem:[#allocation5] sm:$0x3] %v4201_v37  ;;  %6937 = vtanh.f32 %v4201_v37 }
0x1151   :  { %v6938_v3 = vpop.eup %6937 }
0x1152   :  { %v4203_v11 = vmul.f32 %v6938_v3, %v6936_v41 }
0x1154   :  { %4204 = vst [vmem:[#allocation3 + $0x2] sm:$0x3] %v4203_v11  ;;  %4819 = vmatmul.mubr.f32.vlgmr.msra.gmra.mrb[38].mxu1 %v4203_v11 }
0x1227   :  { %v4271_v56 = vpop.f32.mrb[38].mxu1 }
0x1228   :  { %v4272_v21 = vadd.f32 %v9307_v33, %v4271_v56  ;;  %v4820_v47 = vpop.f32.mrb[39].mxu1 }
0x122a   :  { %v4282_v40 = vrot.slane %v4272_v21, %v10228_v1 }
0x122c   :  { %v4283_v54 = vcombine.high %v4282_v40, %v4282_v40  ;;  %v4290_v6 = vrot.slane %v4282_v40, %v10228_v1 }
0x122e   :  { %v4297_v15 = vrot.slane %v4283_v54, %v10228_v1  ;;  %4300 = vst.msk [vmem:[%s9372_s7 + $0x7] sm:$0x1] %vm820_vm12, %v4290_v6 }
0x1230   :  { %4301 = vst.msk [vmem:[%s9372_s7 + $0xf] sm:$0x1] %vm820_vm12, %v4297_v15 }

</bundles_post_ra>
